<compile_context>
chip_gen: v7x
topology: tpu7x:2x2x1
jax: 0.10.0
libtpu: 0.0.40
codegen_flags: <defaults>
</compile_context>

<pallas_src>
import functools

import jax
import jax.numpy as jnp
from jax import lax
from jax.experimental import pallas as pl
from jax.experimental.pallas import tpu as pltpu


def _srcnn_kernel(p_ref, w1_ref, b1_ref, w2_ref, b2_ref, w3_ref, b3_ref,
                  mask_ref, o_ref, *, H, W, C0, C1, C2, K2, K3):
    """One batch element, fully channel-major (C on sublanes, HW on lanes).

    p_ref   : (1, F1p, HW)  bf16  hoisted layer-1 im2col patches
    w1_ref  : (C1, F1p)     bf16  layer-1 im2col weights
    w2_ref  : (K2*K2, C2, C1) f32 per-tap layer-2 weights
    w3_ref  : (K3*K3, C0, C2) f32 per-tap layer-3 weights
    mask_ref: (K2*K2, HW)   f32  0/1 border masks (shared by layers 2 and 3)
    o_ref   : (1, C0, HW)   f32  lane-dense NCHW output block
    """
    HW = H * W

    # ---------- layer 1: C0 -> C1, 9x9, ReLU (one MXU matmul) ----------
    a1 = jnp.dot(w1_ref[...], p_ref[0],
                 preferred_element_type=jnp.float32)          # (C1, HW) f32
    a1 = jnp.maximum(a1 + b1_ref[...], 0.0)

    def conv_taps(act, w_ref, K, cout):
        """sum_k W_k @ shift_k(act); zero-padded borders via the 0/1 masks."""
        p = K // 2
        acc = jnp.zeros((cout, HW), jnp.float32)
        for k in range(K * K):
            dy, dx = k // K - p, k % K - p
            d = dy * W + dx
            if d == 0:
                shifted = act                                  # center tap
            else:
                # flat lane rotation + border mask == shifted, zero-padded act
                shifted = (pltpu.roll(act, (-d) % HW, 1)
                           * mask_ref[k:k + 1, :])
            acc = acc + jnp.dot(w_ref[k], shifted,
                                preferred_element_type=jnp.float32)
        return acc

    # ---------- layer 2: C1 -> C2, 5x5, ReLU ----------
    a2 = jnp.maximum(conv_taps(a1, w2_ref, K2, C2) + b2_ref[...], 0.0)

    # ---------- layer 3: C2 -> C0, 5x5 (no ReLU) ----------
    out = conv_taps(a2, w3_ref, K3, C0) + b3_ref[...]          # (C0, HW)
    o_ref[0] = out.astype(o_ref.dtype)


def srcnn_pallas(x_nchw, params):
    """SRCNN forward. Input/output are NCHW like the PyTorch module."""
    N, C0, H, W = x_nchw.shape
    HW = H * W
    C1, K1 = params["w1"].shape[0], params["w1"].shape[2]     # 64, 9
    C2, K2 = params["w2"].shape[0], params["w2"].shape[2]     # 32, 5
    K3 = params["w3"].shape[2]                                 # 5
    assert K2 == K3, "layers 2/3 share the shift masks"

    # ---- layer-1 im2col hoisted to XLA (feature order: (kh,kw)-major, ci) ----
    p1 = K1 // 2
    xpad = jnp.pad(x_nchw, ((0, 0), (0, 0), (p1, p1), (p1, p1)))
    cols = [xpad[:, :, kh:kh + H, kw:kw + W]
            for kh in range(K1) for kw in range(K1)]
    patches = jnp.concatenate(cols, axis=1).reshape(N, K1 * K1 * C0, HW)
    F1 = K1 * K1 * C0
    F1p = ((F1 + 127) // 128) * 128                            # 243 -> 256
    patches = jnp.pad(patches, ((0, 0), (0, F1p - F1), (0, 0)))
    patches = patches.astype(jnp.bfloat16)

    # ---- weights / biases ----
    w1m = jnp.transpose(params["w1"], (0, 2, 3, 1)).reshape(C1, F1)
    w1m = jnp.pad(w1m, ((0, 0), (0, F1p - F1))).astype(jnp.bfloat16)
    w2s = jnp.transpose(params["w2"], (2, 3, 0, 1)).reshape(K2 * K2, C2, C1)
    w3s = jnp.transpose(params["w3"], (2, 3, 0, 1)).reshape(K3 * K3, C0, C2)
    w2s = w2s.astype(jnp.float32)
    w3s = w3s.astype(jnp.float32)
    b1 = params["b1"].reshape(C1, 1).astype(jnp.float32)
    b2 = params["b2"].reshape(C2, 1).astype(jnp.float32)
    b3 = params["b3"].reshape(C0, 1).astype(jnp.float32)

    # ---- 0/1 border masks for the 5x5 shifted taps (flattened HW) ----
    p2 = K2 // 2
    yy = jnp.arange(HW) // W
    xx = jnp.arange(HW) % W
    mrows = []
    for kh in range(K2):
        for kw in range(K2):
            dy, dx = kh - p2, kw - p2
            mrows.append((yy + dy >= 0) & (yy + dy < H)
                         & (xx + dx >= 0) & (xx + dx < W))
    masks = jnp.stack(mrows).astype(jnp.float32)               # (25, HW)

    kernel = functools.partial(_srcnn_kernel, H=H, W=W, C0=C0, C1=C1, C2=C2,
                               K2=K2, K3=K3)

    out = pl.pallas_call(
        kernel,
        out_shape=jax.ShapeDtypeStruct((N, C0, HW), jnp.float32),
        grid_spec=pltpu.PrefetchScalarGridSpec(
            num_scalar_prefetch=0,
            grid=(N,),
            in_specs=[
                pl.BlockSpec((1, F1p, HW), lambda n: (n, 0, 0)),
                pl.BlockSpec((C1, F1p), lambda n: (0, 0)),
                pl.BlockSpec((C1, 1), lambda n: (0, 0)),
                pl.BlockSpec((K2 * K2, C2, C1), lambda n: (0, 0, 0)),
                pl.BlockSpec((C2, 1), lambda n: (0, 0)),
                pl.BlockSpec((K3 * K3, C0, C2), lambda n: (0, 0, 0)),
                pl.BlockSpec((C0, 1), lambda n: (0, 0)),
                pl.BlockSpec((K2 * K2, HW), lambda n: (0, 0)),
            ],
            out_specs=pl.BlockSpec((1, C0, HW), lambda n: (n, 0, 0)),
        ),
        compiler_params=pltpu.CompilerParams(
            dimension_semantics=("parallel",)),
    )(patches, w1m, b1, w2s, b2, w3s, b3, masks)

    return out.reshape(N, C0, H, W)


srcnn_forward = jax.jit(srcnn_pallas)


def srcnn_reference(x_nchw, params):
    """Pure-JAX f32 reference (PyTorch Conv2d semantics)."""
    def conv(x, w, b):
        y = lax.conv_general_dilated(
            x, w, window_strides=(1, 1), padding="SAME",
            dimension_numbers=("NCHW", "OIHW", "NCHW"),
            precision=lax.Precision.HIGHEST)
        return y + b.reshape(1, -1, 1, 1)
    out = jax.nn.relu(conv(x_nchw, params["w1"], params["b1"]))
    out = jax.nn.relu(conv(out, params["w2"], params["b2"]))
    return conv(out, params["w3"], params["b3"])


def init_srcnn_params(key, num_channels=3):
    """Deterministic synthetic parameters matching SRCNN.__init__ shapes."""
    ks = jax.random.split(key, 6)

    def conv_init(kw, kb, cout, cin, ksz):
        fan_in = cin * ksz * ksz
        bound = 1.0 / jnp.sqrt(fan_in)
        w = jax.random.uniform(kw, (cout, cin, ksz, ksz),
                               jnp.float32, -bound, bound)
        b = jax.random.uniform(kb, (cout,), jnp.float32, -bound, bound)
        return w, b

    w1, b1 = conv_init(ks[0], ks[1], 64, num_channels, 9)
    w2, b2 = conv_init(ks[2], ks[3], 32, 64, 5)
    w3, b3 = conv_init(ks[4], ks[5], num_channels, 32, 5)
    return dict(w1=w1, b1=b1, w2=w2, b2=b2, w3=w3, b3=b3)


if __name__ == "__main__":
    key = jax.random.PRNGKey(0)
    k_params, k_x = jax.random.split(key)

    num_channels = 3
    params = init_srcnn_params(k_params, num_channels=num_channels)

    # Small deterministic input: batch=2, channels=3, spatial=16x16 (NCHW).
    x = jax.random.normal(k_x, (2, num_channels, 16, 16), jnp.float32)

    y = srcnn_forward(x, params)
    jax.block_until_ready(y)
    assert y.shape == (2, num_channels, 16, 16), y.shape

    # Sanity check against the f32 reference (bf16 layer-1 inputs => loose tol).
    y_ref = srcnn_reference(x, params)
    max_err = float(jnp.max(jnp.abs(y - y_ref)))
    assert max_err < 5e-2, f"max abs error vs reference: {max_err}"

    print("KERNEL_OK")
</pallas_src>

<mosaic_0001>
module attributes {stable_mosaic.version = 11 : i64} {
  func.func @_srcnn_kernel(%arg0: i32, %arg1: memref<1x256x256xbf16, #tpu.memory_space<vmem>>, %arg2: memref<64x256xbf16, #tpu.memory_space<vmem>>, %arg3: memref<64x1xf32, #tpu.memory_space<vmem>>, %arg4: memref<25x32x64xf32, #tpu.memory_space<vmem>>, %arg5: memref<32x1xf32, #tpu.memory_space<vmem>>, %arg6: memref<25x3x32xf32, #tpu.memory_space<vmem>>, %arg7: memref<3x1xf32, #tpu.memory_space<vmem>>, %arg8: memref<25x256xf32, #tpu.memory_space<vmem>>, %arg9: memref<1x3x256xf32, #tpu.memory_space<vmem>>) attributes {dimension_semantics = [#tpu.dimension_semantics<parallel>], iteration_bounds = array<i64: 2>, scalar_prefetch = 0 : i64, scratch_operands = 0 : i64, tpu.core_type = #tpu.core_type<tc>, window_params = [{transform_indices = @transform_0, window_bounds = array<i64: 1, 256, 256>}, {pipeline_mode = #tpu.pipeline_mode<synchronous>, transform_indices = @transform_1, window_bounds = array<i64: 64, 256>}, {pipeline_mode = #tpu.pipeline_mode<synchronous>, transform_indices = @transform_2, window_bounds = array<i64: 64, 1>}, {pipeline_mode = #tpu.pipeline_mode<synchronous>, transform_indices = @transform_3, window_bounds = array<i64: 25, 32, 64>}, {pipeline_mode = #tpu.pipeline_mode<synchronous>, transform_indices = @transform_4, window_bounds = array<i64: 32, 1>}, {pipeline_mode = #tpu.pipeline_mode<synchronous>, transform_indices = @transform_5, window_bounds = array<i64: 25, 3, 32>}, {pipeline_mode = #tpu.pipeline_mode<synchronous>, transform_indices = @transform_6, window_bounds = array<i64: 3, 1>}, {pipeline_mode = #tpu.pipeline_mode<synchronous>, transform_indices = @transform_7, window_bounds = array<i64: 25, 256>}, {transform_indices = @transform_8, window_bounds = array<i64: 1, 3, 256>}]} {
    %c0 = arith.constant 0 : index
    %c0_0 = arith.constant 0 : index
    %0 = vector.load %arg2[%c0, %c0_0] : memref<64x256xbf16, #tpu.memory_space<vmem>>, vector<64x256xbf16>
    %c0_1 = arith.constant 0 : index
    %c0_2 = arith.constant 0 : index
    %c0_3 = arith.constant 0 : index
    %1 = vector.load %arg1[%c0_1, %c0_2, %c0_3] : memref<1x256x256xbf16, #tpu.memory_space<vmem>>, vector<1x256x256xbf16>
    %2 = vector.shape_cast %1 : vector<1x256x256xbf16> to vector<256x256xbf16>
    %cst = arith.constant dense<0.000000e+00> : vector<64x256xf32>
    %3 = tpu.matmul %0, %2, %cst {dimension_numbers = #tpu.dot_dimension_numbers<[1], [0], [0], [1], [0, 0, 1, 1], [], []>} : vector<64x256xbf16>, vector<256x256xbf16>, vector<64x256xf32> -> vector<64x256xf32>
    %c0_4 = arith.constant 0 : index
    %c0_5 = arith.constant 0 : index
    %4 = vector.load %arg3[%c0_4, %c0_5] : memref<64x1xf32, #tpu.memory_space<vmem>>, vector<64x1xf32>
    %5 = vector.broadcast %4 : vector<64x1xf32> to vector<64x256xf32>
    %6 = arith.addf %3, %5 : vector<64x256xf32>
    %cst_6 = arith.constant 0.000000e+00 : f32
    %7 = vector.broadcast %cst_6 : f32 to vector<64x256xf32>
    %8 = arith.maximumf %6, %7 : vector<64x256xf32>
    %cst_7 = arith.constant 0.000000e+00 : f32
    %9 = vector.broadcast %cst_7 : f32 to vector<32x256xf32>
    %c34_i32 = arith.constant 34 : i32
    %10 = tpu.dynamic_rotate %8 by %c34_i32 dim 1 : vector<64x256xf32>, i32 -> vector<64x256xf32>
    %c0_8 = arith.constant 0 : index
    %c0_9 = arith.constant 0 : index
    %11 = vector.load %arg8[%c0_8, %c0_9] : memref<25x256xf32, #tpu.memory_space<vmem>>, vector<1x256xf32>
    %12 = vector.broadcast %11 : vector<1x256xf32> to vector<64x256xf32>
    %13 = arith.mulf %10, %12 : vector<64x256xf32>
    %c0_10 = arith.constant 0 : index
    %c0_11 = arith.constant 0 : index
    %c0_12 = arith.constant 0 : index
    %14 = vector.load %arg4[%c0_10, %c0_11, %c0_12] : memref<25x32x64xf32, #tpu.memory_space<vmem>>, vector<1x32x64xf32>
    %15 = vector.shape_cast %14 : vector<1x32x64xf32> to vector<32x64xf32>
    %cst_13 = arith.constant dense<0.000000e+00> : vector<32x256xf32>
    %16 = tpu.matmul %15, %13, %cst_13 {dimension_numbers = #tpu.dot_dimension_numbers<[1], [0], [0], [1], [0, 0, 1, 1], [], []>} : vector<32x64xf32>, vector<64x256xf32>, vector<32x256xf32> -> vector<32x256xf32>
    %17 = arith.addf %9, %16 : vector<32x256xf32>
    %c33_i32 = arith.constant 33 : i32
    %18 = tpu.dynamic_rotate %8 by %c33_i32 dim 1 : vector<64x256xf32>, i32 -> vector<64x256xf32>
    %c1 = arith.constant 1 : index
    %c0_14 = arith.constant 0 : index
    %19 = vector.load %arg8[%c1, %c0_14] : memref<25x256xf32, #tpu.memory_space<vmem>>, vector<1x256xf32>
    %20 = vector.broadcast %19 : vector<1x256xf32> to vector<64x256xf32>
    %21 = arith.mulf %18, %20 : vector<64x256xf32>
    %c1_15 = arith.constant 1 : index
    %c0_16 = arith.constant 0 : index
    %c0_17 = arith.constant 0 : index
    %22 = vector.load %arg4[%c1_15, %c0_16, %c0_17] : memref<25x32x64xf32, #tpu.memory_space<vmem>>, vector<1x32x64xf32>
    %23 = vector.shape_cast %22 : vector<1x32x64xf32> to vector<32x64xf32>
    %cst_18 = arith.constant dense<0.000000e+00> : vector<32x256xf32>
    %24 = tpu.matmul %23, %21, %cst_18 {dimension_numbers = #tpu.dot_dimension_numbers<[1], [0], [0], [1], [0, 0, 1, 1], [], []>} : vector<32x64xf32>, vector<64x256xf32>, vector<32x256xf32> -> vector<32x256xf32>
    %25 = arith.addf %17, %24 : vector<32x256xf32>
    %c32_i32 = arith.constant 32 : i32
    %26 = tpu.dynamic_rotate %8 by %c32_i32 dim 1 : vector<64x256xf32>, i32 -> vector<64x256xf32>
    %c2 = arith.constant 2 : index
    %c0_19 = arith.constant 0 : index
    %27 = vector.load %arg8[%c2, %c0_19] : memref<25x256xf32, #tpu.memory_space<vmem>>, vector<1x256xf32>
    %28 = vector.broadcast %27 : vector<1x256xf32> to vector<64x256xf32>
    %29 = arith.mulf %26, %28 : vector<64x256xf32>
    %c2_20 = arith.constant 2 : index
    %c0_21 = arith.constant 0 : index
    %c0_22 = arith.constant 0 : index
    %30 = vector.load %arg4[%c2_20, %c0_21, %c0_22] : memref<25x32x64xf32, #tpu.memory_space<vmem>>, vector<1x32x64xf32>
    %31 = vector.shape_cast %30 : vector<1x32x64xf32> to vector<32x64xf32>
    %cst_23 = arith.constant dense<0.000000e+00> : vector<32x256xf32>
    %32 = tpu.matmul %31, %29, %cst_23 {dimension_numbers = #tpu.dot_dimension_numbers<[1], [0], [0], [1], [0, 0, 1, 1], [], []>} : vector<32x64xf32>, vector<64x256xf32>, vector<32x256xf32> -> vector<32x256xf32>
    %33 = arith.addf %25, %32 : vector<32x256xf32>
    %c31_i32 = arith.constant 31 : i32
    %34 = tpu.dynamic_rotate %8 by %c31_i32 dim 1 : vector<64x256xf32>, i32 -> vector<64x256xf32>
    %c3 = arith.constant 3 : index
    %c0_24 = arith.constant 0 : index
    %35 = vector.load %arg8[%c3, %c0_24] : memref<25x256xf32, #tpu.memory_space<vmem>>, vector<1x256xf32>
    %36 = vector.broadcast %35 : vector<1x256xf32> to vector<64x256xf32>
    %37 = arith.mulf %34, %36 : vector<64x256xf32>
    %c3_25 = arith.constant 3 : index
    %c0_26 = arith.constant 0 : index
    %c0_27 = arith.constant 0 : index
    %38 = vector.load %arg4[%c3_25, %c0_26, %c0_27] : memref<25x32x64xf32, #tpu.memory_space<vmem>>, vector<1x32x64xf32>
    %39 = vector.shape_cast %38 : vector<1x32x64xf32> to vector<32x64xf32>
    %cst_28 = arith.constant dense<0.000000e+00> : vector<32x256xf32>
    %40 = tpu.matmul %39, %37, %cst_28 {dimension_numbers = #tpu.dot_dimension_numbers<[1], [0], [0], [1], [0, 0, 1, 1], [], []>} : vector<32x64xf32>, vector<64x256xf32>, vector<32x256xf32> -> vector<32x256xf32>
    %41 = arith.addf %33, %40 : vector<32x256xf32>
    %c30_i32 = arith.constant 30 : i32
    %42 = tpu.dynamic_rotate %8 by %c30_i32 dim 1 : vector<64x256xf32>, i32 -> vector<64x256xf32>
    %c4 = arith.constant 4 : index
    %c0_29 = arith.constant 0 : index
    %43 = vector.load %arg8[%c4, %c0_29] : memref<25x256xf32, #tpu.memory_space<vmem>>, vector<1x256xf32>
    %44 = vector.broadcast %43 : vector<1x256xf32> to vector<64x256xf32>
    %45 = arith.mulf %42, %44 : vector<64x256xf32>
    %c4_30 = arith.constant 4 : index
    %c0_31 = arith.constant 0 : index
    %c0_32 = arith.constant 0 : index
    %46 = vector.load %arg4[%c4_30, %c0_31, %c0_32] : memref<25x32x64xf32, #tpu.memory_space<vmem>>, vector<1x32x64xf32>
    %47 = vector.shape_cast %46 : vector<1x32x64xf32> to vector<32x64xf32>
    %cst_33 = arith.constant dense<0.000000e+00> : vector<32x256xf32>
    %48 = tpu.matmul %47, %45, %cst_33 {dimension_numbers = #tpu.dot_dimension_numbers<[1], [0], [0], [1], [0, 0, 1, 1], [], []>} : vector<32x64xf32>, vector<64x256xf32>, vector<32x256xf32> -> vector<32x256xf32>
    %49 = arith.addf %41, %48 : vector<32x256xf32>
    %c18_i32 = arith.constant 18 : i32
    %50 = tpu.dynamic_rotate %8 by %c18_i32 dim 1 : vector<64x256xf32>, i32 -> vector<64x256xf32>
    %c5 = arith.constant 5 : index
    %c0_34 = arith.constant 0 : index
    %51 = vector.load %arg8[%c5, %c0_34] : memref<25x256xf32, #tpu.memory_space<vmem>>, vector<1x256xf32>
    %52 = vector.broadcast %51 : vector<1x256xf32> to vector<64x256xf32>
    %53 = arith.mulf %50, %52 : vector<64x256xf32>
    %c5_35 = arith.constant 5 : index
    %c0_36 = arith.constant 0 : index
    %c0_37 = arith.constant 0 : index
    %54 = vector.load %arg4[%c5_35, %c0_36, %c0_37] : memref<25x32x64xf32, #tpu.memory_space<vmem>>, vector<1x32x64xf32>
    %55 = vector.shape_cast %54 : vector<1x32x64xf32> to vector<32x64xf32>
    %cst_38 = arith.constant dense<0.000000e+00> : vector<32x256xf32>
    %56 = tpu.matmul %55, %53, %cst_38 {dimension_numbers = #tpu.dot_dimension_numbers<[1], [0], [0], [1], [0, 0, 1, 1], [], []>} : vector<32x64xf32>, vector<64x256xf32>, vector<32x256xf32> -> vector<32x256xf32>
    %57 = arith.addf %49, %56 : vector<32x256xf32>
    %c17_i32 = arith.constant 17 : i32
    %58 = tpu.dynamic_rotate %8 by %c17_i32 dim 1 : vector<64x256xf32>, i32 -> vector<64x256xf32>
    %c6 = arith.constant 6 : index
    %c0_39 = arith.constant 0 : index
    %59 = vector.load %arg8[%c6, %c0_39] : memref<25x256xf32, #tpu.memory_space<vmem>>, vector<1x256xf32>
    %60 = vector.broadcast %59 : vector<1x256xf32> to vector<64x256xf32>
    %61 = arith.mulf %58, %60 : vector<64x256xf32>
    %c6_40 = arith.constant 6 : index
    %c0_41 = arith.constant 0 : index
    %c0_42 = arith.constant 0 : index
    %62 = vector.load %arg4[%c6_40, %c0_41, %c0_42] : memref<25x32x64xf32, #tpu.memory_space<vmem>>, vector<1x32x64xf32>
    %63 = vector.shape_cast %62 : vector<1x32x64xf32> to vector<32x64xf32>
    %cst_43 = arith.constant dense<0.000000e+00> : vector<32x256xf32>
    %64 = tpu.matmul %63, %61, %cst_43 {dimension_numbers = #tpu.dot_dimension_numbers<[1], [0], [0], [1], [0, 0, 1, 1], [], []>} : vector<32x64xf32>, vector<64x256xf32>, vector<32x256xf32> -> vector<32x256xf32>
    %65 = arith.addf %57, %64 : vector<32x256xf32>
    %c16_i32 = arith.constant 16 : i32
    %66 = tpu.dynamic_rotate %8 by %c16_i32 dim 1 : vector<64x256xf32>, i32 -> vector<64x256xf32>
    %c7 = arith.constant 7 : index
    %c0_44 = arith.constant 0 : index
    %67 = vector.load %arg8[%c7, %c0_44] : memref<25x256xf32, #tpu.memory_space<vmem>>, vector<1x256xf32>
    %68 = vector.broadcast %67 : vector<1x256xf32> to vector<64x256xf32>
    %69 = arith.mulf %66, %68 : vector<64x256xf32>
    %c7_45 = arith.constant 7 : index
    %c0_46 = arith.constant 0 : index
    %c0_47 = arith.constant 0 : index
    %70 = vector.load %arg4[%c7_45, %c0_46, %c0_47] : memref<25x32x64xf32, #tpu.memory_space<vmem>>, vector<1x32x64xf32>
    %71 = vector.shape_cast %70 : vector<1x32x64xf32> to vector<32x64xf32>
    %cst_48 = arith.constant dense<0.000000e+00> : vector<32x256xf32>
    %72 = tpu.matmul %71, %69, %cst_48 {dimension_numbers = #tpu.dot_dimension_numbers<[1], [0], [0], [1], [0, 0, 1, 1], [], []>} : vector<32x64xf32>, vector<64x256xf32>, vector<32x256xf32> -> vector<32x256xf32>
    %73 = arith.addf %65, %72 : vector<32x256xf32>
    %c15_i32 = arith.constant 15 : i32
    %74 = tpu.dynamic_rotate %8 by %c15_i32 dim 1 : vector<64x256xf32>, i32 -> vector<64x256xf32>
    %c8 = arith.constant 8 : index
    %c0_49 = arith.constant 0 : index
    %75 = vector.load %arg8[%c8, %c0_49] : memref<25x256xf32, #tpu.memory_space<vmem>>, vector<1x256xf32>
    %76 = vector.broadcast %75 : vector<1x256xf32> to vector<64x256xf32>
    %77 = arith.mulf %74, %76 : vector<64x256xf32>
    %c8_50 = arith.constant 8 : index
    %c0_51 = arith.constant 0 : index
    %c0_52 = arith.constant 0 : index
    %78 = vector.load %arg4[%c8_50, %c0_51, %c0_52] : memref<25x32x64xf32, #tpu.memory_space<vmem>>, vector<1x32x64xf32>
    %79 = vector.shape_cast %78 : vector<1x32x64xf32> to vector<32x64xf32>
    %cst_53 = arith.constant dense<0.000000e+00> : vector<32x256xf32>
    %80 = tpu.matmul %79, %77, %cst_53 {dimension_numbers = #tpu.dot_dimension_numbers<[1], [0], [0], [1], [0, 0, 1, 1], [], []>} : vector<32x64xf32>, vector<64x256xf32>, vector<32x256xf32> -> vector<32x256xf32>
    %81 = arith.addf %73, %80 : vector<32x256xf32>
    %c14_i32 = arith.constant 14 : i32
    %82 = tpu.dynamic_rotate %8 by %c14_i32 dim 1 : vector<64x256xf32>, i32 -> vector<64x256xf32>
    %c9 = arith.constant 9 : index
    %c0_54 = arith.constant 0 : index
    %83 = vector.load %arg8[%c9, %c0_54] : memref<25x256xf32, #tpu.memory_space<vmem>>, vector<1x256xf32>
    %84 = vector.broadcast %83 : vector<1x256xf32> to vector<64x256xf32>
    %85 = arith.mulf %82, %84 : vector<64x256xf32>
    %c9_55 = arith.constant 9 : index
    %c0_56 = arith.constant 0 : index
    %c0_57 = arith.constant 0 : index
    %86 = vector.load %arg4[%c9_55, %c0_56, %c0_57] : memref<25x32x64xf32, #tpu.memory_space<vmem>>, vector<1x32x64xf32>
    %87 = vector.shape_cast %86 : vector<1x32x64xf32> to vector<32x64xf32>
    %cst_58 = arith.constant dense<0.000000e+00> : vector<32x256xf32>
    %88 = tpu.matmul %87, %85, %cst_58 {dimension_numbers = #tpu.dot_dimension_numbers<[1], [0], [0], [1], [0, 0, 1, 1], [], []>} : vector<32x64xf32>, vector<64x256xf32>, vector<32x256xf32> -> vector<32x256xf32>
    %89 = arith.addf %81, %88 : vector<32x256xf32>
    %c2_i32 = arith.constant 2 : i32
    %90 = tpu.dynamic_rotate %8 by %c2_i32 dim 1 : vector<64x256xf32>, i32 -> vector<64x256xf32>
    %c10 = arith.constant 10 : index
    %c0_59 = arith.constant 0 : index
    %91 = vector.load %arg8[%c10, %c0_59] : memref<25x256xf32, #tpu.memory_space<vmem>>, vector<1x256xf32>
    %92 = vector.broadcast %91 : vector<1x256xf32> to vector<64x256xf32>
    %93 = arith.mulf %90, %92 : vector<64x256xf32>
    %c10_60 = arith.constant 10 : index
    %c0_61 = arith.constant 0 : index
    %c0_62 = arith.constant 0 : index
    %94 = vector.load %arg4[%c10_60, %c0_61, %c0_62] : memref<25x32x64xf32, #tpu.memory_space<vmem>>, vector<1x32x64xf32>
    %95 = vector.shape_cast %94 : vector<1x32x64xf32> to vector<32x64xf32>
    %cst_63 = arith.constant dense<0.000000e+00> : vector<32x256xf32>
    %96 = tpu.matmul %95, %93, %cst_63 {dimension_numbers = #tpu.dot_dimension_numbers<[1], [0], [0], [1], [0, 0, 1, 1], [], []>} : vector<32x64xf32>, vector<64x256xf32>, vector<32x256xf32> -> vector<32x256xf32>
    %97 = arith.addf %89, %96 : vector<32x256xf32>
    %c1_i32 = arith.constant 1 : i32
    %98 = tpu.dynamic_rotate %8 by %c1_i32 dim 1 : vector<64x256xf32>, i32 -> vector<64x256xf32>
    %c11 = arith.constant 11 : index
    %c0_64 = arith.constant 0 : index
    %99 = vector.load %arg8[%c11, %c0_64] : memref<25x256xf32, #tpu.memory_space<vmem>>, vector<1x256xf32>
    %100 = vector.broadcast %99 : vector<1x256xf32> to vector<64x256xf32>
    %101 = arith.mulf %98, %100 : vector<64x256xf32>
    %c11_65 = arith.constant 11 : index
    %c0_66 = arith.constant 0 : index
    %c0_67 = arith.constant 0 : index
    %102 = vector.load %arg4[%c11_65, %c0_66, %c0_67] : memref<25x32x64xf32, #tpu.memory_space<vmem>>, vector<1x32x64xf32>
    %103 = vector.shape_cast %102 : vector<1x32x64xf32> to vector<32x64xf32>
    %cst_68 = arith.constant dense<0.000000e+00> : vector<32x256xf32>
    %104 = tpu.matmul %103, %101, %cst_68 {dimension_numbers = #tpu.dot_dimension_numbers<[1], [0], [0], [1], [0, 0, 1, 1], [], []>} : vector<32x64xf32>, vector<64x256xf32>, vector<32x256xf32> -> vector<32x256xf32>
    %105 = arith.addf %97, %104 : vector<32x256xf32>
    %c12 = arith.constant 12 : index
    %c0_69 = arith.constant 0 : index
    %c0_70 = arith.constant 0 : index
    %106 = vector.load %arg4[%c12, %c0_69, %c0_70] : memref<25x32x64xf32, #tpu.memory_space<vmem>>, vector<1x32x64xf32>
    %107 = vector.shape_cast %106 : vector<1x32x64xf32> to vector<32x64xf32>
    %cst_71 = arith.constant dense<0.000000e+00> : vector<32x256xf32>
    %108 = tpu.matmul %107, %8, %cst_71 {dimension_numbers = #tpu.dot_dimension_numbers<[1], [0], [0], [1], [0, 0, 1, 1], [], []>} : vector<32x64xf32>, vector<64x256xf32>, vector<32x256xf32> -> vector<32x256xf32>
    %109 = arith.addf %105, %108 : vector<32x256xf32>
    %c255_i32 = arith.constant 255 : i32
    %110 = tpu.dynamic_rotate %8 by %c255_i32 dim 1 : vector<64x256xf32>, i32 -> vector<64x256xf32>
    %c13 = arith.constant 13 : index
    %c0_72 = arith.constant 0 : index
    %111 = vector.load %arg8[%c13, %c0_72] : memref<25x256xf32, #tpu.memory_space<vmem>>, vector<1x256xf32>
    %112 = vector.broadcast %111 : vector<1x256xf32> to vector<64x256xf32>
    %113 = arith.mulf %110, %112 : vector<64x256xf32>
    %c13_73 = arith.constant 13 : index
    %c0_74 = arith.constant 0 : index
    %c0_75 = arith.constant 0 : index
    %114 = vector.load %arg4[%c13_73, %c0_74, %c0_75] : memref<25x32x64xf32, #tpu.memory_space<vmem>>, vector<1x32x64xf32>
    %115 = vector.shape_cast %114 : vector<1x32x64xf32> to vector<32x64xf32>
    %cst_76 = arith.constant dense<0.000000e+00> : vector<32x256xf32>
    %116 = tpu.matmul %115, %113, %cst_76 {dimension_numbers = #tpu.dot_dimension_numbers<[1], [0], [0], [1], [0, 0, 1, 1], [], []>} : vector<32x64xf32>, vector<64x256xf32>, vector<32x256xf32> -> vector<32x256xf32>
    %117 = arith.addf %109, %116 : vector<32x256xf32>
    %c254_i32 = arith.constant 254 : i32
    %118 = tpu.dynamic_rotate %8 by %c254_i32 dim 1 : vector<64x256xf32>, i32 -> vector<64x256xf32>
    %c14 = arith.constant 14 : index
    %c0_77 = arith.constant 0 : index
    %119 = vector.load %arg8[%c14, %c0_77] : memref<25x256xf32, #tpu.memory_space<vmem>>, vector<1x256xf32>
    %120 = vector.broadcast %119 : vector<1x256xf32> to vector<64x256xf32>
    %121 = arith.mulf %118, %120 : vector<64x256xf32>
    %c14_78 = arith.constant 14 : index
    %c0_79 = arith.constant 0 : index
    %c0_80 = arith.constant 0 : index
    %122 = vector.load %arg4[%c14_78, %c0_79, %c0_80] : memref<25x32x64xf32, #tpu.memory_space<vmem>>, vector<1x32x64xf32>
    %123 = vector.shape_cast %122 : vector<1x32x64xf32> to vector<32x64xf32>
    %cst_81 = arith.constant dense<0.000000e+00> : vector<32x256xf32>
    %124 = tpu.matmul %123, %121, %cst_81 {dimension_numbers = #tpu.dot_dimension_numbers<[1], [0], [0], [1], [0, 0, 1, 1], [], []>} : vector<32x64xf32>, vector<64x256xf32>, vector<32x256xf32> -> vector<32x256xf32>
    %125 = arith.addf %117, %124 : vector<32x256xf32>
    %c242_i32 = arith.constant 242 : i32
    %126 = tpu.dynamic_rotate %8 by %c242_i32 dim 1 : vector<64x256xf32>, i32 -> vector<64x256xf32>
    %c15 = arith.constant 15 : index
    %c0_82 = arith.constant 0 : index
    %127 = vector.load %arg8[%c15, %c0_82] : memref<25x256xf32, #tpu.memory_space<vmem>>, vector<1x256xf32>
    %128 = vector.broadcast %127 : vector<1x256xf32> to vector<64x256xf32>
    %129 = arith.mulf %126, %128 : vector<64x256xf32>
    %c15_83 = arith.constant 15 : index
    %c0_84 = arith.constant 0 : index
    %c0_85 = arith.constant 0 : index
    %130 = vector.load %arg4[%c15_83, %c0_84, %c0_85] : memref<25x32x64xf32, #tpu.memory_space<vmem>>, vector<1x32x64xf32>
    %131 = vector.shape_cast %130 : vector<1x32x64xf32> to vector<32x64xf32>
    %cst_86 = arith.constant dense<0.000000e+00> : vector<32x256xf32>
    %132 = tpu.matmul %131, %129, %cst_86 {dimension_numbers = #tpu.dot_dimension_numbers<[1], [0], [0], [1], [0, 0, 1, 1], [], []>} : vector<32x64xf32>, vector<64x256xf32>, vector<32x256xf32> -> vector<32x256xf32>
    %133 = arith.addf %125, %132 : vector<32x256xf32>
    %c241_i32 = arith.constant 241 : i32
    %134 = tpu.dynamic_rotate %8 by %c241_i32 dim 1 : vector<64x256xf32>, i32 -> vector<64x256xf32>
    %c16 = arith.constant 16 : index
    %c0_87 = arith.constant 0 : index
    %135 = vector.load %arg8[%c16, %c0_87] : memref<25x256xf32, #tpu.memory_space<vmem>>, vector<1x256xf32>
    %136 = vector.broadcast %135 : vector<1x256xf32> to vector<64x256xf32>
    %137 = arith.mulf %134, %136 : vector<64x256xf32>
    %c16_88 = arith.constant 16 : index
    %c0_89 = arith.constant 0 : index
    %c0_90 = arith.constant 0 : index
    %138 = vector.load %arg4[%c16_88, %c0_89, %c0_90] : memref<25x32x64xf32, #tpu.memory_space<vmem>>, vector<1x32x64xf32>
    %139 = vector.shape_cast %138 : vector<1x32x64xf32> to vector<32x64xf32>
    %cst_91 = arith.constant dense<0.000000e+00> : vector<32x256xf32>
    %140 = tpu.matmul %139, %137, %cst_91 {dimension_numbers = #tpu.dot_dimension_numbers<[1], [0], [0], [1], [0, 0, 1, 1], [], []>} : vector<32x64xf32>, vector<64x256xf32>, vector<32x256xf32> -> vector<32x256xf32>
    %141 = arith.addf %133, %140 : vector<32x256xf32>
    %c240_i32 = arith.constant 240 : i32
    %142 = tpu.dynamic_rotate %8 by %c240_i32 dim 1 : vector<64x256xf32>, i32 -> vector<64x256xf32>
    %c17 = arith.constant 17 : index
    %c0_92 = arith.constant 0 : index
    %143 = vector.load %arg8[%c17, %c0_92] : memref<25x256xf32, #tpu.memory_space<vmem>>, vector<1x256xf32>
    %144 = vector.broadcast %143 : vector<1x256xf32> to vector<64x256xf32>
    %145 = arith.mulf %142, %144 : vector<64x256xf32>
    %c17_93 = arith.constant 17 : index
    %c0_94 = arith.constant 0 : index
    %c0_95 = arith.constant 0 : index
    %146 = vector.load %arg4[%c17_93, %c0_94, %c0_95] : memref<25x32x64xf32, #tpu.memory_space<vmem>>, vector<1x32x64xf32>
    %147 = vector.shape_cast %146 : vector<1x32x64xf32> to vector<32x64xf32>
    %cst_96 = arith.constant dense<0.000000e+00> : vector<32x256xf32>
    %148 = tpu.matmul %147, %145, %cst_96 {dimension_numbers = #tpu.dot_dimension_numbers<[1], [0], [0], [1], [0, 0, 1, 1], [], []>} : vector<32x64xf32>, vector<64x256xf32>, vector<32x256xf32> -> vector<32x256xf32>
    %149 = arith.addf %141, %148 : vector<32x256xf32>
    %c239_i32 = arith.constant 239 : i32
    %150 = tpu.dynamic_rotate %8 by %c239_i32 dim 1 : vector<64x256xf32>, i32 -> vector<64x256xf32>
    %c18 = arith.constant 18 : index
    %c0_97 = arith.constant 0 : index
    %151 = vector.load %arg8[%c18, %c0_97] : memref<25x256xf32, #tpu.memory_space<vmem>>, vector<1x256xf32>
    %152 = vector.broadcast %151 : vector<1x256xf32> to vector<64x256xf32>
    %153 = arith.mulf %150, %152 : vector<64x256xf32>
    %c18_98 = arith.constant 18 : index
    %c0_99 = arith.constant 0 : index
    %c0_100 = arith.constant 0 : index
    %154 = vector.load %arg4[%c18_98, %c0_99, %c0_100] : memref<25x32x64xf32, #tpu.memory_space<vmem>>, vector<1x32x64xf32>
    %155 = vector.shape_cast %154 : vector<1x32x64xf32> to vector<32x64xf32>
    %cst_101 = arith.constant dense<0.000000e+00> : vector<32x256xf32>
    %156 = tpu.matmul %155, %153, %cst_101 {dimension_numbers = #tpu.dot_dimension_numbers<[1], [0], [0], [1], [0, 0, 1, 1], [], []>} : vector<32x64xf32>, vector<64x256xf32>, vector<32x256xf32> -> vector<32x256xf32>
    %157 = arith.addf %149, %156 : vector<32x256xf32>
    %c238_i32 = arith.constant 238 : i32
    %158 = tpu.dynamic_rotate %8 by %c238_i32 dim 1 : vector<64x256xf32>, i32 -> vector<64x256xf32>
    %c19 = arith.constant 19 : index
    %c0_102 = arith.constant 0 : index
    %159 = vector.load %arg8[%c19, %c0_102] : memref<25x256xf32, #tpu.memory_space<vmem>>, vector<1x256xf32>
    %160 = vector.broadcast %159 : vector<1x256xf32> to vector<64x256xf32>
    %161 = arith.mulf %158, %160 : vector<64x256xf32>
    %c19_103 = arith.constant 19 : index
    %c0_104 = arith.constant 0 : index
    %c0_105 = arith.constant 0 : index
    %162 = vector.load %arg4[%c19_103, %c0_104, %c0_105] : memref<25x32x64xf32, #tpu.memory_space<vmem>>, vector<1x32x64xf32>
    %163 = vector.shape_cast %162 : vector<1x32x64xf32> to vector<32x64xf32>
    %cst_106 = arith.constant dense<0.000000e+00> : vector<32x256xf32>
    %164 = tpu.matmul %163, %161, %cst_106 {dimension_numbers = #tpu.dot_dimension_numbers<[1], [0], [0], [1], [0, 0, 1, 1], [], []>} : vector<32x64xf32>, vector<64x256xf32>, vector<32x256xf32> -> vector<32x256xf32>
    %165 = arith.addf %157, %164 : vector<32x256xf32>
    %c226_i32 = arith.constant 226 : i32
    %166 = tpu.dynamic_rotate %8 by %c226_i32 dim 1 : vector<64x256xf32>, i32 -> vector<64x256xf32>
    %c20 = arith.constant 20 : index
    %c0_107 = arith.constant 0 : index
    %167 = vector.load %arg8[%c20, %c0_107] : memref<25x256xf32, #tpu.memory_space<vmem>>, vector<1x256xf32>
    %168 = vector.broadcast %167 : vector<1x256xf32> to vector<64x256xf32>
    %169 = arith.mulf %166, %168 : vector<64x256xf32>
    %c20_108 = arith.constant 20 : index
    %c0_109 = arith.constant 0 : index
    %c0_110 = arith.constant 0 : index
    %170 = vector.load %arg4[%c20_108, %c0_109, %c0_110] : memref<25x32x64xf32, #tpu.memory_space<vmem>>, vector<1x32x64xf32>
    %171 = vector.shape_cast %170 : vector<1x32x64xf32> to vector<32x64xf32>
    %cst_111 = arith.constant dense<0.000000e+00> : vector<32x256xf32>
    %172 = tpu.matmul %171, %169, %cst_111 {dimension_numbers = #tpu.dot_dimension_numbers<[1], [0], [0], [1], [0, 0, 1, 1], [], []>} : vector<32x64xf32>, vector<64x256xf32>, vector<32x256xf32> -> vector<32x256xf32>
    %173 = arith.addf %165, %172 : vector<32x256xf32>
    %c225_i32 = arith.constant 225 : i32
    %174 = tpu.dynamic_rotate %8 by %c225_i32 dim 1 : vector<64x256xf32>, i32 -> vector<64x256xf32>
    %c21 = arith.constant 21 : index
    %c0_112 = arith.constant 0 : index
    %175 = vector.load %arg8[%c21, %c0_112] : memref<25x256xf32, #tpu.memory_space<vmem>>, vector<1x256xf32>
    %176 = vector.broadcast %175 : vector<1x256xf32> to vector<64x256xf32>
    %177 = arith.mulf %174, %176 : vector<64x256xf32>
    %c21_113 = arith.constant 21 : index
    %c0_114 = arith.constant 0 : index
    %c0_115 = arith.constant 0 : index
    %178 = vector.load %arg4[%c21_113, %c0_114, %c0_115] : memref<25x32x64xf32, #tpu.memory_space<vmem>>, vector<1x32x64xf32>
    %179 = vector.shape_cast %178 : vector<1x32x64xf32> to vector<32x64xf32>
    %cst_116 = arith.constant dense<0.000000e+00> : vector<32x256xf32>
    %180 = tpu.matmul %179, %177, %cst_116 {dimension_numbers = #tpu.dot_dimension_numbers<[1], [0], [0], [1], [0, 0, 1, 1], [], []>} : vector<32x64xf32>, vector<64x256xf32>, vector<32x256xf32> -> vector<32x256xf32>
    %181 = arith.addf %173, %180 : vector<32x256xf32>
    %c224_i32 = arith.constant 224 : i32
    %182 = tpu.dynamic_rotate %8 by %c224_i32 dim 1 : vector<64x256xf32>, i32 -> vector<64x256xf32>
    %c22 = arith.constant 22 : index
    %c0_117 = arith.constant 0 : index
    %183 = vector.load %arg8[%c22, %c0_117] : memref<25x256xf32, #tpu.memory_space<vmem>>, vector<1x256xf32>
    %184 = vector.broadcast %183 : vector<1x256xf32> to vector<64x256xf32>
    %185 = arith.mulf %182, %184 : vector<64x256xf32>
    %c22_118 = arith.constant 22 : index
    %c0_119 = arith.constant 0 : index
    %c0_120 = arith.constant 0 : index
    %186 = vector.load %arg4[%c22_118, %c0_119, %c0_120] : memref<25x32x64xf32, #tpu.memory_space<vmem>>, vector<1x32x64xf32>
    %187 = vector.shape_cast %186 : vector<1x32x64xf32> to vector<32x64xf32>
    %cst_121 = arith.constant dense<0.000000e+00> : vector<32x256xf32>
    %188 = tpu.matmul %187, %185, %cst_121 {dimension_numbers = #tpu.dot_dimension_numbers<[1], [0], [0], [1], [0, 0, 1, 1], [], []>} : vector<32x64xf32>, vector<64x256xf32>, vector<32x256xf32> -> vector<32x256xf32>
    %189 = arith.addf %181, %188 : vector<32x256xf32>
    %c223_i32 = arith.constant 223 : i32
    %190 = tpu.dynamic_rotate %8 by %c223_i32 dim 1 : vector<64x256xf32>, i32 -> vector<64x256xf32>
    %c23 = arith.constant 23 : index
    %c0_122 = arith.constant 0 : index
    %191 = vector.load %arg8[%c23, %c0_122] : memref<25x256xf32, #tpu.memory_space<vmem>>, vector<1x256xf32>
    %192 = vector.broadcast %191 : vector<1x256xf32> to vector<64x256xf32>
    %193 = arith.mulf %190, %192 : vector<64x256xf32>
    %c23_123 = arith.constant 23 : index
    %c0_124 = arith.constant 0 : index
    %c0_125 = arith.constant 0 : index
    %194 = vector.load %arg4[%c23_123, %c0_124, %c0_125] : memref<25x32x64xf32, #tpu.memory_space<vmem>>, vector<1x32x64xf32>
    %195 = vector.shape_cast %194 : vector<1x32x64xf32> to vector<32x64xf32>
    %cst_126 = arith.constant dense<0.000000e+00> : vector<32x256xf32>
    %196 = tpu.matmul %195, %193, %cst_126 {dimension_numbers = #tpu.dot_dimension_numbers<[1], [0], [0], [1], [0, 0, 1, 1], [], []>} : vector<32x64xf32>, vector<64x256xf32>, vector<32x256xf32> -> vector<32x256xf32>
    %197 = arith.addf %189, %196 : vector<32x256xf32>
    %c222_i32 = arith.constant 222 : i32
    %198 = tpu.dynamic_rotate %8 by %c222_i32 dim 1 : vector<64x256xf32>, i32 -> vector<64x256xf32>
    %c24 = arith.constant 24 : index
    %c0_127 = arith.constant 0 : index
    %199 = vector.load %arg8[%c24, %c0_127] : memref<25x256xf32, #tpu.memory_space<vmem>>, vector<1x256xf32>
    %200 = vector.broadcast %199 : vector<1x256xf32> to vector<64x256xf32>
    %201 = arith.mulf %198, %200 : vector<64x256xf32>
    %c24_128 = arith.constant 24 : index
    %c0_129 = arith.constant 0 : index
    %c0_130 = arith.constant 0 : index
    %202 = vector.load %arg4[%c24_128, %c0_129, %c0_130] : memref<25x32x64xf32, #tpu.memory_space<vmem>>, vector<1x32x64xf32>
    %203 = vector.shape_cast %202 : vector<1x32x64xf32> to vector<32x64xf32>
    %cst_131 = arith.constant dense<0.000000e+00> : vector<32x256xf32>
    %204 = tpu.matmul %203, %201, %cst_131 {dimension_numbers = #tpu.dot_dimension_numbers<[1], [0], [0], [1], [0, 0, 1, 1], [], []>} : vector<32x64xf32>, vector<64x256xf32>, vector<32x256xf32> -> vector<32x256xf32>
    %205 = arith.addf %197, %204 : vector<32x256xf32>
    %c0_132 = arith.constant 0 : index
    %c0_133 = arith.constant 0 : index
    %206 = vector.load %arg5[%c0_132, %c0_133] : memref<32x1xf32, #tpu.memory_space<vmem>>, vector<32x1xf32>
    %207 = vector.broadcast %206 : vector<32x1xf32> to vector<32x256xf32>
    %208 = arith.addf %205, %207 : vector<32x256xf32>
    %cst_134 = arith.constant 0.000000e+00 : f32
    %209 = vector.broadcast %cst_134 : f32 to vector<32x256xf32>
    %210 = arith.maximumf %208, %209 : vector<32x256xf32>
    %cst_135 = arith.constant 0.000000e+00 : f32
    %211 = vector.broadcast %cst_135 : f32 to vector<3x256xf32>
    %c34_i32_136 = arith.constant 34 : i32
    %212 = tpu.dynamic_rotate %210 by %c34_i32_136 dim 1 : vector<32x256xf32>, i32 -> vector<32x256xf32>
    %c0_137 = arith.constant 0 : index
    %c0_138 = arith.constant 0 : index
    %213 = vector.load %arg8[%c0_137, %c0_138] : memref<25x256xf32, #tpu.memory_space<vmem>>, vector<1x256xf32>
    %214 = vector.broadcast %213 : vector<1x256xf32> to vector<32x256xf32>
    %215 = arith.mulf %212, %214 : vector<32x256xf32>
    %c0_139 = arith.constant 0 : index
    %c0_140 = arith.constant 0 : index
    %c0_141 = arith.constant 0 : index
    %216 = vector.load %arg6[%c0_139, %c0_140, %c0_141] : memref<25x3x32xf32, #tpu.memory_space<vmem>>, vector<1x3x32xf32>
    %217 = vector.shape_cast %216 : vector<1x3x32xf32> to vector<3x32xf32>
    %cst_142 = arith.constant dense<0.000000e+00> : vector<3x256xf32>
    %218 = tpu.matmul %217, %215, %cst_142 {dimension_numbers = #tpu.dot_dimension_numbers<[1], [0], [0], [1], [0, 0, 1, 1], [], []>} : vector<3x32xf32>, vector<32x256xf32>, vector<3x256xf32> -> vector<3x256xf32>
    %219 = arith.addf %211, %218 : vector<3x256xf32>
    %c33_i32_143 = arith.constant 33 : i32
    %220 = tpu.dynamic_rotate %210 by %c33_i32_143 dim 1 : vector<32x256xf32>, i32 -> vector<32x256xf32>
    %c1_144 = arith.constant 1 : index
    %c0_145 = arith.constant 0 : index
    %221 = vector.load %arg8[%c1_144, %c0_145] : memref<25x256xf32, #tpu.memory_space<vmem>>, vector<1x256xf32>
    %222 = vector.broadcast %221 : vector<1x256xf32> to vector<32x256xf32>
    %223 = arith.mulf %220, %222 : vector<32x256xf32>
    %c1_146 = arith.constant 1 : index
    %c0_147 = arith.constant 0 : index
    %c0_148 = arith.constant 0 : index
    %224 = vector.load %arg6[%c1_146, %c0_147, %c0_148] : memref<25x3x32xf32, #tpu.memory_space<vmem>>, vector<1x3x32xf32>
    %225 = vector.shape_cast %224 : vector<1x3x32xf32> to vector<3x32xf32>
    %cst_149 = arith.constant dense<0.000000e+00> : vector<3x256xf32>
    %226 = tpu.matmul %225, %223, %cst_149 {dimension_numbers = #tpu.dot_dimension_numbers<[1], [0], [0], [1], [0, 0, 1, 1], [], []>} : vector<3x32xf32>, vector<32x256xf32>, vector<3x256xf32> -> vector<3x256xf32>
    %227 = arith.addf %219, %226 : vector<3x256xf32>
    %c32_i32_150 = arith.constant 32 : i32
    %228 = tpu.dynamic_rotate %210 by %c32_i32_150 dim 1 : vector<32x256xf32>, i32 -> vector<32x256xf32>
    %c2_151 = arith.constant 2 : index
    %c0_152 = arith.constant 0 : index
    %229 = vector.load %arg8[%c2_151, %c0_152] : memref<25x256xf32, #tpu.memory_space<vmem>>, vector<1x256xf32>
    %230 = vector.broadcast %229 : vector<1x256xf32> to vector<32x256xf32>
    %231 = arith.mulf %228, %230 : vector<32x256xf32>
    %c2_153 = arith.constant 2 : index
    %c0_154 = arith.constant 0 : index
    %c0_155 = arith.constant 0 : index
    %232 = vector.load %arg6[%c2_153, %c0_154, %c0_155] : memref<25x3x32xf32, #tpu.memory_space<vmem>>, vector<1x3x32xf32>
    %233 = vector.shape_cast %232 : vector<1x3x32xf32> to vector<3x32xf32>
    %cst_156 = arith.constant dense<0.000000e+00> : vector<3x256xf32>
    %234 = tpu.matmul %233, %231, %cst_156 {dimension_numbers = #tpu.dot_dimension_numbers<[1], [0], [0], [1], [0, 0, 1, 1], [], []>} : vector<3x32xf32>, vector<32x256xf32>, vector<3x256xf32> -> vector<3x256xf32>
    %235 = arith.addf %227, %234 : vector<3x256xf32>
    %c31_i32_157 = arith.constant 31 : i32
    %236 = tpu.dynamic_rotate %210 by %c31_i32_157 dim 1 : vector<32x256xf32>, i32 -> vector<32x256xf32>
    %c3_158 = arith.constant 3 : index
    %c0_159 = arith.constant 0 : index
    %237 = vector.load %arg8[%c3_158, %c0_159] : memref<25x256xf32, #tpu.memory_space<vmem>>, vector<1x256xf32>
    %238 = vector.broadcast %237 : vector<1x256xf32> to vector<32x256xf32>
    %239 = arith.mulf %236, %238 : vector<32x256xf32>
    %c3_160 = arith.constant 3 : index
    %c0_161 = arith.constant 0 : index
    %c0_162 = arith.constant 0 : index
    %240 = vector.load %arg6[%c3_160, %c0_161, %c0_162] : memref<25x3x32xf32, #tpu.memory_space<vmem>>, vector<1x3x32xf32>
    %241 = vector.shape_cast %240 : vector<1x3x32xf32> to vector<3x32xf32>
    %cst_163 = arith.constant dense<0.000000e+00> : vector<3x256xf32>
    %242 = tpu.matmul %241, %239, %cst_163 {dimension_numbers = #tpu.dot_dimension_numbers<[1], [0], [0], [1], [0, 0, 1, 1], [], []>} : vector<3x32xf32>, vector<32x256xf32>, vector<3x256xf32> -> vector<3x256xf32>
    %243 = arith.addf %235, %242 : vector<3x256xf32>
    %c30_i32_164 = arith.constant 30 : i32
    %244 = tpu.dynamic_rotate %210 by %c30_i32_164 dim 1 : vector<32x256xf32>, i32 -> vector<32x256xf32>
    %c4_165 = arith.constant 4 : index
    %c0_166 = arith.constant 0 : index
    %245 = vector.load %arg8[%c4_165, %c0_166] : memref<25x256xf32, #tpu.memory_space<vmem>>, vector<1x256xf32>
    %246 = vector.broadcast %245 : vector<1x256xf32> to vector<32x256xf32>
    %247 = arith.mulf %244, %246 : vector<32x256xf32>
    %c4_167 = arith.constant 4 : index
    %c0_168 = arith.constant 0 : index
    %c0_169 = arith.constant 0 : index
    %248 = vector.load %arg6[%c4_167, %c0_168, %c0_169] : memref<25x3x32xf32, #tpu.memory_space<vmem>>, vector<1x3x32xf32>
    %249 = vector.shape_cast %248 : vector<1x3x32xf32> to vector<3x32xf32>
    %cst_170 = arith.constant dense<0.000000e+00> : vector<3x256xf32>
    %250 = tpu.matmul %249, %247, %cst_170 {dimension_numbers = #tpu.dot_dimension_numbers<[1], [0], [0], [1], [0, 0, 1, 1], [], []>} : vector<3x32xf32>, vector<32x256xf32>, vector<3x256xf32> -> vector<3x256xf32>
    %251 = arith.addf %243, %250 : vector<3x256xf32>
    %c18_i32_171 = arith.constant 18 : i32
    %252 = tpu.dynamic_rotate %210 by %c18_i32_171 dim 1 : vector<32x256xf32>, i32 -> vector<32x256xf32>
    %c5_172 = arith.constant 5 : index
    %c0_173 = arith.constant 0 : index
    %253 = vector.load %arg8[%c5_172, %c0_173] : memref<25x256xf32, #tpu.memory_space<vmem>>, vector<1x256xf32>
    %254 = vector.broadcast %253 : vector<1x256xf32> to vector<32x256xf32>
    %255 = arith.mulf %252, %254 : vector<32x256xf32>
    %c5_174 = arith.constant 5 : index
    %c0_175 = arith.constant 0 : index
    %c0_176 = arith.constant 0 : index
    %256 = vector.load %arg6[%c5_174, %c0_175, %c0_176] : memref<25x3x32xf32, #tpu.memory_space<vmem>>, vector<1x3x32xf32>
    %257 = vector.shape_cast %256 : vector<1x3x32xf32> to vector<3x32xf32>
    %cst_177 = arith.constant dense<0.000000e+00> : vector<3x256xf32>
    %258 = tpu.matmul %257, %255, %cst_177 {dimension_numbers = #tpu.dot_dimension_numbers<[1], [0], [0], [1], [0, 0, 1, 1], [], []>} : vector<3x32xf32>, vector<32x256xf32>, vector<3x256xf32> -> vector<3x256xf32>
    %259 = arith.addf %251, %258 : vector<3x256xf32>
    %c17_i32_178 = arith.constant 17 : i32
    %260 = tpu.dynamic_rotate %210 by %c17_i32_178 dim 1 : vector<32x256xf32>, i32 -> vector<32x256xf32>
    %c6_179 = arith.constant 6 : index
    %c0_180 = arith.constant 0 : index
    %261 = vector.load %arg8[%c6_179, %c0_180] : memref<25x256xf32, #tpu.memory_space<vmem>>, vector<1x256xf32>
    %262 = vector.broadcast %261 : vector<1x256xf32> to vector<32x256xf32>
    %263 = arith.mulf %260, %262 : vector<32x256xf32>
    %c6_181 = arith.constant 6 : index
    %c0_182 = arith.constant 0 : index
    %c0_183 = arith.constant 0 : index
    %264 = vector.load %arg6[%c6_181, %c0_182, %c0_183] : memref<25x3x32xf32, #tpu.memory_space<vmem>>, vector<1x3x32xf32>
    %265 = vector.shape_cast %264 : vector<1x3x32xf32> to vector<3x32xf32>
    %cst_184 = arith.constant dense<0.000000e+00> : vector<3x256xf32>
    %266 = tpu.matmul %265, %263, %cst_184 {dimension_numbers = #tpu.dot_dimension_numbers<[1], [0], [0], [1], [0, 0, 1, 1], [], []>} : vector<3x32xf32>, vector<32x256xf32>, vector<3x256xf32> -> vector<3x256xf32>
    %267 = arith.addf %259, %266 : vector<3x256xf32>
    %c16_i32_185 = arith.constant 16 : i32
    %268 = tpu.dynamic_rotate %210 by %c16_i32_185 dim 1 : vector<32x256xf32>, i32 -> vector<32x256xf32>
    %c7_186 = arith.constant 7 : index
    %c0_187 = arith.constant 0 : index
    %269 = vector.load %arg8[%c7_186, %c0_187] : memref<25x256xf32, #tpu.memory_space<vmem>>, vector<1x256xf32>
    %270 = vector.broadcast %269 : vector<1x256xf32> to vector<32x256xf32>
    %271 = arith.mulf %268, %270 : vector<32x256xf32>
    %c7_188 = arith.constant 7 : index
    %c0_189 = arith.constant 0 : index
    %c0_190 = arith.constant 0 : index
    %272 = vector.load %arg6[%c7_188, %c0_189, %c0_190] : memref<25x3x32xf32, #tpu.memory_space<vmem>>, vector<1x3x32xf32>
    %273 = vector.shape_cast %272 : vector<1x3x32xf32> to vector<3x32xf32>
    %cst_191 = arith.constant dense<0.000000e+00> : vector<3x256xf32>
    %274 = tpu.matmul %273, %271, %cst_191 {dimension_numbers = #tpu.dot_dimension_numbers<[1], [0], [0], [1], [0, 0, 1, 1], [], []>} : vector<3x32xf32>, vector<32x256xf32>, vector<3x256xf32> -> vector<3x256xf32>
    %275 = arith.addf %267, %274 : vector<3x256xf32>
    %c15_i32_192 = arith.constant 15 : i32
    %276 = tpu.dynamic_rotate %210 by %c15_i32_192 dim 1 : vector<32x256xf32>, i32 -> vector<32x256xf32>
    %c8_193 = arith.constant 8 : index
    %c0_194 = arith.constant 0 : index
    %277 = vector.load %arg8[%c8_193, %c0_194] : memref<25x256xf32, #tpu.memory_space<vmem>>, vector<1x256xf32>
    %278 = vector.broadcast %277 : vector<1x256xf32> to vector<32x256xf32>
    %279 = arith.mulf %276, %278 : vector<32x256xf32>
    %c8_195 = arith.constant 8 : index
    %c0_196 = arith.constant 0 : index
    %c0_197 = arith.constant 0 : index
    %280 = vector.load %arg6[%c8_195, %c0_196, %c0_197] : memref<25x3x32xf32, #tpu.memory_space<vmem>>, vector<1x3x32xf32>
    %281 = vector.shape_cast %280 : vector<1x3x32xf32> to vector<3x32xf32>
    %cst_198 = arith.constant dense<0.000000e+00> : vector<3x256xf32>
    %282 = tpu.matmul %281, %279, %cst_198 {dimension_numbers = #tpu.dot_dimension_numbers<[1], [0], [0], [1], [0, 0, 1, 1], [], []>} : vector<3x32xf32>, vector<32x256xf32>, vector<3x256xf32> -> vector<3x256xf32>
    %283 = arith.addf %275, %282 : vector<3x256xf32>
    %c14_i32_199 = arith.constant 14 : i32
    %284 = tpu.dynamic_rotate %210 by %c14_i32_199 dim 1 : vector<32x256xf32>, i32 -> vector<32x256xf32>
    %c9_200 = arith.constant 9 : index
    %c0_201 = arith.constant 0 : index
    %285 = vector.load %arg8[%c9_200, %c0_201] : memref<25x256xf32, #tpu.memory_space<vmem>>, vector<1x256xf32>
    %286 = vector.broadcast %285 : vector<1x256xf32> to vector<32x256xf32>
    %287 = arith.mulf %284, %286 : vector<32x256xf32>
    %c9_202 = arith.constant 9 : index
    %c0_203 = arith.constant 0 : index
    %c0_204 = arith.constant 0 : index
    %288 = vector.load %arg6[%c9_202, %c0_203, %c0_204] : memref<25x3x32xf32, #tpu.memory_space<vmem>>, vector<1x3x32xf32>
    %289 = vector.shape_cast %288 : vector<1x3x32xf32> to vector<3x32xf32>
    %cst_205 = arith.constant dense<0.000000e+00> : vector<3x256xf32>
    %290 = tpu.matmul %289, %287, %cst_205 {dimension_numbers = #tpu.dot_dimension_numbers<[1], [0], [0], [1], [0, 0, 1, 1], [], []>} : vector<3x32xf32>, vector<32x256xf32>, vector<3x256xf32> -> vector<3x256xf32>
    %291 = arith.addf %283, %290 : vector<3x256xf32>
    %c2_i32_206 = arith.constant 2 : i32
    %292 = tpu.dynamic_rotate %210 by %c2_i32_206 dim 1 : vector<32x256xf32>, i32 -> vector<32x256xf32>
    %c10_207 = arith.constant 10 : index
    %c0_208 = arith.constant 0 : index
    %293 = vector.load %arg8[%c10_207, %c0_208] : memref<25x256xf32, #tpu.memory_space<vmem>>, vector<1x256xf32>
    %294 = vector.broadcast %293 : vector<1x256xf32> to vector<32x256xf32>
    %295 = arith.mulf %292, %294 : vector<32x256xf32>
    %c10_209 = arith.constant 10 : index
    %c0_210 = arith.constant 0 : index
    %c0_211 = arith.constant 0 : index
    %296 = vector.load %arg6[%c10_209, %c0_210, %c0_211] : memref<25x3x32xf32, #tpu.memory_space<vmem>>, vector<1x3x32xf32>
    %297 = vector.shape_cast %296 : vector<1x3x32xf32> to vector<3x32xf32>
    %cst_212 = arith.constant dense<0.000000e+00> : vector<3x256xf32>
    %298 = tpu.matmul %297, %295, %cst_212 {dimension_numbers = #tpu.dot_dimension_numbers<[1], [0], [0], [1], [0, 0, 1, 1], [], []>} : vector<3x32xf32>, vector<32x256xf32>, vector<3x256xf32> -> vector<3x256xf32>
    %299 = arith.addf %291, %298 : vector<3x256xf32>
    %c1_i32_213 = arith.constant 1 : i32
    %300 = tpu.dynamic_rotate %210 by %c1_i32_213 dim 1 : vector<32x256xf32>, i32 -> vector<32x256xf32>
    %c11_214 = arith.constant 11 : index
    %c0_215 = arith.constant 0 : index
    %301 = vector.load %arg8[%c11_214, %c0_215] : memref<25x256xf32, #tpu.memory_space<vmem>>, vector<1x256xf32>
    %302 = vector.broadcast %301 : vector<1x256xf32> to vector<32x256xf32>
    %303 = arith.mulf %300, %302 : vector<32x256xf32>
    %c11_216 = arith.constant 11 : index
    %c0_217 = arith.constant 0 : index
    %c0_218 = arith.constant 0 : index
    %304 = vector.load %arg6[%c11_216, %c0_217, %c0_218] : memref<25x3x32xf32, #tpu.memory_space<vmem>>, vector<1x3x32xf32>
    %305 = vector.shape_cast %304 : vector<1x3x32xf32> to vector<3x32xf32>
    %cst_219 = arith.constant dense<0.000000e+00> : vector<3x256xf32>
    %306 = tpu.matmul %305, %303, %cst_219 {dimension_numbers = #tpu.dot_dimension_numbers<[1], [0], [0], [1], [0, 0, 1, 1], [], []>} : vector<3x32xf32>, vector<32x256xf32>, vector<3x256xf32> -> vector<3x256xf32>
    %307 = arith.addf %299, %306 : vector<3x256xf32>
    %c12_220 = arith.constant 12 : index
    %c0_221 = arith.constant 0 : index
    %c0_222 = arith.constant 0 : index
    %308 = vector.load %arg6[%c12_220, %c0_221, %c0_222] : memref<25x3x32xf32, #tpu.memory_space<vmem>>, vector<1x3x32xf32>
    %309 = vector.shape_cast %308 : vector<1x3x32xf32> to vector<3x32xf32>
    %cst_223 = arith.constant dense<0.000000e+00> : vector<3x256xf32>
    %310 = tpu.matmul %309, %210, %cst_223 {dimension_numbers = #tpu.dot_dimension_numbers<[1], [0], [0], [1], [0, 0, 1, 1], [], []>} : vector<3x32xf32>, vector<32x256xf32>, vector<3x256xf32> -> vector<3x256xf32>
    %311 = arith.addf %307, %310 : vector<3x256xf32>
    %c255_i32_224 = arith.constant 255 : i32
    %312 = tpu.dynamic_rotate %210 by %c255_i32_224 dim 1 : vector<32x256xf32>, i32 -> vector<32x256xf32>
    %c13_225 = arith.constant 13 : index
    %c0_226 = arith.constant 0 : index
    %313 = vector.load %arg8[%c13_225, %c0_226] : memref<25x256xf32, #tpu.memory_space<vmem>>, vector<1x256xf32>
    %314 = vector.broadcast %313 : vector<1x256xf32> to vector<32x256xf32>
    %315 = arith.mulf %312, %314 : vector<32x256xf32>
    %c13_227 = arith.constant 13 : index
    %c0_228 = arith.constant 0 : index
    %c0_229 = arith.constant 0 : index
    %316 = vector.load %arg6[%c13_227, %c0_228, %c0_229] : memref<25x3x32xf32, #tpu.memory_space<vmem>>, vector<1x3x32xf32>
    %317 = vector.shape_cast %316 : vector<1x3x32xf32> to vector<3x32xf32>
    %cst_230 = arith.constant dense<0.000000e+00> : vector<3x256xf32>
    %318 = tpu.matmul %317, %315, %cst_230 {dimension_numbers = #tpu.dot_dimension_numbers<[1], [0], [0], [1], [0, 0, 1, 1], [], []>} : vector<3x32xf32>, vector<32x256xf32>, vector<3x256xf32> -> vector<3x256xf32>
    %319 = arith.addf %311, %318 : vector<3x256xf32>
    %c254_i32_231 = arith.constant 254 : i32
    %320 = tpu.dynamic_rotate %210 by %c254_i32_231 dim 1 : vector<32x256xf32>, i32 -> vector<32x256xf32>
    %c14_232 = arith.constant 14 : index
    %c0_233 = arith.constant 0 : index
    %321 = vector.load %arg8[%c14_232, %c0_233] : memref<25x256xf32, #tpu.memory_space<vmem>>, vector<1x256xf32>
    %322 = vector.broadcast %321 : vector<1x256xf32> to vector<32x256xf32>
    %323 = arith.mulf %320, %322 : vector<32x256xf32>
    %c14_234 = arith.constant 14 : index
    %c0_235 = arith.constant 0 : index
    %c0_236 = arith.constant 0 : index
    %324 = vector.load %arg6[%c14_234, %c0_235, %c0_236] : memref<25x3x32xf32, #tpu.memory_space<vmem>>, vector<1x3x32xf32>
    %325 = vector.shape_cast %324 : vector<1x3x32xf32> to vector<3x32xf32>
    %cst_237 = arith.constant dense<0.000000e+00> : vector<3x256xf32>
    %326 = tpu.matmul %325, %323, %cst_237 {dimension_numbers = #tpu.dot_dimension_numbers<[1], [0], [0], [1], [0, 0, 1, 1], [], []>} : vector<3x32xf32>, vector<32x256xf32>, vector<3x256xf32> -> vector<3x256xf32>
    %327 = arith.addf %319, %326 : vector<3x256xf32>
    %c242_i32_238 = arith.constant 242 : i32
    %328 = tpu.dynamic_rotate %210 by %c242_i32_238 dim 1 : vector<32x256xf32>, i32 -> vector<32x256xf32>
    %c15_239 = arith.constant 15 : index
    %c0_240 = arith.constant 0 : index
    %329 = vector.load %arg8[%c15_239, %c0_240] : memref<25x256xf32, #tpu.memory_space<vmem>>, vector<1x256xf32>
    %330 = vector.broadcast %329 : vector<1x256xf32> to vector<32x256xf32>
    %331 = arith.mulf %328, %330 : vector<32x256xf32>
    %c15_241 = arith.constant 15 : index
    %c0_242 = arith.constant 0 : index
    %c0_243 = arith.constant 0 : index
    %332 = vector.load %arg6[%c15_241, %c0_242, %c0_243] : memref<25x3x32xf32, #tpu.memory_space<vmem>>, vector<1x3x32xf32>
    %333 = vector.shape_cast %332 : vector<1x3x32xf32> to vector<3x32xf32>
    %cst_244 = arith.constant dense<0.000000e+00> : vector<3x256xf32>
    %334 = tpu.matmul %333, %331, %cst_244 {dimension_numbers = #tpu.dot_dimension_numbers<[1], [0], [0], [1], [0, 0, 1, 1], [], []>} : vector<3x32xf32>, vector<32x256xf32>, vector<3x256xf32> -> vector<3x256xf32>
    %335 = arith.addf %327, %334 : vector<3x256xf32>
    %c241_i32_245 = arith.constant 241 : i32
    %336 = tpu.dynamic_rotate %210 by %c241_i32_245 dim 1 : vector<32x256xf32>, i32 -> vector<32x256xf32>
    %c16_246 = arith.constant 16 : index
    %c0_247 = arith.constant 0 : index
    %337 = vector.load %arg8[%c16_246, %c0_247] : memref<25x256xf32, #tpu.memory_space<vmem>>, vector<1x256xf32>
    %338 = vector.broadcast %337 : vector<1x256xf32> to vector<32x256xf32>
    %339 = arith.mulf %336, %338 : vector<32x256xf32>
    %c16_248 = arith.constant 16 : index
    %c0_249 = arith.constant 0 : index
    %c0_250 = arith.constant 0 : index
    %340 = vector.load %arg6[%c16_248, %c0_249, %c0_250] : memref<25x3x32xf32, #tpu.memory_space<vmem>>, vector<1x3x32xf32>
    %341 = vector.shape_cast %340 : vector<1x3x32xf32> to vector<3x32xf32>
    %cst_251 = arith.constant dense<0.000000e+00> : vector<3x256xf32>
    %342 = tpu.matmul %341, %339, %cst_251 {dimension_numbers = #tpu.dot_dimension_numbers<[1], [0], [0], [1], [0, 0, 1, 1], [], []>} : vector<3x32xf32>, vector<32x256xf32>, vector<3x256xf32> -> vector<3x256xf32>
    %343 = arith.addf %335, %342 : vector<3x256xf32>
    %c240_i32_252 = arith.constant 240 : i32
    %344 = tpu.dynamic_rotate %210 by %c240_i32_252 dim 1 : vector<32x256xf32>, i32 -> vector<32x256xf32>
    %c17_253 = arith.constant 17 : index
    %c0_254 = arith.constant 0 : index
    %345 = vector.load %arg8[%c17_253, %c0_254] : memref<25x256xf32, #tpu.memory_space<vmem>>, vector<1x256xf32>
    %346 = vector.broadcast %345 : vector<1x256xf32> to vector<32x256xf32>
    %347 = arith.mulf %344, %346 : vector<32x256xf32>
    %c17_255 = arith.constant 17 : index
    %c0_256 = arith.constant 0 : index
    %c0_257 = arith.constant 0 : index
    %348 = vector.load %arg6[%c17_255, %c0_256, %c0_257] : memref<25x3x32xf32, #tpu.memory_space<vmem>>, vector<1x3x32xf32>
    %349 = vector.shape_cast %348 : vector<1x3x32xf32> to vector<3x32xf32>
    %cst_258 = arith.constant dense<0.000000e+00> : vector<3x256xf32>
    %350 = tpu.matmul %349, %347, %cst_258 {dimension_numbers = #tpu.dot_dimension_numbers<[1], [0], [0], [1], [0, 0, 1, 1], [], []>} : vector<3x32xf32>, vector<32x256xf32>, vector<3x256xf32> -> vector<3x256xf32>
    %351 = arith.addf %343, %350 : vector<3x256xf32>
    %c239_i32_259 = arith.constant 239 : i32
    %352 = tpu.dynamic_rotate %210 by %c239_i32_259 dim 1 : vector<32x256xf32>, i32 -> vector<32x256xf32>
    %c18_260 = arith.constant 18 : index
    %c0_261 = arith.constant 0 : index
    %353 = vector.load %arg8[%c18_260, %c0_261] : memref<25x256xf32, #tpu.memory_space<vmem>>, vector<1x256xf32>
    %354 = vector.broadcast %353 : vector<1x256xf32> to vector<32x256xf32>
    %355 = arith.mulf %352, %354 : vector<32x256xf32>
    %c18_262 = arith.constant 18 : index
    %c0_263 = arith.constant 0 : index
    %c0_264 = arith.constant 0 : index
    %356 = vector.load %arg6[%c18_262, %c0_263, %c0_264] : memref<25x3x32xf32, #tpu.memory_space<vmem>>, vector<1x3x32xf32>
    %357 = vector.shape_cast %356 : vector<1x3x32xf32> to vector<3x32xf32>
    %cst_265 = arith.constant dense<0.000000e+00> : vector<3x256xf32>
    %358 = tpu.matmul %357, %355, %cst_265 {dimension_numbers = #tpu.dot_dimension_numbers<[1], [0], [0], [1], [0, 0, 1, 1], [], []>} : vector<3x32xf32>, vector<32x256xf32>, vector<3x256xf32> -> vector<3x256xf32>
    %359 = arith.addf %351, %358 : vector<3x256xf32>
    %c238_i32_266 = arith.constant 238 : i32
    %360 = tpu.dynamic_rotate %210 by %c238_i32_266 dim 1 : vector<32x256xf32>, i32 -> vector<32x256xf32>
    %c19_267 = arith.constant 19 : index
    %c0_268 = arith.constant 0 : index
    %361 = vector.load %arg8[%c19_267, %c0_268] : memref<25x256xf32, #tpu.memory_space<vmem>>, vector<1x256xf32>
    %362 = vector.broadcast %361 : vector<1x256xf32> to vector<32x256xf32>
    %363 = arith.mulf %360, %362 : vector<32x256xf32>
    %c19_269 = arith.constant 19 : index
    %c0_270 = arith.constant 0 : index
    %c0_271 = arith.constant 0 : index
    %364 = vector.load %arg6[%c19_269, %c0_270, %c0_271] : memref<25x3x32xf32, #tpu.memory_space<vmem>>, vector<1x3x32xf32>
    %365 = vector.shape_cast %364 : vector<1x3x32xf32> to vector<3x32xf32>
    %cst_272 = arith.constant dense<0.000000e+00> : vector<3x256xf32>
    %366 = tpu.matmul %365, %363, %cst_272 {dimension_numbers = #tpu.dot_dimension_numbers<[1], [0], [0], [1], [0, 0, 1, 1], [], []>} : vector<3x32xf32>, vector<32x256xf32>, vector<3x256xf32> -> vector<3x256xf32>
    %367 = arith.addf %359, %366 : vector<3x256xf32>
    %c226_i32_273 = arith.constant 226 : i32
    %368 = tpu.dynamic_rotate %210 by %c226_i32_273 dim 1 : vector<32x256xf32>, i32 -> vector<32x256xf32>
    %c20_274 = arith.constant 20 : index
    %c0_275 = arith.constant 0 : index
    %369 = vector.load %arg8[%c20_274, %c0_275] : memref<25x256xf32, #tpu.memory_space<vmem>>, vector<1x256xf32>
    %370 = vector.broadcast %369 : vector<1x256xf32> to vector<32x256xf32>
    %371 = arith.mulf %368, %370 : vector<32x256xf32>
    %c20_276 = arith.constant 20 : index
    %c0_277 = arith.constant 0 : index
    %c0_278 = arith.constant 0 : index
    %372 = vector.load %arg6[%c20_276, %c0_277, %c0_278] : memref<25x3x32xf32, #tpu.memory_space<vmem>>, vector<1x3x32xf32>
    %373 = vector.shape_cast %372 : vector<1x3x32xf32> to vector<3x32xf32>
    %cst_279 = arith.constant dense<0.000000e+00> : vector<3x256xf32>
    %374 = tpu.matmul %373, %371, %cst_279 {dimension_numbers = #tpu.dot_dimension_numbers<[1], [0], [0], [1], [0, 0, 1, 1], [], []>} : vector<3x32xf32>, vector<32x256xf32>, vector<3x256xf32> -> vector<3x256xf32>
    %375 = arith.addf %367, %374 : vector<3x256xf32>
    %c225_i32_280 = arith.constant 225 : i32
    %376 = tpu.dynamic_rotate %210 by %c225_i32_280 dim 1 : vector<32x256xf32>, i32 -> vector<32x256xf32>
    %c21_281 = arith.constant 21 : index
    %c0_282 = arith.constant 0 : index
    %377 = vector.load %arg8[%c21_281, %c0_282] : memref<25x256xf32, #tpu.memory_space<vmem>>, vector<1x256xf32>
    %378 = vector.broadcast %377 : vector<1x256xf32> to vector<32x256xf32>
    %379 = arith.mulf %376, %378 : vector<32x256xf32>
    %c21_283 = arith.constant 21 : index
    %c0_284 = arith.constant 0 : index
    %c0_285 = arith.constant 0 : index
    %380 = vector.load %arg6[%c21_283, %c0_284, %c0_285] : memref<25x3x32xf32, #tpu.memory_space<vmem>>, vector<1x3x32xf32>
    %381 = vector.shape_cast %380 : vector<1x3x32xf32> to vector<3x32xf32>
    %cst_286 = arith.constant dense<0.000000e+00> : vector<3x256xf32>
    %382 = tpu.matmul %381, %379, %cst_286 {dimension_numbers = #tpu.dot_dimension_numbers<[1], [0], [0], [1], [0, 0, 1, 1], [], []>} : vector<3x32xf32>, vector<32x256xf32>, vector<3x256xf32> -> vector<3x256xf32>
    %383 = arith.addf %375, %382 : vector<3x256xf32>
    %c224_i32_287 = arith.constant 224 : i32
    %384 = tpu.dynamic_rotate %210 by %c224_i32_287 dim 1 : vector<32x256xf32>, i32 -> vector<32x256xf32>
    %c22_288 = arith.constant 22 : index
    %c0_289 = arith.constant 0 : index
    %385 = vector.load %arg8[%c22_288, %c0_289] : memref<25x256xf32, #tpu.memory_space<vmem>>, vector<1x256xf32>
    %386 = vector.broadcast %385 : vector<1x256xf32> to vector<32x256xf32>
    %387 = arith.mulf %384, %386 : vector<32x256xf32>
    %c22_290 = arith.constant 22 : index
    %c0_291 = arith.constant 0 : index
    %c0_292 = arith.constant 0 : index
    %388 = vector.load %arg6[%c22_290, %c0_291, %c0_292] : memref<25x3x32xf32, #tpu.memory_space<vmem>>, vector<1x3x32xf32>
    %389 = vector.shape_cast %388 : vector<1x3x32xf32> to vector<3x32xf32>
    %cst_293 = arith.constant dense<0.000000e+00> : vector<3x256xf32>
    %390 = tpu.matmul %389, %387, %cst_293 {dimension_numbers = #tpu.dot_dimension_numbers<[1], [0], [0], [1], [0, 0, 1, 1], [], []>} : vector<3x32xf32>, vector<32x256xf32>, vector<3x256xf32> -> vector<3x256xf32>
    %391 = arith.addf %383, %390 : vector<3x256xf32>
    %c223_i32_294 = arith.constant 223 : i32
    %392 = tpu.dynamic_rotate %210 by %c223_i32_294 dim 1 : vector<32x256xf32>, i32 -> vector<32x256xf32>
    %c23_295 = arith.constant 23 : index
    %c0_296 = arith.constant 0 : index
    %393 = vector.load %arg8[%c23_295, %c0_296] : memref<25x256xf32, #tpu.memory_space<vmem>>, vector<1x256xf32>
    %394 = vector.broadcast %393 : vector<1x256xf32> to vector<32x256xf32>
    %395 = arith.mulf %392, %394 : vector<32x256xf32>
    %c23_297 = arith.constant 23 : index
    %c0_298 = arith.constant 0 : index
    %c0_299 = arith.constant 0 : index
    %396 = vector.load %arg6[%c23_297, %c0_298, %c0_299] : memref<25x3x32xf32, #tpu.memory_space<vmem>>, vector<1x3x32xf32>
    %397 = vector.shape_cast %396 : vector<1x3x32xf32> to vector<3x32xf32>
    %cst_300 = arith.constant dense<0.000000e+00> : vector<3x256xf32>
    %398 = tpu.matmul %397, %395, %cst_300 {dimension_numbers = #tpu.dot_dimension_numbers<[1], [0], [0], [1], [0, 0, 1, 1], [], []>} : vector<3x32xf32>, vector<32x256xf32>, vector<3x256xf32> -> vector<3x256xf32>
    %399 = arith.addf %391, %398 : vector<3x256xf32>
    %c222_i32_301 = arith.constant 222 : i32
    %400 = tpu.dynamic_rotate %210 by %c222_i32_301 dim 1 : vector<32x256xf32>, i32 -> vector<32x256xf32>
    %c24_302 = arith.constant 24 : index
    %c0_303 = arith.constant 0 : index
    %401 = vector.load %arg8[%c24_302, %c0_303] : memref<25x256xf32, #tpu.memory_space<vmem>>, vector<1x256xf32>
    %402 = vector.broadcast %401 : vector<1x256xf32> to vector<32x256xf32>
    %403 = arith.mulf %400, %402 : vector<32x256xf32>
    %c24_304 = arith.constant 24 : index
    %c0_305 = arith.constant 0 : index
    %c0_306 = arith.constant 0 : index
    %404 = vector.load %arg6[%c24_304, %c0_305, %c0_306] : memref<25x3x32xf32, #tpu.memory_space<vmem>>, vector<1x3x32xf32>
    %405 = vector.shape_cast %404 : vector<1x3x32xf32> to vector<3x32xf32>
    %cst_307 = arith.constant dense<0.000000e+00> : vector<3x256xf32>
    %406 = tpu.matmul %405, %403, %cst_307 {dimension_numbers = #tpu.dot_dimension_numbers<[1], [0], [0], [1], [0, 0, 1, 1], [], []>} : vector<3x32xf32>, vector<32x256xf32>, vector<3x256xf32> -> vector<3x256xf32>
    %407 = arith.addf %399, %406 : vector<3x256xf32>
    %c0_308 = arith.constant 0 : index
    %c0_309 = arith.constant 0 : index
    %408 = vector.load %arg7[%c0_308, %c0_309] : memref<3x1xf32, #tpu.memory_space<vmem>>, vector<3x1xf32>
    %409 = vector.broadcast %408 : vector<3x1xf32> to vector<3x256xf32>
    %410 = arith.addf %407, %409 : vector<3x256xf32>
    %c0_310 = arith.constant 0 : index
    %c0_311 = arith.constant 0 : index
    %c0_312 = arith.constant 0 : index
    %411 = vector.load %arg9[%c0_310, %c0_311, %c0_312] : memref<1x3x256xf32, #tpu.memory_space<vmem>>, vector<1x3x256xf32>
    %412 = vector.shape_cast %411 : vector<1x3x256xf32> to vector<3x256xf32>
    %413 = vector.shape_cast %410 : vector<3x256xf32> to vector<1x3x256xf32>
    tpu.vector_store %arg9[%c0_310, %c0_311, %c0_312], %413 {strides = array<i32>} : memref<1x3x256xf32, #tpu.memory_space<vmem>>, vector<1x3x256xf32>,
    return
  }
  func.func @transform_0(%arg0: i32) -> (i32, i32, i32) {
    %c0_i32 = arith.constant 0 : i32
    %c0_i32_0 = arith.constant 0 : i32
    %c0_i32_1 = arith.constant 0 : i32
    return %arg0, %c0_i32, %c0_i32_0 : i32, i32, i32
  }
  func.func @transform_1(%arg0: i32) -> (i32, i32) {
    %c0_i32 = arith.constant 0 : i32
    %c0_i32_0 = arith.constant 0 : i32
    %c0_i32_1 = arith.constant 0 : i32
    return %c0_i32, %c0_i32_0 : i32, i32
  }
  func.func @transform_2(%arg0: i32) -> (i32, i32) {
    %c0_i32 = arith.constant 0 : i32
    %c0_i32_0 = arith.constant 0 : i32
    %c0_i32_1 = arith.constant 0 : i32
    return %c0_i32, %c0_i32_0 : i32, i32
  }
  func.func @transform_3(%arg0: i32) -> (i32, i32, i32) {
    %c0_i32 = arith.constant 0 : i32
    %c0_i32_0 = arith.constant 0 : i32
    %c0_i32_1 = arith.constant 0 : i32
    %c0_i32_2 = arith.constant 0 : i32
    return %c0_i32, %c0_i32_0, %c0_i32_1 : i32, i32, i32
  }
  func.func @transform_4(%arg0: i32) -> (i32, i32) {
    %c0_i32 = arith.constant 0 : i32
    %c0_i32_0 = arith.constant 0 : i32
    %c0_i32_1 = arith.constant 0 : i32
    return %c0_i32, %c0_i32_0 : i32, i32
  }
  func.func @transform_5(%arg0: i32) -> (i32, i32, i32) {
    %c0_i32 = arith.constant 0 : i32
    %c0_i32_0 = arith.constant 0 : i32
    %c0_i32_1 = arith.constant 0 : i32
    %c0_i32_2 = arith.constant 0 : i32
    return %c0_i32, %c0_i32_0, %c0_i32_1 : i32, i32, i32
  }
  func.func @transform_6(%arg0: i32) -> (i32, i32) {
    %c0_i32 = arith.constant 0 : i32
    %c0_i32_0 = arith.constant 0 : i32
    %c0_i32_1 = arith.constant 0 : i32
    return %c0_i32, %c0_i32_0 : i32, i32
  }
  func.func @transform_7(%arg0: i32) -> (i32, i32) {
    %c0_i32 = arith.constant 0 : i32
    %c0_i32_0 = arith.constant 0 : i32
    %c0_i32_1 = arith.constant 0 : i32
    return %c0_i32, %c0_i32_0 : i32, i32
  }
  func.func @transform_8(%arg0: i32) -> (i32, i32, i32) {
    %c0_i32 = arith.constant 0 : i32
    %c0_i32_0 = arith.constant 0 : i32
    %c0_i32_1 = arith.constant 0 : i32
    return %arg0, %c0_i32, %c0_i32_0 : i32, i32, i32
  }
}

</mosaic_0001>

<bundles_post_ra>
// kernel: srcnn_pallas.1
= control target key start
LH: loop header
LB: loop body
LE: loop exit
PB: predicated region body
PF: predicated region fallthrough
CT: control target
= control target key end

     0   :  { %s9548_s27 = smov 0   ;;  %s14998_s0 = inlined_call_operand.vmem [shape: bf16[2,256,256], index: 0, kind: input, shape index: {}]   ;;  %s14999_s1 = inlined_call_operand.vmem [shape: bf16[64,256], index: 1, kind: input, shape index: {}]   ;;  %s15000_s2 = inlined_call_operand.vmem [shape: f32[64,1], index: 2, kind: input, shape index: {}]   ;;  %s15001_s3 = inlined_call_operand.vmem [shape: f32[25,32,64], index: 3, kind: input, shape index: {}]   ;;  %s15002_s4 = inlined_call_operand.vmem [shape: f32[32,1], index: 4, kind: input, shape index: {}]   ;;  %s15003_s5 = inlined_call_operand.vmem [shape: f32[25,3,32], index: 5, kind: input, shape index: {}]   ;;  %s15004_s6 = inlined_call_operand.vmem [shape: f32[3,1], index: 6, kind: input, shape index: {}]   ;;  %s15005_s7 = inlined_call_operand.vmem [shape: f32[25,256], index: 7, kind: input, shape index: {}]   ;;  %s15006_s8 = inlined_call_operand.vmem [shape: f32[2,3,256], index: 8, kind: output, shape index: {}]  }
   0x1 LB: > { %s8212_s28 = sadd.s32 4294967295, %s9475_s27   ;;  %p8216_p0 = scmp.ge.s32.totalorder %s9475_s27, 1  ;;  %s9475_s27 = sphi %s9548_s27, %s18_s27  }
   0x2   : > { %p262_p1 = scmp.lt.s32.totalorder %s9475_s27, 3 }
   0x4   : > { %p263_p2 = pnand %p8216_p0, %p262_p1 }
   0x6   : > { %266 = sbr.rel (%p263_p2) target bundleno = 2135 (0x857), region = 52 }
   0xd   : > { %p296_p3 = scmp.lt.s32.totalorder %s8212_s28, 1  ;;  %v9459_v0 = vld [vmem:[%s14999_s1 + $0x4] ss:$8 sps:$4 sm:$0xff]   ;;  %v9477_v1 = vmov 0   ;;  %v348_v18 = vld [vmem:[%s15000_s2 + $0x10] sm:$0xff]  ;;  %v349_v22 = vld [vmem:[%s15000_s2 + $0x18] sm:$0xff] }
   0xe   : > { %9407 = vset.pattern.permute.xlu0 %v9477_v1  ;;  %9408 = vset.pattern.permute.xlu1 %v9477_v1  ;;  %v346_v2 = vld [vmem:[%s15000_s2] sm:$0xff]  ;;  %v347_v3 = vld [vmem:[%s15000_s2 + $0x8] sm:$0xff]  ;;  %v352_v20 = vld [vmem:[%s15000_s2 + $0x30] sm:$0xff]  ;;  %s9478_s23 = smov 30   ;;  %s9479_s24 = smov 34   ;;  %vm849_vm6 = vcmask 523264  }
   0xf   : > { %s15792_s28 = smov (!%p296_p3, %s8212_s28), 1  ;;  %626 = vmatprep.mubr.bf16.mxu0 %v9459_v0  ;;  %356 = vperm.xlu0 %9407, %v346_v2   ;;  %v350_v17 = vld [vmem:[%s15000_s2 + $0x20] sm:$0xff]  ;;  %v351_v25 = vld [vmem:[%s15000_s2 + $0x28] sm:$0xff]  ;;  %v353_v28 = vld [vmem:[%s15000_s2 + $0x38] sm:$0xff]  ;;  %s9480_s25 = smov 18  }
  0x10   : > { %s8531_s9 = sshll.u32 %s15792_s28, 8  ;;  %366 = vperm.xlu1 %9408, %v348_v18   ;;  %v9457_v42 = vld [vmem:[%s14999_s1] ss:$8 sps:$4 sm:$0xff]   ;;  %v9460_v43 = vld [vmem:[%s14999_s1 + $0x14] ss:$8 sps:$4 sm:$0xff]   ;;  %s9481_s26 = smov 33  }
  0x11   : > { %s9565_s12 = scalar_lea.vmem %s14998_s0, %s8531_s9  ;;  %v9462_v44 = vld [vmem:[%s14999_s1 + $0x10] ss:$8 sps:$4 sm:$0xff]   ;;  %v9463_v45 = vld [vmem:[%s14999_s1 + $0x24] ss:$8 sps:$4 sm:$0xff]   ;;  %v9465_v46 = vld [vmem:[%s14999_s1 + $0x20] ss:$8 sps:$4 sm:$0xff]  }
  0x12   : > { %v9409_v4 = vld [vmem:[%s9565_s12 + $0x4] ss:$8 sps:$4 sm:$0xff]   ;;  %v9411_v5 = vld [vmem:[%s9565_s12] ss:$8 sps:$4 sm:$0xff]   ;;  %v9412_v6 = vld [vmem:[%s9565_s12 + $0x14] ss:$8 sps:$4 sm:$0xff]  }
  0x13   : > { %594 = vmatprep.subr.bf16.mxu0 %v9409_v4  ;;  %v9414_v7 = vld [vmem:[%s9565_s12 + $0x10] ss:$8 sps:$4 sm:$0xff]   ;;  %v9415_v8 = vld [vmem:[%s9565_s12 + $0x24] ss:$8 sps:$4 sm:$0xff]   ;;  %361 = vperm.xlu0 %9407, %v347_v3   ;;  %v9417_v9 = vld [vmem:[%s9565_s12 + $0x20] ss:$8 sps:$4 sm:$0xff]  }
  0x14   : > { %595 = vmatpush1.bf16.msra.mxu0 %v9411_v5  ;;  %v9418_v10 = vld [vmem:[%s9565_s12 + $0x34] ss:$8 sps:$4 sm:$0xff]   ;;  %v9420_v11 = vld [vmem:[%s9565_s12 + $0x30] ss:$8 sps:$4 sm:$0xff]   ;;  %v9421_v12 = vld [vmem:[%s9565_s12 + $0x44] ss:$8 sps:$4 sm:$0xff]   ;;  %371 = vperm.xlu1 %9408, %v349_v22  }
  0x15   : > { %596 = vmatprep.subr.bf16.mxu0 %v9412_v6  ;;  %v9423_v13 = vld [vmem:[%s9565_s12 + $0x40] ss:$8 sps:$4 sm:$0xff]   ;;  %v9424_v14 = vld [vmem:[%s9565_s12 + $0x54] ss:$8 sps:$4 sm:$0xff]   ;;  %v9426_v15 = vld [vmem:[%s9565_s12 + $0x50] ss:$8 sps:$4 sm:$0xff]  }
  0x16   : > { %v9427_v16 = vld [vmem:[%s9565_s12 + $0x64] ss:$8 sps:$4 sm:$0xff]   ;;  %v9429_v19 = vld [vmem:[%s9565_s12 + $0x60] ss:$8 sps:$4 sm:$0xff]   ;;  %v9430_v21 = vld [vmem:[%s9565_s12 + $0x74] ss:$8 sps:$4 sm:$0xff]  }
  0x17   : > { %376 = vperm.xlu0 %9407, %v350_v17   ;;  %v9432_v23 = vld [vmem:[%s9565_s12 + $0x70] ss:$8 sps:$4 sm:$0xff]   ;;  %v9433_v24 = vld [vmem:[%s9565_s12 + $0x84] ss:$8 sps:$4 sm:$0xff]   ;;  %v9435_v26 = vld [vmem:[%s9565_s12 + $0x80] ss:$8 sps:$4 sm:$0xff]  }
  0x18   : > { %597 = vmatpush1.bf16.msra.mxu0 %v9414_v7  ;;  %381 = vperm.xlu1 %9408, %v351_v25   ;;  %v9436_v27 = vld [vmem:[%s9565_s12 + $0x94] ss:$8 sps:$4 sm:$0xff]   ;;  %v9438_v29 = vld [vmem:[%s9565_s12 + $0x90] ss:$8 sps:$4 sm:$0xff]   ;;  %v9439_v30 = vld [vmem:[%s9565_s12 + $0xa4] ss:$8 sps:$4 sm:$0xff]  }
  0x19   : > { %598 = vmatprep.subr.bf16.mxu0 %v9415_v8  ;;  %v9441_v31 = vld [vmem:[%s9565_s12 + $0xa0] ss:$8 sps:$4 sm:$0xff]   ;;  %v9442_v32 = vld [vmem:[%s9565_s12 + $0xb4] ss:$8 sps:$4 sm:$0xff]   ;;  %v9444_v33 = vld [vmem:[%s9565_s12 + $0xb0] ss:$8 sps:$4 sm:$0xff]  }
  0x1a   : > { %v9445_v34 = vld [vmem:[%s9565_s12 + $0xc4] ss:$8 sps:$4 sm:$0xff]   ;;  %v9447_v35 = vld [vmem:[%s9565_s12 + $0xc0] ss:$8 sps:$4 sm:$0xff]   ;;  %v9448_v36 = vld [vmem:[%s9565_s12 + $0xd4] ss:$8 sps:$4 sm:$0xff]  }
  0x1b   : > { %386 = vperm.xlu0 %9407, %v352_v20   ;;  %v9450_v37 = vld [vmem:[%s9565_s12 + $0xd0] ss:$8 sps:$4 sm:$0xff]   ;;  %v9451_v38 = vld [vmem:[%s9565_s12 + $0xe4] ss:$8 sps:$4 sm:$0xff]   ;;  %v9453_v39 = vld [vmem:[%s9565_s12 + $0xe0] ss:$8 sps:$4 sm:$0xff]  }
  0x1c   : > { %599 = vmatpush1.bf16.msra.mxu0 %v9417_v9  ;;  %391 = vperm.xlu1 %9408, %v353_v28   ;;  %v9454_v40 = vld [vmem:[%s9565_s12 + $0xf4] ss:$8 sps:$4 sm:$0xff]   ;;  %v9456_v41 = vld [vmem:[%s9565_s12 + $0xf0] ss:$8 sps:$4 sm:$0xff]   ;;  %s9482_s29 = smov 17   ;;  %s9483_s30 = smov 32  }
  0x1d   : > { %600 = vmatprep.subr.bf16.mxu0 %v9418_v10  ;;  %v9466_v47 = vld [vmem:[%s14999_s1 + $0x34] ss:$8 sps:$4 sm:$0xff]   ;;  %v9468_v48 = vld [vmem:[%s14999_s1 + $0x30] ss:$8 sps:$4 sm:$0xff]   ;;  %s9484_s9 = smov 16   ;;  %s9485_s10 = smov 15  }
  0x1e   : > { %s9486_s11 = smov 14   ;;  %s9487_s13 = smov 2  }
  0x1f   : > { %s9488_s14 = smov 1   ;;  %s15212_s18 = smov 127  }
  0x20   : > { %601 = vmatpush1.bf16.msra.mxu0 %v9420_v11  ;;  %s15210_s19 = smov 126   ;;  %s15206_s12 = smov 114  }
  0x21   : > { %602 = vmatprep.subr.bf16.mxu0 %v9421_v12  ;;  %s15201_s20 = smov 113   ;;  %s15158_s21 = smov 112  }
  0x22   : > { %s15168_s22 = smov 111   ;;  %s15188_s16 = smov 110  }
  0x23   : > { %s15191_s15 = smov 97   ;;  %s15204_s17 = smov 94  }
  0x24   : > { %603 = vmatpush1.bf16.msra.mxu0 %v9423_v13 }
  0x25   : > { %604 = vmatprep.subr.bf16.mxu0 %v9424_v14 }
  0x28   : > { %605 = vmatpush1.bf16.msra.mxu0 %v9426_v15 }
  0x29   : > { %606 = vmatprep.subr.bf16.mxu0 %v9427_v16 }
  0x2c   : > { %607 = vmatpush1.bf16.msra.mxu0 %v9429_v19 }
  0x2d   : > { %608 = vmatprep.subr.bf16.mxu0 %v9430_v21 }
  0x30   : > { %609 = vmatpush1.bf16.msra.mxu0 %v9432_v23 }
  0x31   : > { %610 = vmatprep.subr.bf16.mxu0 %v9433_v24 }
  0x34   : > { %611 = vmatpush1.bf16.msra.mxu0 %v9435_v26 }
  0x35   : > { %612 = vmatprep.subr.bf16.mxu0 %v9436_v27 }
  0x38   : > { %613 = vmatpush1.bf16.msra.mxu0 %v9438_v29 }
  0x39   : > { %614 = vmatprep.subr.bf16.mxu0 %v9439_v30 }
  0x3c   : > { %615 = vmatpush1.bf16.msra.mxu0 %v9441_v31 }
  0x3d   : > { %616 = vmatprep.subr.bf16.mxu0 %v9442_v32 }
  0x40   : > { %617 = vmatpush1.bf16.msra.mxu0 %v9444_v33 }
  0x41   : > { %618 = vmatprep.subr.bf16.mxu0 %v9445_v34 }
  0x44   : > { %619 = vmatpush1.bf16.msra.mxu0 %v9447_v35 }
  0x45   : > { %620 = vmatprep.subr.bf16.mxu0 %v9448_v36 }
  0x48   : > { %621 = vmatpush1.bf16.msra.mxu0 %v9450_v37 }
  0x49   : > { %622 = vmatprep.subr.bf16.mxu0 %v9451_v38 }
  0x4c   : > { %623 = vmatpush1.bf16.msra.mxu0 %v9453_v39 }
  0x4d   : > { %624 = vmatprep.subr.bf16.mxu0 %v9454_v40 }
  0x50   : > { %625 = vmatpush1.bf16.msra.mxu0 %v9456_v41 }
  0x53   : > { %627 = vmatmul.mubr.bf16.vlgmr.msra.gmra.mrb[0].mxu0 %v9457_v42 }
  0x54   : > { %636 = vmatprep.mubr.bf16.mxu0 %v9460_v43 }
  0x5b   : > { %637 = vmatmul.mubr.bf16.gmra.mrb[4].mxu0 %v9462_v44 }
  0x5c   : > { %646 = vmatprep.mubr.bf16.mxu0 %v9463_v45 }
  0x63   : > { %647 = vmatmul.mubr.bf16.gmra.mrb[8].mxu0 %v9465_v46  ;;  %v715_v46 = vlaneseq }
  0x64   : > { %656 = vmatprep.mubr.bf16.mxu0 %v9466_v47 }
  0x6b   : > { %657 = vmatmul.mubr.bf16.gmra.mrb[12].mxu0 %v9468_v48 }
  0x8e   : > { %v357_v49 = vpop.permute.xlu0 %356 }
  0x8f   : > { %v367_v11 = vpop.permute.xlu1 %366 }
  0x92   : > { %v362_v0 = vpop.permute.xlu0 %361 }
  0x93   : > { %v372_v16 = vpop.permute.xlu1 %371 }
  0x96   : > { %v9789_v19 = vpop.permute.xlu0 %376 }
  0x97   : > { %v9795_v20 = vpop.permute.xlu1 %381 }
  0x9a   : > { %v9801_v21 = vpop.permute.xlu0 %386 }
  0x9b   : > { %v9803_v22 = vpop.permute.xlu1 %391 }
 0x126   : > { %v628_v50 = vpop.f32.mrb[0].mxu0 }
 0x127   : > { %v629_v51 = vadd.f32 %v628_v50, %v357_v49  ;;  %v630_v52 = vpop.f32.mrb[1].mxu0  ;;  %v737_v50 = vshrl.u32 %v715_v46, 7 }
 0x128   : > { %v632_v53 = vpop.f32.mrb[2].mxu0  ;;  %v631_v59 = vadd.f32 %v630_v52, %v357_v49 }
 0x129   : > { %v9644_v54 = vmax.f32 %v629_v51, 0.0  ;;  %v634_v55 = vpop.f32.mrb[3].mxu0  ;;  %v633_v2 = vadd.f32 %v632_v53, %v362_v0  ;;  %v9904_v53 = vand.u32 127, %v715_v46 }
 0x12a   : > { %v9666_v61 = vmax.f32 %v631_v59, 0.0  ;;  %v635_v9 = vadd.f32 %v634_v55, %v362_v0  ;;  %v8292_v55 = vld [vmem:[%s15005_s7 + $0x4] ss:$8 sm:$0x3] }
 0x12b   : > { %15298 = vst [vmem:[#allocation2_spill] sm:$0xff] %v9644_v54  ;;  %1436 = vrot.lane.b32.xlu1 %v9644_v54, %s9478_s23  ;;  %683 = vrot.lane.b32.xlu0 %v9644_v54, %s9479_s24  ;;  %v9684_v4 = vmax.f32 %v633_v2, 0.0  ;;  %vm1468_vm0 = vcmp.lt.s32.totalorder %v9904_v53, 30  ;;  %vm798_vm1 = vcmp.lt.s32.totalorder %v9904_v53, 33  ;;  %vm717_vm2 = vcmp.lt.s32.totalorder %v9904_v53, 34 }
 0x12c   : > { %15299 = vst [vmem:[#allocation3_spill] sm:$0xff] %v9666_v61  ;;  %v9726_v10 = vmax.f32 %v635_v9, 0.0  ;;  %vm1660_vm3 = vcmp.lt.s32.totalorder %v9904_v53, 18  ;;  %vm1852_vm4 = vcmp.lt.s32.totalorder %v9904_v53, 17  ;;  %vm2044_vm5 = vcmp.lt.s32.totalorder %v9904_v53, 16 }
 0x12d   : > { %15300 = vst [vmem:[#allocation4_spill] sm:$0xff] %v9684_v4  ;;  %vm2236_vm7 = vcmp.lt.s32.totalorder %v9904_v53, 15  ;;  %vm2428_vm8 = vcmp.lt.s32.totalorder %v9904_v53, 14  ;;  %vm2620_vm9 = vcmp.lt.s32.totalorder %v9904_v53, 2  ;;  %vm2812_vm10 = vcmp.lt.s32.totalorder %v9904_v53, 1 }
 0x12e   : > { %v9650_v56 = vpop.f32.mrb[4].mxu0  ;;  %vm3118_vm11 = vcmp.lt.s32.totalorder %v9904_v53, 127  ;;  %vm3310_vm12 = vcmp.lt.s32.totalorder %v9904_v53, 126  ;;  %vm15209_vm13 = vcmp.lt.s32.totalorder %v9904_v53, 114  ;;  %vm15185_vm14 = vcmp.lt.s32.totalorder %v9904_v53, 113 }
 0x12f   : > { %1628 = vrot.lane.b32.xlu1 %v9644_v54, %s9480_s25  ;;  %766 = vrot.lane.b32.xlu0 %v9644_v54, %s9481_s26  ;;  %v9656_v57 = vpop.f32.mrb[5].mxu0  ;;  %v639_v12 = vadd.f32 %v9650_v56, %v367_v11  ;;  %vm15198_vm15 = vcmp.lt.s32.totalorder %v9904_v53, 112 }
 0x130   : > { %v9658_v58 = vpop.f32.mrb[6].mxu0  ;;  %v641_v14 = vadd.f32 %v9656_v57, %v367_v11  ;;  %v9915_v57 = vsub.s32 1, %v737_v50 }
 0x131   : > { %v9660_v60 = vpop.f32.mrb[7].mxu0  ;;  %v9753_v13 = vmax.f32 %v639_v12, 0.0  ;;  %v643_v17 = vadd.f32 %v9658_v58, %v372_v16 }
 0x132   : > { %v9772_v15 = vmax.f32 %v641_v14, 0.0  ;;  %v645_v29 = vadd.f32 %v9660_v60, %v372_v16  ;;  %15309 = vst [vmem:[#allocation13_spill] sm:$0xff] %v9915_v57  ;;  %v9927_v60 = vrot.slane %v8292_v55, %v9915_v57 }
 0x133   : > { %1820 = vrot.lane.b32.xlu1 %v9644_v54, %s9482_s29  ;;  %1052 = vrot.lane.b32.xlu0 %v9644_v54, %s9483_s30  ;;  %v9783_v18 = vmax.f32 %v643_v17, 0.0 }
 0x134   : > { %v9842_v32 = vmax.f32 %v645_v29, 0.0  ;;  %15312 = vst [vmem:[#allocation16_spill] sm:$0xff] %v9927_v60 }
 0x136   : > { %v9668_v62 = vpop.f32.mrb[8].mxu0 }
 0x137   : > { %v9670_v63 = vpop.f32.mrb[9].mxu0  ;;  %2012 = vrot.lane.b32.xlu1 %v9644_v54, %s9484_s9  ;;  %699 = vrot.lane.b32.xlu0 %v9666_v61, %s9479_s24  ;;  %v649_v45 = vadd.f32 %v9668_v62, %v9789_v19  ;;  %v9929_v62 = vsub.s32 0, %v737_v50 }
 0x138   : > { %v9676_v1 = vpop.f32.mrb[10].mxu0  ;;  %v651_v56 = vadd.f32 %v9670_v63, %v9789_v19 }
 0x139   : > { %v9678_v3 = vpop.f32.mrb[11].mxu0  ;;  %v9898_v49 = vmax.f32 %v649_v45, 0.0  ;;  %15313 = vst [vmem:[#allocation17_spill] sm:$0xff] %v9929_v62  ;;  %v9943_v14 = vrot.slane %v8292_v55, %v9929_v62 }
 0x13a   : > { %v9934_v0 = vmax.f32 %v651_v56, 0.0 }
 0x13b   : > { %2204 = vrot.lane.b32.xlu1 %v9644_v54, %s9485_s10  ;;  %782 = vrot.lane.b32.xlu0 %v9666_v61, %s9481_s26  ;;  %15315 = vst [vmem:[#allocation19_spill] sm:$0xff] %v9943_v14 }
 0x13e   : > { %v9686_v5 = vpop.f32.mrb[12].mxu0 }
 0x13f   : > { %v9688_v6 = vpop.f32.mrb[13].mxu0  ;;  %2396 = vrot.lane.b32.xlu1 %v9644_v54, %s9486_s11  ;;  %1438 = vrot.lane.b32.xlu0 %v9684_v4, %s9478_s23 }
 0x140   : > { %v9694_v7 = vpop.f32.mrb[14].mxu0 }
 0x141   : > { %v9696_v8 = vpop.f32.mrb[15].mxu0 }
 0x143   : > { %2588 = vrot.lane.b32.xlu1 %v9644_v54, %s9487_s13  ;;  %1630 = vrot.lane.b32.xlu0 %v9684_v4, %s9480_s25 }
 0x147   : > { %2780 = vrot.lane.b32.xlu1 %v9644_v54, %s9488_s14  ;;  %1822 = vrot.lane.b32.xlu0 %v9684_v4, %s9482_s29 }
 0x14b   : > { %1452 = vrot.lane.b32.xlu1 %v9666_v61, %s9478_s23  ;;  %2014 = vrot.lane.b32.xlu0 %v9684_v4, %s9484_s9 }
 0x14f   : > { %1644 = vrot.lane.b32.xlu1 %v9666_v61, %s9480_s25  ;;  %2206 = vrot.lane.b32.xlu0 %v9684_v4, %s9485_s10 }
 0x153   : > { %1836 = vrot.lane.b32.xlu1 %v9666_v61, %s9482_s29  ;;  %2398 = vrot.lane.b32.xlu0 %v9684_v4, %s9486_s11 }
 0x157   : > { %2028 = vrot.lane.b32.xlu1 %v9666_v61, %s9484_s9  ;;  %2590 = vrot.lane.b32.xlu0 %v9684_v4, %s9487_s13 }
 0x15b   : > { %2220 = vrot.lane.b32.xlu1 %v9666_v61, %s9485_s10  ;;  %2782 = vrot.lane.b32.xlu0 %v9684_v4, %s9488_s14 }
 0x15f   : > { %2412 = vrot.lane.b32.xlu1 %v9666_v61, %s9486_s11  ;;  %1454 = vrot.lane.b32.xlu0 %v9726_v10, %s9478_s23 }
 0x163   : > { %2604 = vrot.lane.b32.xlu1 %v9666_v61, %s9487_s13  ;;  %1646 = vrot.lane.b32.xlu0 %v9726_v10, %s9480_s25 }
 0x167   : > { %2796 = vrot.lane.b32.xlu1 %v9666_v61, %s9488_s14  ;;  %1838 = vrot.lane.b32.xlu0 %v9726_v10, %s9482_s29 }
 0x16b   : > { %685 = vrot.lane.b32.xlu1 %v9684_v4, %s9479_s24  ;;  %2030 = vrot.lane.b32.xlu0 %v9726_v10, %s9484_s9 }
 0x16f   : > { %768 = vrot.lane.b32.xlu1 %v9684_v4, %s9481_s26  ;;  %2222 = vrot.lane.b32.xlu0 %v9726_v10, %s9485_s10 }
 0x173   : > { %701 = vrot.lane.b32.xlu1 %v9726_v10, %s9479_s24  ;;  %2414 = vrot.lane.b32.xlu0 %v9726_v10, %s9486_s11 }
 0x177   : > { %784 = vrot.lane.b32.xlu1 %v9726_v10, %s9481_s26  ;;  %2606 = vrot.lane.b32.xlu0 %v9726_v10, %s9487_s13 }
 0x17b   : > { %1440 = vrot.lane.b32.xlu1 %v9753_v13, %s9478_s23  ;;  %2798 = vrot.lane.b32.xlu0 %v9726_v10, %s9488_s14 }
 0x17f   : > { %1632 = vrot.lane.b32.xlu1 %v9753_v13, %s9480_s25  ;;  %687 = vrot.lane.b32.xlu0 %v9753_v13, %s9479_s24 }
 0x183   : > { %1824 = vrot.lane.b32.xlu1 %v9753_v13, %s9482_s29  ;;  %770 = vrot.lane.b32.xlu0 %v9753_v13, %s9481_s26 }
 0x187   : > { %2016 = vrot.lane.b32.xlu1 %v9753_v13, %s9484_s9  ;;  %703 = vrot.lane.b32.xlu0 %v9772_v15, %s9479_s24 }
 0x18b   : > { %2208 = vrot.lane.b32.xlu1 %v9753_v13, %s9485_s10  ;;  %786 = vrot.lane.b32.xlu0 %v9772_v15, %s9481_s26 }
 0x18f   : > { %2400 = vrot.lane.b32.xlu1 %v9753_v13, %s9486_s11  ;;  %1442 = vrot.lane.b32.xlu0 %v9783_v18, %s9478_s23 }
 0x193   : > { %2592 = vrot.lane.b32.xlu1 %v9753_v13, %s9487_s13  ;;  %1634 = vrot.lane.b32.xlu0 %v9783_v18, %s9480_s25 }
 0x197   : > { %2784 = vrot.lane.b32.xlu1 %v9753_v13, %s9488_s14  ;;  %1826 = vrot.lane.b32.xlu0 %v9783_v18, %s9482_s29 }
 0x19b   : > { %1456 = vrot.lane.b32.xlu1 %v9772_v15, %s9478_s23  ;;  %2018 = vrot.lane.b32.xlu0 %v9783_v18, %s9484_s9 }
 0x19d   : > { %v9809_v23 = vpop.permute.xlu1 %1436  ;;  %v9811_v24 = vpop.permute.xlu0 %683 }
 0x19f   : > { %1648 = vrot.lane.b32.xlu1 %v9772_v15, %s9480_s25  ;;  %2210 = vrot.lane.b32.xlu0 %v9783_v18, %s9485_s10 }
 0x1a1   : > { %v9817_v25 = vpop.permute.xlu1 %1628  ;;  %v9819_v26 = vpop.permute.xlu0 %766 }
 0x1a3   : > { %1840 = vrot.lane.b32.xlu1 %v9772_v15, %s9482_s29  ;;  %2402 = vrot.lane.b32.xlu0 %v9783_v18, %s9486_s11 }
 0x1a5   : > { %v9825_v27 = vpop.permute.xlu1 %1820  ;;  %v9827_v28 = vpop.permute.xlu0 %1052 }
 0x1a6   : > { %15301 = vst [vmem:[#allocation5_spill] sm:$0xff] %v9827_v28 }
 0x1a7   : > { %2032 = vrot.lane.b32.xlu1 %v9772_v15, %s9484_s9  ;;  %2594 = vrot.lane.b32.xlu0 %v9783_v18, %s9487_s13 }
 0x1a9   : > { %v9834_v30 = vpop.permute.xlu1 %2012  ;;  %v9836_v31 = vpop.permute.xlu0 %699 }
 0x1ab   : > { %2224 = vrot.lane.b32.xlu1 %v9772_v15, %s9485_s10  ;;  %2786 = vrot.lane.b32.xlu0 %v9783_v18, %s9488_s14 }
 0x1ad   : > { %v9844_v33 = vpop.permute.xlu1 %2204  ;;  %v9846_v34 = vpop.permute.xlu0 %782 }
 0x1ae   : > { %15302 = vst [vmem:[#allocation6_spill] sm:$0xff] %v9844_v33 }
 0x1af   : > { %2416 = vrot.lane.b32.xlu1 %v9772_v15, %s9486_s11  ;;  %1458 = vrot.lane.b32.xlu0 %v9842_v32, %s9478_s23 }
 0x1b1   : > { %v9852_v35 = vpop.permute.xlu1 %2396  ;;  %v1439_v36 = vpop.permute.xlu0 %1438 }
 0x1b2   : > { %15303 = vst [vmem:[#allocation7_spill] sm:$0xff] %v9852_v35 }
 0x1b3   : > { %2608 = vrot.lane.b32.xlu1 %v9772_v15, %s9487_s13  ;;  %1650 = vrot.lane.b32.xlu0 %v9842_v32, %s9480_s25 }
 0x1b5   : > { %v9858_v37 = vpop.permute.xlu1 %2588  ;;  %v9860_v38 = vpop.permute.xlu0 %1630 }
 0x1b6   : > { %15304 = vst [vmem:[#allocation8_spill] sm:$0xff] %v9858_v37 }
 0x1b7   : > { %2800 = vrot.lane.b32.xlu1 %v9772_v15, %s9488_s14  ;;  %1842 = vrot.lane.b32.xlu0 %v9842_v32, %s9482_s29 }
 0x1b9   : > { %v9866_v39 = vpop.permute.xlu1 %2780  ;;  %v9868_v40 = vpop.permute.xlu0 %1822 }
 0x1ba   : > { %15305 = vst [vmem:[#allocation9_spill] sm:$0xff] %v9866_v39 }
 0x1bb   : > { %689 = vrot.lane.b32.xlu1 %v9783_v18, %s9479_s24  ;;  %2034 = vrot.lane.b32.xlu0 %v9842_v32, %s9484_s9 }
 0x1bd   : > { %v1453_v41 = vpop.permute.xlu1 %1452  ;;  %v9874_v42 = vpop.permute.xlu0 %2014 }
 0x1be   : > { %v1469_v63 = vsel %vm1468_vm0, %v9809_v23, %v1453_v41  ;;  %v1477_v16 = vsel %vm1468_vm0, %v1453_v41, %v9809_v23  ;;  %v653_v23 = vadd.f32 %v9676_v1, %v9795_v20 }
 0x1bf   : > { %772 = vrot.lane.b32.xlu1 %v9783_v18, %s9481_s26  ;;  %2226 = vrot.lane.b32.xlu0 %v9842_v32, %s9485_s10  ;;  %v1499_v17 = vmul.f32 %v9927_v60, %v1469_v63  ;;  %v1498_v41 = vmul.f32 %v9943_v14, %v1477_v16  ;;  %v8261_v16 = vld [vmem:[%s15005_s7 + $0x1] ss:$8 sm:$0x3] }
 0x1c0   : > { %v9970_v63 = vmax.f32 %v653_v23, 0.0  ;;  %v799_v23 = vsel %vm798_vm1, %v9819_v26, %v9846_v34 }
 0x1c1   : > { %v9880_v43 = vpop.permute.xlu1 %1644  ;;  %v9882_v44 = vpop.permute.xlu0 %2206 }
 0x1c2   : > { %15306 = vst [vmem:[#allocation10_spill] sm:$0xff] %v9882_v44  ;;  %15318 = vst [vmem:[#allocation22_spill] sm:$0xff] %v9970_v63 }
 0x1c3   : > { %705 = vrot.lane.b32.xlu1 %v9842_v32, %s9479_s24  ;;  %2418 = vrot.lane.b32.xlu0 %v9842_v32, %s9486_s11 }
 0x1c5   : > { %v9890_v47 = vpop.permute.xlu1 %1836  ;;  %v9892_v48 = vpop.permute.xlu0 %2398 }
 0x1c6   : > { %15307 = vst [vmem:[#allocation11_spill] sm:$0xff] %v9892_v48 }
 0x1c7   : > { %788 = vrot.lane.b32.xlu1 %v9842_v32, %s9481_s26  ;;  %2610 = vrot.lane.b32.xlu0 %v9842_v32, %s9487_s13 }
 0x1c9   : > { %v9900_v51 = vpop.permute.xlu1 %2028  ;;  %v9902_v52 = vpop.permute.xlu0 %2590 }
 0x1ca   : > { %15308 = vst [vmem:[#allocation12_spill] sm:$0xff] %v9902_v52 }
 0x1cb   : > { %1444 = vrot.lane.b32.xlu1 %v9898_v49, %s9478_s23  ;;  %691 = vrot.lane.b32.xlu0 %v9898_v49, %s9479_s24 }
 0x1cd   : > { %v9918_v58 = vpop.permute.xlu1 %2220  ;;  %v9920_v59 = vpop.permute.xlu0 %2782 }
 0x1ce   : > { %15310 = vst [vmem:[#allocation14_spill] sm:$0xff] %v9918_v58  ;;  %15311 = vst [vmem:[#allocation15_spill] sm:$0xff] %v9920_v59 }
 0x1cf   : > { %1636 = vrot.lane.b32.xlu1 %v9898_v49, %s9480_s25  ;;  %774 = vrot.lane.b32.xlu0 %v9898_v49, %s9481_s26 }
 0x1d1   : > { %v9936_v2 = vpop.permute.xlu1 %2412  ;;  %v1455_v9 = vpop.permute.xlu0 %1454 }
 0x1d2   : > { %15314 = vst [vmem:[#allocation18_spill] sm:$0xff] %v9936_v2  ;;  %v1478_v11 = vsel %vm1468_vm0, %v1455_v9, %v1439_v36  ;;  %v1470_v12 = vsel %vm1468_vm0, %v1439_v36, %v1455_v9 }
 0x1d3   : > { %1828 = vrot.lane.b32.xlu1 %v9898_v49, %s9482_s29  ;;  %707 = vrot.lane.b32.xlu0 %v9934_v0, %s9479_s24  ;;  %v1501_v19 = vmul.f32 %v9927_v60, %v1470_v12  ;;  %v1500_v29 = vmul.f32 %v9943_v14, %v1478_v11 }
 0x1d5   : > { %v9955_v36 = vpop.permute.xlu1 %2604  ;;  %v9957_v45 = vpop.permute.xlu0 %1646  ;;  %v8597_v46 = vpack.c.bf16 %v1501_v19, %v1499_v17  ;;  %v8599_v50 = vpack.c.bf16 %v1500_v29, %v1498_v41  ;;  %v9999_v29 = vrot.slane %v8261_v16, %v9929_v62  ;;  %v807_v41 = vsel %vm798_vm1, %v9846_v34, %v9819_v26 }
 0x1d6   : > { %15316 = vst [vmem:[#allocation20_spill] sm:$0xff] %v9955_v36 }
 0x1d7   : > { %2020 = vrot.lane.b32.xlu1 %v9898_v49, %s9484_s9  ;;  %790 = vrot.lane.b32.xlu0 %v9934_v0, %s9481_s26  ;;  %15321 = vst [vmem:[#allocation25_spill] sm:$0xff] %v9999_v29 }
 0x1d8   : > { %8598 = vmatprep.subr.bf16.mxu1 %v8597_v46  ;;  %v10002_v46 = vrot.slane %v8261_v16, %v9915_v57 }
 0x1d9   : > { %v9966_v55 = vpop.permute.xlu1 %2796  ;;  %v9968_v56 = vpop.permute.xlu0 %1838  ;;  %8600 = vmatpush1.bf16.msra.mxu1 %v8599_v50 }
 0x1da   : > { %15317 = vst [vmem:[#allocation21_spill] sm:$0xff] %v9966_v55  ;;  %15322 = vst [vmem:[#allocation26_spill] sm:$0xff] %v10002_v46  ;;  %v828_v55 = vmul.f32 %v9999_v29, %v807_v41  ;;  %v829_v59 = vmul.f32 %v10002_v46, %v799_v23 }
 0x1db   : > { %2212 = vrot.lane.b32.xlu1 %v9898_v49, %s9485_s10  ;;  %1446 = vrot.lane.b32.xlu0 %v9970_v63, %s9478_s23 }
 0x1dd   : > { %v9976_v1 = vpop.permute.xlu1 %685  ;;  %v9978_v9 = vpop.permute.xlu0 %2030 }
 0x1df   : > { %2404 = vrot.lane.b32.xlu1 %v9898_v49, %s9486_s11  ;;  %1638 = vrot.lane.b32.xlu0 %v9970_v63, %s9480_s25 }
 0x1e1   : > { %v769_v11 = vpop.permute.xlu1 %768  ;;  %v9984_v12 = vpop.permute.xlu0 %2222 }
 0x1e2   : > { %15319 = vst [vmem:[#allocation23_spill] sm:$0xff] %v9984_v12 }
 0x1e3   : > { %2596 = vrot.lane.b32.xlu1 %v9898_v49, %s9487_s13  ;;  %1830 = vrot.lane.b32.xlu0 %v9970_v63, %s9482_s29 }
 0x1e5   : > { %v9994_v17 = vpop.permute.xlu1 %701  ;;  %v9996_v19 = vpop.permute.xlu0 %2414 }
 0x1e6   : > { %15320 = vst [vmem:[#allocation24_spill] sm:$0xff] %v9996_v19 }
 0x1e7   : > { %1460 = vrot.lane.b32.xlu1 %v9934_v0, %s9478_s23  ;;  %2022 = vrot.lane.b32.xlu0 %v9970_v63, %s9484_s9 }
 0x1e9   : > { %v785_v50 = vpop.permute.xlu1 %784  ;;  %v10016_v28 = vpop.permute.xlu0 %2606 }
 0x1ea   : > { %15323 = vst [vmem:[#allocation27_spill] sm:$0xff] %v10016_v28  ;;  %v800_v16 = vsel %vm798_vm1, %v769_v11, %v785_v50  ;;  %v808_v39 = vsel %vm798_vm1, %v785_v50, %v769_v11 }
 0x1eb   : > { %v830_v37 = vmul.f32 %v9999_v29, %v808_v39  ;;  %v831_v26 = vmul.f32 %v10002_v46, %v800_v16  ;;  %1652 = vrot.lane.b32.xlu1 %v9934_v0, %s9480_s25  ;;  %2214 = vrot.lane.b32.xlu0 %v9970_v63, %s9485_s10 }
 0x1ed   : > { %v8535_v34 = vpack.c.bf16 %v830_v37, %v828_v55  ;;  %v10030_v36 = vpop.permute.xlu1 %1440  ;;  %v10032_v52 = vpop.permute.xlu0 %2798  ;;  %v8533_v11 = vpack.c.bf16 %v831_v26, %v829_v59  ;;  %v655_v37 = vadd.f32 %v9678_v3, %v9795_v20 }
 0x1ee   : > { %15324 = vst [vmem:[#allocation28_spill] sm:$0xff] %v10032_v52 }
 0x1ef   : > { %1844 = vrot.lane.b32.xlu1 %v9934_v0, %s9482_s29  ;;  %8534 = vmatprep.subr.bf16.mxu0 %v8533_v11  ;;  %v10052_v41 = vmax.f32 %v655_v37, 0.0 }
 0x1f0   : > { %2406 = vrot.lane.b32.xlu0 %v9970_v63, %s9486_s11  ;;  %8536 = vmatpush1.bf16.msra.mxu0 %v8535_v34 }
 0x1f1   : > { %v10038_v39 = vpop.permute.xlu1 %1632  ;;  %v10040_v23 = vpop.permute.xlu0 %687  ;;  %15326 = vst [vmem:[#allocation30_spill] sm:$0xff] %v10052_v41 }
 0x1f3   : > { %2036 = vrot.lane.b32.xlu1 %v9934_v0, %s9484_s9 }
 0x1f4   : > { %2598 = vrot.lane.b32.xlu0 %v9970_v63, %s9487_s13 }
 0x1f5   : > { %v10048_v59 = vpop.permute.xlu1 %1824  ;;  %v10050_v55 = vpop.permute.xlu0 %770 }
 0x1f6   : > { %15325 = vst [vmem:[#allocation29_spill] sm:$0xff] %v10048_v59 }
 0x1f7   : > { %2228 = vrot.lane.b32.xlu1 %v9934_v0, %s9485_s10 }
 0x1f8   : > { %1462 = vrot.lane.b32.xlu0 %v10052_v41, %s9478_s23 }
 0x1f9   : > { %v10058_v50 = vpop.permute.xlu1 %2016  ;;  %v10060_v3 = vpop.permute.xlu0 %703 }
 0x1fa   : > { %15327 = vst [vmem:[#allocation31_spill] sm:$0xff] %v10058_v50 }
 0x1fb   : > { %2420 = vrot.lane.b32.xlu1 %v9934_v0, %s9486_s11 }
 0x1fc   : > { %1654 = vrot.lane.b32.xlu0 %v10052_v41, %s9480_s25 }
 0x1fd   : > { %v10066_v20 = vpop.permute.xlu1 %2208  ;;  %v10068_v16 = vpop.permute.xlu0 %786 }
 0x1fe   : > { %15328 = vst [vmem:[#allocation32_spill] sm:$0xff] %v10066_v20  ;;  %v661_v20 = vadd.f32 %v9688_v6, %v9801_v21 }
 0x1ff   : > { %2612 = vrot.lane.b32.xlu1 %v9934_v0, %s9487_s13 }
 0x200   : > { %1846 = vrot.lane.b32.xlu0 %v10052_v41, %s9482_s29  ;;  %v10128_v33 = vmax.f32 %v661_v20, 0.0 }
 0x201   : > { %v10074_v26 = vpop.permute.xlu1 %2400  ;;  %v1443_v34 = vpop.permute.xlu0 %1442 }
 0x202   : > { %15329 = vst [vmem:[#allocation33_spill] sm:$0xff] %v10074_v26  ;;  %15339 = vst [vmem:[#allocation43_spill] sm:$0xff] %v10128_v33 }
 0x203   : > { %693 = vrot.lane.b32.xlu1 %v9970_v63, %s9479_s24 }
 0x204   : > { %2038 = vrot.lane.b32.xlu0 %v10052_v41, %s9484_s9 }
 0x205   : > { %v10080_v11 = vpop.permute.xlu1 %2592  ;;  %v10082_v37 = vpop.permute.xlu0 %1634 }
 0x206   : > { %15330 = vst [vmem:[#allocation34_spill] sm:$0xff] %v10080_v11  ;;  %v659_v11 = vadd.f32 %v9686_v5, %v9801_v21  ;;  %v663_v21 = vadd.f32 %v9694_v7, %v9803_v22 }
 0x207   : > { %776 = vrot.lane.b32.xlu1 %v9970_v63, %s9481_s26 }
 0x208   : > { %2230 = vrot.lane.b32.xlu0 %v10052_v41, %s9485_s10  ;;  %v10152_v58 = vmax.f32 %v663_v21, 0.0 }
 0x209   : > { %v10088_v52 = vpop.permute.xlu1 %2784  ;;  %v10090_v28 = vpop.permute.xlu0 %1826 }
 0x20a   : > { %15331 = vst [vmem:[#allocation35_spill] sm:$0xff] %v10088_v52  ;;  %v10104_v52 = vmax.f32 %v659_v11, 0.0  ;;  %15343 = vst [vmem:[#allocation47_spill] sm:$0xff] %v10152_v58 }
 0x20b   : > { %709 = vrot.lane.b32.xlu1 %v10052_v41, %s9479_s24 }
 0x20c   : > { %2422 = vrot.lane.b32.xlu0 %v10052_v41, %s9486_s11  ;;  %15333 = vst [vmem:[#allocation37_spill] sm:$0xff] %v10104_v52 }
 0x20d   : > { %v1457_v26 = vpop.permute.xlu1 %1456  ;;  %v10098_v35 = vpop.permute.xlu0 %2018 }
 0x20e   : > { %15332 = vst [vmem:[#allocation36_spill] sm:$0xff] %v10098_v35  ;;  %v1471_v20 = vsel %vm1468_vm0, %v10030_v36, %v1457_v26 }
 0x20f   : > { %792 = vrot.lane.b32.xlu1 %v10052_v41, %s9481_s26  ;;  %v1503_v35 = vmul.f32 %v9927_v60, %v1471_v20 }
 0x210   : > { %2614 = vrot.lane.b32.xlu0 %v10052_v41, %s9487_s13 }
 0x211   : > { %v10106_v2 = vpop.permute.xlu1 %1648  ;;  %v10108_v48 = vpop.permute.xlu0 %2210 }
 0x212   : > { %15334 = vst [vmem:[#allocation38_spill] sm:$0xff] %v10108_v48 }
 0x213   : > { %1448 = vrot.lane.b32.xlu1 %v10104_v52, %s9478_s23 }
 0x214   : > { %695 = vrot.lane.b32.xlu0 %v10104_v52, %s9479_s24 }
 0x215   : > { %v10114_v5 = vpop.permute.xlu1 %1840  ;;  %v10116_v19 = vpop.permute.xlu0 %2402 }
 0x216   : > { %15335 = vst [vmem:[#allocation39_spill] sm:$0xff] %v10114_v5  ;;  %15336 = vst [vmem:[#allocation40_spill] sm:$0xff] %v10116_v19 }
 0x217   : > { %1640 = vrot.lane.b32.xlu1 %v10104_v52, %s9480_s25 }
 0x218   : > { %778 = vrot.lane.b32.xlu0 %v10104_v52, %s9481_s26 }
 0x219   : > { %v10124_v11 = vpop.permute.xlu1 %2032  ;;  %v10126_v48 = vpop.permute.xlu0 %2594 }
 0x21a   : > { %15337 = vst [vmem:[#allocation41_spill] sm:$0xff] %v10124_v11  ;;  %15338 = vst [vmem:[#allocation42_spill] sm:$0xff] %v10126_v48  ;;  %v1479_v48 = vsel %vm1468_vm0, %v1457_v26, %v10030_v36 }
 0x21b   : > { %1832 = vrot.lane.b32.xlu1 %v10104_v52, %s9482_s29  ;;  %v1502_v12 = vmul.f32 %v9943_v14, %v1479_v48 }
 0x21c   : > { %711 = vrot.lane.b32.xlu0 %v10128_v33, %s9479_s24 }
 0x21d   : > { %v10134_v19 = vpop.permute.xlu1 %2224  ;;  %v10136_v6 = vpop.permute.xlu0 %2786 }
 0x21e   : > { %15340 = vst [vmem:[#allocation44_spill] sm:$0xff] %v10134_v19  ;;  %15341 = vst [vmem:[#allocation45_spill] sm:$0xff] %v10136_v6 }
 0x21f   : > { %2024 = vrot.lane.b32.xlu1 %v10104_v52, %s9484_s9 }
 0x220   : > { %794 = vrot.lane.b32.xlu0 %v10128_v33, %s9481_s26 }
 0x221   : > { %v10150_v19 = vpop.permute.xlu1 %2416  ;;  %v1459_v6 = vpop.permute.xlu0 %1458 }
 0x222   : > { %15342 = vst [vmem:[#allocation46_spill] sm:$0xff] %v10150_v19  ;;  %v1472_v7 = vsel %vm1468_vm0, %v1443_v34, %v1459_v6  ;;  %v1480_v44 = vsel %vm1468_vm0, %v1459_v6, %v1443_v34 }
 0x223   : > { %v1504_v36 = vmul.f32 %v9943_v14, %v1480_v44  ;;  %v1505_v26 = vmul.f32 %v9927_v60, %v1472_v7  ;;  %2216 = vrot.lane.b32.xlu1 %v10104_v52, %s9485_s10 }
 0x224   : > { %1450 = vrot.lane.b32.xlu0 %v10152_v58, %s9478_s23 }
 0x225   : > { %v10166_v21 = vpop.permute.xlu1 %2608  ;;  %v10168_v19 = vpop.permute.xlu0 %1650  ;;  %v8601_v50 = vpack.c.bf16 %v1505_v26, %v1503_v35  ;;  %v8603_v34 = vpack.c.bf16 %v1504_v36, %v1502_v12  ;;  %v801_v36 = vsel %vm798_vm1, %v10050_v55, %v10068_v16  ;;  %v809_v26 = vsel %vm798_vm1, %v10068_v16, %v10050_v55 }
 0x226   : > { %15344 = vst [vmem:[#allocation48_spill] sm:$0xff] %v10166_v21  ;;  %v665_v21 = vadd.f32 %v9696_v8, %v9803_v22 }
 0x227   : > { %2408 = vrot.lane.b32.xlu1 %v10104_v52, %s9486_s11  ;;  %8602 = vmatprep.subr.bf16.mxu1 %v8601_v50 }
 0x228   : > { %1642 = vrot.lane.b32.xlu0 %v10152_v58, %s9480_s25  ;;  %8604 = vmatpush1.bf16.msra.mxu1 %v8603_v34 }
 0x229   : > { %v10174_v44 = vpop.permute.xlu1 %2800  ;;  %v10176_v48 = vpop.permute.xlu0 %1842 }
 0x22a   : > { %15345 = vst [vmem:[#allocation49_spill] sm:$0xff] %v10174_v44 }
 0x22b   : > { %2600 = vrot.lane.b32.xlu1 %v10104_v52, %s9487_s13 }
 0x22c   : > { %1834 = vrot.lane.b32.xlu0 %v10152_v58, %s9482_s29 }
 0x22d   : > { %v10182_v35 = vpop.permute.xlu1 %689  ;;  %v10184_v12 = vpop.permute.xlu0 %2034 }
 0x22e   : > { %15346 = vst [vmem:[#allocation50_spill] sm:$0xff] %v10182_v35  ;;  %15347 = vst [vmem:[#allocation51_spill] sm:$0xff] %v10184_v12  ;;  %v832_v35 = vmul.f32 %v9999_v29, %v809_v26  ;;  %v15044_v26 = vmov 0.0  }
 0x22f   : > { %1464 = vrot.lane.b32.xlu1 %v10128_v33, %s9478_s23  ;;  %1595 = vmatprep.mubr.f32.mxu1 %v15044_v26 }
 0x230   : > { %2026 = vrot.lane.b32.xlu0 %v10152_v58, %s9484_s9  ;;  %926 = vmatprep.mubr.f32.mxu0 %v15044_v26 }
 0x231   : > { %v773_v50 = vpop.permute.xlu1 %772  ;;  %v10190_v6 = vpop.permute.xlu0 %2226 }
 0x232   : > { %15348 = vst [vmem:[#allocation52_spill] sm:$0xff] %v10190_v6 }
 0x233   : > { %1656 = vrot.lane.b32.xlu1 %v10128_v33, %s9480_s25 }
 0x234   : > { %2218 = vrot.lane.b32.xlu0 %v10152_v58, %s9485_s10 }
 0x235   : > { %v10196_v20 = vpop.permute.xlu1 %705  ;;  %v10198_v7 = vpop.permute.xlu0 %2418 }
 0x236   : > { %15349 = vst [vmem:[#allocation53_spill] sm:$0xff] %v10196_v20  ;;  %15350 = vst [vmem:[#allocation54_spill] sm:$0xff] %v10198_v7  ;;  %v833_v20 = vmul.f32 %v10002_v46, %v801_v36 }
 0x237   : > { %1848 = vrot.lane.b32.xlu1 %v10128_v33, %s9482_s29 }
 0x238   : > { %2410 = vrot.lane.b32.xlu0 %v10152_v58, %s9486_s11 }
 0x239   : > { %v789_v34 = vpop.permute.xlu1 %788  ;;  %v10212_v44 = vpop.permute.xlu0 %2610 }
 0x23a   : > { %15351 = vst [vmem:[#allocation55_spill] sm:$0xff] %v10212_v44  ;;  %v802_v7 = vsel %vm798_vm1, %v773_v50, %v789_v34  ;;  %v810_v6 = vsel %vm798_vm1, %v789_v34, %v773_v50  ;;  %v10230_v50 = vmax.f32 %v665_v21, 0.0 }
 0x23b   : > { %v834_v55 = vmul.f32 %v9999_v29, %v810_v6  ;;  %v835_v16 = vmul.f32 %v10002_v46, %v802_v7  ;;  %2040 = vrot.lane.b32.xlu1 %v10128_v33, %s9484_s9 }
 0x23c   : > { %2602 = vrot.lane.b32.xlu0 %v10152_v58, %s9487_s13  ;;  %15353 = vst [vmem:[#allocation57_spill] sm:$0xff] %v10230_v50 }
 0x23d   : > { %v8539_v8 = vpack.c.bf16 %v834_v55, %v832_v35  ;;  %v1445_v22 = vpop.permute.xlu1 %1444  ;;  %v10228_v44 = vpop.permute.xlu0 %691  ;;  %v8537_v12 = vpack.c.bf16 %v835_v16, %v833_v20 }
 0x23e   : > { %15352 = vst [vmem:[#allocation56_spill] sm:$0xff] %v10228_v44 }
 0x23f   : > { %2232 = vrot.lane.b32.xlu1 %v10128_v33, %s9485_s10  ;;  %8538 = vmatprep.subr.bf16.mxu0 %v8537_v12 }
 0x240   : > { %1466 = vrot.lane.b32.xlu0 %v10230_v50, %s9478_s23  ;;  %8540 = vmatpush1.bf16.msra.mxu0 %v8539_v8 }
 0x241   : > { %v10238_v35 = vpop.permute.xlu1 %1636  ;;  %v10240_v6 = vpop.permute.xlu0 %774 }
 0x243   : > { %2424 = vrot.lane.b32.xlu1 %v10128_v33, %s9486_s11 }
 0x244   : > { %1658 = vrot.lane.b32.xlu0 %v10230_v50, %s9480_s25 }
 0x245   : > { %v10246_v21 = vpop.permute.xlu1 %1828  ;;  %v10248_v20 = vpop.permute.xlu0 %707 }
 0x246   : > { %15354 = vst [vmem:[#allocation58_spill] sm:$0xff] %v10246_v21  ;;  %15355 = vst [vmem:[#allocation59_spill] sm:$0xff] %v10248_v20 }
 0x247   : > { %2616 = vrot.lane.b32.xlu1 %v10128_v33, %s9487_s13 }
 0x248   : > { %1850 = vrot.lane.b32.xlu0 %v10230_v50, %s9482_s29 }
 0x249   : > { %v10254_v12 = vpop.permute.xlu1 %2020  ;;  %v10256_v7 = vpop.permute.xlu0 %790 }
 0x24a   : > { %15356 = vst [vmem:[#allocation60_spill] sm:$0xff] %v10254_v12 }
 0x24b   : > { %697 = vrot.lane.b32.xlu1 %v10152_v58, %s9479_s24 }
 0x24c   : > { %2042 = vrot.lane.b32.xlu0 %v10230_v50, %s9484_s9 }
 0x24d   : > { %v10262_v36 = vpop.permute.xlu1 %2212  ;;  %v1447_v34 = vpop.permute.xlu0 %1446 }
 0x24e   : > { %15357 = vst [vmem:[#allocation61_spill] sm:$0xff] %v10262_v36 }
 0x24f   : > { %780 = vrot.lane.b32.xlu1 %v10152_v58, %s9481_s26 }
 0x250   : > { %2234 = vrot.lane.b32.xlu0 %v10230_v50, %s9485_s10 }
 0x251   : > { %v10268_v55 = vpop.permute.xlu1 %2404  ;;  %v10270_v16 = vpop.permute.xlu0 %1638 }
 0x252   : > { %15358 = vst [vmem:[#allocation62_spill] sm:$0xff] %v10268_v55 }
 0x253   : > { %713 = vrot.lane.b32.xlu1 %v10230_v50, %s9479_s24 }
 0x254   : > { %2426 = vrot.lane.b32.xlu0 %v10230_v50, %s9486_s11 }
 0x255   : > { %v10276_v8 = vpop.permute.xlu1 %2596  ;;  %v10278_v26 = vpop.permute.xlu0 %1830 }
 0x256   : > { %15359 = vst [vmem:[#allocation63_spill] sm:$0xff] %v10276_v8  ;;  %15360 = vst [vmem:[#allocation64_spill] sm:$0xff] %v10278_v26 }
 0x257   : > { %796 = vrot.lane.b32.xlu1 %v10230_v50, %s9481_s26 }
 0x258   : > { %2618 = vrot.lane.b32.xlu0 %v10230_v50, %s9487_s13 }
 0x259   : > { %v1461_v36 = vpop.permute.xlu1 %1460  ;;  %v10284_v55 = vpop.permute.xlu0 %2022 }
 0x25a   : > { %15361 = vst [vmem:[#allocation65_spill] sm:$0xff] %v10284_v55 }
 0x25b   : > { %2788 = vrot.lane.b32.xlu1 %v9898_v49, %s9488_s14 }
 0x25c   : > { %2802 = vrot.lane.b32.xlu0 %v9842_v32, %s9488_s14 }
 0x25d   : > { %v10290_v12 = vpop.permute.xlu1 %1652  ;;  %v10292_v8 = vpop.permute.xlu0 %2214 }
 0x25e   : > { %15362 = vst [vmem:[#allocation66_spill] sm:$0xff] %v10292_v8  ;;  %v1473_v8 = vsel %vm1468_vm0, %v1445_v22, %v1461_v36 }
 0x25f   : > { %2804 = vrot.lane.b32.xlu1 %v9934_v0, %s9488_s14  ;;  %v1507_v59 = vmul.f32 %v9927_v60, %v1473_v8 }
 0x260   : > { %2790 = vrot.lane.b32.xlu0 %v9970_v63, %s9488_s14 }
 0x261   : > { %v10298_v44 = vpop.permute.xlu1 %1844 }
 0x262   : > { %15363 = vst [vmem:[#allocation67_spill] sm:$0xff] %v10298_v44  ;;  %v10300_v20 = vpop.permute.xlu0 %2406 }
 0x263   : > { %15364 = vst [vmem:[#allocation68_spill] sm:$0xff] %v10300_v20  ;;  %2792 = vrot.lane.b32.xlu1 %v10104_v52, %s9488_s14  ;;  %v1481_v20 = vsel %vm1468_vm0, %v1461_v36, %v1445_v22 }
 0x264   : > { %2806 = vrot.lane.b32.xlu0 %v10052_v41, %s9488_s14  ;;  %v1506_v11 = vmul.f32 %v9943_v14, %v1481_v20 }
 0x265   : > { %v10306_v55 = vpop.permute.xlu1 %2036 }
 0x266   : > { %15365 = vst [vmem:[#allocation69_spill] sm:$0xff] %v10306_v55  ;;  %v10308_v21 = vpop.permute.xlu0 %2598 }
 0x267   : > { %15366 = vst [vmem:[#allocation70_spill] sm:$0xff] %v10308_v21  ;;  %2808 = vrot.lane.b32.xlu1 %v10128_v33, %s9488_s14 }
 0x268   : > { %2794 = vrot.lane.b32.xlu0 %v10152_v58, %s9488_s14 }
 0x269   : > { %v10318_v44 = vpop.permute.xlu1 %2228 }
 0x26a   : > { %15367 = vst [vmem:[#allocation71_spill] sm:$0xff] %v10318_v44  ;;  %v1463_v26 = vpop.permute.xlu0 %1462 }
 0x26b   : > { %v1474_v55 = vsel %vm1468_vm0, %v1447_v34, %v1463_v26  ;;  %v1482_v21 = vsel %vm1468_vm0, %v1463_v26, %v1447_v34  ;;  %3086 = vrot.lane.b32.xlu1 %v9644_v54, %s15212_s18 }
 0x26c   : > { %v1508_v5 = vmul.f32 %v9943_v14, %v1482_v21  ;;  %v1509_v22 = vmul.f32 %v9927_v60, %v1474_v55  ;;  %2810 = vrot.lane.b32.xlu0 %v10230_v50, %s9488_s14 }
 0x26d   : > { %v10332_v36 = vpop.permute.xlu1 %2420 }
 0x26e   : > { %15368 = vst [vmem:[#allocation72_spill] sm:$0xff] %v10332_v36  ;;  %v10334_v44 = vpop.permute.xlu0 %1654  ;;  %v8605_v26 = vpack.c.bf16 %v1509_v22, %v1507_v59  ;;  %v8607_v34 = vpack.c.bf16 %v1508_v5, %v1506_v11 }
 0x26f   : > { %3102 = vrot.lane.b32.xlu1 %v9666_v61, %s15212_s18 }
 0x270   : > { %3088 = vrot.lane.b32.xlu0 %v9684_v4, %s15212_s18  ;;  %8606 = vmatprep.subr.bf16.mxu1 %v8605_v26  ;;  %v803_v26 = vsel %vm798_vm1, %v10240_v6, %v10256_v7 }
 0x271   : > { %8608 = vmatpush1.bf16.msra.mxu1 %v8607_v34  ;;  %v10340_v21 = vpop.permute.xlu1 %2612  ;;  %v811_v34 = vsel %vm798_vm1, %v10256_v7, %v10240_v6 }
 0x272   : > { %15369 = vst [vmem:[#allocation73_spill] sm:$0xff] %v10340_v21  ;;  %v10342_v20 = vpop.permute.xlu0 %1846 }
 0x273   : > { %15370 = vst [vmem:[#allocation74_spill] sm:$0xff] %v10342_v20  ;;  %3090 = vrot.lane.b32.xlu1 %v9753_v13, %s15212_s18 }
 0x274   : > { %3104 = vrot.lane.b32.xlu0 %v9726_v10, %s15212_s18 }
 0x275   : > { %v10348_v59 = vpop.permute.xlu1 %693 }
 0x276   : > { %15371 = vst [vmem:[#allocation75_spill] sm:$0xff] %v10348_v59  ;;  %v10350_v5 = vpop.permute.xlu0 %2038  ;;  %v837_v59 = vmul.f32 %v10002_v46, %v803_v26 }
 0x277   : > { %15372 = vst [vmem:[#allocation76_spill] sm:$0xff] %v10350_v5  ;;  %3106 = vrot.lane.b32.xlu1 %v9772_v15, %s15212_s18  ;;  %v836_v5 = vmul.f32 %v9999_v29, %v811_v34 }
 0x278   : > { %3092 = vrot.lane.b32.xlu0 %v9783_v18, %s15212_s18 }
 0x279   : > { %v777_v11 = vpop.permute.xlu1 %776 }
 0x27a   : > { %v10356_v55 = vpop.permute.xlu0 %2230 }
 0x27b   : > { %15373 = vst [vmem:[#allocation77_spill] sm:$0xff] %v10356_v55  ;;  %3094 = vrot.lane.b32.xlu1 %v9898_v49, %s15212_s18 }
 0x27c   : > { %3108 = vrot.lane.b32.xlu0 %v9842_v32, %s15212_s18 }
 0x27d   : > { %v10362_v8 = vpop.permute.xlu1 %709 }
 0x27e   : > { %15374 = vst [vmem:[#allocation78_spill] sm:$0xff] %v10362_v8  ;;  %v10364_v22 = vpop.permute.xlu0 %2422 }
 0x27f   : > { %15375 = vst [vmem:[#allocation79_spill] sm:$0xff] %v10364_v22  ;;  %3110 = vrot.lane.b32.xlu1 %v9934_v0, %s15212_s18 }
 0x280   : > { %3096 = vrot.lane.b32.xlu0 %v9970_v63, %s15212_s18 }
 0x281   : > { %v793_v21 = vpop.permute.xlu1 %792 }
 0x282   : > { %v804_v36 = vsel %vm798_vm1, %v777_v11, %v793_v21  ;;  %v812_v22 = vsel %vm798_vm1, %v793_v21, %v777_v11  ;;  %v10382_v55 = vpop.permute.xlu0 %2614 }
 0x283   : > { %15376 = vst [vmem:[#allocation80_spill] sm:$0xff] %v10382_v55  ;;  %v838_v8 = vmul.f32 %v9999_v29, %v812_v22  ;;  %v839_v6 = vmul.f32 %v10002_v46, %v804_v36  ;;  %3098 = vrot.lane.b32.xlu1 %v10104_v52, %s15212_s18 }
 0x284   : > { %3112 = vrot.lane.b32.xlu0 %v10052_v41, %s15212_s18 }
 0x285   : > { %v8543_v7 = vpack.c.bf16 %v838_v8, %v836_v5  ;;  %v10392_v20 = vpop.permute.xlu1 %1448  ;;  %v8541_v21 = vpack.c.bf16 %v839_v6, %v837_v59 }
 0x286   : > { %v10394_v11 = vpop.permute.xlu0 %695 }
 0x287   : > { %15377 = vst [vmem:[#allocation81_spill] sm:$0xff] %v10394_v11  ;;  %3114 = vrot.lane.b32.xlu1 %v10128_v33, %s15212_s18  ;;  %8542 = vmatprep.subr.bf16.mxu0 %v8541_v21 }
 0x288   : > { %3100 = vrot.lane.b32.xlu0 %v10152_v58, %s15212_s18  ;;  %8544 = vmatpush1.bf16.msra.mxu0 %v8543_v7 }
 0x289   : > { %v10400_v36 = vpop.permute.xlu1 %1640 }
 0x28a   : > { %v10402_v22 = vpop.permute.xlu0 %778 }
 0x28b   : > { %15378 = vst [vmem:[#allocation82_spill] sm:$0xff] %v10402_v22  ;;  %3278 = vrot.lane.b32.xlu1 %v9644_v54, %s15210_s19  ;;  %v1669_v22 = vsel %vm1660_vm3, %v9880_v43, %v9817_v25 }
 0x28c   : > { %3116 = vrot.lane.b32.xlu0 %v10230_v50, %s15212_s18  ;;  %s15587_s18 = smov 127  }
 0x28d   : > { %v10408_v59 = vpop.permute.xlu1 %1832 }
 0x28e   : > { %15379 = vst [vmem:[#allocation83_spill] sm:$0xff] %v10408_v59  ;;  %v10410_v5 = vpop.permute.xlu0 %711 }
 0x28f   : > { %15380 = vst [vmem:[#allocation84_spill] sm:$0xff] %v10410_v5  ;;  %3294 = vrot.lane.b32.xlu1 %v9666_v61, %s15210_s19  ;;  %v8301_v5 = vld [vmem:[%s15005_s7 + $0x5] ss:$8 sm:$0x3] }
 0x290   : > { %3280 = vrot.lane.b32.xlu0 %v9684_v4, %s15210_s19 }
 0x291   : > { %v10416_v8 = vpop.permute.xlu1 %2024 }
 0x292   : > { %15381 = vst [vmem:[#allocation85_spill] sm:$0xff] %v10416_v8  ;;  %v10418_v26 = vpop.permute.xlu0 %794 }
 0x293   : > { %15382 = vst [vmem:[#allocation86_spill] sm:$0xff] %v10418_v26  ;;  %3282 = vrot.lane.b32.xlu1 %v9753_v13, %s15210_s19 }
 0x294   : > { %3296 = vrot.lane.b32.xlu0 %v9726_v10, %s15210_s19 }
 0x295   : > { %v10424_v34 = vpop.permute.xlu1 %2216 }
 0x296   : > { %15383 = vst [vmem:[#allocation87_spill] sm:$0xff] %v10424_v34  ;;  %v10426_v6 = vpop.permute.xlu0 %1450 }
 0x297   : > { %3298 = vrot.lane.b32.xlu1 %v9772_v15, %s15210_s19 }
 0x298   : > { %3284 = vrot.lane.b32.xlu0 %v9783_v18, %s15210_s19 }
 0x299   : > { %v10432_v7 = vpop.permute.xlu1 %2408 }
 0x29a   : > { %15384 = vst [vmem:[#allocation88_spill] sm:$0xff] %v10432_v7  ;;  %v10434_v21 = vpop.permute.xlu0 %1642 }
 0x29b   : > { %3286 = vrot.lane.b32.xlu1 %v9898_v49, %s15210_s19 }
 0x29c   : > { %3300 = vrot.lane.b32.xlu0 %v9842_v32, %s15210_s19 }
 0x29d   : > { %v10440_v55 = vpop.permute.xlu1 %2600 }
 0x29e   : > { %15385 = vst [vmem:[#allocation89_spill] sm:$0xff] %v10440_v55  ;;  %v10442_v34 = vpop.permute.xlu0 %1834 }
 0x29f   : > { %15386 = vst [vmem:[#allocation90_spill] sm:$0xff] %v10442_v34  ;;  %3302 = vrot.lane.b32.xlu1 %v9934_v0, %s15210_s19  ;;  %v8310_v34 = vld [vmem:[%s15005_s7 + $0x6] ss:$8 sm:$0x3] }
 0x2a0   : > { %3288 = vrot.lane.b32.xlu0 %v9970_v63, %s15210_s19 }
 0x2a1   : > { %v1465_v8 = vpop.permute.xlu1 %1464 }
 0x2a2   : > { %v10448_v7 = vpop.permute.xlu0 %2026 }
 0x2a3   : > { %15387 = vst [vmem:[#allocation91_spill] sm:$0xff] %v10448_v7  ;;  %3290 = vrot.lane.b32.xlu1 %v10104_v52, %s15210_s19  ;;  %v734_v7 = vld [vmem:[%s15005_s7] ss:$8 sm:$0x3] }
 0x2a4   : > { %3304 = vrot.lane.b32.xlu0 %v10052_v41, %s15210_s19  ;;  %v10480_v46 = vrot.slane %v734_v7, %v9929_v62  ;;  %v10483_v29 = vrot.slane %v734_v7, %v9915_v57  ;;  %v726_v7 = vsel %vm717_vm2, %v9836_v31, %v9811_v24 }
 0x2a5   : > { %v10454_v11 = vpop.permute.xlu1 %1656 }
 0x2a6   : > { %v10456_v55 = vpop.permute.xlu0 %2218  ;;  %15391 = vst [vmem:[#allocation95_spill] sm:$0xff] %v10480_v46  ;;  %15392 = vst [vmem:[#allocation96_spill] sm:$0xff] %v10483_v29 }
 0x2a7   : > { %15388 = vst [vmem:[#allocation92_spill] sm:$0xff] %v10456_v55  ;;  %3306 = vrot.lane.b32.xlu1 %v10128_v33, %s15210_s19  ;;  %v10516_v33 = vrot.slane %v8310_v34, %v9929_v62 }
 0x2a8   : > { %3292 = vrot.lane.b32.xlu0 %v10152_v58, %s15210_s19  ;;  %v10502_v58 = vrot.slane %v8301_v5, %v9915_v57 }
 0x2a9   : > { %v10468_v59 = vpop.permute.xlu1 %1848  ;;  %15396 = vst [vmem:[#allocation100_spill] sm:$0xff] %v10516_v33 }
 0x2aa   : > { %15389 = vst [vmem:[#allocation93_spill] sm:$0xff] %v10468_v59  ;;  %v10472_v55 = vpop.permute.xlu0 %2410  ;;  %v10486_v59 = vrot.slane %v8301_v5, %v9929_v62  ;;  %15394 = vst [vmem:[#allocation98_spill] sm:$0xff] %v10502_v58 }
 0x2ab   : > { %15390 = vst [vmem:[#allocation94_spill] sm:$0xff] %v10472_v55  ;;  %3470 = vrot.lane.b32.xlu1 %v9644_v54, %s15206_s12  ;;  %v8319_v55 = vld [vmem:[%s15005_s7 + $0x7] ss:$8 sm:$0x3]  ;;  %v718_v54 = vsel %vm717_vm2, %v9811_v24, %v9836_v31  ;;  %v10521_v31 = vrot.slane %v8310_v34, %v9915_v57 }
 0x2ac   : > { %15393 = vst [vmem:[#allocation97_spill] sm:$0xff] %v10486_v59  ;;  %3308 = vrot.lane.b32.xlu0 %v10230_v50, %s15210_s19  ;;  %v1661_v50 = vsel %vm1660_vm3, %v9817_v25, %v9880_v43  ;;  %v10525_v5 = vrot.slane %v8319_v55, %v9929_v62  ;;  %v1662_v25 = vsel %vm1660_vm3, %v9860_v38, %v9957_v45 }
 0x2ad   : > { %v10508_v26 = vpop.permute.xlu1 %2040  ;;  %15398 = vst [vmem:[#allocation102_spill] sm:$0xff] %v10521_v31  ;;  %v10534_v43 = vmul.f32 %v10480_v46, %v726_v7  ;;  %v10540_v34 = vmul.f32 %v10486_v59, %v1669_v22  ;;  %v10543_v62 = vrot.slane %v8319_v55, %v9915_v57  ;;  %v1853_v7 = vsel %vm1852_vm4, %v9825_v27, %v9890_v47 }
 0x2ae   : > { %15395 = vst [vmem:[#allocation99_spill] sm:$0xff] %v10508_v26  ;;  %v10518_v24 = vpop.permute.xlu0 %2602  ;;  %15399 = vst [vmem:[#allocation103_spill] sm:$0xff] %v10525_v5  ;;  %v1691_v26 = vmul.f32 %v10502_v58, %v1661_v50  ;;  %v1483_v22 = vsel %vm1468_vm0, %v1465_v8, %v10392_v20  ;;  %v1861_v50 = vsel %vm1852_vm4, %v9890_v47, %v9825_v27 }
 0x2af   : > { %15397 = vst [vmem:[#allocation101_spill] sm:$0xff] %v10518_v24  ;;  %3486 = vrot.lane.b32.xlu1 %v9666_v61, %s15206_s12  ;;  %v10537_v24 = vmul.f32 %v10483_v29, %v718_v54  ;;  %15401 = vst [vmem:[#allocation105_spill] sm:$0xff] %v10543_v62  ;;  %v1475_v54 = vsel %vm1468_vm0, %v10392_v20, %v1465_v8  ;;  %v2053_v57 = vsel %vm2044_vm5, %v9900_v51, %v9834_v30 }
 0x2b0   : > { %3472 = vrot.lane.b32.xlu0 %v9684_v4, %s15206_s12  ;;  %v1670_v4 = vsel %vm1660_vm3, %v9957_v45, %v9860_v38  ;;  %v1693_v61 = vmul.f32 %v10502_v58, %v1662_v25  ;;  %v1854_v8 = vsel %vm1852_vm4, %v9868_v40, %v9968_v56  ;;  %v1862_v27 = vsel %vm1852_vm4, %v9968_v56, %v9868_v40 }
 0x2b1   : > { %15400 = vst [vmem:[#allocation104_spill] sm:$0xff] %v10537_v24  ;;  %v10558_v55 = vpop.permute.xlu1 %2232  ;;  %v1510_v45 = vmul.f32 %v9943_v14, %v1483_v22  ;;  %v1511_v25 = vmul.f32 %v9927_v60, %v1475_v54  ;;  %v10596_v40 = vmul.f32 %v10516_v33, %v1861_v50  ;;  %v10599_v56 = vmul.f32 %v10521_v31, %v1853_v7 }
 0x2b2   : > { %15402 = vst [vmem:[#allocation106_spill] sm:$0xff] %v10558_v55  ;;  %v1467_v20 = vpop.permute.xlu0 %1466  ;;  %v1664_v54 = vsel %vm1660_vm3, %v10082_v37, %v10168_v19  ;;  %v10613_v50 = vmul.f32 %v10516_v33, %v1862_v27  ;;  %v1671_v27 = vsel %vm1660_vm3, %v10106_v2, %v10038_v39 }
 0x2b3   : > { %v1476_v47 = vsel %vm1468_vm0, %v10426_v6, %v1467_v20  ;;  %v1484_v38 = vsel %vm1468_vm0, %v1467_v20, %v10426_v6  ;;  %3474 = vrot.lane.b32.xlu1 %v9753_v13, %s15206_s12  ;;  %v1692_v6 = vmul.f32 %v10486_v59, %v1670_v4  ;;  %v2045_v20 = vsel %vm2044_vm5, %v9834_v30, %v9900_v51 }
 0x2b4   : > { %v1512_v55 = vmul.f32 %v9943_v14, %v1484_v38  ;;  %v1513_v24 = vmul.f32 %v9927_v60, %v1476_v47  ;;  %3488 = vrot.lane.b32.xlu0 %v9726_v10, %s15206_s12  ;;  %v10616_v4 = vmul.f32 %v10525_v5, %v2053_v57  ;;  %v10619_v14 = vmul.f32 %v10521_v31, %v1854_v8 }
 0x2b5   : > { %v10606_v22 = vpop.permute.xlu1 %2424  ;;  %v1663_v60 = vsel %vm1660_vm3, %v10038_v39, %v10106_v2  ;;  %v8613_v30 = vpack.c.bf16 %v1693_v61, %v1691_v26  ;;  %v2054_v51 = vsel %vm2044_vm5, %v9978_v9, %v9874_v42  ;;  %v1672_v57 = vsel %vm1660_vm3, %v10168_v19, %v10082_v37  ;;  %v8293_v19 = vld [vmem:[%s15001_s3 + $0x80] sm:$0xff]  ;;  %v15419_v37 = vld [vmem:[#allocation53_spill] sm:$0xff] }
 0x2b6   : > { %15403 = vst [vmem:[#allocation107_spill] sm:$0xff] %v10606_v22  ;;  %v1659_v47 = vpop.permute.xlu0 %1658  ;;  %v8609_v7 = vpack.c.bf16 %v1513_v24, %v1511_v25  ;;  %v8611_v38 = vpack.c.bf16 %v1512_v55, %v1510_v45  ;;  %v1697_v24 = vmul.f32 %v10502_v58, %v1664_v54  ;;  %v10639_v55 = vmul.f32 %v10543_v62, %v2045_v20  ;;  %v15420_v2 = vld [vmem:[#allocation50_spill] sm:$0xff] }
 0x2b7   : > { %3490 = vrot.lane.b32.xlu1 %v9772_v15, %s15206_s12  ;;  %v8615_v61 = vpack.c.bf16 %v1692_v6, %v10540_v34  ;;  %v1666_v26 = vsel %vm1660_vm3, %v10270_v16, %v10334_v44  ;;  %v2046_v34 = vsel %vm2044_vm5, %v9874_v42, %v9978_v9  ;;  %v1695_v45 = vmul.f32 %v10502_v58, %v1663_v60 }
 0x2b8   : > { %3476 = vrot.lane.b32.xlu0 %v9783_v18, %s15206_s12  ;;  %8610 = vmatprep.subr.bf16.mxu1 %v8609_v7  ;;  %v10665_v6 = vmul.f32 %v10525_v5, %v2054_v51  ;;  %v1696_v54 = vmul.f32 %v10486_v59, %v1672_v57  ;;  %v1665_v42 = vsel %vm1660_vm3, %v10238_v35, %v10290_v12 }
 0x2b9   : > { %8612 = vmatpush1.bf16.msra.mxu1 %v8611_v38  ;;  %v10646_v8 = vpop.permute.xlu1 %2616  ;;  %v1674_v60 = vsel %vm1660_vm3, %v10334_v44, %v10270_v16  ;;  %v1701_v9 = vmul.f32 %v10502_v58, %v1666_v26  ;;  %v8617_v39 = vpack.c.bf16 %v1697_v24, %v1695_v45  ;;  %v10685_v20 = vmul.f32 %v10543_v62, %v2046_v34  ;;  %v8294_v16 = vld [vmem:[%s15001_s3 + $0x88] sm:$0xff] }
 0x2ba   : > { %15404 = vst [vmem:[#allocation108_spill] sm:$0xff] %v10646_v8  ;;  %8614 = vmatprep.subr.bf16.mxu1 %v8613_v30  ;;  %v10662_v25 = vpop.permute.xlu0 %1850  ;;  %v1694_v7 = vmul.f32 %v10486_v59, %v1671_v27  ;;  %v1668_v38 = vsel %vm1660_vm3, %v10434_v21, %v1659_v47  ;;  %v15405_v44 = vmov 0.0   ;;  %v719_v51 = vsel %vm717_vm2, %v9976_v1, %v9994_v17 }
 0x2bb   : > { %3478 = vrot.lane.b32.xlu1 %v9898_v49, %s15206_s12  ;;  %v727_v57 = vsel %vm717_vm2, %v9994_v17, %v9976_v1  ;;  %v1673_v24 = vsel %vm1660_vm3, %v10290_v12, %v10238_v35  ;;  %v1700_v27 = vmul.f32 %v10486_v59, %v1674_v60  ;;  %v1667_v1 = vsel %vm1660_vm3, %v10400_v36, %v10454_v11 }
 0x2bc   : > { %3492 = vrot.lane.b32.xlu0 %v9842_v32, %s15206_s12  ;;  %8297 = vmatmul.mubr.msk.f32.vlgmr.msra.gmra.mrb[0].mxu1 %vm849_vm6, %v8293_v19  ;;  %v8619_v34 = vpack.c.bf16 %v1696_v54, %v1694_v7  ;;  %v1676_v17 = vsel %vm1660_vm3, %v1659_v47, %v10434_v21  ;;  %v1705_v35 = vmul.f32 %v10502_v58, %v1668_v38  ;;  %v8295_v21 = vld [vmem:[%s15001_s3 + $0x90] sm:$0xff] }
 0x2bd   : > { %8616 = vmatpush1.bf16.msra.mxu1 %v8615_v61  ;;  %v10691_v30 = vpop.permute.xlu1 %697  ;;  %1601 = vmatprep.mubr.f32.mxu1 %v15405_v44  ;;  %v1699_v61 = vmul.f32 %v10502_v58, %v1665_v42  ;;  %v10729_v45 = vmul.f32 %v10480_v46, %v727_v57  ;;  %v10732_v54 = vmul.f32 %v10483_v29, %v719_v51  ;;  %v15418_v19 = vld [vmem:[#allocation36_spill] sm:$0xff] }
 0x2be   : > { %8618 = vmatprep.subr.bf16.mxu1 %v8617_v39  ;;  %v10710_v26 = vpop.permute.xlu0 %2042  ;;  %v1698_v42 = vmul.f32 %v10486_v59, %v1673_v24  ;;  %v1856_v47 = vsel %vm1852_vm4, %v10090_v28, %v10176_v48  ;;  %v1675_v39 = vsel %vm1660_vm3, %v10454_v11, %v10400_v36  ;;  %v1703_v7 = vmul.f32 %v10502_v58, %v1667_v1  ;;  %v15407_v11 = vld [vmem:[#allocation39_spill] sm:$0xff]  ;;  %v15408_v36 = vld [vmem:[#allocation29_spill] sm:$0xff] }
 0x2bf   : > { %3494 = vrot.lane.b32.xlu1 %v9934_v0, %s15206_s12  ;;  %v8621_v12 = vpack.c.bf16 %v1701_v9, %v1699_v61  ;;  %v1864_v9 = vsel %vm1852_vm4, %v10176_v48, %v10090_v28  ;;  %v728_v28 = vsel %vm717_vm2, %v10060_v3, %v10040_v23  ;;  %v1704_v51 = vmul.f32 %v10486_v59, %v1676_v17  ;;  %v8296_v1 = vld [vmem:[%s15001_s3 + $0x98] sm:$0xff] }
 0x2c0   : > { %3480 = vrot.lane.b32.xlu0 %v9970_v63, %s15206_s12  ;;  %8298 = vmatmul.mubr.msk.f32.gmra.mrb[2].mxu1 %vm849_vm6, %v8294_v16  ;;  %v720_v16 = vsel %vm717_vm2, %v10040_v23, %v10060_v3  ;;  %v8623_v48 = vpack.c.bf16 %v1700_v27, %v1698_v42  ;;  %v1855_v57 = vsel %vm1852_vm4, %v15408_v36, %v15407_v11  ;;  %v15410_v42 = vld [vmem:[#allocation104_spill] sm:$0xff] }
 0x2c1   : > { %8620 = vmatpush1.bf16.msra.mxu1 %v8619_v34  ;;  %v781_v60 = vpop.permute.xlu1 %780  ;;  %1607 = vmatprep.mubr.f32.mxu1 %v15405_v44  ;;  %v1863_v24 = vsel %vm1852_vm4, %v15407_v11, %v15408_v36  ;;  %v8625_v23 = vpack.c.bf16 %v1705_v35, %v1703_v7  ;;  %v10777_v3 = vmul.f32 %v10516_v33, %v1864_v9  ;;  %v15412_v11 = vld [vmem:[#allocation41_spill] sm:$0xff]  ;;  %v15413_v36 = vld [vmem:[#allocation31_spill] sm:$0xff] }
 0x2c2   : > { %8622 = vmatprep.subr.bf16.mxu1 %v8621_v12  ;;  %v10752_v38 = vpop.permute.xlu0 %2234  ;;  %v1889_v61 = vmul.f32 %v10521_v31, %v1856_v47  ;;  %v1702_v34 = vmul.f32 %v10486_v59, %v1675_v39  ;;  %v10790_v35 = vmul.f32 %v10480_v46, %v728_v28  ;;  %v10799_v9 = vmul.f32 %v10483_v29, %v720_v16  ;;  %v15411_v28 = vld [vmem:[#allocation43_spill] sm:$0xff] }
 0x2c3   : > { %15406 = vst [vmem:[#allocation109_spill] sm:$0xff] %v10752_v38  ;;  %3482 = vrot.lane.b32.xlu1 %v10104_v52, %s15206_s12  ;;  %v10802_v39 = vmul.f32 %v10516_v33, %v1863_v24  ;;  %v1887_v7 = vmul.f32 %v10521_v31, %v1855_v57  ;;  %v15423_v8 = vpack.c.bf16 %v10619_v14, %v10599_v56  ;;  %v15428_v56 = vld [vmem:[#allocation67_spill] sm:$0xff] }
 0x2c4   : > { %3496 = vrot.lane.b32.xlu0 %v10052_v41, %s15206_s12  ;;  %8299 = vmatmul.mubr.msk.f32.gmra.mrb[4].mxu1 %vm849_vm6, %v8295_v21  ;;  %v8549_v21 = vpack.c.bf16 %v10732_v54, %v15410_v42  ;;  %v10811_v54 = vsel %vm2044_vm5, %v15413_v36, %v15412_v11  ;;  %v15415_v42 = vld [vmem:[#allocation82_spill] sm:$0xff]  ;;  %v729_v14 = vsel %vm717_vm2, %v15419_v37, %v15420_v2 }
 0x2c5   : > { %8624 = vmatpush1.bf16.msra.mxu1 %v8623_v48  ;;  %v10781_v27 = vpop.permute.xlu1 %713  ;;  %1613 = vmatprep.mubr.f32.mxu1 %v15405_v44  ;;  %v8627_v48 = vpack.c.bf16 %v1704_v51, %v1702_v34  ;;  %v15416_v51 = vld [vmem:[#allocation47_spill] sm:$0xff]  ;;  %v8635_v24 = vpack.c.bf16 %v10777_v3, %v10802_v39  ;;  %v15421_v3 = vld [vmem:[#allocation74_spill] sm:$0xff]  ;;  %v15422_v39 = vld [vmem:[#allocation64_spill] sm:$0xff] }
 0x2c6   : > { %8626 = vmatprep.subr.bf16.mxu1 %v8625_v23  ;;  %v10792_v12 = vpop.permute.xlu0 %2426  ;;  %v15414_v23 = vld [vmem:[#allocation86_spill] sm:$0xff]  ;;  %v15417_v34 = vld [vmem:[#allocation51_spill] sm:$0xff]  ;;  %v1858_v59 = vsel %vm1852_vm4, %v15422_v39, %v15421_v3 }
 0x2c7   : > { %15409 = vst [vmem:[#allocation39_spill] sm:$0xff] %v10792_v12  ;;  %3498 = vrot.lane.b32.xlu1 %v15411_v28, %s15206_s12  ;;  %v805_v16 = vsel %vm798_vm1, %v15415_v42, %v15414_v23  ;;  %v813_v57 = vsel %vm798_vm1, %v15414_v23, %v15415_v42  ;;  %v2048_v47 = vsel %vm2044_vm5, %v15418_v19, %v15417_v34  ;;  %v8302_v23 = vld [vmem:[%s15001_s3 + $0xa0] sm:$0xff] }
 0x2c8   : > { %3484 = vrot.lane.b32.xlu0 %v15416_v51, %s15206_s12  ;;  %8300 = vmatmul.mubr.msk.f32.gmra.mrb[6].mxu1 %vm849_vm6, %v8296_v1  ;;  %v8633_v42 = vpack.c.bf16 %v1889_v61, %v1887_v7  ;;  %v721_v1 = vsel %vm717_vm2, %v15420_v2, %v15419_v37  ;;  %v15425_v7 = vld [vmem:[#allocation25_spill] sm:$0xff]  ;;  %v15426_v12 = vld [vmem:[#allocation26_spill] sm:$0xff]  ;;  %v15431_v37 = vpack.c.bf16 %v10613_v50, %v10596_v40 }
 0x2c9   : > { %8628 = vmatpush1.bf16.msra.mxu1 %v8627_v48  ;;  %v797_v17 = vpop.permute.xlu1 %796  ;;  %1787 = vmatprep.mubr.f32.mxu1 %v15405_v44  ;;  %v840_v22 = vmul.f32 %v15425_v7, %v813_v57  ;;  %v841_v38 = vmul.f32 %v15426_v12, %v805_v16  ;;  %v15427_v41 = vld [vmem:[#allocation2_spill] sm:$0xff]  ;;  %v1893_v16 = vmul.f32 %v10521_v31, %v1858_v59 }
 0x2ca   : > { %v806_v48 = vsel %vm798_vm1, %v781_v60, %v797_v17  ;;  %v814_v58 = vsel %vm798_vm1, %v797_v17, %v781_v60  ;;  %8630 = vmatprep.subr.bf16.mxu1 %v15423_v8  ;;  %v10849_v61 = vpop.permute.xlu0 %2618  ;;  %v15429_v8 = vld [vmem:[#allocation58_spill] sm:$0xff]  ;;  %v15430_v17 = vld [vmem:[#allocation57_spill] sm:$0xff]  ;;  %v753_v59 = vmul.f32 %v10483_v29, %v721_v1  ;;  %v15437_v1 = vld [vmem:[#allocation75_spill] sm:$0xff] }
 0x2cb   : > { %15424 = vst [vmem:[#allocation29_spill] sm:$0xff] %v10849_v61  ;;  %v842_v51 = vmul.f32 %v15425_v7, %v814_v58  ;;  %v843_v28 = vmul.f32 %v15426_v12, %v806_v48  ;;  %3662 = vrot.lane.b32.xlu1 %v15427_v41, %s15201_s20  ;;  %v1857_v60 = vsel %vm1852_vm4, %v15429_v8, %v15428_v56  ;;  %v8262_v7 = vld [vmem:[%s15001_s3 + $0x20] sm:$0xff] }
 0x2cc   : > { %v1866_v58 = vsel %vm1852_vm4, %v15421_v3, %v15422_v39  ;;  %3500 = vrot.lane.b32.xlu0 %v15430_v17, %s15206_s12  ;;  %8306 = vmatmul.mubr.msk.f32.vlgmr.msra.gmra.mrb[0].mxu1 %vm849_vm6, %v8302_v23  ;;  %v10883_v3 = vsel %vm2044_vm5, %v15417_v34, %v15418_v19  ;;  %v10886_v23 = vmul.f32 %v10543_v62, %v2048_v47 }
 0x2cd   : > { %v8547_v57 = vpack.c.bf16 %v842_v51, %v840_v22  ;;  %8632 = vmatpush1.bf16.msra.mxu1 %v15431_v37  ;;  %v10876_v2 = vpop.permute.xlu1 %2788  ;;  %v8545_v48 = vpack.c.bf16 %v843_v28, %v841_v38  ;;  %1793 = vmatprep.mubr.f32.mxu1 %v15405_v44  ;;  %v15433_v22 = vld [vmem:[#allocation90_spill] sm:$0xff]  ;;  %v8303_v38 = vld [vmem:[%s15001_s3 + $0xa8] sm:$0xff]  ;;  %v752_v19 = vmul.f32 %v10480_v46, %v729_v14  ;;  %v15438_v37 = vld [vmem:[#allocation93_spill] sm:$0xff] }
 0x2ce   : > { %15432 = vst [vmem:[#allocation104_spill] sm:$0xff] %v10876_v2  ;;  %v1860_v40 = vsel %vm1852_vm4, %v15433_v22, %v10662_v25  ;;  %8634 = vmatprep.subr.bf16.mxu1 %v8633_v42  ;;  %v10893_v50 = vpop.permute.xlu0 %2802  ;;  %v1865_v47 = vsel %vm1852_vm4, %v15428_v56, %v15429_v8  ;;  %v1891_v28 = vmul.f32 %v10521_v31, %v1857_v60  ;;  %v15435_v51 = vld [vmem:[#allocation3_spill] sm:$0xff]  ;;  %v15436_v42 = vld [vmem:[#allocation78_spill] sm:$0xff]  ;;  %v15440_v56 = vld [vmem:[#allocation4_spill] sm:$0xff] }
 0x2cf   : > { %15434 = vst [vmem:[#allocation41_spill] sm:$0xff] %v10893_v50  ;;  %3678 = vrot.lane.b32.xlu1 %v15435_v51, %s15201_s20  ;;  %8546 = vmatprep.subr.bf16.mxu0 %v8545_v48  ;;  %v1892_v34 = vmul.f32 %v10516_v33, %v1866_v58  ;;  %v723_v39 = vsel %vm717_vm2, %v15437_v1, %v15436_v42  ;;  %v15439_v14 = vld [vmem:[#allocation83_spill] sm:$0xff]  ;;  %v15442_v50 = vld [vmem:[#allocation56_spill] sm:$0xff] }
 0x2d0   : > { %v1859_v12 = vsel %vm1852_vm4, %v15439_v14, %v15438_v37  ;;  %3664 = vrot.lane.b32.xlu0 %v15440_v56, %s15201_s20  ;;  %8548 = vmatpush1.bf16.msra.mxu0 %v8547_v57  ;;  %v1868_v8 = vsel %vm1852_vm4, %v10662_v25, %v15433_v22  ;;  %v1897_v60 = vmul.f32 %v10521_v31, %v1860_v40  ;;  %v15441_v2 = vld [vmem:[#allocation59_spill] sm:$0xff] }
 0x2d1   : > { %8307 = vmatmul.mubr.msk.f32.gmra.mrb[2].mxu1 %vm849_vm6, %v8303_v38  ;;  %v10923_v58 = vpop.permute.xlu1 %2804  ;;  %8550 = vmatprep.subr.bf16.mxu0 %v8549_v21  ;;  %v8637_v48 = vpack.c.bf16 %v1893_v16, %v1891_v28  ;;  %v722_v57 = vsel %vm717_vm2, %v15442_v50, %v15441_v2  ;;  %v1890_v61 = vmul.f32 %v10516_v33, %v1865_v47  ;;  %v8304_v21 = vld [vmem:[%s15001_s3 + $0xb0] sm:$0xff] }
 0x2d2   : > { %8636 = vmatpush1.bf16.msra.mxu1 %v8635_v24  ;;  %v10933_v25 = vpop.permute.xlu0 %2790  ;;  %1799 = vmatprep.mubr.f32.mxu1 %v15405_v44  ;;  %v8553_v16 = vpack.c.bf16 %v753_v59, %v10799_v9  ;;  %v757_v22 = vmul.f32 %v10483_v29, %v723_v39  ;;  %v1867_v40 = vsel %vm1852_vm4, %v15438_v37, %v15439_v14  ;;  %v15444_v37 = vld [vmem:[#allocation84_spill] sm:$0xff]  ;;  %v15445_v14 = vld [vmem:[#allocation81_spill] sm:$0xff] }
 0x2d3   : > { %v1895_v38 = vmul.f32 %v10521_v31, %v1859_v12  ;;  %8638 = vmatprep.subr.bf16.mxu1 %v8637_v48  ;;  %3666 = vrot.lane.b32.xlu1 %v9753_v13, %s15201_s20  ;;  %v8639_v24 = vpack.c.bf16 %v1892_v34, %v1890_v61  ;;  %v731_v47 = vsel %vm717_vm2, %v15436_v42, %v15437_v1 }
 0x2d4   : > { %v1896_v9 = vmul.f32 %v10516_v33, %v1868_v8  ;;  %3680 = vrot.lane.b32.xlu0 %v9726_v10, %s15201_s20  ;;  %8266 = vmatmul.mubr.msk.f32.vlgmr.msra.gmra.mrb[16].mxu0 %vm849_vm6, %v8262_v7  ;;  %v755_v59 = vmul.f32 %v10483_v29, %v722_v57  ;;  %v725_v12 = vsel %vm717_vm2, %v10691_v30, %v10781_v27 }
 0x2d5   : > { %v15443_v61 = vpack.c.bf16 %v10729_v45, %v10534_v43  ;;  %8308 = vmatmul.mubr.msk.f32.gmra.mrb[4].mxu1 %vm849_vm6, %v8304_v21  ;;  %v10965_v28 = vpop.permute.xlu1 %2792  ;;  %v8641_v34 = vpack.c.bf16 %v1897_v60, %v1895_v38  ;;  %v8555_v42 = vpack.c.bf16 %v752_v19, %v10790_v35  ;;  %v730_v7 = vsel %vm717_vm2, %v15441_v2, %v15442_v50  ;;  %v8305_v43 = vld [vmem:[%s15001_s3 + $0xb8] sm:$0xff] }
 0x2d6   : > { %v1894_v1 = vmul.f32 %v10516_v33, %v1867_v40  ;;  %8640 = vmatpush1.bf16.msra.mxu1 %v8639_v24  ;;  %v10973_v39 = vpop.permute.xlu0 %2806  ;;  %v756_v45 = vmul.f32 %v10480_v46, %v731_v47  ;;  %v724_v35 = vsel %vm717_vm2, %v15445_v14, %v15444_v37  ;;  %v8557_v2 = vpack.c.bf16 %v757_v22, %v755_v59  ;;  %v15447_v21 = vld [vmem:[#allocation65_spill] sm:$0xff]  ;;  %v8311_v22 = vld [vmem:[%s15001_s3 + $0xc0] sm:$0xff]  ;;  %v15450_v59 = vld [vmem:[#allocation60_spill] sm:$0xff] }
 0x2d7   : > { %8552 = vmatpush1.bf16.msra.mxu0 %v15443_v61  ;;  %8642 = vmatprep.subr.bf16.mxu1 %v8641_v34  ;;  %v733_v19 = vsel %vm717_vm2, %v10781_v27, %v10691_v30  ;;  %v761_v8 = vmul.f32 %v10483_v29, %v725_v12  ;;  %v2055_v60 = vsel %vm2044_vm5, %v15412_v11, %v15413_v36  ;;  %v15446_v27 = vld [vmem:[#allocation76_spill] sm:$0xff] }
 0x2d8   : > { %8554 = vmatprep.subr.bf16.mxu0 %v8553_v16  ;;  %3682 = vrot.lane.b32.xlu1 %v9772_v15, %s15201_s20  ;;  %v8643_v50 = vpack.c.bf16 %v1896_v9, %v1894_v1  ;;  %v2079_v48 = vmul.f32 %v10543_v62, %v10811_v54  ;;  %v754_v57 = vmul.f32 %v10480_v46, %v730_v7  ;;  %v15449_v9 = vld [vmem:[#allocation69_spill] sm:$0xff]  ;;  %v15451_v1 = vld [vmem:[#allocation91_spill] sm:$0xff] }
 0x2d9   : > { %3668 = vrot.lane.b32.xlu0 %v9783_v18, %s15201_s20  ;;  %1805 = vmatprep.mubr.f32.mxu1 %v15405_v44  ;;  %v11001_v30 = vpop.permute.xlu1 %2808  ;;  %v2050_v16 = vsel %vm2044_vm5, %v15447_v21, %v15446_v27  ;;  %v732_v11 = vsel %vm717_vm2, %v15444_v37, %v15445_v14  ;;  %v759_v36 = vmul.f32 %v10483_v29, %v724_v35  ;;  %v8312_v37 = vld [vmem:[%s15001_s3 + $0xc8] sm:$0xff] }
 0x2da   : > { %8309 = vmatmul.mubr.msk.f32.gmra.mrb[6].mxu1 %vm849_vm6, %v8305_v43  ;;  %v11012_v54 = vpop.permute.xlu0 %2794  ;;  %v2080_v40 = vmul.f32 %v10525_v5, %v10883_v3  ;;  %v8559_v38 = vpack.c.bf16 %v756_v45, %v754_v57  ;;  %v760_v24 = vmul.f32 %v10480_v46, %v733_v19  ;;  %v15448_v47 = vpack.c.bf16 %v10685_v20, %v10639_v55  ;;  %v15453_v19 = vld [vmem:[#allocation99_spill] sm:$0xff] }
 0x2db   : > { %8556 = vmatpush1.bf16.msra.mxu0 %v8555_v42  ;;  %8644 = vmatpush1.bf16.msra.mxu1 %v8643_v50  ;;  %v2049_v12 = vsel %vm2044_vm5, %v15450_v59, %v15449_v9  ;;  %v8561_v3 = vpack.c.bf16 %v761_v8, %v759_v36  ;;  %v8649_v61 = vpack.c.bf16 %v10886_v23, %v2079_v48  ;;  %v15454_v8 = vld [vmem:[#allocation85_spill] sm:$0xff] }
 0x2dc   : > { %8558 = vmatprep.subr.bf16.mxu0 %v8557_v2  ;;  %8646 = vmatprep.subr.bf16.mxu1 %v15448_v47  ;;  %v2058_v55 = vsel %vm2044_vm5, %v15446_v27, %v15447_v21  ;;  %v2085_v20 = vmul.f32 %v10543_v62, %v2050_v16  ;;  %v758_v34 = vmul.f32 %v10480_v46, %v732_v11  ;;  %v15455_v16 = vld [vmem:[#allocation23_spill] sm:$0xff]  ;;  %v15456_v11 = vld [vmem:[#allocation10_spill] sm:$0xff] }
 0x2dd   : > { %3670 = vrot.lane.b32.xlu1 %v9898_v49, %s15201_s20  ;;  %3684 = vrot.lane.b32.xlu0 %v9842_v32, %s15201_s20  ;;  %v11040_v42 = vpop.permute.xlu1 %3086  ;;  %v2078_v7 = vmul.f32 %v10525_v5, %v2055_v60  ;;  %v2052_v23 = vsel %vm2044_vm5, %v15451_v1, %v10710_v26  ;;  %v15452_v43 = vpack.c.bf16 %v10665_v6, %v10616_v4  ;;  %v8328_v4 = vld [vmem:[%s15005_s7 + $0x10] ss:$8 sm:$0x3] }
 0x2de   : > { %1979 = vmatprep.mubr.f32.mxu1 %v15405_v44  ;;  %v11050_v45 = vpop.permute.xlu0 %2810  ;;  %v2057_v14 = vsel %vm2044_vm5, %v15449_v9, %v15450_v59  ;;  %v2083_v35 = vmul.f32 %v10543_v62, %v2049_v12  ;;  %v8563_v2 = vpack.c.bf16 %v760_v24, %v758_v34  ;;  %v2084_v50 = vmul.f32 %v10525_v5, %v2058_v55  ;;  %v15459_v59 = vld [vmem:[#allocation14_spill] sm:$0xff] }
 0x2df   : > { %8560 = vmatpush1.bf16.msra.mxu0 %v8559_v38  ;;  %8315 = vmatmul.mubr.msk.f32.vlgmr.msra.gmra.mrb[0].mxu1 %vm849_vm6, %v8311_v22  ;;  %v8651_v6 = vpack.c.bf16 %v2080_v40, %v2078_v7  ;;  %v2051_v60 = vsel %vm2044_vm5, %v15454_v8, %v15453_v19  ;;  %v2060_v48 = vsel %vm2044_vm5, %v10710_v26, %v15451_v1  ;;  %v8313_v26 = vld [vmem:[%s15001_s3 + $0xd0] sm:$0xff]  ;;  %v15457_v38 = vld [vmem:[#allocation13_spill] sm:$0xff]  ;;  %v15460_v12 = vld [vmem:[#allocation6_spill] sm:$0xff] }
 0x2e0   : > { %8648 = vmatpush1.bf16.msra.mxu1 %v15452_v43  ;;  %8562 = vmatprep.subr.bf16.mxu0 %v8561_v3  ;;  %v2089_v57 = vmul.f32 %v10543_v62, %v2052_v23  ;;  %v8653_v21 = vpack.c.bf16 %v2085_v20, %v2083_v35  ;;  %v2238_v36 = vsel %vm2236_vm7, %v15456_v11, %v15455_v16  ;;  %v15461_v20 = vld [vmem:[#allocation30_spill] sm:$0xff]  ;;  %v15462_v43 = vld [vmem:[#allocation17_spill] sm:$0xff] }
 0x2e1   : > { %8650 = vmatprep.subr.bf16.mxu1 %v8649_v61  ;;  %3686 = vrot.lane.b32.xlu1 %v9934_v0, %s15201_s20  ;;  %v11080_v27 = vpop.permute.xlu1 %3102  ;;  %v2082_v22 = vmul.f32 %v10525_v5, %v2057_v14  ;;  %v11094_v24 = vrot.slane %v8328_v4, %v15457_v38  ;;  %v2059_v47 = vsel %vm2044_vm5, %v15453_v19, %v15454_v8  ;;  %v15464_v14 = vld [vmem:[#allocation52_spill] sm:$0xff]  ;;  %v15465_v35 = vld [vmem:[#allocation38_spill] sm:$0xff]  ;;  %v8314_v19 = vld [vmem:[%s15001_s3 + $0xd8] sm:$0xff] }
 0x2e2   : > { %3672 = vrot.lane.b32.xlu0 %v9970_v63, %s15201_s20  ;;  %1985 = vmatprep.mubr.f32.mxu1 %v15405_v44  ;;  %v11087_v40 = vpop.permute.xlu0 %3088  ;;  %v2087_v9 = vmul.f32 %v10543_v62, %v2051_v60  ;;  %v2237_v3 = vsel %vm2236_vm7, %v15460_v12, %v15459_v59  ;;  %v2088_v55 = vmul.f32 %v10525_v5, %v2060_v48  ;;  %v15466_v60 = vld [vmem:[#allocation43_spill] sm:$0xff] }
 0x2e3   : > { %8564 = vmatpush1.bf16.msra.mxu0 %v8563_v2  ;;  %8316 = vmatmul.mubr.msk.f32.gmra.mrb[2].mxu1 %vm849_vm6, %v8312_v37  ;;  %15458 = vst [vmem:[#allocation31_spill] sm:$0xff] %v11094_v24  ;;  %v8655_v61 = vpack.c.bf16 %v2084_v50, %v2082_v22  ;;  %v2246_v34 = vsel %vm2236_vm7, %v15455_v16, %v15456_v11 }
 0x2e4   : > { %8652 = vmatpush1.bf16.msra.mxu1 %v8651_v6  ;;  %1991 = vmatprep.mubr.f32.mxu1 %v15405_v44  ;;  %v2269_v7 = vmul.f32 %v11094_v24, %v2238_v36  ;;  %v8657_v23 = vpack.c.bf16 %v2089_v57, %v2087_v9  ;;  %v11120_v37 = vrot.slane %v8328_v4, %v15462_v43  ;;  %v15467_v57 = vld [vmem:[#allocation44_spill] sm:$0xff]  ;;  %v15469_v36 = vld [vmem:[#allocation47_spill] sm:$0xff] }
 0x2e5   : > { %8654 = vmatprep.subr.bf16.mxu1 %v8653_v21  ;;  %3674 = vrot.lane.b32.xlu1 %v10104_v52, %s15201_s20  ;;  %v11117_v1 = vpop.permute.xlu1 %3090  ;;  %v2240_v2 = vsel %vm2236_vm7, %v15465_v35, %v15464_v14  ;;  %v2086_v6 = vmul.f32 %v10525_v5, %v2059_v47  ;;  %v2245_v4 = vsel %vm2236_vm7, %v15459_v59, %v15460_v12  ;;  %v15468_v21 = vld [vmem:[#allocation32_spill] sm:$0xff]  ;;  %v15470_v12 = vld [vmem:[#allocation77_spill] sm:$0xff] }
 0x2e6   : > { %3688 = vrot.lane.b32.xlu0 %v15461_v20, %s15201_s20  ;;  %932 = vmatprep.mubr.f32.mxu0 %v15405_v44  ;;  %15463 = vst [vmem:[#allocation86_spill] sm:$0xff] %v11120_v37  ;;  %v11127_v50 = vpop.permute.xlu0 %3104  ;;  %v2267_v8 = vmul.f32 %v11094_v24, %v2237_v3  ;;  %v2268_v48 = vmul.f32 %v11120_v37, %v2246_v34  ;;  %v15471_v3 = vld [vmem:[#allocation66_spill] sm:$0xff] }
 0x2e7   : > { %8317 = vmatmul.mubr.msk.f32.gmra.mrb[4].mxu1 %vm849_vm6, %v8313_v26  ;;  %v2239_v16 = vsel %vm2236_vm7, %v15468_v21, %v15467_v57  ;;  %v8659_v11 = vpack.c.bf16 %v2088_v55, %v2086_v6  ;;  %v2248_v22 = vsel %vm2236_vm7, %v15464_v14, %v15465_v35  ;;  %v2273_v26 = vmul.f32 %v11094_v24, %v2240_v2  ;;  %v8320_v34 = vld [vmem:[%s15001_s3 + $0xe0] sm:$0xff]  ;;  %v15472_v2 = vld [vmem:[#allocation71_spill] sm:$0xff]  ;;  %v15473_v6 = vld [vmem:[#allocation61_spill] sm:$0xff] }
 0x2e8   : > { %8656 = vmatpush1.bf16.msra.mxu1 %v8655_v61  ;;  %1997 = vmatprep.mubr.f32.mxu1 %v15405_v44  ;;  %v8661_v9 = vpack.c.bf16 %v2269_v7, %v2267_v8  ;;  %v2266_v59 = vmul.f32 %v11120_v37, %v2245_v4  ;;  %v2242_v61 = vsel %vm2236_vm7, %v15471_v3, %v15470_v12 }
 0x2e9   : > { %8658 = vmatprep.subr.bf16.mxu1 %v8657_v23  ;;  %3690 = vrot.lane.b32.xlu1 %v15466_v60, %s15201_s20  ;;  %v11153_v47 = vpop.permute.xlu1 %3106  ;;  %v2247_v7 = vsel %vm2236_vm7, %v15467_v57, %v15468_v21  ;;  %v2271_v23 = vmul.f32 %v11094_v24, %v2239_v16  ;;  %v2272_v35 = vmul.f32 %v11120_v37, %v2248_v22  ;;  %v15474_v16 = vld [vmem:[#allocation109_spill] sm:$0xff] }
 0x2ea   : > { %3676 = vrot.lane.b32.xlu0 %v15469_v36, %s15201_s20  ;;  %v11160_v55 = vpop.permute.xlu0 %3092  ;;  %v8663_v14 = vpack.c.bf16 %v2268_v48, %v2266_v59  ;;  %v2250_v4 = vsel %vm2236_vm7, %v15470_v12, %v15471_v3  ;;  %v2277_v8 = vmul.f32 %v11094_v24, %v2242_v61  ;;  %v2270_v21 = vmul.f32 %v11120_v37, %v2247_v7  ;;  %v8321_v59 = vld [vmem:[%s15001_s3 + $0xe8] sm:$0xff]  ;;  %v8337_v3 = vld [vmem:[%s15005_s7 + $0x11] ss:$8 sm:$0x3]  ;;  %v15476_v7 = vld [vmem:[#allocation106_spill] sm:$0xff] }
 0x2eb   : > { %8318 = vmatmul.mubr.msk.f32.gmra.mrb[6].mxu1 %vm849_vm6, %v8314_v19  ;;  %v2241_v19 = vsel %vm2236_vm7, %v15473_v6, %v15472_v2  ;;  %v8665_v57 = vpack.c.bf16 %v2273_v26, %v2271_v23  ;;  %v2249_v26 = vsel %vm2236_vm7, %v15472_v2, %v15473_v6  ;;  %v15477_v23 = vld [vmem:[#allocation87_spill] sm:$0xff] }
 0x2ec   : > { %8660 = vmatpush1.bf16.msra.mxu1 %v8659_v11  ;;  %2171 = vmatprep.mubr.f32.mxu1 %v15405_v44  ;;  %v15475_v11 = vld [vmem:[#allocation92_spill] sm:$0xff]  ;;  %v2275_v12 = vmul.f32 %v11094_v24, %v2241_v19  ;;  %v8667_v61 = vpack.c.bf16 %v2272_v35, %v2270_v21  ;;  %v2274_v5 = vmul.f32 %v11120_v37, %v2249_v26  ;;  %v15482_v26 = vld [vmem:[#allocation7_spill] sm:$0xff] }
 0x2ed   : > { %8662 = vmatprep.subr.bf16.mxu1 %v8661_v9  ;;  %3854 = vrot.lane.b32.xlu1 %v15427_v41, %s15158_s21  ;;  %v11186_v48 = vpop.permute.xlu1 %3094  ;;  %v2244_v22 = vsel %vm2236_vm7, %v15475_v11, %v15474_v16  ;;  %v2252_v2 = vsel %vm2236_vm7, %v15474_v16, %v15475_v11  ;;  %v8322_v16 = vld [vmem:[%s15001_s3 + $0xf0] sm:$0xff]  ;;  %v11237_v11 = vrot.slane %v8337_v3, %v15457_v38 }
 0x2ee   : > { %3692 = vrot.lane.b32.xlu0 %v15430_v17, %s15201_s20  ;;  %v11193_v9 = vpop.permute.xlu0 %3108  ;;  %v2281_v6 = vmul.f32 %v11094_v24, %v2244_v22  ;;  %v8669_v19 = vpack.c.bf16 %v2277_v8, %v2275_v12  ;;  %v2251_v8 = vsel %vm2236_vm7, %v15476_v7, %v15477_v23  ;;  %v2280_v33 = vmul.f32 %v11120_v37, %v2252_v2 }
 0x2ef   : > { %8324 = vmatmul.mubr.msk.f32.vlgmr.msra.gmra.mrb[0].mxu1 %vm849_vm6, %v8320_v34  ;;  %v2276_v34 = vmul.f32 %v11120_v37, %v2250_v4  ;;  %v15478_v4 = vld [vmem:[#allocation24_spill] sm:$0xff]  ;;  %15480 = vst [vmem:[#allocation82_spill] sm:$0xff] %v11237_v11  ;;  %v2278_v31 = vmul.f32 %v11120_v37, %v2251_v8 }
 0x2f0   : > { %8664 = vmatpush1.bf16.msra.mxu1 %v8663_v14  ;;  %2177 = vmatprep.mubr.f32.mxu1 %v15405_v44  ;;  %v2243_v14 = vsel %vm2236_vm7, %v15477_v23, %v15476_v7  ;;  %v15491_v37 = vld [vmem:[#allocation68_spill] sm:$0xff] }
 0x2f1   : > { %8666 = vmatprep.subr.bf16.mxu1 %v8665_v57  ;;  %3870 = vrot.lane.b32.xlu1 %v15435_v51, %s15158_s21  ;;  %v11223_v35 = vpop.permute.xlu1 %3110  ;;  %v15479_v57 = vld [vmem:[#allocation11_spill] sm:$0xff]  ;;  %v2279_v22 = vmul.f32 %v11094_v24, %v2243_v14  ;;  %v11262_v24 = vrot.slane %v8337_v3, %v15462_v43 }
 0x2f2   : > { %3856 = vrot.lane.b32.xlu0 %v15440_v56, %s15158_s21  ;;  %v2430_v21 = vsel %vm2428_vm8, %v15479_v57, %v15478_v4  ;;  %v11230_v62 = vpop.permute.xlu0 %3096  ;;  %v2438_v7 = vsel %vm2428_vm8, %v15478_v4, %v15479_v57  ;;  %v8323_v4 = vld [vmem:[%s15001_s3 + $0xf8] sm:$0xff] }
 0x2f3   : > { %8325 = vmatmul.mubr.msk.f32.gmra.mrb[2].mxu1 %vm849_vm6, %v8321_v59  ;;  %v15481_v59 = vld [vmem:[#allocation18_spill] sm:$0xff]  ;;  %v2461_v23 = vmul.f32 %v11237_v11, %v2430_v21  ;;  %15484 = vst [vmem:[#allocation36_spill] sm:$0xff] %v11262_v24  ;;  %v2460_v57 = vmul.f32 %v11262_v24, %v2438_v7 }
 0x2f4   : > { %8668 = vmatpush1.bf16.msra.mxu1 %v8667_v61  ;;  %2183 = vmatprep.mubr.f32.mxu1 %v15405_v44  ;;  %v2429_v12 = vsel %vm2428_vm8, %v15482_v26, %v15481_v59  ;;  %v8671_v61 = vpack.c.bf16 %v2276_v34, %v2274_v5  ;;  %v15485_v5 = vld [vmem:[#allocation54_spill] sm:$0xff]  ;;  %v15486_v34 = vld [vmem:[#allocation40_spill] sm:$0xff]  ;;  %v2437_v3 = vsel %vm2428_vm8, %v15481_v59, %v15482_v26 }
 0x2f5   : > { %8670 = vmatprep.subr.bf16.mxu1 %v8669_v19  ;;  %3858 = vrot.lane.b32.xlu1 %v9753_v13, %s15158_s21  ;;  %v11259_v14 = vpop.permute.xlu1 %3098  ;;  %v8673_v19 = vpack.c.bf16 %v2281_v6, %v2279_v22  ;;  %v2432_v2 = vsel %vm2428_vm8, %v15486_v34, %v15485_v5  ;;  %v2459_v6 = vmul.f32 %v11237_v11, %v2429_v12  ;;  %v15487_v21 = vld [vmem:[#allocation46_spill] sm:$0xff] }
 0x2f6   : > { %3872 = vrot.lane.b32.xlu0 %v9726_v10, %s15158_s21  ;;  %15483 = vst [vmem:[#allocation51_spill] sm:$0xff] %v11259_v14  ;;  %v11269_v46 = vpop.permute.xlu0 %3112  ;;  %v8675_v22 = vpack.c.bf16 %v2280_v33, %v2278_v31  ;;  %v2440_v59 = vsel %vm2428_vm8, %v15485_v5, %v15486_v34  ;;  %v2465_v26 = vmul.f32 %v11237_v11, %v2432_v2  ;;  %v8329_v5 = vld [vmem:[%s15001_s3 + $0x100] sm:$0xff] }
 0x2f7   : > { %8326 = vmatmul.mubr.msk.f32.gmra.mrb[4].mxu1 %vm849_vm6, %v8322_v16  ;;  %v15488_v16 = vld [vmem:[#allocation33_spill] sm:$0xff]  ;;  %v2458_v7 = vmul.f32 %v11262_v24, %v2437_v3  ;;  %v15493_v3 = vld [vmem:[#allocation72_spill] sm:$0xff] }
 0x2f8   : > { %8672 = vmatpush1.bf16.msra.mxu1 %v8671_v61  ;;  %2189 = vmatprep.mubr.f32.mxu1 %v15405_v44  ;;  %v2431_v8 = vsel %vm2428_vm8, %v15488_v16, %v15487_v21  ;;  %v8677_v61 = vpack.c.bf16 %v2461_v23, %v2459_v6  ;;  %v2439_v23 = vsel %vm2428_vm8, %v15487_v21, %v15488_v16  ;;  %v15494_v6 = vld [vmem:[#allocation62_spill] sm:$0xff] }
 0x2f9   : > { %8674 = vmatprep.subr.bf16.mxu1 %v8673_v19  ;;  %3874 = vrot.lane.b32.xlu1 %v9772_v15, %s15158_s21  ;;  %v11295_v12 = vpop.permute.xlu1 %3114  ;;  %v15490_v19 = vld [vmem:[#allocation79_spill] sm:$0xff]  ;;  %v2463_v34 = vmul.f32 %v11237_v11, %v2431_v8  ;;  %v8679_v2 = vpack.c.bf16 %v2460_v57, %v2458_v7  ;;  %v15497_v7 = vld [vmem:[#allocation94_spill] sm:$0xff] }
 0x2fa   : > { %3860 = vrot.lane.b32.xlu0 %v9783_v18, %s15158_s21  ;;  %15489 = vst [vmem:[#allocation53_spill] sm:$0xff] %v11295_v12  ;;  %v2434_v33 = vsel %vm2428_vm8, %v15491_v37, %v15490_v19  ;;  %v11302_v31 = vpop.permute.xlu0 %3100  ;;  %v2442_v21 = vsel %vm2428_vm8, %v15490_v19, %v15491_v37  ;;  %v8330_v37 = vld [vmem:[%s15001_s3 + $0x108] sm:$0xff] }
 0x2fb   : > { %8327 = vmatmul.mubr.msk.f32.gmra.mrb[6].mxu1 %vm849_vm6, %v8323_v4  ;;  %15492 = vst [vmem:[#allocation50_spill] sm:$0xff] %v11302_v31  ;;  %v2464_v4 = vmul.f32 %v11262_v24, %v2440_v59  ;;  %v2469_v16 = vmul.f32 %v11237_v11, %v2434_v33  ;;  %v8681_v8 = vpack.c.bf16 %v2465_v26, %v2463_v34  ;;  %v8346_v33 = vld [vmem:[%s15005_s7 + $0x12] ss:$8 sm:$0x3]  ;;  %v15499_v34 = vld [vmem:[#allocation107_spill] sm:$0xff] }
 0x2fc   : > { %8676 = vmatpush1.bf16.msra.mxu1 %v8675_v22  ;;  %2363 = vmatprep.mubr.f32.mxu1 %v15405_v44  ;;  %v2433_v22 = vsel %vm2428_vm8, %v15494_v6, %v15493_v3  ;;  %v2462_v59 = vmul.f32 %v11262_v24, %v2439_v23  ;;  %v2441_v26 = vsel %vm2428_vm8, %v15493_v3, %v15494_v6 }
 0x2fd   : > { %8678 = vmatprep.subr.bf16.mxu1 %v8677_v61  ;;  %3862 = vrot.lane.b32.xlu1 %v9898_v49, %s15158_s21  ;;  %v11328_v57 = vpop.permute.xlu1 %3278  ;;  %v15496_v61 = vld [vmem:[#allocation39_spill] sm:$0xff]  ;;  %v2467_v19 = vmul.f32 %v11237_v11, %v2433_v22  ;;  %v2468_v23 = vmul.f32 %v11262_v24, %v2442_v21  ;;  %v2466_v14 = vmul.f32 %v11262_v24, %v2441_v26  ;;  %v15507_v26 = vld [vmem:[#allocation8_spill] sm:$0xff] }
 0x2fe   : > { %3876 = vrot.lane.b32.xlu0 %v9842_v32, %s15158_s21  ;;  %15495 = vst [vmem:[#allocation74_spill] sm:$0xff] %v11328_v57  ;;  %v2436_v29 = vsel %vm2428_vm8, %v15497_v7, %v15496_v61  ;;  %v11335_v12 = vpop.permute.xlu0 %3116  ;;  %v2444_v3 = vsel %vm2428_vm8, %v15496_v61, %v15497_v7  ;;  %v15502_v21 = vld [vmem:[#allocation27_spill] sm:$0xff]  ;;  %v11379_v61 = vrot.slane %v8346_v33, %v15457_v38 }
 0x2ff   : > { %8333 = vmatmul.mubr.msk.f32.vlgmr.msra.gmra.mrb[0].mxu1 %vm849_vm6, %v8329_v5  ;;  %15498 = vst [vmem:[#allocation64_spill] sm:$0xff] %v11335_v12  ;;  %v8683_v5 = vpack.c.bf16 %v2464_v4, %v2462_v59  ;;  %v2473_v6 = vmul.f32 %v11237_v11, %v2436_v29  ;;  %v8685_v22 = vpack.c.bf16 %v2469_v16, %v2467_v19  ;;  %v8331_v29 = vld [vmem:[%s15001_s3 + $0x110] sm:$0xff] }
 0x300   : > { %8680 = vmatpush1.bf16.msra.mxu1 %v8679_v2  ;;  %2369 = vmatprep.mubr.f32.mxu1 %v15405_v44  ;;  %v15500_v2 = vld [vmem:[#allocation88_spill] sm:$0xff]  ;;  %15505 = vst [vmem:[#allocation58_spill] sm:$0xff] %v11379_v61 }
 0x301   : > { %8682 = vmatprep.subr.bf16.mxu1 %v8681_v8  ;;  %3878 = vrot.lane.b32.xlu1 %v9934_v0, %s15158_s21  ;;  %v2435_v57 = vsel %vm2428_vm8, %v15500_v2, %v15499_v34  ;;  %v11365_v4 = vpop.permute.xlu1 %3294  ;;  %v15503_v8 = vld [vmem:[#allocation12_spill] sm:$0xff]  ;;  %v2443_v16 = vsel %vm2428_vm8, %v15499_v34, %v15500_v2 }
 0x302   : > { %3864 = vrot.lane.b32.xlu0 %v9970_v63, %s15158_s21  ;;  %15501 = vst [vmem:[#allocation2_spill] sm:$0xff] %v11365_v4  ;;  %v2622_v59 = vsel %vm2620_vm9, %v15503_v8, %v15502_v21  ;;  %v11372_v12 = vpop.permute.xlu0 %3280  ;;  %v2471_v7 = vmul.f32 %v11237_v11, %v2435_v57  ;;  %v2472_v4 = vmul.f32 %v11262_v24, %v2444_v3 }
 0x303   : > { %8334 = vmatmul.mubr.msk.f32.gmra.mrb[2].mxu1 %vm849_vm6, %v8330_v37  ;;  %15504 = vst [vmem:[#allocation67_spill] sm:$0xff] %v11372_v12  ;;  %v15506_v37 = vld [vmem:[#allocation20_spill] sm:$0xff]  ;;  %v2630_v57 = vsel %vm2620_vm9, %v15502_v21, %v15503_v8  ;;  %v2653_v34 = vmul.f32 %v11379_v61, %v2622_v59  ;;  %v11404_v11 = vrot.slane %v8346_v33, %v15462_v43  ;;  %v8332_v21 = vld [vmem:[%s15001_s3 + $0x118] sm:$0xff] }
 0x304   : > { %8684 = vmatpush1.bf16.msra.mxu1 %v8683_v5  ;;  %2375 = vmatprep.mubr.f32.mxu1 %v15405_v44  ;;  %v2621_v19 = vsel %vm2620_vm9, %v15507_v26, %v15506_v37  ;;  %v8687_v5 = vpack.c.bf16 %v2468_v23, %v2466_v14  ;;  %v15510_v14 = vld [vmem:[#allocation55_spill] sm:$0xff]  ;;  %v15511_v23 = vld [vmem:[#allocation42_spill] sm:$0xff]  ;;  %v2470_v12 = vmul.f32 %v11262_v24, %v2443_v16  ;;  %v15513_v59 = vld [vmem:[#allocation48_spill] sm:$0xff] }
 0x305   : > { %8686 = vmatprep.subr.bf16.mxu1 %v8685_v22  ;;  %3866 = vrot.lane.b32.xlu1 %v10104_v52, %s15158_s21  ;;  %v11401_v2 = vpop.permute.xlu1 %3282  ;;  %v8689_v22 = vpack.c.bf16 %v2473_v6, %v2471_v7  ;;  %15509 = vst [vmem:[#allocation90_spill] sm:$0xff] %v11404_v11  ;;  %v2624_v3 = vsel %vm2620_vm9, %v15511_v23, %v15510_v14  ;;  %v15517_v24 = vld [vmem:[#allocation70_spill] sm:$0xff] }
 0x306   : > { %3880 = vrot.lane.b32.xlu0 %v15461_v20, %s15158_s21  ;;  %15508 = vst [vmem:[#allocation57_spill] sm:$0xff] %v11401_v2  ;;  %v11411_v31 = vpop.permute.xlu0 %3296  ;;  %v2629_v33 = vsel %vm2620_vm9, %v15506_v37, %v15507_v26  ;;  %v2651_v6 = vmul.f32 %v11379_v61, %v2621_v19  ;;  %v2652_v8 = vmul.f32 %v11404_v11, %v2630_v57 }
 0x307   : > { %8335 = vmatmul.mubr.msk.f32.gmra.mrb[4].mxu1 %vm849_vm6, %v8331_v29  ;;  %15512 = vst [vmem:[#allocation3_spill] sm:$0xff] %v11411_v31  ;;  %v15514_v29 = vld [vmem:[#allocation34_spill] sm:$0xff]  ;;  %v8691_v7 = vpack.c.bf16 %v2472_v4, %v2470_v12  ;;  %v2632_v37 = vsel %vm2620_vm9, %v15510_v14, %v15511_v23  ;;  %v2657_v26 = vmul.f32 %v11379_v61, %v2624_v3 }
 0x308   : > { %8688 = vmatpush1.bf16.msra.mxu1 %v8687_v5  ;;  %2381 = vmatprep.mubr.f32.mxu1 %v15405_v44  ;;  %v2623_v16 = vsel %vm2620_vm9, %v15514_v29, %v15513_v59  ;;  %v8693_v5 = vpack.c.bf16 %v2653_v34, %v2651_v6  ;;  %v2650_v57 = vmul.f32 %v11404_v11, %v2629_v33  ;;  %v8338_v14 = vld [vmem:[%s15001_s3 + $0x120] sm:$0xff]  ;;  %v15519_v33 = vld [vmem:[#allocation73_spill] sm:$0xff]  ;;  %v15520_v6 = vld [vmem:[#allocation63_spill] sm:$0xff] }
 0x309   : > { %8690 = vmatprep.subr.bf16.mxu1 %v8689_v22  ;;  %3882 = vrot.lane.b32.xlu1 %v15466_v60, %s15158_s21  ;;  %v11437_v19 = vpop.permute.xlu1 %3298  ;;  %v15516_v22 = vld [vmem:[#allocation80_spill] sm:$0xff]  ;;  %v2631_v34 = vsel %vm2620_vm9, %v15513_v59, %v15514_v29  ;;  %v2655_v23 = vmul.f32 %v11379_v61, %v2623_v16 }
 0x30a   : > { %3868 = vrot.lane.b32.xlu0 %v15469_v36, %s15158_s21  ;;  %15515 = vst [vmem:[#allocation78_spill] sm:$0xff] %v11437_v19  ;;  %v2626_v12 = vsel %vm2620_vm9, %v15517_v24, %v15516_v22  ;;  %v11444_v4 = vpop.permute.xlu0 %3284  ;;  %v8695_v3 = vpack.c.bf16 %v2652_v8, %v2650_v57  ;;  %v2634_v59 = vsel %vm2620_vm9, %v15516_v22, %v15517_v24  ;;  %v15523_v57 = vld [vmem:[#allocation101_spill] sm:$0xff]  ;;  %v8339_v24 = vld [vmem:[%s15001_s3 + $0x128] sm:$0xff] }
 0x30b   : > { %8336 = vmatmul.mubr.msk.f32.gmra.mrb[6].mxu1 %vm849_vm6, %v8332_v21  ;;  %15518 = vst [vmem:[#allocation75_spill] sm:$0xff] %v11444_v4  ;;  %v2656_v21 = vmul.f32 %v11404_v11, %v2632_v37  ;;  %v2661_v29 = vmul.f32 %v11379_v61, %v2626_v12  ;;  %v8697_v16 = vpack.c.bf16 %v2657_v26, %v2655_v23  ;;  %v8355_v12 = vld [vmem:[%s15005_s7 + $0x13] ss:$8 sm:$0x3] }
 0x30c   : > { %8692 = vmatpush1.bf16.msra.mxu1 %v8691_v7  ;;  %2555 = vmatprep.mubr.f32.mxu1 %v15405_v44  ;;  %v2625_v7 = vsel %vm2620_vm9, %v15520_v6, %v15519_v33  ;;  %v2654_v37 = vmul.f32 %v11404_v11, %v2631_v34  ;;  %v2633_v26 = vsel %vm2620_vm9, %v15519_v33, %v15520_v6  ;;  %v15525_v23 = vld [vmem:[#allocation108_spill] sm:$0xff] }
 0x30d   : > { %8694 = vmatprep.subr.bf16.mxu1 %v8693_v5  ;;  %4046 = vrot.lane.b32.xlu1 %v15427_v41, %s15168_s22  ;;  %v11470_v8 = vpop.permute.xlu1 %3286  ;;  %v15522_v5 = vld [vmem:[#allocation29_spill] sm:$0xff]  ;;  %v2659_v22 = vmul.f32 %v11379_v61, %v2625_v7  ;;  %v2660_v34 = vmul.f32 %v11404_v11, %v2634_v59  ;;  %v15528_v59 = vld [vmem:[#allocation28_spill] sm:$0xff] }
 0x30e   : > { %3884 = vrot.lane.b32.xlu0 %v15430_v17, %s15158_s21  ;;  %15521 = vst [vmem:[#allocation93_spill] sm:$0xff] %v11470_v8  ;;  %v2628_v19 = vsel %vm2620_vm9, %v15523_v57, %v15522_v5  ;;  %v11477_v2 = vpop.permute.xlu0 %3300  ;;  %v2636_v33 = vsel %vm2620_vm9, %v15522_v5, %v15523_v57  ;;  %v11521_v5 = vrot.slane %v8355_v12, %v15457_v38  ;;  %s15638_s21 = smov 98  }
 0x30f   : > { %8342 = vmatmul.mubr.msk.f32.vlgmr.msra.gmra.mrb[0].mxu1 %vm849_vm6, %v8338_v14  ;;  %15524 = vst [vmem:[#allocation83_spill] sm:$0xff] %v11477_v2  ;;  %v8699_v14 = vpack.c.bf16 %v2656_v21, %v2654_v37  ;;  %v2665_v6 = vmul.f32 %v11379_v61, %v2628_v19  ;;  %v8701_v7 = vpack.c.bf16 %v2661_v29, %v2659_v22  ;;  %v8340_v19 = vld [vmem:[%s15001_s3 + $0x130] sm:$0xff] }
 0x310   : > { %8696 = vmatpush1.bf16.msra.mxu1 %v8695_v3  ;;  %2561 = vmatprep.mubr.f32.mxu1 %v15405_v44  ;;  %v15526_v3 = vld [vmem:[#allocation89_spill] sm:$0xff]  ;;  %v2658_v2 = vmul.f32 %v11404_v11, %v2633_v26  ;;  %15531 = vst [vmem:[#allocation56_spill] sm:$0xff] %v11521_v5 }
 0x311   : > { %8698 = vmatprep.subr.bf16.mxu1 %v8697_v16  ;;  %4062 = vrot.lane.b32.xlu1 %v15435_v51, %s15168_s22  ;;  %v2627_v8 = vsel %vm2620_vm9, %v15526_v3, %v15525_v23  ;;  %v11507_v21 = vpop.permute.xlu1 %3302  ;;  %v15529_v16 = vld [vmem:[#allocation15_spill] sm:$0xff]  ;;  %v2635_v29 = vsel %vm2620_vm9, %v15525_v23, %v15526_v3  ;;  %v15533_v26 = vld [vmem:[#allocation9_spill] sm:$0xff] }
 0x312   : > { %4048 = vrot.lane.b32.xlu0 %v15440_v56, %s15168_s22  ;;  %15527 = vst [vmem:[#allocation4_spill] sm:$0xff] %v11507_v21  ;;  %v2814_v37 = vsel %vm2812_vm10, %v15529_v16, %v15528_v59  ;;  %v11514_v4 = vpop.permute.xlu0 %3288  ;;  %v2663_v57 = vmul.f32 %v11379_v61, %v2627_v8  ;;  %v2664_v21 = vmul.f32 %v11404_v11, %v2636_v33  ;;  %v15536_v33 = vld [vmem:[#allocation45_spill] sm:$0xff] }
 0x313   : > { %8343 = vmatmul.mubr.msk.f32.gmra.mrb[2].mxu1 %vm849_vm6, %v8339_v24  ;;  %15530 = vst [vmem:[#allocation59_spill] sm:$0xff] %v11514_v4  ;;  %v15532_v24 = vld [vmem:[#allocation21_spill] sm:$0xff]  ;;  %v2822_v8 = vsel %vm2812_vm10, %v15528_v59, %v15529_v16  ;;  %v2845_v23 = vmul.f32 %v11521_v5, %v2814_v37  ;;  %v11546_v61 = vrot.slane %v8355_v12, %v15462_v43 }
 0x314   : > { %8700 = vmatpush1.bf16.msra.mxu1 %v8699_v14  ;;  %2567 = vmatprep.mubr.f32.mxu1 %v15405_v44  ;;  %v2813_v22 = vsel %vm2812_vm10, %v15533_v26, %v15532_v24  ;;  %v8703_v14 = vpack.c.bf16 %v2660_v34, %v2658_v2  ;;  %v2662_v2 = vmul.f32 %v11404_v11, %v2635_v29  ;;  %v15535_v34 = vld [vmem:[#allocation41_spill] sm:$0xff] }
 0x315   : > { %8702 = vmatprep.subr.bf16.mxu1 %v8701_v7  ;;  %4050 = vrot.lane.b32.xlu1 %v9753_v13, %s15168_s22  ;;  %v11543_v3 = vpop.permute.xlu1 %3290  ;;  %v8705_v7 = vpack.c.bf16 %v2665_v6, %v2663_v57  ;;  %15534 = vst [vmem:[#allocation84_spill] sm:$0xff] %v11546_v61  ;;  %v2816_v4 = vsel %vm2812_vm10, %v15536_v33, %v15535_v34  ;;  %v8341_v59 = vld [vmem:[%s15001_s3 + $0x138] sm:$0xff] }
 0x316   : > { %4064 = vrot.lane.b32.xlu0 %v9726_v10, %s15168_s22  ;;  %v11553_v31 = vpop.permute.xlu0 %3304  ;;  %v2821_v12 = vsel %vm2812_vm10, %v15532_v24, %v15533_v26  ;;  %v2843_v6 = vmul.f32 %v11521_v5, %v2813_v22  ;;  %v2844_v16 = vmul.f32 %v11546_v61, %v2822_v8  ;;  %v15537_v37 = vld [vmem:[#allocation49_spill] sm:$0xff]  ;;  %v8707_v57 = vpack.c.bf16 %v2664_v21, %v2662_v2 }
 0x317   : > { %8344 = vmatmul.mubr.msk.f32.gmra.mrb[4].mxu1 %vm849_vm6, %v8340_v19  ;;  %v15538_v19 = vld [vmem:[#allocation35_spill] sm:$0xff]  ;;  %v2824_v24 = vsel %vm2812_vm10, %v15535_v34, %v15536_v33  ;;  %v2849_v26 = vmul.f32 %v11521_v5, %v2816_v4  ;;  %v2842_v8 = vmul.f32 %v11546_v61, %v2821_v12  ;;  %v2818_v21 = vsel %vm2812_vm10, %v10933_v25, %v10973_v39  ;;  %v8347_v4 = vld [vmem:[%s15001_s3 + $0x140] sm:$0xff]  ;;  %v8381_v11 = vld [vmem:[%s15005_s7 + $0x16] ss:$8 sm:$0x3] }
 0x318   : > { %8704 = vmatpush1.bf16.msra.mxu1 %v8703_v14  ;;  %2573 = vmatprep.mubr.f32.mxu1 %v15405_v44  ;;  %v2815_v29 = vsel %vm2812_vm10, %v15538_v19, %v15537_v37  ;;  %v8709_v14 = vpack.c.bf16 %v2845_v23, %v2843_v6  ;;  %v2823_v23 = vsel %vm2812_vm10, %v15537_v37, %v15538_v19 }
 0x319   : > { %8706 = vmatprep.subr.bf16.mxu1 %v8705_v7  ;;  %4066 = vrot.lane.b32.xlu1 %v9772_v15, %s15168_s22  ;;  %v11579_v22 = vpop.permute.xlu1 %3306  ;;  %v2847_v2 = vmul.f32 %v11521_v5, %v2815_v29  ;;  %v8711_v34 = vpack.c.bf16 %v2844_v16, %v2842_v8  ;;  %v2848_v33 = vmul.f32 %v11546_v61, %v2824_v24 }
 0x31a   : > { %4052 = vrot.lane.b32.xlu0 %v9783_v18, %s15168_s22  ;;  %v11586_v7 = vpop.permute.xlu0 %3292  ;;  %v2826_v6 = vsel %vm2812_vm10, %v10973_v39, %v10933_v25  ;;  %v2853_v37 = vmul.f32 %v11521_v5, %v2818_v21  ;;  %v2846_v29 = vmul.f32 %v11546_v61, %v2823_v23  ;;  %v8348_v25 = vld [vmem:[%s15001_s3 + $0x148] sm:$0xff]  ;;  %v2819_v21 = vsel %vm2812_vm10, %v10965_v28, %v11001_v30 }
 0x31b   : > { %8345 = vmatmul.mubr.msk.f32.gmra.mrb[6].mxu1 %vm849_vm6, %v8341_v59  ;;  %v15539_v59 = vld [vmem:[#allocation104_spill] sm:$0xff]  ;;  %v8713_v19 = vpack.c.bf16 %v2849_v26, %v2847_v2  ;;  %v2852_v8 = vmul.f32 %v11546_v61, %v2826_v6 }
 0x31c   : > { %8708 = vmatpush1.bf16.msra.mxu1 %v8707_v57  ;;  %2747 = vmatprep.mubr.f32.mxu1 %v15405_v44  ;;  %v2817_v12 = vsel %vm2812_vm10, %v15539_v59, %v10923_v58  ;;  %v2820_v57 = vsel %vm2812_vm10, %v11012_v54, %v11050_v45  ;;  %v2825_v39 = vsel %vm2812_vm10, %v10923_v58, %v15539_v59  ;;  %v8349_v59 = vld [vmem:[%s15001_s3 + $0x150] sm:$0xff] }
 0x31d   : > { %8710 = vmatprep.subr.bf16.mxu1 %v8709_v14  ;;  %4054 = vrot.lane.b32.xlu1 %v9898_v49, %s15168_s22  ;;  %v11612_v16 = vpop.permute.xlu1 %3470  ;;  %v2851_v26 = vmul.f32 %v11521_v5, %v2817_v12  ;;  %v8715_v14 = vpack.c.bf16 %v2848_v33, %v2846_v29  ;;  %v2828_v58 = vsel %vm2812_vm10, %v11050_v45, %v11012_v54 }
 0x31e   : > { %4068 = vrot.lane.b32.xlu0 %v9842_v32, %s15168_s22  ;;  %v11619_v24 = vpop.permute.xlu0 %3308  ;;  %v2827_v54 = vsel %vm2812_vm10, %v11001_v30, %v10965_v28  ;;  %v2855_v45 = vmul.f32 %v11521_v5, %v2819_v21  ;;  %v2856_v6 = vmul.f32 %v11546_v61, %v2828_v58  ;;  %v8350_v30 = vld [vmem:[%s15001_s3 + $0x158] sm:$0xff]  ;;  %v8729_v58 = vpack.c.bf16 %v9842_v32, %v9772_v15 }
 0x31f   : > { %8351 = vmatmul.mubr.msk.f32.vlgmr.msra.gmra.mrb[0].mxu1 %vm849_vm6, %v8347_v4  ;;  %v2857_v4 = vmul.f32 %v11521_v5, %v2820_v57  ;;  %v8717_v2 = vpack.c.bf16 %v2853_v37, %v2851_v26  ;;  %v2854_v29 = vmul.f32 %v11546_v61, %v2827_v54 }
 0x320   : > { %8712 = vmatpush1.bf16.msra.mxu1 %v8711_v34  ;;  %2753 = vmatprep.mubr.f32.mxu1 %v15405_v44  ;;  %v2850_v34 = vmul.f32 %v11546_v61, %v2825_v39  ;;  %v8725_v39 = vpack.c.bf16 %v9726_v10, %v15435_v51  ;;  %v3132_v61 = vsel %vm3118_vm11, %v11269_v46, %v11230_v62 }
 0x321   : > { %8714 = vmatprep.subr.bf16.mxu1 %v8713_v19  ;;  %4070 = vrot.lane.b32.xlu1 %v9934_v0, %s15168_s22  ;;  %v11645_v23 = vpop.permute.xlu1 %3486  ;;  %v8721_v19 = vpack.c.bf16 %v2857_v4, %v2855_v45  ;;  %v8723_v57 = vpack.c.bf16 %v2856_v6, %v2854_v29  ;;  %v8733_v45 = vpack.c.bf16 %v15461_v20, %v9934_v0 }
 0x322   : > { %4056 = vrot.lane.b32.xlu0 %v9970_v63, %s15168_s22  ;;  %v11648_v33 = vpop.permute.xlu0 %3472  ;;  %v8719_v12 = vpack.c.bf16 %v2852_v8, %v2850_v34  ;;  %v8727_v8 = vpack.c.bf16 %v15440_v56, %v15427_v41  ;;  %v8372_v34 = vld [vmem:[%s15005_s7 + $0x15] ss:$8 sm:$0x3] }
 0x323   : > { %8352 = vmatmul.mubr.msk.f32.gmra.mrb[2].mxu1 %vm849_vm6, %v8348_v25  ;;  %v11732_v29 = vrot.slane %v8372_v34, %v15457_v38 }
 0x324   : > { %8716 = vmatpush1.bf16.msra.mxu1 %v8715_v14  ;;  %2759 = vmatprep.mubr.f32.mxu1 %v15405_v44  ;;  %v8356_v14 = vld [vmem:[%s15001_s3 + $0x160] sm:$0xff] }
 0x325   : > { %8718 = vmatprep.subr.bf16.mxu1 %v8717_v2  ;;  %4058 = vrot.lane.b32.xlu1 %v10104_v52, %s15168_s22  ;;  %v11665_v37 = vpop.permute.xlu1 %3474  ;;  %v8357_v2 = vld [vmem:[%s15001_s3 + $0x168] sm:$0xff]  ;;  %15540 = vst [vmem:[#allocation81_spill] sm:$0xff] %v11732_v29 }
 0x326   : > { %4072 = vrot.lane.b32.xlu0 %v15461_v20, %s15168_s22  ;;  %v11668_v28 = vpop.permute.xlu0 %3488 }
 0x327   : > { %8353 = vmatmul.mubr.msk.f32.gmra.mrb[4].mxu1 %vm849_vm6, %v8349_v59  ;;  %v8731_v59 = vpack.c.bf16 %v9783_v18, %v9753_v13 }
 0x328   : > { %8720 = vmatpush1.bf16.msra.mxu1 %v8719_v12  ;;  %2765 = vmatprep.mubr.f32.mxu1 %v15405_v44  ;;  %v3128_v12 = vsel %vm3118_vm11, %v11127_v50, %v11087_v40 }
 0x329   : > { %8722 = vmatprep.subr.bf16.mxu1 %v8721_v19  ;;  %4074 = vrot.lane.b32.xlu1 %v15466_v60, %s15168_s22  ;;  %v11679_v25 = vpop.permute.xlu1 %3490  ;;  %v8358_v19 = vld [vmem:[%s15001_s3 + $0x170] sm:$0xff] }
 0x32a   : > { %4060 = vrot.lane.b32.xlu0 %v15469_v36, %s15168_s22  ;;  %v11683_v26 = vpop.permute.xlu0 %3476 }
 0x32b   : > { %8354 = vmatmul.mubr.msk.f32.gmra.mrb[6].mxu1 %vm849_vm6, %v8350_v30  ;;  %v3127_v30 = vsel %vm3118_vm11, %v11080_v27, %v11040_v42 }
 0x32c   : > { %8724 = vmatpush1.bf16.msra.mxu1 %v8723_v57  ;;  %2939 = vmatprep.mubr.f32.mxu1 %v15405_v44  ;;  %v8735_v57 = vpack.c.bf16 %v9970_v63, %v9898_v49 }
 0x32d   : > { %8726 = vmatprep.subr.bf16.mxu1 %v8725_v39  ;;  %4238 = vrot.lane.b32.xlu1 %v15427_v41, %s15188_s16  ;;  %v11696_v21 = vpop.permute.xlu1 %3478  ;;  %v3120_v39 = vsel %vm3118_vm11, %v11087_v40, %v11127_v50  ;;  %v8359_v40 = vld [vmem:[%s15001_s3 + $0x178] sm:$0xff]  ;;  %v3119_v50 = vsel %vm3118_vm11, %v11040_v42, %v11080_v27  ;;  %v3122_v42 = vsel %vm3118_vm11, %v11160_v55, %v11193_v9 }
 0x32e   : > { %4076 = vrot.lane.b32.xlu0 %v15430_v17, %s15168_s22  ;;  %v11700_v4 = vpop.permute.xlu0 %3492  ;;  %s15186_s22 = smov 98  }
 0x32f   : > { %8360 = vmatmul.mubr.msk.f32.vlgmr.msra.gmra.mrb[0].mxu1 %vm849_vm6, %v8356_v14  ;;  %v3151_v14 = vmul.f32 %v11732_v29, %v3128_v12 }
 0x330   : > { %8728 = vmatpush1.bf16.msra.mxu1 %v8727_v8  ;;  %2945 = vmatprep.mubr.f32.mxu1 %v15405_v44 }
 0x331   : > { %8730 = vmatprep.subr.bf16.mxu1 %v8729_v58  ;;  %4254 = vrot.lane.b32.xlu1 %v15435_v51, %s15188_s16  ;;  %v11717_v54 = vpop.permute.xlu1 %3494  ;;  %v8737_v58 = vpack.c.bf16 %v15430_v17, %v15466_v60 }
 0x332   : > { %4240 = vrot.lane.b32.xlu0 %v15440_v56, %s15188_s16  ;;  %v11725_v6 = vpop.permute.xlu0 %3480 }
 0x333   : > { %8361 = vmatmul.mubr.msk.f32.gmra.mrb[2].mxu1 %vm849_vm6, %v8357_v2  ;;  %v11755_v2 = vrot.slane %v8372_v34, %v15462_v43  ;;  %v3149_v34 = vmul.f32 %v11732_v29, %v3127_v30 }
 0x334   : > { %8732 = vmatpush1.bf16.msra.mxu1 %v8731_v59  ;;  %2951 = vmatprep.mubr.f32.mxu1 %v15405_v44  ;;  %v3130_v59 = vsel %vm3118_vm11, %v11193_v9, %v11160_v55  ;;  %v8364_v55 = vld [vmem:[%s15001_s3 + $0x180] sm:$0xff]  ;;  %v3121_v9 = vsel %vm3118_vm11, %v11117_v1, %v11153_v47 }
 0x335   : > { %8734 = vmatprep.subr.bf16.mxu1 %v8733_v45  ;;  %4242 = vrot.lane.b32.xlu1 %v9753_v13, %s15188_s16  ;;  %v11750_v8 = vpop.permute.xlu1 %3482  ;;  %15541 = vst [vmem:[#allocation76_spill] sm:$0xff] %v11755_v2  ;;  %v3150_v12 = vmul.f32 %v11755_v2, %v3120_v39  ;;  %v3155_v27 = vmul.f32 %v11732_v29, %v3130_v59 }
 0x336   : > { %4256 = vrot.lane.b32.xlu0 %v9726_v10, %s15188_s16  ;;  %v11761_v45 = vpop.permute.xlu0 %3496  ;;  %v8741_v39 = vpack.c.bf16 %v3151_v14, %v3149_v34 }
 0x337   : > { %8362 = vmatmul.mubr.msk.f32.gmra.mrb[4].mxu1 %vm849_vm6, %v8358_v19  ;;  %v3129_v19 = vsel %vm3118_vm11, %v11153_v47, %v11117_v1  ;;  %v3124_v1 = vsel %vm3118_vm11, %v11230_v62, %v11269_v46  ;;  %v3159_v47 = vmul.f32 %v11732_v29, %v3132_v61  ;;  %v8365_v62 = vld [vmem:[%s15001_s3 + $0x188] sm:$0xff]  ;;  %v3123_v46 = vsel %vm3118_vm11, %v11186_v48, %v11223_v35 }
 0x338   : > { %8736 = vmatpush1.bf16.msra.mxu1 %v8735_v57  ;;  %2957 = vmatprep.mubr.f32.mxu1 %v15405_v44  ;;  %v8739_v57 = vpack.c.bf16 %v15469_v36, %v10104_v52  ;;  %v3153_v14 = vmul.f32 %v11732_v29, %v3129_v19  ;;  %v3152_v19 = vmul.f32 %v11755_v2, %v3121_v9  ;;  %v15545_v9 = vld [vmem:[#allocation51_spill] sm:$0xff] }
 0x339   : > { %8738 = vmatprep.subr.bf16.mxu1 %v8737_v58  ;;  %4258 = vrot.lane.b32.xlu1 %v9772_v15, %s15188_s16  ;;  %v11789_v30 = vpop.permute.xlu1 %3498  ;;  %v3148_v58 = vmul.f32 %v11755_v2, %v3119_v50  ;;  %v3131_v50 = vsel %vm3118_vm11, %v11223_v35, %v11186_v48 }
 0x33a   : > { %4244 = vrot.lane.b32.xlu0 %v9783_v18, %s15188_s16  ;;  %v11796_v5 = vpop.permute.xlu0 %3484  ;;  %v3157_v61 = vmul.f32 %v11732_v29, %v3131_v50 }
 0x33b   : > { %8363 = vmatmul.mubr.msk.f32.gmra.mrb[6].mxu1 %vm849_vm6, %v8359_v40  ;;  %v8743_v59 = vpack.c.bf16 %v3150_v12, %v3148_v58  ;;  %v3154_v40 = vmul.f32 %v11755_v2, %v3122_v42  ;;  %v8745_v12 = vpack.c.bf16 %v3155_v27, %v3153_v14  ;;  %v15544_v42 = vld [vmem:[#allocation64_spill] sm:$0xff]  ;;  %v15546_v14 = vld [vmem:[#allocation53_spill] sm:$0xff] }
 0x33c   : > { %8740 = vmatpush1.bf16.msra.mxu1 %v8739_v57  ;;  %3053 = vmatprep.mubr.f32.mxu1 %v15405_v44  ;;  %v15543_v57 = vld [vmem:[#allocation50_spill] sm:$0xff]  ;;  %v8749_v50 = vpack.c.bf16 %v3159_v47, %v3157_v61  ;;  %v3125_v47 = vsel %vm3118_vm11, %v15545_v9, %v15546_v14 }
 0x33d   : > { %8742 = vmatprep.subr.bf16.mxu1 %v8741_v39  ;;  %4246 = vrot.lane.b32.xlu1 %v9898_v49, %s15188_s16  ;;  %v11822_v34 = vpop.permute.xlu1 %3662  ;;  %v3134_v39 = vsel %vm3118_vm11, %v15544_v42, %v15543_v57  ;;  %v8747_v27 = vpack.c.bf16 %v3154_v40, %v3152_v19  ;;  %v3126_v48 = vsel %vm3118_vm11, %v15543_v57, %v15544_v42  ;;  %v15549_v19 = vld [vmem:[#allocation3_spill] sm:$0xff]  ;;  %v8366_v57 = vld [vmem:[%s15001_s3 + $0x190] sm:$0xff]  ;;  %v15551_v61 = vld [vmem:[#allocation74_spill] sm:$0xff] }
 0x33e   : > { %4260 = vrot.lane.b32.xlu0 %v9842_v32, %s15188_s16  ;;  %15542 = vst [vmem:[#allocation65_spill] sm:$0xff] %v11822_v34  ;;  %v11829_v58 = vpop.permute.xlu0 %3500  ;;  %v3163_v35 = vmul.f32 %v11732_v29, %v3134_v39  ;;  %v11878_v39 = vrot.slane %v8381_v11, %v15457_v38 }
 0x33f   : > { %8368 = vmatmul.mubr.msk.f32.vlgmr.msra.gmra.mrb[0].mxu1 %vm849_vm6, %v8364_v55  ;;  %v3158_v55 = vmul.f32 %v11755_v2, %v3124_v1  ;;  %v3156_v1 = vmul.f32 %v11755_v2, %v3123_v46  ;;  %v3162_v46 = vmul.f32 %v11755_v2, %v3126_v48  ;;  %v3160_v48 = vmul.f32 %v11755_v2, %v3125_v47  ;;  %v15557_v47 = vld [vmem:[#allocation78_spill] sm:$0xff] }
 0x340   : > { %8744 = vmatpush1.bf16.msra.mxu1 %v8743_v59  ;;  %3059 = vmatprep.mubr.f32.mxu1 %v15405_v44  ;;  %v3133_v59 = vsel %vm3118_vm11, %v15546_v14, %v15545_v9  ;;  %15550 = vst [vmem:[#allocation60_spill] sm:$0xff] %v11878_v39 }
 0x341   : > { %8746 = vmatprep.subr.bf16.mxu1 %v8745_v12  ;;  %4262 = vrot.lane.b32.xlu1 %v9934_v0, %s15188_s16  ;;  %v11859_v40 = vpop.permute.xlu1 %3678  ;;  %v15548_v12 = vld [vmem:[#allocation67_spill] sm:$0xff]  ;;  %v3161_v42 = vmul.f32 %v11732_v29, %v3133_v59 }
 0x342   : > { %4248 = vrot.lane.b32.xlu0 %v9970_v63, %s15188_s16  ;;  %15547 = vst [vmem:[#allocation69_spill] sm:$0xff] %v11859_v40  ;;  %v3320_v34 = vsel %vm3310_vm12, %v15549_v19, %v15548_v12  ;;  %v11866_v63 = vpop.permute.xlu0 %3664  ;;  %v3312_v9 = vsel %vm3310_vm12, %v15548_v12, %v15549_v19  ;;  %v15555_v29 = vld [vmem:[#allocation83_spill] sm:$0xff]  ;;  %v8755_v12 = vpack.c.bf16 %v3162_v46, %v3160_v48 }
 0x343   : > { %8369 = vmatmul.mubr.msk.f32.gmra.mrb[2].mxu1 %vm849_vm6, %v8365_v62  ;;  %v8751_v62 = vpack.c.bf16 %v3158_v55, %v3156_v1  ;;  %v3343_v14 = vmul.f32 %v11878_v39, %v3320_v34  ;;  %v8753_v59 = vpack.c.bf16 %v3163_v35, %v3161_v42  ;;  %v15554_v1 = vld [vmem:[#allocation75_spill] sm:$0xff]  ;;  %v8367_v34 = vld [vmem:[%s15001_s3 + $0x198] sm:$0xff] }
 0x344   : > { %8748 = vmatpush1.bf16.msra.mxu1 %v8747_v27  ;;  %3065 = vmatprep.mubr.f32.mxu1 %v15405_v44  ;;  %v15552_v27 = vld [vmem:[#allocation2_spill] sm:$0xff] }
 0x345   : > { %8750 = vmatprep.subr.bf16.mxu1 %v8749_v50  ;;  %4250 = vrot.lane.b32.xlu1 %v10104_v52, %s15188_s16  ;;  %v3319_v40 = vsel %vm3310_vm12, %v15552_v27, %v15551_v61  ;;  %v11895_v55 = vpop.permute.xlu1 %3666  ;;  %v11899_v50 = vrot.slane %v8381_v11, %v15462_v43  ;;  %v3311_v11 = vsel %vm3310_vm12, %v15551_v61, %v15552_v27 }
 0x346   : > { %4264 = vrot.lane.b32.xlu0 %v15461_v20, %s15188_s16  ;;  %v3322_v20 = vsel %vm3310_vm12, %v15555_v29, %v15554_v1  ;;  %v11905_v52 = vpop.permute.xlu0 %3680  ;;  %v3341_v35 = vmul.f32 %v11878_v39, %v3319_v40  ;;  %v3314_v40 = vsel %vm3310_vm12, %v15554_v1, %v15555_v29 }
 0x347   : > { %8370 = vmatmul.mubr.msk.f32.gmra.mrb[4].mxu1 %vm849_vm6, %v8366_v57  ;;  %15553 = vst [vmem:[#allocation91_spill] sm:$0xff] %v11899_v50  ;;  %v3342_v19 = vmul.f32 %v11899_v50, %v3312_v9  ;;  %v15556_v57 = vld [vmem:[#allocation57_spill] sm:$0xff]  ;;  %v3340_v27 = vmul.f32 %v11899_v50, %v3311_v11  ;;  %v15558_v9 = vld [vmem:[#allocation59_spill] sm:$0xff] }
 0x348   : > { %8752 = vmatpush1.bf16.msra.mxu1 %v8751_v62  ;;  %3071 = vmatprep.mubr.f32.mxu1 %v15405_v44  ;;  %v3321_v42 = vsel %vm3310_vm12, %v15557_v47, %v15556_v57  ;;  %v3347_v62 = vmul.f32 %v11878_v39, %v3322_v20  ;;  %v8757_v61 = vpack.c.bf16 %v3343_v14, %v3341_v35  ;;  %v8373_v20 = vld [vmem:[%s15001_s3 + $0x1a0] sm:$0xff]  ;;  %v15559_v11 = vld [vmem:[#allocation93_spill] sm:$0xff]  ;;  %v15560_v35 = vld [vmem:[#allocation4_spill] sm:$0xff] }
 0x349   : > { %8754 = vmatprep.subr.bf16.mxu1 %v8753_v59  ;;  %4266 = vrot.lane.b32.xlu1 %v15466_v60, %s15188_s16  ;;  %v3324_v59 = vsel %vm3310_vm12, %v11553_v31, %v15558_v9  ;;  %v3313_v29 = vsel %vm3310_vm12, %v15556_v57, %v15557_v47  ;;  %v3345_v14 = vmul.f32 %v11878_v39, %v3321_v42 }
 0x34a   : > { %4252 = vrot.lane.b32.xlu0 %v15469_v36, %s15188_s16  ;;  %v11931_v46 = vpop.permute.xlu1 %3682  ;;  %v8759_v1 = vpack.c.bf16 %v3342_v19, %v3340_v27  ;;  %v3316_v57 = vsel %vm3310_vm12, %v15558_v9, %v11553_v31  ;;  %v3351_v47 = vmul.f32 %v11878_v39, %v3324_v59  ;;  %v8374_v31 = vld [vmem:[%s15001_s3 + $0x1a8] sm:$0xff] }
 0x34b   : > { %8371 = vmatmul.mubr.msk.f32.gmra.mrb[6].mxu1 %vm849_vm6, %v8367_v34  ;;  %v11938_v48 = vpop.permute.xlu0 %3668  ;;  %v3346_v34 = vmul.f32 %v11899_v50, %v3314_v40  ;;  %v8761_v42 = vpack.c.bf16 %v3347_v62, %v3345_v14  ;;  %v3344_v40 = vmul.f32 %v11899_v50, %v3313_v29  ;;  %v3315_v62 = vsel %vm3310_vm12, %v15559_v11, %v15560_v35  ;;  %v8390_v14 = vld [vmem:[%s15005_s7 + $0x17] ss:$8 sm:$0x3] }
 0x34c   : > { %8756 = vmatpush1.bf16.msra.mxu1 %v8755_v12  ;;  %3245 = vmatprep.mubr.f32.mxu1 %v15405_v44  ;;  %v3323_v12 = vsel %vm3310_vm12, %v15560_v35, %v15559_v11  ;;  %v3325_v29 = vsel %vm3310_vm12, %v11579_v22, %v11543_v3 }
 0x34d   : > { %8758 = vmatprep.subr.bf16.mxu1 %v8757_v61  ;;  %4430 = vrot.lane.b32.xlu1 %v15427_v41, %s15186_s22  ;;  %v3326_v61 = vsel %vm3310_vm12, %v11619_v24, %v11586_v7  ;;  %v3349_v9 = vmul.f32 %v11878_v39, %v3323_v12  ;;  %v8763_v59 = vpack.c.bf16 %v3346_v34, %v3344_v40 }
 0x34e   : > { %4268 = vrot.lane.b32.xlu0 %v15430_v17, %s15188_s16  ;;  %v3355_v34 = vmul.f32 %v11878_v39, %v3326_v61  ;;  %v3348_v12 = vmul.f32 %v11899_v50, %v3315_v62  ;;  %v12020_v40 = vrot.slane %v8390_v14, %v15457_v38  ;;  %v3511_v62 = vsel %vm15209_vm13, %v11645_v23, %v11612_v16  ;;  %s15194_s16 = smov 96  }
 0x34f   : > { %8377 = vmatmul.mubr.msk.f32.vlgmr.msra.gmra.mrb[0].mxu1 %vm849_vm6, %v8373_v20  ;;  %v11964_v19 = vpop.permute.xlu1 %3670  ;;  %v11971_v27 = vpop.permute.xlu0 %3684  ;;  %v3350_v20 = vmul.f32 %v11899_v50, %v3316_v57  ;;  %v8765_v35 = vpack.c.bf16 %v3351_v47, %v3349_v9  ;;  %v3512_v57 = vsel %vm15209_vm13, %v11668_v28, %v11648_v33  ;;  %v3353_v47 = vmul.f32 %v11878_v39, %v3325_v29 }
 0x350   : > { %8760 = vmatpush1.bf16.msra.mxu1 %v8759_v1  ;;  %3251 = vmatprep.mubr.f32.mxu1 %v15405_v44  ;;  %v3318_v1 = vsel %vm3310_vm12, %v11586_v7, %v11619_v24  ;;  %v8375_v7 = vld [vmem:[%s15001_s3 + $0x1b0] sm:$0xff]  ;;  %v3317_v24 = vsel %vm3310_vm12, %v11543_v3, %v11579_v22  ;;  %15561 = vst [vmem:[#allocation99_spill] sm:$0xff] %v12020_v40 }
 0x351   : > { %8762 = vmatprep.subr.bf16.mxu1 %v8761_v42  ;;  %4446 = vrot.lane.b32.xlu1 %v15435_v51, %s15186_s22  ;;  %v8767_v61 = vpack.c.bf16 %v3350_v20, %v3348_v12  ;;  %v3504_v3 = vsel %vm15209_vm13, %v11648_v33, %v11668_v28  ;;  %v3535_v22 = vmul.f32 %v12020_v40, %v3512_v57  ;;  %v8376_v33 = vld [vmem:[%s15001_s3 + $0x1b8] sm:$0xff] }
 0x352   : > { %4432 = vrot.lane.b32.xlu0 %v15440_v56, %s15186_s22  ;;  %v3352_v20 = vmul.f32 %v11899_v50, %v3317_v24  ;;  %v12041_v29 = vrot.slane %v8390_v14, %v15462_v43  ;;  %v3503_v28 = vsel %vm15209_vm13, %v11612_v16, %v11645_v23  ;;  %v3533_v14 = vmul.f32 %v12020_v40, %v3511_v62 }
 0x353   : > { %8378 = vmatmul.mubr.msk.f32.gmra.mrb[2].mxu1 %vm849_vm6, %v8374_v31  ;;  %v12001_v11 = vpop.permute.xlu1 %3686  ;;  %v3354_v31 = vmul.f32 %v11899_v50, %v3318_v1  ;;  %v3514_v1 = vsel %vm15209_vm13, %v11700_v4, %v11683_v26  ;;  %v3513_v57 = vsel %vm15209_vm13, %v11679_v25, %v11665_v37  ;;  %v3506_v16 = vsel %vm15209_vm13, %v11683_v26, %v11700_v4  ;;  %v8382_v26 = vld [vmem:[%s15001_s3 + $0x1c0] sm:$0xff] }
 0x354   : > { %8764 = vmatpush1.bf16.msra.mxu1 %v8763_v59  ;;  %v12008_v42 = vpop.permute.xlu0 %3672  ;;  %3257 = vmatprep.mubr.f32.mxu1 %v15405_v44  ;;  %v8769_v59 = vpack.c.bf16 %v3355_v34, %v3353_v47  ;;  %15562 = vst [vmem:[#allocation85_spill] sm:$0xff] %v12041_v29  ;;  %v3534_v12 = vmul.f32 %v12041_v29, %v3504_v3 }
 0x355   : > { %8766 = vmatprep.subr.bf16.mxu1 %v8765_v35  ;;  %4434 = vrot.lane.b32.xlu1 %v9753_v13, %s15186_s22  ;;  %v8771_v34 = vpack.c.bf16 %v3354_v31, %v3352_v20  ;;  %v3539_v23 = vmul.f32 %v12020_v40, %v3514_v1  ;;  %v8773_v24 = vpack.c.bf16 %v3535_v22, %v3533_v14 }
 0x356   : > { %4448 = vrot.lane.b32.xlu0 %v9726_v10, %s15186_s22  ;;  %v3532_v47 = vmul.f32 %v12041_v29, %v3503_v28  ;;  %v3505_v4 = vsel %vm15209_vm13, %v11665_v37, %v11679_v25  ;;  %v3537_v62 = vmul.f32 %v12020_v40, %v3513_v57  ;;  %v3538_v22 = vmul.f32 %v12041_v29, %v3506_v16 }
 0x357   : > { %8379 = vmatmul.mubr.msk.f32.gmra.mrb[4].mxu1 %vm849_vm6, %v8375_v7  ;;  %v12037_v9 = vpop.permute.xlu1 %3674  ;;  %v3508_v37 = vsel %vm15209_vm13, %v11725_v6, %v11761_v45  ;;  %v3518_v28 = vsel %vm15209_vm13, %v11829_v58, %v11796_v5  ;;  %v3517_v16 = vsel %vm15209_vm13, %v11789_v30, %v11750_v8 }
 0x358   : > { %8768 = vmatpush1.bf16.msra.mxu1 %v8767_v61  ;;  %v12047_v35 = vpop.permute.xlu0 %3688  ;;  %3263 = vmatprep.mubr.f32.mxu1 %v15405_v44  ;;  %v3516_v61 = vsel %vm15209_vm13, %v11761_v45, %v11725_v6  ;;  %v8775_v3 = vpack.c.bf16 %v3534_v12, %v3532_v47  ;;  %v8777_v1 = vpack.c.bf16 %v3539_v23, %v3537_v62  ;;  %v8383_v6 = vld [vmem:[%s15001_s3 + $0x1c8] sm:$0xff] }
 0x359   : > { %8770 = vmatprep.subr.bf16.mxu1 %v8769_v59  ;;  %4450 = vrot.lane.b32.xlu1 %v9772_v15, %s15186_s22  ;;  %v3515_v59 = vsel %vm15209_vm13, %v11717_v54, %v11696_v21  ;;  %v3543_v25 = vmul.f32 %v12020_v40, %v3516_v61  ;;  %v3507_v45 = vsel %vm15209_vm13, %v11696_v21, %v11717_v54  ;;  %v8399_v23 = vld [vmem:[%s15005_s7 + $0x20] ss:$8 sm:$0x3] }
 0x35a   : > { %4436 = vrot.lane.b32.xlu0 %v9783_v18, %s15186_s22  ;;  %v3542_v57 = vmul.f32 %v12041_v29, %v3508_v37  ;;  %v15563_v21 = vld [vmem:[#allocation22_spill] sm:$0xff]  ;;  %v3510_v54 = vsel %vm15209_vm13, %v11796_v5, %v11829_v58  ;;  %v8384_v5 = vld [vmem:[%s15001_s3 + $0x1d0] sm:$0xff]  ;;  %v3509_v58 = vsel %vm15209_vm13, %v11750_v8, %v11789_v30  ;;  %v3696_v8 = vsel %vm15185_vm14, %v11866_v63, %v11905_v52 }
 0x35b   : > { %8380 = vmatmul.mubr.msk.f32.gmra.mrb[6].mxu1 %vm849_vm6, %v8376_v33  ;;  %v12073_v7 = vpop.permute.xlu1 %3690  ;;  %v3536_v33 = vmul.f32 %v12041_v29, %v3505_v4  ;;  %v3704_v4 = vsel %vm15185_vm14, %v11905_v52, %v11866_v63  ;;  %v8385_v52 = vld [vmem:[%s15001_s3 + $0x1d8] sm:$0xff]  ;;  %vm5230_vm13 = vcmp.lt.s32.totalorder %v9904_v53, 94 }
 0x35c   : > { %8772 = vmatpush1.bf16.msra.mxu1 %v8771_v34  ;;  %v12080_v31 = vpop.permute.xlu0 %3676  ;;  %3437 = vmatprep.mubr.f32.mxu1 %v15405_v44  ;;  %v3541_v34 = vmul.f32 %v12020_v40, %v3515_v59  ;;  %v15565_v59 = vld [vmem:[#allocation37_spill] sm:$0xff] }
 0x35d   : > { %8774 = vmatprep.subr.bf16.mxu1 %v8773_v24  ;;  %4438 = vrot.lane.b32.xlu1 %v9898_v49, %s15186_s22  ;;  %v8779_v12 = vpack.c.bf16 %v3538_v22, %v3536_v33  ;;  %v3547_v24 = vmul.f32 %v12020_v40, %v3518_v28  ;;  %v12162_v22 = vrot.slane %v8399_v23, %v15457_v38  ;;  %v15567_v33 = vld [vmem:[#allocation69_spill] sm:$0xff] }
 0x35e   : > { %4452 = vrot.lane.b32.xlu0 %v9842_v32, %s15186_s22  ;;  %v8781_v61 = vpack.c.bf16 %v3543_v25, %v3541_v34  ;;  %v3546_v25 = vmul.f32 %v12041_v29, %v3510_v54 }
 0x35f   : > { %8386 = vmatmul.mubr.msk.f32.vlgmr.msra.gmra.mrb[0].mxu1 %vm849_vm6, %v8382_v26  ;;  %v12106_v20 = vpop.permute.xlu1 %3854  ;;  %v3540_v26 = vmul.f32 %v12041_v29, %v3507_v45  ;;  %15564 = vst [vmem:[#allocation23_spill] sm:$0xff] %v12162_v22  ;;  %v3727_v30 = vmul.f32 %v12162_v22, %v3704_v4  ;;  %v3698_v4 = vsel %vm15185_vm14, %v11938_v48, %v11971_v27 }
 0x360   : > { %8776 = vmatpush1.bf16.msra.mxu1 %v8775_v3  ;;  %v12113_v14 = vpop.permute.xlu0 %3692  ;;  %3443 = vmatprep.mubr.f32.mxu1 %v15405_v44  ;;  %v3545_v3 = vmul.f32 %v12020_v40, %v3517_v16  ;;  %v3706_v16 = vsel %vm15185_vm14, %v11971_v27, %v11938_v48  ;;  %v8391_v48 = vld [vmem:[%s15001_s3 + $0x1e0] sm:$0xff]  ;;  %v3697_v27 = vsel %vm15185_vm14, %v11895_v55, %v11931_v46 }
 0x361   : > { %8778 = vmatprep.subr.bf16.mxu1 %v8777_v1  ;;  %4454 = vrot.lane.b32.xlu1 %v9934_v0, %s15186_s22  ;;  %v8783_v37 = vpack.c.bf16 %v3542_v57, %v3540_v26  ;;  %v15566_v1 = vld [vmem:[#allocation65_spill] sm:$0xff]  ;;  %v12183_v57 = vrot.slane %v8399_v23, %v15462_v43  ;;  %v3705_v26 = vsel %vm15185_vm14, %v11931_v46, %v11895_v55 }
 0x362   : > { %4440 = vrot.lane.b32.xlu0 %v15563_v21, %s15186_s22  ;;  %v3703_v28 = vsel %vm15185_vm14, %v15567_v33, %v15566_v1  ;;  %v8785_v34 = vpack.c.bf16 %v3547_v24, %v3545_v3  ;;  %v3695_v63 = vsel %vm15185_vm14, %v15566_v1, %v15567_v33  ;;  %v3729_v33 = vmul.f32 %v12162_v22, %v3705_v26 }
 0x363   : > { %8387 = vmatmul.mubr.msk.f32.gmra.mrb[2].mxu1 %vm849_vm6, %v8383_v6  ;;  %v12143_v47 = vpop.permute.xlu1 %3870  ;;  %v15568_v6 = vld [vmem:[#allocation30_spill] sm:$0xff]  ;;  %15569 = vst [vmem:[#allocation10_spill] sm:$0xff] %v12183_v57  ;;  %v3725_v23 = vmul.f32 %v12162_v22, %v3703_v28  ;;  %v3700_v55 = vsel %vm15185_vm14, %v12008_v42, %v12047_v35  ;;  %v3709_v26 = vsel %vm15185_vm14, %v12073_v7, %v12037_v9 }
 0x364   : > { %8780 = vmatpush1.bf16.msra.mxu1 %v8779_v12  ;;  %v12150_v62 = vpop.permute.xlu0 %3856  ;;  %3449 = vmatprep.mubr.f32.mxu1 %v15405_v44  ;;  %v3544_v12 = vmul.f32 %v12041_v29, %v3509_v58 }
 0x365   : > { %8782 = vmatprep.subr.bf16.mxu1 %v8781_v61  ;;  %4442 = vrot.lane.b32.xlu1 %v15565_v59, %s15186_s22  ;;  %v3726_v61 = vmul.f32 %v12183_v57, %v3696_v8  ;;  %v8789_v3 = vpack.c.bf16 %v3727_v30, %v3725_v23  ;;  %v3730_v8 = vmul.f32 %v12183_v57, %v3698_v4  ;;  %v8408_v4 = vld [vmem:[%s15005_s7 + $0x21] ss:$8 sm:$0x3] }
 0x366   : > { %4456 = vrot.lane.b32.xlu0 %v15568_v6, %s15186_s22  ;;  %v8787_v24 = vpack.c.bf16 %v3546_v25, %v3544_v12  ;;  %v3708_v25 = vsel %vm15185_vm14, %v12047_v35, %v12008_v42  ;;  %v3707_v30 = vsel %vm15185_vm14, %v12001_v11, %v11964_v19  ;;  %v8392_v42 = vld [vmem:[%s15001_s3 + $0x1e8] sm:$0xff]  ;;  %v3699_v35 = vsel %vm15185_vm14, %v11964_v19, %v12001_v11 }
 0x367   : > { %8388 = vmatmul.mubr.msk.f32.gmra.mrb[4].mxu1 %vm849_vm6, %v8384_v5  ;;  %v12179_v45 = vpop.permute.xlu1 %3858  ;;  %v3731_v5 = vmul.f32 %v12162_v22, %v3706_v16  ;;  %v3735_v46 = vmul.f32 %v12162_v22, %v3708_v25  ;;  %v3728_v16 = vmul.f32 %v12183_v57, %v3697_v27  ;;  %v3733_v23 = vmul.f32 %v12162_v22, %v3707_v30 }
 0x368   : > { %8784 = vmatpush1.bf16.msra.mxu1 %v8783_v37  ;;  %v12189_v54 = vpop.permute.xlu0 %3872  ;;  %3455 = vmatprep.mubr.f32.mxu1 %v15405_v44  ;;  %v3724_v37 = vmul.f32 %v12183_v57, %v3695_v63  ;;  %v3702_v19 = vsel %vm15185_vm14, %v12080_v31, %v12113_v14  ;;  %v3737_v27 = vmul.f32 %v12162_v22, %v3709_v26 }
 0x369   : > { %8786 = vmatprep.subr.bf16.mxu1 %v8785_v34  ;;  %4458 = vrot.lane.b32.xlu1 %v15466_v60, %s15186_s22  ;;  %v8793_v12 = vpack.c.bf16 %v3731_v5, %v3729_v33  ;;  %v3896_v25 = vsel %vm15198_vm15, %v12189_v54, %v12150_v62  ;;  %v12300_v33 = vrot.slane %v8408_v4, %v15457_v38 }
 0x36a   : > { %4444 = vrot.lane.b32.xlu0 %v15469_v36, %s15186_s22  ;;  %v8791_v28 = vpack.c.bf16 %v3726_v61, %v3724_v37  ;;  %v3734_v61 = vmul.f32 %v12183_v57, %v3700_v55  ;;  %v3732_v37 = vmul.f32 %v12183_v57, %v3699_v35  ;;  %v3895_v30 = vsel %vm15198_vm15, %v12143_v47, %v12106_v20 }
 0x36b   : > { %8389 = vmatmul.mubr.msk.f32.gmra.mrb[6].mxu1 %vm849_vm6, %v8385_v52  ;;  %v12215_v58 = vpop.permute.xlu1 %3874  ;;  %v3710_v52 = vsel %vm15185_vm14, %v12113_v14, %v12080_v31  ;;  %v8393_v31 = vld [vmem:[%s15001_s3 + $0x1f0] sm:$0xff]  ;;  %v3701_v14 = vsel %vm15185_vm14, %v12037_v9, %v12073_v7  ;;  %15570 = vst [vmem:[#allocation13_spill] sm:$0xff] %v12300_v33  ;;  %v3888_v9 = vsel %vm15198_vm15, %v12150_v62, %v12189_v54  ;;  %v8394_v62 = vld [vmem:[%s15001_s3 + $0x1f8] sm:$0xff]  ;;  %vm15190_vm14 = vcmp.lt.s32.totalorder %v9904_v53, 111 }
 0x36c   : > { %8788 = vmatpush1.bf16.msra.mxu1 %v8787_v24  ;;  %v12222_v1 = vpop.permute.xlu0 %3860  ;;  %3629 = vmatprep.mubr.f32.mxu1 %v15405_v44  ;;  %v8795_v24 = vpack.c.bf16 %v3730_v8, %v3728_v16  ;;  %v3739_v11 = vmul.f32 %v12162_v22, %v3710_v52  ;;  %v3738_v8 = vmul.f32 %v12183_v57, %v3702_v19 }
 0x36d   : > { %8790 = vmatprep.subr.bf16.mxu1 %v8789_v3  ;;  %4622 = vrot.lane.b32.xlu1 %v15427_v41, %s15191_s15  ;;  %v8797_v3 = vpack.c.bf16 %v3735_v46, %v3733_v23  ;;  %v3919_v7 = vmul.f32 %v12300_v33, %v3896_v25  ;;  %v12321_v16 = vrot.slane %v8408_v4, %v15462_v43 }
 0x36e   : > { %4460 = vrot.lane.b32.xlu0 %v15430_v17, %s15186_s22  ;;  %v8801_v46 = vpack.c.bf16 %v3739_v11, %v3737_v27  ;;  %v3887_v54 = vsel %vm15198_vm15, %v12106_v20, %v12143_v47  ;;  %v3917_v35 = vmul.f32 %v12300_v33, %v3895_v30  ;;  %s15199_s22 = smov 95  }
 0x36f   : > { %8395 = vmatmul.mubr.msk.f32.vlgmr.msra.gmra.mrb[0].mxu1 %vm849_vm6, %v8391_v48  ;;  %v12248_v34 = vpop.permute.xlu1 %3862  ;;  %15571 = vst [vmem:[#allocation14_spill] sm:$0xff] %v12321_v16  ;;  %v3916_v19 = vmul.f32 %v12321_v16, %v3887_v54 }
 0x370   : > { %8792 = vmatpush1.bf16.msra.mxu1 %v8791_v28  ;;  %v3877_v63 = vpop.permute.xlu0 %3876  ;;  %3635 = vmatprep.mubr.f32.mxu1 %v15405_v44  ;;  %v8799_v28 = vpack.c.bf16 %v3734_v61, %v3732_v37  ;;  %v3897_v61 = vsel %vm15198_vm15, %v12215_v58, %v12179_v45  ;;  %v8805_v4 = vpack.c.bf16 %v3919_v7, %v3917_v35  ;;  %v8400_v37 = vld [vmem:[%s15001_s3 + $0x200] sm:$0xff] }
 0x371   : > { %8794 = vmatprep.subr.bf16.mxu1 %v8793_v12  ;;  %4638 = vrot.lane.b32.xlu1 %v15435_v51, %s15191_s15  ;;  %v3736_v12 = vmul.f32 %v12183_v57, %v3701_v14  ;;  %v3898_v52 = vsel %vm15198_vm15, %v3877_v63, %v12222_v1  ;;  %v3890_v20 = vsel %vm15198_vm15, %v12222_v1, %v3877_v63 }
 0x372   : > { %4624 = vrot.lane.b32.xlu0 %v15440_v56, %s15191_s15  ;;  %v3923_v47 = vmul.f32 %v12300_v33, %v3898_v52  ;;  %v3889_v1 = vsel %vm15198_vm15, %v12179_v45, %v12215_v58  ;;  %v3921_v63 = vmul.f32 %v12300_v33, %v3897_v61  ;;  %v8402_v61 = vld [vmem:[%s15001_s3 + $0x210] sm:$0xff] }
 0x373   : > { %8396 = vmatmul.mubr.msk.f32.gmra.mrb[2].mxu1 %vm849_vm6, %v8392_v42  ;;  %v12283_v5 = vpop.permute.xlu1 %3878  ;;  %v8803_v23 = vpack.c.bf16 %v3738_v8, %v3736_v12  ;;  %v3920_v8 = vmul.f32 %v12321_v16, %v3889_v1 }
 0x374   : > { %8796 = vmatpush1.bf16.msra.mxu1 %v8795_v24  ;;  %v3865_v48 = vpop.permute.xlu0 %3864  ;;  %3641 = vmatprep.mubr.f32.mxu1 %v15405_v44  ;;  %v3918_v24 = vmul.f32 %v12321_v16, %v3888_v9  ;;  %v3899_v14 = vsel %vm15198_vm15, %v12283_v5, %v12248_v34  ;;  %v8401_v9 = vld [vmem:[%s15001_s3 + $0x208] sm:$0xff] }
 0x375   : > { %8798 = vmatprep.subr.bf16.mxu1 %v8797_v3  ;;  %4626 = vrot.lane.b32.xlu1 %v9753_v13, %s15191_s15  ;;  %v3925_v7 = vmul.f32 %v12300_v33, %v3899_v14 }
 0x376   : > { %4640 = vrot.lane.b32.xlu0 %v9726_v10, %s15191_s15  ;;  %v8807_v25 = vpack.c.bf16 %v3918_v24, %v3916_v19 }
 0x377   : > { %8397 = vmatmul.mubr.msk.f32.gmra.mrb[4].mxu1 %vm849_vm6, %v8393_v31  ;;  %v12317_v55 = vpop.permute.xlu1 %3866  ;;  %v3922_v31 = vmul.f32 %v12321_v16, %v3890_v20 }
 0x378   : > { %8800 = vmatpush1.bf16.msra.mxu1 %v8799_v28  ;;  %v3881_v42 = vpop.permute.xlu0 %3880  ;;  %3647 = vmatprep.mubr.f32.mxu1 %v15405_v44  ;;  %v8809_v28 = vpack.c.bf16 %v3923_v47, %v3921_v63 }
 0x379   : > { %8802 = vmatprep.subr.bf16.mxu1 %v8801_v46  ;;  %4642 = vrot.lane.b32.xlu1 %v9772_v15, %s15191_s15  ;;  %v3900_v11 = vsel %vm15198_vm15, %v3881_v42, %v3865_v48  ;;  %v3892_v45 = vsel %vm15198_vm15, %v3865_v48, %v3881_v42  ;;  %v3891_v48 = vsel %vm15198_vm15, %v12248_v34, %v12283_v5 }
 0x37a   : > { %4628 = vrot.lane.b32.xlu0 %v9783_v18, %s15191_s15  ;;  %v3927_v58 = vmul.f32 %v12300_v33, %v3900_v11  ;;  %v8811_v12 = vpack.c.bf16 %v3922_v31, %v3920_v8  ;;  %v3926_v52 = vmul.f32 %v12321_v16, %v3892_v45  ;;  %v8403_v31 = vld [vmem:[%s15001_s3 + $0x218] sm:$0xff] }
 0x37b   : > { %8398 = vmatmul.mubr.msk.f32.gmra.mrb[6].mxu1 %vm849_vm6, %v8394_v62  ;;  %v3883_v26 = vpop.permute.xlu1 %3882  ;;  %v8417_v62 = vld [vmem:[%s15005_s7 + $0x22] ss:$8 sm:$0x3] }
 0x37c   : > { %8804 = vmatpush1.bf16.msra.mxu1 %v8803_v23  ;;  %v3869_v3 = vpop.permute.xlu0 %3868  ;;  %3821 = vmatprep.mubr.f32.mxu1 %v15405_v44  ;;  %v3901_v42 = vsel %vm15198_vm15, %v3883_v26, %v12317_v55  ;;  %v8813_v35 = vpack.c.bf16 %v3927_v58, %v3925_v7  ;;  %v3924_v23 = vmul.f32 %v12321_v16, %v3891_v48 }
 0x37d   : > { %8806 = vmatprep.subr.bf16.mxu1 %v8805_v4  ;;  %4630 = vrot.lane.b32.xlu1 %v9898_v49, %s15191_s15  ;;  %v3893_v20 = vsel %vm15198_vm15, %v12317_v55, %v3883_v26  ;;  %v3929_v47 = vmul.f32 %v12300_v33, %v3901_v42  ;;  %v12415_v11 = vrot.slane %v8417_v62, %v15462_v43 }
 0x37e   : > { %4644 = vrot.lane.b32.xlu0 %v9842_v32, %s15191_s15  ;;  %v8815_v4 = vpack.c.bf16 %v3926_v52, %v3924_v23  ;;  %v3928_v1 = vmul.f32 %v12321_v16, %v3893_v20 }
 0x37f   : > { %8404 = vmatmul.mubr.msk.f32.vlgmr.msra.gmra.mrb[0].mxu1 %vm849_vm6, %v8400_v37  ;;  %v4047_v27 = vpop.permute.xlu1 %4046  ;;  %15572 = vst [vmem:[#allocation6_spill] sm:$0xff] %v12415_v11 }
 0x380   : > { %8808 = vmatpush1.bf16.msra.mxu1 %v8807_v25  ;;  %v3885_v30 = vpop.permute.xlu0 %3884  ;;  %3827 = vmatprep.mubr.f32.mxu1 %v15405_v44 }
 0x381   : > { %v3902_v46 = vsel %vm15198_vm15, %v3885_v30, %v3869_v3  ;;  %8810 = vmatprep.subr.bf16.mxu1 %v8809_v28  ;;  %4646 = vrot.lane.b32.xlu1 %v9934_v0, %s15191_s15  ;;  %v3894_v34 = vsel %vm15198_vm15, %v3869_v3, %v3885_v30  ;;  %v12420_v3 = vrot.slane %v8417_v62, %v15457_v38  ;;  %v8410_v62 = vld [vmem:[%s15001_s3 + $0x228] sm:$0xff]  ;;  %vm1084_vm15 = vcmp.lt.s32.totalorder %v9904_v53, 32 }
 0x382   : > { %4632 = vrot.lane.b32.xlu0 %v15563_v21, %s15191_s15  ;;  %v3931_v5 = vmul.f32 %v12300_v33, %v3902_v46  ;;  %v3930_v19 = vmul.f32 %v12321_v16, %v3894_v34  ;;  %v8409_v46 = vld [vmem:[%s15001_s3 + $0x220] sm:$0xff] }
 0x383   : > { %8405 = vmatmul.mubr.msk.f32.gmra.mrb[2].mxu1 %vm849_vm6, %v8401_v9  ;;  %v4063_v54 = vpop.permute.xlu1 %4062  ;;  %15573 = vst [vmem:[#allocation17_spill] sm:$0xff] %v12420_v3 }
 0x384   : > { %8812 = vmatpush1.bf16.msra.mxu1 %v8811_v12  ;;  %v4049_v24 = vpop.permute.xlu0 %4048  ;;  %3833 = vmatprep.mubr.f32.mxu1 %v15405_v44  ;;  %v4079_v55 = vsel %vm15190_vm14, %v4047_v27, %v4063_v54  ;;  %v8817_v37 = vpack.c.bf16 %v3931_v5, %v3929_v47  ;;  %v4087_v63 = vsel %vm15190_vm14, %v4063_v54, %v4047_v27 }
 0x385   : > { %8814 = vmatprep.subr.bf16.mxu1 %v8813_v35  ;;  %4634 = vrot.lane.b32.xlu1 %v15565_v59, %s15191_s15  ;;  %v8819_v58 = vpack.c.bf16 %v3930_v19, %v3928_v1  ;;  %v4108_v27 = vmul.f32 %v12415_v11, %v4079_v55  ;;  %v4109_v30 = vmul.f32 %v12420_v3, %v4087_v63 }
 0x386   : > { %4648 = vrot.lane.b32.xlu0 %v15568_v6, %s15191_s15 }
 0x387   : > { %8406 = vmatmul.mubr.msk.f32.gmra.mrb[4].mxu1 %vm849_vm6, %v8402_v61  ;;  %v4051_v26 = vpop.permute.xlu1 %4050 }
 0x388   : > { %8816 = vmatpush1.bf16.msra.mxu1 %v8815_v4  ;;  %v4065_v25 = vpop.permute.xlu0 %4064  ;;  %3839 = vmatprep.mubr.f32.mxu1 %v15405_v44 }
 0x389   : > { %v4080_v14 = vsel %vm15190_vm14, %v4049_v24, %v4065_v25  ;;  %v4088_v45 = vsel %vm15190_vm14, %v4065_v25, %v4049_v24  ;;  %8818 = vmatprep.subr.bf16.mxu1 %v8817_v37  ;;  %4650 = vrot.lane.b32.xlu1 %v15466_v60, %s15191_s15 }
 0x38a   : > { %v4110_v28 = vmul.f32 %v12415_v11, %v4080_v14  ;;  %v4111_v8 = vmul.f32 %v12420_v3, %v4088_v45  ;;  %4636 = vrot.lane.b32.xlu0 %v15469_v36, %s15191_s15  ;;  %v8412_v45 = vld [vmem:[%s15001_s3 + $0x238] sm:$0xff] }
 0x38b   : > { %8407 = vmatmul.mubr.msk.f32.gmra.mrb[6].mxu1 %vm849_vm6, %v8403_v31  ;;  %v4067_v9 = vpop.permute.xlu1 %4066 }
 0x38c   : > { %v8823_v48 = vpack.c.bf16 %v4110_v28, %v4108_v27  ;;  %8820 = vmatpush1.bf16.msra.mxu1 %v8819_v58  ;;  %v4053_v7 = vpop.permute.xlu0 %4052  ;;  %4013 = vmatprep.mubr.f32.mxu1 %v15405_v44  ;;  %v8821_v12 = vpack.c.bf16 %v4111_v8, %v4109_v30  ;;  %v4081_v52 = vsel %vm15190_vm14, %v4051_v26, %v4067_v9 }
 0x38d   : > { %4814 = vrot.lane.b32.xlu1 %v15427_v41, %s15194_s16  ;;  %v4089_v42 = vsel %vm15190_vm14, %v4067_v9, %v4051_v26  ;;  %v4112_v23 = vmul.f32 %v12415_v11, %v4081_v52  ;;  %v8411_v26 = vld [vmem:[%s15001_s3 + $0x230] sm:$0xff] }
 0x38e   : > { %4652 = vrot.lane.b32.xlu0 %v15430_v17, %s15191_s15  ;;  %8822 = vmatprep.subr.bf16.mxu1 %v8821_v12  ;;  %v4113_v24 = vmul.f32 %v12420_v3, %v4089_v42 }
 0x38f   : > { %8413 = vmatmul.mubr.msk.f32.vlgmr.msra.gmra.mrb[0].mxu1 %vm849_vm6, %v8409_v46  ;;  %v4055_v34 = vpop.permute.xlu1 %4054  ;;  %v8263_v46 = vld [vmem:[%s15001_s3 + $0x28] sm:$0xff] }
 0x390   : > { %8824 = vmatpush1.bf16.msra.mxu1 %v8823_v48  ;;  %v4069_v5 = vpop.permute.xlu0 %4068  ;;  %4019 = vmatprep.mubr.f32.mxu1 %v15405_v44 }
 0x391   : > { %v4082_v54 = vsel %vm15190_vm14, %v4053_v7, %v4069_v5  ;;  %v4090_v35 = vsel %vm15190_vm14, %v4069_v5, %v4053_v7  ;;  %4830 = vrot.lane.b32.xlu1 %v15435_v51, %s15194_s16  ;;  %8267 = vmatmul.mubr.msk.f32.gmra.mrb[18].mxu0 %vm849_vm6, %v8263_v46 }
 0x392   : > { %v4114_v61 = vmul.f32 %v12415_v11, %v4082_v54  ;;  %v4115_v20 = vmul.f32 %v12420_v3, %v4090_v35  ;;  %4816 = vrot.lane.b32.xlu0 %v15440_v56, %s15194_s16  ;;  %938 = vmatprep.mubr.f32.mxu0 %v15405_v44 }
 0x393   : > { %v4071_v47 = vpop.permute.xlu1 %4070  ;;  %8414 = vmatmul.mubr.msk.f32.gmra.mrb[2].mxu1 %vm849_vm6, %v8410_v62 }
 0x394   : > { %v8827_v4 = vpack.c.bf16 %v4114_v61, %v4112_v23  ;;  %v4057_v19 = vpop.permute.xlu0 %4056  ;;  %v8825_v55 = vpack.c.bf16 %v4115_v20, %v4113_v24  ;;  %4025 = vmatprep.mubr.f32.mxu1 %v15405_v44  ;;  %v4083_v37 = vsel %vm15190_vm14, %v4055_v34, %v4071_v47  ;;  %v4091_v1 = vsel %vm15190_vm14, %v4071_v47, %v4055_v34  ;;  %v8426_v61 = vld [vmem:[%s15005_s7 + $0x23] ss:$8 sm:$0x3] }
 0x395   : > { %4818 = vrot.lane.b32.xlu1 %v9753_v13, %s15194_s16  ;;  %v4116_v58 = vmul.f32 %v12415_v11, %v4083_v37  ;;  %v4117_v27 = vmul.f32 %v12420_v3, %v4091_v1  ;;  %v12545_v37 = vrot.slane %v8426_v61, %v15457_v38 }
 0x396   : > { %4832 = vrot.lane.b32.xlu0 %v9726_v10, %s15194_s16  ;;  %8826 = vmatprep.subr.bf16.mxu1 %v8825_v55  ;;  %v8264_v55 = vld [vmem:[%s15001_s3 + $0x30] sm:$0xff] }
 0x397   : > { %8828 = vmatpush1.bf16.msra.mxu1 %v8827_v4  ;;  %v4059_v63 = vpop.permute.xlu1 %4058  ;;  %8268 = vmatmul.mubr.msk.f32.gmra.mrb[20].mxu0 %vm849_vm6, %v8264_v55  ;;  %15575 = vst [vmem:[#allocation38_spill] sm:$0xff] %v12545_v37 }
 0x398   : > { %v4073_v25 = vpop.permute.xlu0 %4072  ;;  %8415 = vmatmul.mubr.msk.f32.gmra.mrb[4].mxu1 %vm849_vm6, %v8411_v26  ;;  %v12539_v26 = vrot.slane %v8426_v61, %v15462_v43  ;;  %944 = vmatprep.mubr.f32.mxu0 %v15405_v44 }
 0x399   : > { %v4084_v31 = vsel %vm15190_vm14, %v4057_v19, %v4073_v25  ;;  %v4092_v14 = vsel %vm15190_vm14, %v4073_v25, %v4057_v19  ;;  %4834 = vrot.lane.b32.xlu1 %v9772_v15, %s15194_s16  ;;  %4031 = vmatprep.mubr.f32.mxu1 %v15405_v44 }
 0x39a   : > { %v4118_v28 = vmul.f32 %v12415_v11, %v4084_v31  ;;  %v4119_v8 = vmul.f32 %v12420_v3, %v4092_v14  ;;  %4820 = vrot.lane.b32.xlu0 %v9783_v18, %s15194_s16  ;;  %15574 = vst [vmem:[#allocation52_spill] sm:$0xff] %v12539_v26  ;;  %v8418_v31 = vld [vmem:[%s15001_s3 + $0x240] sm:$0xff] }
 0x39b   : > { %v4075_v30 = vpop.permute.xlu1 %4074 }
 0x39c   : > { %v8831_v9 = vpack.c.bf16 %v4118_v28, %v4116_v58  ;;  %v4061_v48 = vpop.permute.xlu0 %4060  ;;  %v8829_v7 = vpack.c.bf16 %v4119_v8, %v4117_v27  ;;  %8416 = vmatmul.mubr.msk.f32.gmra.mrb[6].mxu1 %vm849_vm6, %v8412_v45  ;;  %v4085_v12 = vsel %vm15190_vm14, %v4059_v63, %v4075_v30  ;;  %v4093_v52 = vsel %vm15190_vm14, %v4075_v30, %v4059_v63  ;;  %v8265_v45 = vld [vmem:[%s15001_s3 + $0x38] sm:$0xff] }
 0x39d   : > { %4822 = vrot.lane.b32.xlu1 %v9898_v49, %s15194_s16  ;;  %4205 = vmatprep.mubr.f32.mxu1 %v15405_v44  ;;  %v4120_v54 = vmul.f32 %v12415_v11, %v4085_v12  ;;  %v4121_v35 = vmul.f32 %v12420_v3, %v4093_v52 }
 0x39e   : > { %4836 = vrot.lane.b32.xlu0 %v9842_v32, %s15194_s16  ;;  %8830 = vmatprep.subr.bf16.mxu1 %v8829_v7 }
 0x39f   : > { %8832 = vmatpush1.bf16.msra.mxu1 %v8831_v9  ;;  %v4239_v42 = vpop.permute.xlu1 %4238  ;;  %8269 = vmatmul.mubr.msk.f32.gmra.mrb[22].mxu0 %vm849_vm6, %v8265_v45 }
 0x3a0   : > { %v4077_v34 = vpop.permute.xlu0 %4076  ;;  %1027 = vmatprep.mubr.f32.mxu0 %v15405_v44 }
 0x3a1   : > { %v4086_v5 = vsel %vm15190_vm14, %v4061_v48, %v4077_v34  ;;  %v4094_v62 = vsel %vm15190_vm14, %v4077_v34, %v4061_v48  ;;  %4838 = vrot.lane.b32.xlu1 %v9934_v0, %s15194_s16  ;;  %vm15193_vm14 = vcmp.lt.s32.totalorder %v9904_v53, 110  ;;  %v762_v48 = vld [vmem:[%s15001_s3] sm:$0xff] }
 0x3a2   : > { %v4122_v23 = vmul.f32 %v12415_v11, %v4086_v5  ;;  %v4123_v24 = vmul.f32 %v12420_v3, %v4094_v62  ;;  %4824 = vrot.lane.b32.xlu0 %v15563_v21, %s15194_s16 }
 0x3a3   : > { %v4255_v20 = vpop.permute.xlu1 %4254  ;;  %8270 = vmatmul.mubr.msk.f32.vlgmr.msra.gmra.mrb[16].mxu0 %vm849_vm6, %v762_v48 }
 0x3a4   : > { %v8835_v47 = vpack.c.bf16 %v4122_v23, %v4120_v54  ;;  %v4241_v4 = vpop.permute.xlu0 %4240  ;;  %v8833_v19 = vpack.c.bf16 %v4123_v24, %v4121_v35  ;;  %v4271_v1 = vsel %vm15193_vm14, %v4239_v42, %v4255_v20  ;;  %v4279_v63 = vsel %vm15193_vm14, %v4255_v20, %v4239_v42  ;;  %v8419_v42 = vld [vmem:[%s15001_s3 + $0x248] sm:$0xff]  ;;  %1033 = vmatprep.mubr.f32.mxu0 %v15405_v44  ;;  %v8420_v24 = vld [vmem:[%s15001_s3 + $0x250] sm:$0xff] }
 0x3a5   : > { %4826 = vrot.lane.b32.xlu1 %v15565_v59, %s15194_s16  ;;  %v4300_v58 = vmul.f32 %v12539_v26, %v4271_v1  ;;  %v4301_v8 = vmul.f32 %v12545_v37, %v4279_v63 }
 0x3a6   : > { %4840 = vrot.lane.b32.xlu0 %v15568_v6, %s15194_s16  ;;  %8834 = vmatprep.subr.bf16.mxu1 %v8833_v19 }
 0x3a7   : > { %8836 = vmatpush1.bf16.msra.mxu1 %v8835_v47  ;;  %v4243_v25 = vpop.permute.xlu1 %4242 }
 0x3a8   : > { %v4257_v14 = vpop.permute.xlu0 %4256 }
 0x3a9   : > { %v4272_v27 = vsel %vm15193_vm14, %v4241_v4, %v4257_v14  ;;  %v4280_v28 = vsel %vm15193_vm14, %v4257_v14, %v4241_v4  ;;  %4842 = vrot.lane.b32.xlu1 %v15466_v60, %s15194_s16 }
 0x3aa   : > { %v4302_v30 = vmul.f32 %v12539_v26, %v4272_v27  ;;  %v4303_v9 = vmul.f32 %v12545_v37, %v4280_v28  ;;  %4828 = vrot.lane.b32.xlu0 %v15469_v36, %s15194_s16  ;;  %8422 = vmatmul.mubr.msk.f32.vlgmr.msra.gmra.mrb[0].mxu1 %vm849_vm6, %v8418_v31 }
 0x3ab   : > { %v4259_v7 = vpop.permute.xlu1 %4258  ;;  %4211 = vmatprep.mubr.f32.mxu1 %v15405_v44 }
 0x3ac   : > { %v8839_v46 = vpack.c.bf16 %v4302_v30, %v4300_v58  ;;  %v4245_v12 = vpop.permute.xlu0 %4244  ;;  %v8837_v52 = vpack.c.bf16 %v4303_v9, %v4301_v8  ;;  %v4273_v34 = vsel %vm15193_vm14, %v4243_v25, %v4259_v7  ;;  %v4281_v5 = vsel %vm15193_vm14, %v4259_v7, %v4243_v25  ;;  %v8421_v25 = vld [vmem:[%s15001_s3 + $0x258] sm:$0xff] }
 0x3ad   : > { %1054 = vrot.lane.b32.xlu1 %v15440_v56, %s9483_s30  ;;  %v4304_v61 = vmul.f32 %v12539_v26, %v4273_v34  ;;  %v4305_v20 = vmul.f32 %v12545_v37, %v4281_v5 }
 0x3ae   : > { %4844 = vrot.lane.b32.xlu0 %v15430_v17, %s15194_s16  ;;  %8838 = vmatprep.subr.bf16.mxu1 %v8837_v52  ;;  %s9501_s16 = smov 31  }
 0x3af   : > { %8840 = vmatpush1.bf16.msra.mxu1 %v8839_v46  ;;  %v4247_v62 = vpop.permute.xlu1 %4246 }
 0x3b0   : > { %v4261_v54 = vpop.permute.xlu0 %4260  ;;  %8423 = vmatmul.mubr.msk.f32.gmra.mrb[2].mxu1 %vm849_vm6, %v8419_v42 }
 0x3b1   : > { %v4274_v35 = vsel %vm15193_vm14, %v4245_v12, %v4261_v54  ;;  %v4282_v23 = vsel %vm15193_vm14, %v4261_v54, %v4245_v12  ;;  %1070 = vrot.lane.b32.xlu1 %v9726_v10, %s9483_s30  ;;  %4217 = vmatprep.mubr.f32.mxu1 %v15405_v44 }
 0x3b2   : > { %v4306_v47 = vmul.f32 %v12539_v26, %v4274_v35  ;;  %v4307_v4 = vmul.f32 %v12545_v37, %v4282_v23  ;;  %1068 = vrot.lane.b32.xlu0 %v15435_v51, %s9483_s30 }
 0x3b3   : > { %v4263_v19 = vpop.permute.xlu1 %4262 }
 0x3b4   : > { %v8843_v55 = vpack.c.bf16 %v4306_v47, %v4304_v61  ;;  %v4249_v1 = vpop.permute.xlu0 %4248  ;;  %v8841_v63 = vpack.c.bf16 %v4307_v4, %v4305_v20  ;;  %8424 = vmatmul.mubr.msk.f32.gmra.mrb[4].mxu1 %vm849_vm6, %v8420_v24  ;;  %v4275_v31 = vsel %vm15193_vm14, %v4247_v62, %v4263_v19  ;;  %v4283_v14 = vsel %vm15193_vm14, %v4263_v19, %v4247_v62  ;;  %v8435_v47 = vld [vmem:[%s15005_s7 + $0x24] ss:$8 sm:$0x3] }
 0x3b5   : > { %5008 = vrot.lane.b32.xlu1 %v15440_v56, %s15199_s22  ;;  %4223 = vmatprep.mubr.f32.mxu1 %v15405_v44  ;;  %v4308_v8 = vmul.f32 %v12539_v26, %v4275_v31  ;;  %v4309_v30 = vmul.f32 %v12545_v37, %v4283_v14 }
 0x3b6   : > { %5006 = vrot.lane.b32.xlu0 %v15427_v41, %s15199_s22  ;;  %8842 = vmatprep.subr.bf16.mxu1 %v8841_v63  ;;  %v12661_v63 = vrot.slane %v8435_v47, %v15462_v43 }
 0x3b7   : > { %8844 = vmatpush1.bf16.msra.mxu1 %v8843_v55  ;;  %v4251_v45 = vpop.permute.xlu1 %4250 }
 0x3b8   : > { %v4265_v58 = vpop.permute.xlu0 %4264  ;;  %8425 = vmatmul.mubr.msk.f32.gmra.mrb[6].mxu1 %vm849_vm6, %v8421_v25  ;;  %15576 = vst [vmem:[#allocation43_spill] sm:$0xff] %v12661_v63  ;;  %v12666_v25 = vrot.slane %v8435_v47, %v15457_v38 }
 0x3b9   : > { %v4276_v27 = vsel %vm15193_vm14, %v4249_v1, %v4265_v58  ;;  %v4284_v28 = vsel %vm15193_vm14, %v4265_v58, %v4249_v1  ;;  %5024 = vrot.lane.b32.xlu1 %v9726_v10, %s15199_s22  ;;  %4397 = vmatprep.mubr.f32.mxu1 %v15405_v44  ;;  %v8427_v58 = vld [vmem:[%s15001_s3 + $0x260] sm:$0xff] }
 0x3ba   : > { %v4310_v9 = vmul.f32 %v12539_v26, %v4276_v27  ;;  %v4311_v48 = vmul.f32 %v12545_v37, %v4284_v28  ;;  %5022 = vrot.lane.b32.xlu0 %v15435_v51, %s15199_s22  ;;  %15577 = vst [vmem:[#allocation44_spill] sm:$0xff] %v12666_v25 }
 0x3bb   : > { %v4267_v7 = vpop.permute.xlu1 %4266 }
 0x3bc   : > { %v8847_v46 = vpack.c.bf16 %v4310_v9, %v4308_v8  ;;  %v4253_v12 = vpop.permute.xlu0 %4252  ;;  %v8845_v52 = vpack.c.bf16 %v4311_v48, %v4309_v30  ;;  %v4277_v42 = vsel %vm15193_vm14, %v4251_v45, %v4267_v7  ;;  %v4285_v34 = vsel %vm15193_vm14, %v4267_v7, %v4251_v45 }
 0x3bd   : > { %1058 = vrot.lane.b32.xlu1 %v9783_v18, %s9483_s30  ;;  %v4312_v23 = vmul.f32 %v12539_v26, %v4277_v42  ;;  %v4313_v24 = vmul.f32 %v12545_v37, %v4285_v34  ;;  %v8428_v34 = vld [vmem:[%s15001_s3 + $0x268] sm:$0xff] }
 0x3be   : > { %1056 = vrot.lane.b32.xlu0 %v9753_v13, %s9483_s30  ;;  %8846 = vmatprep.subr.bf16.mxu1 %v8845_v52 }
 0x3bf   : > { %8848 = vmatpush1.bf16.msra.mxu1 %v8847_v46  ;;  %v4431_v5 = vpop.permute.xlu1 %4430 }
 0x3c0   : > { %v4269_v62 = vpop.permute.xlu0 %4268 }
 0x3c1   : > { %v4278_v54 = vsel %vm15193_vm14, %v4253_v12, %v4269_v62  ;;  %v4286_v35 = vsel %vm15193_vm14, %v4269_v62, %v4253_v12  ;;  %1074 = vrot.lane.b32.xlu1 %v9842_v32, %s9483_s30  ;;  %vm15196_vm14 = vcmp.lt.s32.totalorder %v9904_v53, 98 }
 0x3c2   : > { %v4314_v61 = vmul.f32 %v12539_v26, %v4278_v54  ;;  %v4315_v20 = vmul.f32 %v12545_v37, %v4286_v35  ;;  %1072 = vrot.lane.b32.xlu0 %v9772_v15, %s9483_s30 }
 0x3c3   : > { %v4447_v4 = vpop.permute.xlu1 %4446 }
 0x3c4   : > { %v8851_v19 = vpack.c.bf16 %v4314_v61, %v4312_v23  ;;  %v4433_v55 = vpop.permute.xlu0 %4432  ;;  %v8849_v1 = vpack.c.bf16 %v4315_v20, %v4313_v24  ;;  %v4463_v31 = vsel %vm15196_vm14, %v4431_v5, %v4447_v4  ;;  %v4471_v14 = vsel %vm15196_vm14, %v4447_v4, %v4431_v5  ;;  %v8429_v61 = vld [vmem:[%s15001_s3 + $0x270] sm:$0xff] }
 0x3c5   : > { %5012 = vrot.lane.b32.xlu1 %v9783_v18, %s15199_s22  ;;  %v4492_v28 = vmul.f32 %v12661_v63, %v4463_v31  ;;  %v4493_v9 = vmul.f32 %v12666_v25, %v4471_v14 }
 0x3c6   : > { %5010 = vrot.lane.b32.xlu0 %v9753_v13, %s15199_s22  ;;  %8850 = vmatprep.subr.bf16.mxu1 %v8849_v1 }
 0x3c7   : > { %8852 = vmatpush1.bf16.msra.mxu1 %v8851_v19  ;;  %v4435_v45 = vpop.permute.xlu1 %4434 }
 0x3c8   : > { %v4449_v27 = vpop.permute.xlu0 %4448 }
 0x3c9   : > { %v4464_v8 = vsel %vm15196_vm14, %v4433_v55, %v4449_v27  ;;  %v4472_v30 = vsel %vm15196_vm14, %v4449_v27, %v4433_v55  ;;  %5028 = vrot.lane.b32.xlu1 %v9842_v32, %s15199_s22 }
 0x3ca   : > { %v4494_v48 = vmul.f32 %v12661_v63, %v4464_v8  ;;  %v4495_v7 = vmul.f32 %v12666_v25, %v4472_v30  ;;  %5026 = vrot.lane.b32.xlu0 %v9772_v15, %s15199_s22  ;;  %8431 = vmatmul.mubr.msk.f32.vlgmr.msra.gmra.mrb[0].mxu1 %vm849_vm6, %v8427_v58 }
 0x3cb   : > { %v4451_v46 = vpop.permute.xlu1 %4450  ;;  %4403 = vmatprep.mubr.f32.mxu1 %v15405_v44 }
 0x3cc   : > { %v8855_v12 = vpack.c.bf16 %v4494_v48, %v4492_v28  ;;  %v4437_v52 = vpop.permute.xlu0 %4436  ;;  %v8853_v42 = vpack.c.bf16 %v4495_v7, %v4493_v9  ;;  %v4465_v5 = vsel %vm15196_vm14, %v4435_v45, %v4451_v46  ;;  %v4473_v62 = vsel %vm15196_vm14, %v4451_v46, %v4435_v45  ;;  %v8430_v45 = vld [vmem:[%s15001_s3 + $0x278] sm:$0xff] }
 0x3cd   : > { %1062 = vrot.lane.b32.xlu1 %v15563_v21, %s9483_s30  ;;  %v4496_v20 = vmul.f32 %v12661_v63, %v4465_v5  ;;  %v4497_v47 = vmul.f32 %v12666_v25, %v4473_v62 }
 0x3ce   : > { %1060 = vrot.lane.b32.xlu0 %v9898_v49, %s9483_s30  ;;  %8854 = vmatprep.subr.bf16.mxu1 %v8853_v42 }
 0x3cf   : > { %8856 = vmatpush1.bf16.msra.mxu1 %v8855_v12  ;;  %v4439_v54 = vpop.permute.xlu1 %4438 }
 0x3d0   : > { %v4453_v35 = vpop.permute.xlu0 %4452  ;;  %8432 = vmatmul.mubr.msk.f32.gmra.mrb[2].mxu1 %vm849_vm6, %v8428_v34 }
 0x3d1   : > { %v4466_v23 = vsel %vm15196_vm14, %v4437_v52, %v4453_v35  ;;  %v4474_v24 = vsel %vm15196_vm14, %v4453_v35, %v4437_v52  ;;  %1078 = vrot.lane.b32.xlu1 %v15568_v6, %s9483_s30  ;;  %4409 = vmatprep.mubr.f32.mxu1 %v15405_v44 }
 0x3d2   : > { %v4498_v4 = vmul.f32 %v12661_v63, %v4466_v23  ;;  %v4499_v19 = vmul.f32 %v12666_v25, %v4474_v24  ;;  %1076 = vrot.lane.b32.xlu0 %v9934_v0, %s9483_s30  ;;  %v763_v24 = vld [vmem:[%s15001_s3 + $0x8] sm:$0xff] }
 0x3d3   : > { %v4455_v55 = vpop.permute.xlu1 %4454  ;;  %8271 = vmatmul.mubr.msk.f32.gmra.mrb[18].mxu0 %vm849_vm6, %v763_v24 }
 0x3d4   : > { %v8859_v1 = vpack.c.bf16 %v4498_v4, %v4496_v20  ;;  %v4441_v31 = vpop.permute.xlu0 %4440  ;;  %v8857_v14 = vpack.c.bf16 %v4499_v19, %v4497_v47  ;;  %8433 = vmatmul.mubr.msk.f32.gmra.mrb[4].mxu1 %vm849_vm6, %v8429_v61  ;;  %v4467_v58 = vsel %vm15196_vm14, %v4439_v54, %v4455_v55  ;;  %v4475_v27 = vsel %vm15196_vm14, %v4455_v55, %v4439_v54 }
 0x3d5   : > { %5016 = vrot.lane.b32.xlu1 %v15563_v21, %s15199_s22  ;;  %4415 = vmatprep.mubr.f32.mxu1 %v15405_v44  ;;  %v4500_v48 = vmul.f32 %v12661_v63, %v4467_v58  ;;  %v4501_v7 = vmul.f32 %v12666_v25, %v4475_v27 }
 0x3d6   : > { %5014 = vrot.lane.b32.xlu0 %v9898_v49, %s15199_s22  ;;  %8858 = vmatprep.subr.bf16.mxu1 %v8857_v14 }
 0x3d7   : > { %8860 = vmatpush1.bf16.msra.mxu1 %v8859_v1  ;;  %v4443_v28 = vpop.permute.xlu1 %4442  ;;  %v8444_v1 = vld [vmem:[%s15005_s7 + $0x25] ss:$8 sm:$0x3]  ;;  %1039 = vmatprep.mubr.f32.mxu0 %v15405_v44 }
 0x3d8   : > { %v4457_v8 = vpop.permute.xlu0 %4456  ;;  %8434 = vmatmul.mubr.msk.f32.gmra.mrb[6].mxu1 %vm849_vm6, %v8430_v45 }
 0x3d9   : > { %v4468_v30 = vsel %vm15196_vm14, %v4441_v31, %v4457_v8  ;;  %v4476_v9 = vsel %vm15196_vm14, %v4457_v8, %v4441_v31  ;;  %5032 = vrot.lane.b32.xlu1 %v15568_v6, %s15199_s22  ;;  %4589 = vmatprep.mubr.f32.mxu1 %v15405_v44  ;;  %v764_v31 = vld [vmem:[%s15001_s3 + $0x10] sm:$0xff]  ;;  %v12785_v8 = vrot.slane %v8444_v1, %v15457_v38 }
 0x3da   : > { %v4502_v46 = vmul.f32 %v12661_v63, %v4468_v30  ;;  %v4503_v12 = vmul.f32 %v12666_v25, %v4476_v9  ;;  %5030 = vrot.lane.b32.xlu0 %v9934_v0, %s15199_s22  ;;  %8272 = vmatmul.mubr.msk.f32.gmra.mrb[20].mxu0 %vm849_vm6, %v764_v31 }
 0x3db   : > { %v4459_v52 = vpop.permute.xlu1 %4458  ;;  %15579 = vst [vmem:[#allocation47_spill] sm:$0xff] %v12785_v8  ;;  %1045 = vmatprep.mubr.f32.mxu0 %v15405_v44 }
 0x3dc   : > { %v8863_v42 = vpack.c.bf16 %v4502_v46, %v4500_v48  ;;  %v4445_v34 = vpop.permute.xlu0 %4444  ;;  %v8861_v5 = vpack.c.bf16 %v4503_v12, %v4501_v7  ;;  %v4469_v62 = vsel %vm15196_vm14, %v4443_v28, %v4459_v52  ;;  %v4477_v54 = vsel %vm15196_vm14, %v4459_v52, %v4443_v28  ;;  %v8436_v7 = vld [vmem:[%s15001_s3 + $0x280] sm:$0xff]  ;;  %v765_v12 = vld [vmem:[%s15001_s3 + $0x18] sm:$0xff] }
 0x3dd   : > { %1066 = vrot.lane.b32.xlu1 %v15469_v36, %s9483_s30  ;;  %v4504_v61 = vmul.f32 %v12661_v63, %v4469_v62  ;;  %v4505_v4 = vmul.f32 %v12666_v25, %v4477_v54  ;;  %v12779_v28 = vrot.slane %v8444_v1, %v15462_v43 }
 0x3de   : > { %1064 = vrot.lane.b32.xlu0 %v15565_v59, %s9483_s30  ;;  %8862 = vmatprep.subr.bf16.mxu1 %v8861_v5 }
 0x3df   : > { %8864 = vmatpush1.bf16.msra.mxu1 %v8863_v42  ;;  %v4623_v35 = vpop.permute.xlu1 %4622  ;;  %15578 = vst [vmem:[#allocation32_spill] sm:$0xff] %v12779_v28  ;;  %8273 = vmatmul.mubr.msk.f32.gmra.mrb[22].mxu0 %vm849_vm6, %v765_v12  ;;  %v8439_v12 = vld [vmem:[%s15001_s3 + $0x298] sm:$0xff] }
 0x3e0   : > { %v4461_v23 = vpop.permute.xlu0 %4460  ;;  %1211 = vmatprep.mubr.f32.mxu0 %v15405_v44 }
 0x3e1   : > { %v4470_v20 = vsel %vm15196_vm14, %v4445_v34, %v4461_v23  ;;  %v4478_v47 = vsel %vm15196_vm14, %v4461_v23, %v4445_v34  ;;  %1082 = vrot.lane.b32.xlu1 %v15430_v17, %s9483_s30  ;;  %vm15197_vm14 = vcmp.lt.s32.totalorder %v9904_v53, 97 }
 0x3e2   : > { %v4506_v19 = vmul.f32 %v12661_v63, %v4470_v20  ;;  %v4507_v55 = vmul.f32 %v12666_v25, %v4478_v47  ;;  %1080 = vrot.lane.b32.xlu0 %v15466_v60, %s9483_s30  ;;  %v8437_v20 = vld [vmem:[%s15001_s3 + $0x288] sm:$0xff]  ;;  %v15603_v25 = vld [vmem:[#allocation26_spill] sm:$0xff] }
 0x3e3   : > { %v4639_v14 = vpop.permute.xlu1 %4638 }
 0x3e4   : > { %v8867_v45 = vpack.c.bf16 %v4506_v19, %v4504_v61  ;;  %v4625_v58 = vpop.permute.xlu0 %4624  ;;  %v8865_v27 = vpack.c.bf16 %v4507_v55, %v4505_v4  ;;  %v4655_v30 = vsel %vm15197_vm14, %v4623_v35, %v4639_v14  ;;  %v4663_v9 = vsel %vm15197_vm14, %v4639_v14, %v4623_v35  ;;  %v8438_v14 = vld [vmem:[%s15001_s3 + $0x290] sm:$0xff] }
 0x3e5   : > { %5020 = vrot.lane.b32.xlu1 %v15469_v36, %s15199_s22  ;;  %v4684_v52 = vmul.f32 %v12779_v28, %v4655_v30  ;;  %v4685_v5 = vmul.f32 %v12785_v8, %v4663_v9 }
 0x3e6   : > { %5018 = vrot.lane.b32.xlu0 %v15565_v59, %s15199_s22  ;;  %8866 = vmatprep.subr.bf16.mxu1 %v8865_v27 }
 0x3e7   : > { %8868 = vmatpush1.bf16.msra.mxu1 %v8867_v45  ;;  %v4627_v48 = vpop.permute.xlu1 %4626 }
 0x3e8   : > { %v4641_v46 = vpop.permute.xlu0 %4640 }
 0x3e9   : > { %v4656_v42 = vsel %vm15197_vm14, %v4625_v58, %v4641_v46  ;;  %v4664_v34 = vsel %vm15197_vm14, %v4641_v46, %v4625_v58  ;;  %5036 = vrot.lane.b32.xlu1 %v15430_v17, %s15199_s22 }
 0x3ea   : > { %v4686_v62 = vmul.f32 %v12779_v28, %v4656_v42  ;;  %v4687_v54 = vmul.f32 %v12785_v8, %v4664_v34  ;;  %5034 = vrot.lane.b32.xlu0 %v15466_v60, %s15199_s22  ;;  %8440 = vmatmul.mubr.msk.f32.vlgmr.msra.gmra.mrb[0].mxu1 %vm849_vm6, %v8436_v7 }
 0x3eb   : > { %v4643_v35 = vpop.permute.xlu1 %4642  ;;  %4595 = vmatprep.mubr.f32.mxu1 %v15405_v44 }
 0x3ec   : > { %v8871_v23 = vpack.c.bf16 %v4686_v62, %v4684_v52  ;;  %v4629_v24 = vpop.permute.xlu0 %4628  ;;  %v8869_v61 = vpack.c.bf16 %v4687_v54, %v4685_v5  ;;  %v4657_v47 = vsel %vm15197_vm14, %v4627_v48, %v4643_v35  ;;  %v4665_v4 = vsel %vm15197_vm14, %v4643_v35, %v4627_v48 }
 0x3ed   : > { %1246 = vrot.lane.b32.xlu1 %v15440_v56, %s9501_s16  ;;  %v4688_v45 = vmul.f32 %v12779_v28, %v4657_v47  ;;  %v4689_v58 = vmul.f32 %v12785_v8, %v4665_v4 }
 0x3ee   : > { %1244 = vrot.lane.b32.xlu0 %v15427_v41, %s9501_s16  ;;  %8870 = vmatprep.subr.bf16.mxu1 %v8869_v61 }
 0x3ef   : > { %8872 = vmatpush1.bf16.msra.mxu1 %v8871_v23  ;;  %v4631_v19 = vpop.permute.xlu1 %4630 }
 0x3f0   : > { %v4645_v55 = vpop.permute.xlu0 %4644  ;;  %8441 = vmatmul.mubr.msk.f32.gmra.mrb[2].mxu1 %vm849_vm6, %v8437_v20 }
 0x3f1   : > { %v4658_v1 = vsel %vm15197_vm14, %v4629_v24, %v4645_v55  ;;  %v4666_v31 = vsel %vm15197_vm14, %v4645_v55, %v4629_v24  ;;  %1262 = vrot.lane.b32.xlu1 %v9726_v10, %s9501_s16  ;;  %4601 = vmatprep.mubr.f32.mxu1 %v15405_v44 }
 0x3f2   : > { %v4690_v27 = vmul.f32 %v12779_v28, %v4658_v1  ;;  %v4691_v30 = vmul.f32 %v12785_v8, %v4666_v31  ;;  %1260 = vrot.lane.b32.xlu0 %v15435_v51, %s9501_s16 }
 0x3f3   : > { %v4647_v9 = vpop.permute.xlu1 %4646 }
 0x3f4   : > { %v8875_v48 = vpack.c.bf16 %v4690_v27, %v4688_v45  ;;  %v4633_v7 = vpop.permute.xlu0 %4632  ;;  %v8873_v46 = vpack.c.bf16 %v4691_v30, %v4689_v58  ;;  %8442 = vmatmul.mubr.msk.f32.gmra.mrb[4].mxu1 %vm849_vm6, %v8438_v14  ;;  %v4659_v52 = vsel %vm15197_vm14, %v4631_v19, %v4647_v9  ;;  %v4667_v42 = vsel %vm15197_vm14, %v4647_v9, %v4631_v19  ;;  %v8453_v27 = vld [vmem:[%s15005_s7 + $0x26] ss:$8 sm:$0x3] }
 0x3f5   : > { %5200 = vrot.lane.b32.xlu1 %v15440_v56, %s15204_s17  ;;  %4607 = vmatprep.mubr.f32.mxu1 %v15405_v44  ;;  %v4693_v54 = vmul.f32 %v12785_v8, %v4667_v42 }
 0x3f6   : > { %5198 = vrot.lane.b32.xlu0 %v15427_v41, %s15204_s17  ;;  %8874 = vmatprep.subr.bf16.mxu1 %v8873_v46  ;;  %v4692_v41 = vmul.f32 %v12779_v28, %v4659_v52  ;;  %v12896_v46 = vrot.slane %v8453_v27, %v15462_v43 }
 0x3f7   : > { %8876 = vmatpush1.bf16.msra.mxu1 %v8875_v48  ;;  %v4635_v34 = vpop.permute.xlu1 %4634 }
 0x3f8   : > { %v4649_v5 = vpop.permute.xlu0 %4648  ;;  %8443 = vmatmul.mubr.msk.f32.gmra.mrb[6].mxu1 %vm849_vm6, %v8439_v12  ;;  %15580 = vst [vmem:[#allocation77_spill] sm:$0xff] %v12896_v46  ;;  %v12901_v12 = vrot.slane %v8453_v27, %v15457_v38 }
 0x3f9   : > { %v4660_v56 = vsel %vm15197_vm14, %v4633_v7, %v4649_v5  ;;  %v4668_v62 = vsel %vm15197_vm14, %v4649_v5, %v4633_v7  ;;  %5216 = vrot.lane.b32.xlu1 %v9726_v10, %s15204_s17  ;;  %4781 = vmatprep.mubr.f32.mxu1 %v15405_v44  ;;  %v8445_v5 = vld [vmem:[%s15001_s3 + $0x2a0] sm:$0xff] }
 0x3fa   : > { %v4694_v35 = vmul.f32 %v12779_v28, %v4660_v56  ;;  %v4695_v23 = vmul.f32 %v12785_v8, %v4668_v62  ;;  %5214 = vrot.lane.b32.xlu0 %v15435_v51, %s15204_s17  ;;  %15581 = vst [vmem:[#allocation66_spill] sm:$0xff] %v12901_v12 }
 0x3fb   : > { %v4651_v24 = vpop.permute.xlu1 %4650 }
 0x3fc   : > { %v8879_v61 = vpack.c.bf16 %v4694_v35, %v4692_v41  ;;  %v4637_v20 = vpop.permute.xlu0 %4636  ;;  %v8877_v47 = vpack.c.bf16 %v4695_v23, %v4693_v54  ;;  %v4661_v10 = vsel %vm15197_vm14, %v4635_v34, %v4651_v24  ;;  %v4669_v4 = vsel %vm15197_vm14, %v4651_v24, %v4635_v34 }
 0x3fd   : > { %1250 = vrot.lane.b32.xlu1 %v9783_v18, %s9501_s16  ;;  %v4696_v31 = vmul.f32 %v12779_v28, %v4661_v10  ;;  %v4697_v14 = vmul.f32 %v12785_v8, %v4669_v4 }
 0x3fe   : > { %1248 = vrot.lane.b32.xlu0 %v9753_v13, %s9501_s16  ;;  %8878 = vmatprep.subr.bf16.mxu1 %v8877_v47 }
 0x3ff   : > { %8880 = vmatpush1.bf16.msra.mxu1 %v8879_v61  ;;  %v4815_v19 = vpop.permute.xlu1 %4814 }
 0x400   : > { %v4653_v51 = vpop.permute.xlu0 %4652 }
 0x401   : > { %v4662_v55 = vsel %vm15197_vm14, %v4637_v20, %v4653_v51  ;;  %v4670_v1 = vsel %vm15197_vm14, %v4653_v51, %v4637_v20  ;;  %1266 = vrot.lane.b32.xlu1 %v9842_v32, %s9501_s16  ;;  %vm15203_vm14 = vcmp.lt.s32.totalorder %v9904_v53, 96 }
 0x402   : > { %v4698_v45 = vmul.f32 %v12779_v28, %v4662_v55  ;;  %v4699_v58 = vmul.f32 %v12785_v8, %v4670_v1  ;;  %1264 = vrot.lane.b32.xlu0 %v9772_v15, %s9501_s16  ;;  %v8447_v55 = vld [vmem:[%s15001_s3 + $0x2b0] sm:$0xff]  ;;  %v15602_v8 = vld [vmem:[#allocation25_spill] sm:$0xff] }
 0x403   : > { %v4831_v30 = vpop.permute.xlu1 %4830 }
 0x404   : > { %v8883_v9 = vpack.c.bf16 %v4698_v45, %v4696_v31  ;;  %v4817_v48 = vpop.permute.xlu0 %4816  ;;  %v8881_v7 = vpack.c.bf16 %v4699_v58, %v4697_v14  ;;  %v4847_v52 = vsel %vm15203_vm14, %v4815_v19, %v4831_v30  ;;  %v4855_v42 = vsel %vm15203_vm14, %v4831_v30, %v4815_v19 }
 0x405   : > { %5204 = vrot.lane.b32.xlu1 %v9783_v18, %s15204_s17  ;;  %v4876_v56 = vmul.f32 %v12896_v46, %v4847_v52 }
 0x406   : > { %5202 = vrot.lane.b32.xlu0 %v9753_v13, %s15204_s17  ;;  %8882 = vmatprep.subr.bf16.mxu1 %v8881_v7  ;;  %v4877_v13 = vmul.f32 %v12901_v12, %v4855_v42 }
 0x407   : > { %8884 = vmatpush1.bf16.msra.mxu1 %v8883_v9  ;;  %v4819_v34 = vpop.permute.xlu1 %4818 }
 0x408   : > { %v4833_v18 = vpop.permute.xlu0 %4832 }
 0x409   : > { %v4848_v62 = vsel %vm15203_vm14, %v4817_v48, %v4833_v18  ;;  %v4856_v41 = vsel %vm15203_vm14, %v4833_v18, %v4817_v48  ;;  %5220 = vrot.lane.b32.xlu1 %v9842_v32, %s15204_s17  ;;  %v8446_v32 = vld [vmem:[%s15001_s3 + $0x2a8] sm:$0xff]  ;;  %v8448_v48 = vld [vmem:[%s15001_s3 + $0x2b8] sm:$0xff] }
 0x40a   : > { %v4878_v54 = vmul.f32 %v12896_v46, %v4848_v62  ;;  %v4879_v35 = vmul.f32 %v12901_v12, %v4856_v41  ;;  %5218 = vrot.lane.b32.xlu0 %v9772_v15, %s15204_s17  ;;  %8449 = vmatmul.mubr.msk.f32.vlgmr.msra.gmra.mrb[0].mxu1 %vm849_vm6, %v8445_v5 }
 0x40b   : > { %v4835_v23 = vpop.permute.xlu1 %4834  ;;  %4787 = vmatprep.mubr.f32.mxu1 %v15405_v44 }
 0x40c   : > { %v8887_v24 = vpack.c.bf16 %v4878_v54, %v4876_v56  ;;  %v4821_v61 = vpop.permute.xlu0 %4820  ;;  %v8885_v20 = vpack.c.bf16 %v4879_v35, %v4877_v13  ;;  %v4849_v15 = vsel %vm15203_vm14, %v4819_v34, %v4835_v23  ;;  %v4857_v47 = vsel %vm15203_vm14, %v4835_v23, %v4819_v34 }
 0x40d   : > { %1254 = vrot.lane.b32.xlu1 %v15563_v21, %s9501_s16  ;;  %v4880_v1 = vmul.f32 %v12896_v46, %v4849_v15  ;;  %v4881_v31 = vmul.f32 %v12901_v12, %v4857_v47 }
 0x40e   : > { %1252 = vrot.lane.b32.xlu0 %v9898_v49, %s9501_s16  ;;  %8886 = vmatprep.subr.bf16.mxu1 %v8885_v20 }
 0x40f   : > { %8888 = vmatpush1.bf16.msra.mxu1 %v8887_v24  ;;  %v4823_v10 = vpop.permute.xlu1 %4822 }
 0x410   : > { %v4837_v4 = vpop.permute.xlu0 %4836  ;;  %8450 = vmatmul.mubr.msk.f32.gmra.mrb[2].mxu1 %vm849_vm6, %v8446_v32 }
 0x411   : > { %v4850_v19 = vsel %vm15203_vm14, %v4821_v61, %v4837_v4  ;;  %v4858_v51 = vsel %vm15203_vm14, %v4837_v4, %v4821_v61  ;;  %1270 = vrot.lane.b32.xlu1 %v15568_v6, %s9501_s16  ;;  %4793 = vmatprep.mubr.f32.mxu1 %v15405_v44 }
 0x412   : > { %v4882_v14 = vmul.f32 %v12896_v46, %v4850_v19  ;;  %v4883_v45 = vmul.f32 %v12901_v12, %v4858_v51  ;;  %1268 = vrot.lane.b32.xlu0 %v9934_v0, %s9501_s16 }
 0x413   : > { %v4839_v58 = vpop.permute.xlu1 %4838 }
 0x414   : > { %v8891_v27 = vpack.c.bf16 %v4882_v14, %v4880_v1  ;;  %v4825_v30 = vpop.permute.xlu0 %4824  ;;  %v8889_v9 = vpack.c.bf16 %v4883_v45, %v4881_v31  ;;  %8451 = vmatmul.mubr.msk.f32.gmra.mrb[4].mxu1 %vm849_vm6, %v8447_v55  ;;  %v4851_v7 = vsel %vm15203_vm14, %v4823_v10, %v4839_v58  ;;  %v4859_v52 = vsel %vm15203_vm14, %v4839_v58, %v4823_v10 }
 0x415   : > { %5208 = vrot.lane.b32.xlu1 %v15563_v21, %s15204_s17  ;;  %4799 = vmatprep.mubr.f32.mxu1 %v15405_v44  ;;  %v4885_v18 = vmul.f32 %v12901_v12, %v4859_v52 }
 0x416   : > { %5206 = vrot.lane.b32.xlu0 %v9898_v49, %s15204_s17  ;;  %8890 = vmatprep.subr.bf16.mxu1 %v8889_v9  ;;  %v4884_v49 = vmul.f32 %v12896_v46, %v4851_v7  ;;  %v15582_v9 = vld [vmem:[#allocation5_spill] sm:$0xff] }
 0x417   : > { %8892 = vmatpush1.bf16.msra.mxu1 %v8891_v27  ;;  %v4827_v42 = vpop.permute.xlu1 %4826 }
 0x418   : > { %v4841_v34 = vpop.permute.xlu0 %4840  ;;  %8452 = vmatmul.mubr.msk.f32.gmra.mrb[6].mxu1 %vm849_vm6, %v8448_v48 }
 0x419   : > { %v4852_v21 = vsel %vm15203_vm14, %v4825_v30, %v4841_v34  ;;  %v4860_v5 = vsel %vm15203_vm14, %v4841_v34, %v4825_v30  ;;  %5224 = vrot.lane.b32.xlu1 %v15568_v6, %s15204_s17  ;;  %4973 = vmatprep.mubr.f32.mxu1 %v15405_v44  ;;  %v8274_v6 = vld [vmem:[%s15005_s7 + $0x2] ss:$8 sm:$0x3]  ;;  %v8462_v34 = vld [vmem:[%s15005_s7 + $0x27] ss:$8 sm:$0x3] }
 0x41a   : > { %v4886_v56 = vmul.f32 %v12896_v46, %v4852_v21  ;;  %v4887_v62 = vmul.f32 %v12901_v12, %v4860_v5  ;;  %5222 = vrot.lane.b32.xlu0 %v9934_v0, %s15204_s17  ;;  %v13000_v15 = vrot.slane %v8274_v6, %v15462_v43  ;;  %v13003_v47 = vrot.slane %v8274_v6, %v15457_v38 }
 0x41b   : > { %v4843_v41 = vpop.permute.xlu1 %4842 }
 0x41c   : > { %v8895_v13 = vpack.c.bf16 %v4886_v56, %v4884_v49  ;;  %v4829_v54 = vpop.permute.xlu0 %4828  ;;  %v8893_v35 = vpack.c.bf16 %v4887_v62, %v4885_v18  ;;  %v4853_v23 = vsel %vm15203_vm14, %v4827_v42, %v4843_v41  ;;  %v4861_v0 = vsel %vm15203_vm14, %v4843_v41, %v4827_v42  ;;  %v5391_v62 = vld [vmem:[%s15002_s4 + $0x8] sm:$0xff] }
 0x41d   : > { %1258 = vrot.lane.b32.xlu1 %v15469_v36, %s9501_s16  ;;  %v4888_v10 = vmul.f32 %v12896_v46, %v4853_v23  ;;  %v4889_v4 = vmul.f32 %v12901_v12, %v4861_v0  ;;  %v13042_v56 = vrot.slane %v8462_v34, %v15457_v38 }
 0x41e   : > { %1256 = vrot.lane.b32.xlu0 %v15565_v59, %s9501_s16  ;;  %8894 = vmatprep.subr.bf16.mxu1 %v8893_v35  ;;  %v8455_v35 = vld [vmem:[%s15001_s3 + $0x2c8] sm:$0xff] }
 0x41f   : > { %8896 = vmatpush1.bf16.msra.mxu1 %v8895_v13  ;;  %v1055_v24 = vpop.permute.xlu1 %1054  ;;  %15584 = vst [vmem:[#allocation61_spill] sm:$0xff] %v13042_v56 }
 0x420   : > { %v4845_v61 = vpop.permute.xlu0 %4844 }
 0x421   : > { %v4854_v20 = vsel %vm15203_vm14, %v4829_v54, %v4845_v61  ;;  %v4862_v32 = vsel %vm15203_vm14, %v4845_v61, %v4829_v54  ;;  %1274 = vrot.lane.b32.xlu1 %v15430_v17, %s9501_s16  ;;  %vm15208_vm14 = vcmp.lt.s32.totalorder %v9904_v53, 95 }
 0x422   : > { %v4890_v19 = vmul.f32 %v12896_v46, %v4854_v20  ;;  %v4891_v51 = vmul.f32 %v12901_v12, %v4862_v32  ;;  %1272 = vrot.lane.b32.xlu0 %v15466_v60, %s9501_s16  ;;  %v5393_v32 = vld [vmem:[%s15002_s4 + $0x18] sm:$0xff] }
 0x423   : > { %v1071_v55 = vpop.permute.xlu1 %1070 }
 0x424   : > { %v8899_v1 = vpack.c.bf16 %v4890_v19, %v4888_v10  ;;  %v1086_v31 = vsel %vm1084_vm15, %v1055_v24, %v1071_v55  ;;  %v1094_v14 = vsel %vm1084_vm15, %v1071_v55, %v1055_v24  ;;  %v1069_v45 = vpop.permute.xlu0 %1068  ;;  %v8897_v58 = vpack.c.bf16 %v4891_v51, %v4889_v4  ;;  %v5392_v4 = vld [vmem:[%s15002_s4 + $0x10] sm:$0xff] }
 0x425   : > { %v1116_v27 = vmul.f32 %v13000_v15, %v1094_v14  ;;  %v1117_v30 = vmul.f32 %v13003_v47, %v1086_v31  ;;  %v1085_v48 = vsel %vm1084_vm15, %v15582_v9, %v1069_v45  ;;  %v1093_v7 = vsel %vm1084_vm15, %v1069_v45, %v15582_v9  ;;  %5212 = vrot.lane.b32.xlu1 %v15469_v36, %s15204_s17  ;;  %v8454_v36 = vld [vmem:[%s15001_s3 + $0x2c0] sm:$0xff] }
 0x426   : > { %v1114_v52 = vmul.f32 %v13000_v15, %v1093_v7  ;;  %v1115_v42 = vmul.f32 %v13003_v47, %v1085_v48  ;;  %5210 = vrot.lane.b32.xlu0 %v15565_v59, %s15204_s17  ;;  %8898 = vmatprep.subr.bf16.mxu1 %v8897_v58  ;;  %v13039_v59 = vrot.slane %v8462_v34, %v15462_v43  ;;  %v8457_v7 = vld [vmem:[%s15001_s3 + $0x2d8] sm:$0xff] }
 0x427   : > { %8900 = vmatpush1.bf16.msra.mxu1 %v8899_v1  ;;  %v5009_v21 = vpop.permute.xlu1 %5008  ;;  %v8456_v1 = vld [vmem:[%s15001_s3 + $0x2d0] sm:$0xff] }
 0x428   : > { %v8567_v5 = vpack.c.bf16 %v1116_v27, %v1114_v52  ;;  %v5007_v49 = vpop.permute.xlu0 %5006  ;;  %v8565_v18 = vpack.c.bf16 %v1117_v30, %v1115_v42  ;;  %15583 = vst [vmem:[#allocation71_spill] sm:$0xff] %v13039_v59 }
 0x429   : > { %5228 = vrot.lane.b32.xlu1 %v15430_v17, %s15204_s17  ;;  %v5390_v17 = vld [vmem:[%s15002_s4] sm:$0xff] }
 0x42a   : > { %5226 = vrot.lane.b32.xlu0 %v15466_v60, %s15204_s17  ;;  %8566 = vmatprep.subr.bf16.mxu0 %v8565_v18 }
 0x42b   : > { %8568 = vmatpush1.bf16.msra.mxu0 %v8567_v5  ;;  %v5025_v41 = vpop.permute.xlu1 %5024  ;;  %8458 = vmatmul.mubr.msk.f32.vlgmr.msra.gmra.mrb[0].mxu1 %vm849_vm6, %v8454_v36 }
 0x42c   : > { %v5040_v13 = vsel %vm15208_vm14, %v5009_v21, %v5025_v41  ;;  %v5048_v54 = vsel %vm15208_vm14, %v5025_v41, %v5009_v21  ;;  %v5023_v60 = vpop.permute.xlu0 %5022  ;;  %4979 = vmatprep.mubr.f32.mxu1 %v15405_v44 }
 0x42d   : > { %v5070_v6 = vmul.f32 %v13039_v59, %v5040_v13  ;;  %v5071_v23 = vmul.f32 %v13042_v56, %v5048_v54  ;;  %v5039_v0 = vsel %vm15208_vm14, %v5007_v49, %v5023_v60  ;;  %v5047_v24 = vsel %vm15208_vm14, %v5023_v60, %v5007_v49  ;;  %5401 = vperm.xlu1 %9408, %v5391_v62  }
 0x42e   : > { %v5068_v61 = vmul.f32 %v13039_v59, %v5039_v0  ;;  %v5069_v20 = vmul.f32 %v13042_v56, %v5047_v24  ;;  %5396 = vperm.xlu0 %9407, %v5390_v17  }
 0x42f   : > { %v1059_v10 = vpop.permute.xlu1 %1058  ;;  %8459 = vmatmul.mubr.msk.f32.gmra.mrb[2].mxu1 %vm849_vm6, %v8455_v35 }
 0x430   : > { %v8903_v19 = vpack.c.bf16 %v5070_v6, %v5068_v61  ;;  %v1057_v51 = vpop.permute.xlu0 %1056  ;;  %v8901_v55 = vpack.c.bf16 %v5071_v23, %v5069_v20  ;;  %4985 = vmatprep.mubr.f32.mxu1 %v15405_v44 }
 0x431   : > { %5411 = vperm.xlu1 %9408, %v5393_v32  }
 0x432   : > { %5406 = vperm.xlu0 %9407, %v5392_v4   ;;  %8902 = vmatprep.subr.bf16.mxu1 %v8901_v55 }
 0x433   : > { %8904 = vmatpush1.bf16.msra.mxu1 %v8903_v19  ;;  %v1075_v31 = vpop.permute.xlu1 %1074 }
 0x434   : > { %v1088_v14 = vsel %vm1084_vm15, %v1059_v10, %v1075_v31  ;;  %v1096_v45 = vsel %vm1084_vm15, %v1075_v31, %v1059_v10  ;;  %v1073_v58 = vpop.permute.xlu0 %1072  ;;  %8460 = vmatmul.mubr.msk.f32.gmra.mrb[4].mxu1 %vm849_vm6, %v8456_v1 }
 0x435   : > { %v1120_v27 = vmul.f32 %v13000_v15, %v1096_v45  ;;  %v1121_v30 = vmul.f32 %v13003_v47, %v1088_v14  ;;  %v1087_v9 = vsel %vm1084_vm15, %v1057_v51, %v1073_v58  ;;  %v1095_v48 = vsel %vm1084_vm15, %v1073_v58, %v1057_v51  ;;  %4991 = vmatprep.mubr.f32.mxu1 %v15405_v44 }
 0x436   : > { %v1118_v52 = vmul.f32 %v13000_v15, %v1095_v48  ;;  %v1119_v42 = vmul.f32 %v13003_v47, %v1087_v9 }
 0x437   : > { %v5013_v34 = vpop.permute.xlu1 %5012 }
 0x438   : > { %v8571_v21 = vpack.c.bf16 %v1120_v27, %v1118_v52  ;;  %v5011_v5 = vpop.permute.xlu0 %5010  ;;  %v8569_v49 = vpack.c.bf16 %v1121_v30, %v1119_v42  ;;  %8461 = vmatmul.mubr.msk.f32.gmra.mrb[6].mxu1 %vm849_vm6, %v8457_v7 }
 0x439   : > { %5165 = vmatprep.mubr.f32.mxu1 %v15405_v44 }
 0x43a   : > { %8570 = vmatprep.subr.bf16.mxu0 %v8569_v49 }
 0x43b   : > { %8572 = vmatpush1.bf16.msra.mxu0 %v8571_v21  ;;  %v5029_v18 = vpop.permute.xlu1 %5028 }
 0x43c   : > { %v5042_v36 = vsel %vm15208_vm14, %v5013_v34, %v5029_v18  ;;  %v5050_v62 = vsel %vm15208_vm14, %v5029_v18, %v5013_v34  ;;  %v5027_v41 = vpop.permute.xlu0 %5026 }
 0x43d   : > { %v5074_v17 = vmul.f32 %v13039_v59, %v5042_v36  ;;  %v5075_v13 = vmul.f32 %v13042_v56, %v5050_v62  ;;  %v5041_v54 = vsel %vm15208_vm14, %v5011_v5, %v5027_v41  ;;  %v5049_v60 = vsel %vm15208_vm14, %v5027_v41, %v5011_v5 }
 0x43e   : > { %v5072_v35 = vmul.f32 %v13039_v59, %v5041_v54  ;;  %v5073_v6 = vmul.f32 %v13042_v56, %v5049_v60 }
 0x43f   : > { %v1063_v23 = vpop.permute.xlu1 %1062 }
 0x440   : > { %v8907_v0 = vpack.c.bf16 %v5074_v17, %v5072_v35  ;;  %v1061_v24 = vpop.permute.xlu0 %1060  ;;  %v8905_v61 = vpack.c.bf16 %v5075_v13, %v5073_v6 }
 0x442   : > { %8906 = vmatprep.subr.bf16.mxu1 %v8905_v61 }
 0x443   : > { %8908 = vmatpush1.bf16.msra.mxu1 %v8907_v0  ;;  %v1079_v20 = vpop.permute.xlu1 %1078 }
 0x444   : > { %v1090_v32 = vsel %vm1084_vm15, %v1063_v23, %v1079_v20  ;;  %v1098_v10 = vsel %vm1084_vm15, %v1079_v20, %v1063_v23  ;;  %v1077_v4 = vpop.permute.xlu0 %1076 }
 0x445   : > { %v1124_v19 = vmul.f32 %v13000_v15, %v1098_v10  ;;  %v1125_v51 = vmul.f32 %v13003_v47, %v1090_v32  ;;  %v1089_v55 = vsel %vm1084_vm15, %v1061_v24, %v1077_v4  ;;  %v1097_v1 = vsel %vm1084_vm15, %v1077_v4, %v1061_v24 }
 0x446   : > { %v1122_v31 = vmul.f32 %v13000_v15, %v1097_v1  ;;  %v1123_v14 = vmul.f32 %v13003_v47, %v1089_v55  ;;  %v8275_v55 = vld [vmem:[%s15001_s3 + $0x40] sm:$0xff] }
 0x447   : > { %v5017_v45 = vpop.permute.xlu1 %5016 }
 0x448   : > { %v8575_v58 = vpack.c.bf16 %v1124_v19, %v1122_v31  ;;  %v5015_v27 = vpop.permute.xlu0 %5014  ;;  %v8573_v30 = vpack.c.bf16 %v1125_v51, %v1123_v14 }
 0x44a   : > { %8574 = vmatprep.subr.bf16.mxu0 %v8573_v30 }
 0x44b   : > { %8576 = vmatpush1.bf16.msra.mxu0 %v8575_v58  ;;  %v5033_v9 = vpop.permute.xlu1 %5032 }
 0x44c   : > { %v5044_v48 = vsel %vm15208_vm14, %v5017_v45, %v5033_v9  ;;  %v5052_v7 = vsel %vm15208_vm14, %v5033_v9, %v5017_v45  ;;  %v5031_v52 = vpop.permute.xlu0 %5030 }
 0x44d   : > { %v5078_v42 = vmul.f32 %v13039_v59, %v5044_v48  ;;  %v5079_v34 = vmul.f32 %v13042_v56, %v5052_v7  ;;  %v5043_v21 = vsel %vm15208_vm14, %v5015_v27, %v5031_v52  ;;  %v5051_v5 = vsel %vm15208_vm14, %v5031_v52, %v5015_v27  ;;  %v8283_v7 = vld [vmem:[%s15005_s7 + $0x3] ss:$8 sm:$0x3] }
 0x44e   : > { %v5076_v49 = vmul.f32 %v13039_v59, %v5043_v21  ;;  %v5077_v18 = vmul.f32 %v13042_v56, %v5051_v5 }
 0x44f   : > { %v1067_v36 = vpop.permute.xlu1 %1066 }
 0x450   : > { %v8911_v62 = vpack.c.bf16 %v5078_v42, %v5076_v49  ;;  %v1065_v41 = vpop.permute.xlu0 %1064  ;;  %v8909_v17 = vpack.c.bf16 %v5079_v34, %v5077_v18  ;;  %v8276_v42 = vld [vmem:[%s15001_s3 + $0x48] sm:$0xff]  ;;  %v13172_v49 = vrot.slane %v8283_v7, %v15462_v43  ;;  %v13175_v18 = vrot.slane %v8283_v7, %v15457_v38 }
 0x452   : > { %8910 = vmatprep.subr.bf16.mxu1 %v8909_v17 }
 0x453   : > { %8912 = vmatpush1.bf16.msra.mxu1 %v8911_v62  ;;  %v1083_v13 = vpop.permute.xlu1 %1082  ;;  %v8463_v62 = vld [vmem:[%s15001_s3 + $0x2e0] sm:$0xff] }
 0x454   : > { %v1092_v54 = vsel %vm1084_vm15, %v1067_v36, %v1083_v13  ;;  %v1100_v60 = vsel %vm1084_vm15, %v1083_v13, %v1067_v36  ;;  %v1081_v35 = vpop.permute.xlu0 %1080 }
 0x455   : > { %v1128_v6 = vmul.f32 %v13000_v15, %v1100_v60  ;;  %v1129_v23 = vmul.f32 %v13003_v47, %v1092_v54  ;;  %v1091_v0 = vsel %vm1084_vm15, %v1065_v41, %v1081_v35  ;;  %v1099_v24 = vsel %vm1084_vm15, %v1081_v35, %v1065_v41  ;;  %v8277_v41 = vld [vmem:[%s15001_s3 + $0x50] sm:$0xff] }
 0x456   : > { %v1126_v61 = vmul.f32 %v13000_v15, %v1099_v24  ;;  %v1127_v20 = vmul.f32 %v13003_v47, %v1091_v0 }
 0x457   : > { %v5021_v32 = vpop.permute.xlu1 %5020 }
 0x458   : > { %v8579_v10 = vpack.c.bf16 %v1128_v6, %v1126_v61  ;;  %v5019_v4 = vpop.permute.xlu0 %5018  ;;  %v8577_v19 = vpack.c.bf16 %v1129_v23, %v1127_v20  ;;  %v8471_v61 = vld [vmem:[%s15005_s7 + $0x30] ss:$8 sm:$0x3] }
 0x45a   : > { %8578 = vmatprep.subr.bf16.mxu0 %v8577_v19 }
 0x45b   : > { %8580 = vmatpush1.bf16.msra.mxu0 %v8579_v10  ;;  %v5037_v51 = vpop.permute.xlu1 %5036 }
 0x45c   : > { %v5046_v1 = vsel %vm15208_vm14, %v5021_v32, %v5037_v51  ;;  %v5054_v31 = vsel %vm15208_vm14, %v5037_v51, %v5021_v32  ;;  %v5035_v14 = vpop.permute.xlu0 %5034  ;;  %v8278_v32 = vld [vmem:[%s15001_s3 + $0x58] sm:$0xff]  ;;  %v8464_v51 = vld [vmem:[%s15001_s3 + $0x2e8] sm:$0xff] }
 0x45d   : > { %v5082_v45 = vmul.f32 %v13039_v59, %v5046_v1  ;;  %v5083_v58 = vmul.f32 %v13042_v56, %v5054_v31  ;;  %v5045_v27 = vsel %vm15208_vm14, %v5019_v4, %v5035_v14  ;;  %v5053_v30 = vsel %vm15208_vm14, %v5035_v14, %v5019_v4 }
 0x45e   : > { %v5080_v9 = vmul.f32 %v13039_v59, %v5045_v27  ;;  %v5081_v48 = vmul.f32 %v13042_v56, %v5053_v30  ;;  %8279 = vmatmul.mubr.msk.f32.vlgmr.msra.gmra.mrb[16].mxu0 %vm849_vm6, %v8275_v55  ;;  %vm1276_vm14 = vcmp.lt.s32.totalorder %v9904_v53, 31  ;;  %v13212_v55 = vrot.slane %v8471_v61, %v15462_v43 }
 0x45f   : > { %v1247_v52 = vpop.permute.xlu1 %1246  ;;  %1217 = vmatprep.mubr.f32.mxu0 %v15405_v44  ;;  %v13215_v1 = vrot.slane %v8471_v61, %v15457_v38  ;;  %v8465_v38 = vld [vmem:[%s15001_s3 + $0x2f0] sm:$0xff] }
 0x460   : > { %v8915_v34 = vpack.c.bf16 %v5082_v45, %v5080_v9  ;;  %v1245_v21 = vpop.permute.xlu0 %1244  ;;  %v8913_v5 = vpack.c.bf16 %v5083_v58, %v5081_v48  ;;  %15585 = vst [vmem:[#allocation109_spill] sm:$0xff] %v13212_v55 }
 0x461   : > { %15586 = vst [vmem:[#allocation92_spill] sm:$0xff] %v13215_v1 }
 0x462   : > { %8914 = vmatprep.subr.bf16.mxu1 %v8913_v5  ;;  %8280 = vmatmul.mubr.msk.f32.gmra.mrb[18].mxu0 %vm849_vm6, %v8276_v42  ;;  %v8466_v5 = vld [vmem:[%s15001_s3 + $0x2f8] sm:$0xff] }
 0x463   : > { %8916 = vmatpush1.bf16.msra.mxu1 %v8915_v34  ;;  %v1263_v36 = vpop.permute.xlu1 %1262  ;;  %1223 = vmatprep.mubr.f32.mxu0 %v15405_v44 }
 0x464   : > { %v1278_v17 = vsel %vm1276_vm14, %v1247_v52, %v1263_v36  ;;  %v1286_v13 = vsel %vm1276_vm14, %v1263_v36, %v1247_v52  ;;  %v1261_v54 = vpop.permute.xlu0 %1260 }
 0x465   : > { %v1308_v60 = vmul.f32 %v13172_v49, %v1286_v13  ;;  %v1309_v35 = vmul.f32 %v13175_v18, %v1278_v17  ;;  %v1277_v6 = vsel %vm1276_vm14, %v1245_v21, %v1261_v54  ;;  %v1285_v23 = vsel %vm1276_vm14, %v1261_v54, %v1245_v21 }
 0x466   : > { %v1306_v0 = vmul.f32 %v13172_v49, %v1285_v23  ;;  %v1307_v24 = vmul.f32 %v13175_v18, %v1277_v6  ;;  %8467 = vmatmul.mubr.msk.f32.vlgmr.msra.gmra.mrb[0].mxu1 %vm849_vm6, %v8463_v62  ;;  %8281 = vmatmul.mubr.msk.f32.gmra.mrb[20].mxu0 %vm849_vm6, %v8277_v41 }
 0x467   : > { %v5201_v20 = vpop.permute.xlu1 %5200  ;;  %1229 = vmatprep.mubr.f32.mxu0 %v15405_v44  ;;  %5171 = vmatprep.mubr.f32.mxu1 %v15405_v44 }
 0x468   : > { %v8583_v10 = vpack.c.bf16 %v1308_v60, %v1306_v0  ;;  %v5199_v4 = vpop.permute.xlu0 %5198  ;;  %v8581_v19 = vpack.c.bf16 %v1309_v35, %v1307_v24 }
 0x46a   : > { %8582 = vmatprep.subr.bf16.mxu0 %v8581_v19  ;;  %8282 = vmatmul.mubr.msk.f32.gmra.mrb[22].mxu0 %vm849_vm6, %v8278_v32 }
 0x46b   : > { %8584 = vmatpush1.bf16.msra.mxu0 %v8583_v10  ;;  %v5217_v31 = vpop.permute.xlu1 %5216  ;;  %8468 = vmatmul.mubr.msk.f32.gmra.mrb[2].mxu1 %vm849_vm6, %v8464_v51 }
 0x46c   : > { %v5232_v14 = vsel %vm5230_vm13, %v5201_v20, %v5217_v31  ;;  %v5240_v45 = vsel %vm5230_vm13, %v5217_v31, %v5201_v20  ;;  %v5215_v58 = vpop.permute.xlu0 %5214  ;;  %1403 = vmatprep.mubr.f32.mxu0 %v15405_v44  ;;  %5177 = vmatprep.mubr.f32.mxu1 %v15405_v44 }
 0x46d   : > { %v5262_v43 = vmul.f32 %v13212_v55, %v5232_v14  ;;  %v5263_v27 = vmul.f32 %v13215_v1, %v5240_v45  ;;  %v5231_v30 = vsel %vm5230_vm13, %v5199_v4, %v5215_v58  ;;  %v5239_v9 = vsel %vm5230_vm13, %v5215_v58, %v5199_v4 }
 0x46e   : > { %v5260_v48 = vmul.f32 %v13212_v55, %v5231_v30  ;;  %v5261_v7 = vmul.f32 %v13215_v1, %v5239_v9 }
 0x46f   : > { %v1251_v52 = vpop.permute.xlu1 %1250  ;;  %8469 = vmatmul.mubr.msk.f32.gmra.mrb[4].mxu1 %vm849_vm6, %v8465_v38 }
 0x470   : > { %v8919_v42 = vpack.c.bf16 %v5262_v43, %v5260_v48  ;;  %v1249_v34 = vpop.permute.xlu0 %1248  ;;  %v8917_v21 = vpack.c.bf16 %v5263_v27, %v5261_v7  ;;  %5183 = vmatprep.mubr.f32.mxu1 %v15405_v44 }
 0x472   : > { %8918 = vmatprep.subr.bf16.mxu1 %v8917_v21 }
 0x473   : > { %8920 = vmatpush1.bf16.msra.mxu1 %v8919_v42  ;;  %v1267_v36 = vpop.permute.xlu1 %1266 }
 0x474   : > { %v1280_v62 = vsel %vm1276_vm14, %v1251_v52, %v1267_v36  ;;  %v1288_v41 = vsel %vm1276_vm14, %v1267_v36, %v1251_v52  ;;  %v1265_v17 = vpop.permute.xlu0 %1264  ;;  %8470 = vmatmul.mubr.msk.f32.gmra.mrb[6].mxu1 %vm849_vm6, %v8466_v5 }
 0x475   : > { %v1312_v13 = vmul.f32 %v13172_v49, %v1288_v41  ;;  %v1313_v54 = vmul.f32 %v13175_v18, %v1280_v62  ;;  %v1279_v60 = vsel %vm1276_vm14, %v1249_v34, %v1265_v17  ;;  %v1287_v35 = vsel %vm1276_vm14, %v1265_v17, %v1249_v34  ;;  %5357 = vmatprep.mubr.f32.mxu1 %v15405_v44 }
 0x476   : > { %v1310_v6 = vmul.f32 %v13172_v49, %v1287_v35  ;;  %v1311_v23 = vmul.f32 %v13175_v18, %v1279_v60 }
 0x477   : > { %v5205_v0 = vpop.permute.xlu1 %5204 }
 0x478   : > { %v8587_v24 = vpack.c.bf16 %v1312_v13, %v1310_v6  ;;  %v5203_v61 = vpop.permute.xlu0 %5202  ;;  %v8585_v20 = vpack.c.bf16 %v1313_v54, %v1311_v23 }
 0x47a   : > { %8586 = vmatprep.subr.bf16.mxu0 %v8585_v20 }
 0x47b   : > { %8588 = vmatpush1.bf16.msra.mxu0 %v8587_v24  ;;  %v5221_v32 = vpop.permute.xlu1 %5220 }
 0x47c   : > { %v5234_v10 = vsel %vm5230_vm13, %v5205_v0, %v5221_v32  ;;  %v5242_v4 = vsel %vm5230_vm13, %v5221_v32, %v5205_v0  ;;  %v5219_v19 = vpop.permute.xlu0 %5218 }
 0x47d   : > { %v5266_v51 = vmul.f32 %v13212_v55, %v5234_v10  ;;  %v5267_v31 = vmul.f32 %v13215_v1, %v5242_v4  ;;  %v5233_v14 = vsel %vm5230_vm13, %v5203_v61, %v5219_v19  ;;  %v5241_v45 = vsel %vm5230_vm13, %v5219_v19, %v5203_v61 }
 0x47e   : > { %v5264_v58 = vmul.f32 %v13212_v55, %v5233_v14  ;;  %v5265_v38 = vmul.f32 %v13215_v1, %v5241_v45 }
 0x47f   : > { %v1255_v43 = vpop.permute.xlu1 %1254 }
 0x480   : > { %v8923_v27 = vpack.c.bf16 %v5266_v51, %v5264_v58  ;;  %v1253_v30 = vpop.permute.xlu0 %1252  ;;  %v8921_v9 = vpack.c.bf16 %v5267_v31, %v5265_v38 }
 0x482   : > { %8922 = vmatprep.subr.bf16.mxu1 %v8921_v9 }
 0x483   : > { %8924 = vmatpush1.bf16.msra.mxu1 %v8923_v27  ;;  %v1271_v48 = vpop.permute.xlu1 %1270 }
 0x484   : > { %v1282_v7 = vsel %vm1276_vm14, %v1255_v43, %v1271_v48  ;;  %v1290_v52 = vsel %vm1276_vm14, %v1271_v48, %v1255_v43  ;;  %v1269_v42 = vpop.permute.xlu0 %1268 }
 0x485   : > { %v1316_v34 = vmul.f32 %v13172_v49, %v1290_v52  ;;  %v1317_v21 = vmul.f32 %v13175_v18, %v1282_v7  ;;  %v1281_v5 = vsel %vm1276_vm14, %v1253_v30, %v1269_v42  ;;  %v1289_v36 = vsel %vm1276_vm14, %v1269_v42, %v1253_v30 }
 0x486   : > { %v1314_v62 = vmul.f32 %v13172_v49, %v1289_v36  ;;  %v1315_v41 = vmul.f32 %v13175_v18, %v1281_v5 }
 0x487   : > { %v5209_v17 = vpop.permute.xlu1 %5208 }
 0x488   : > { %v8591_v13 = vpack.c.bf16 %v1316_v34, %v1314_v62  ;;  %v5207_v54 = vpop.permute.xlu0 %5206  ;;  %v8589_v60 = vpack.c.bf16 %v1317_v21, %v1315_v41  ;;  %v8284_v62 = vld [vmem:[%s15001_s3 + $0x60] sm:$0xff] }
 0x48a   : > { %8590 = vmatprep.subr.bf16.mxu0 %v8589_v60 }
 0x48b   : > { %8592 = vmatpush1.bf16.msra.mxu0 %v8591_v13  ;;  %v5225_v35 = vpop.permute.xlu1 %5224 }
 0x48c   : > { %v5236_v6 = vsel %vm5230_vm13, %v5209_v17, %v5225_v35  ;;  %v5244_v23 = vsel %vm5230_vm13, %v5225_v35, %v5209_v17  ;;  %v5223_v0 = vpop.permute.xlu0 %5222 }
 0x48d   : > { %v5270_v24 = vmul.f32 %v13212_v55, %v5236_v6  ;;  %v5271_v61 = vmul.f32 %v13215_v1, %v5244_v23  ;;  %v5235_v20 = vsel %vm5230_vm13, %v5207_v54, %v5223_v0  ;;  %v5243_v32 = vsel %vm5230_vm13, %v5223_v0, %v5207_v54 }
 0x48e   : > { %v5268_v10 = vmul.f32 %v13212_v55, %v5235_v20  ;;  %v5269_v4 = vmul.f32 %v13215_v1, %v5243_v32  ;;  %v8286_v32 = vld [vmem:[%s15001_s3 + $0x70] sm:$0xff] }
 0x48f   : > { %v1259_v19 = vpop.permute.xlu1 %1258 }
 0x490   : > { %v8927_v51 = vpack.c.bf16 %v5270_v24, %v5268_v10  ;;  %v1257_v31 = vpop.permute.xlu0 %1256  ;;  %v8925_v14 = vpack.c.bf16 %v5271_v61, %v5269_v4  ;;  %v8285_v24 = vld [vmem:[%s15001_s3 + $0x68] sm:$0xff]  ;;  %v8472_v10 = vld [vmem:[%s15001_s3 + $0x300] sm:$0xff]  ;;  %v8287_v4 = vld [vmem:[%s15001_s3 + $0x78] sm:$0xff] }
 0x492   : > { %8926 = vmatprep.subr.bf16.mxu1 %v8925_v14 }
 0x493   : > { %8928 = vmatpush1.bf16.msra.mxu1 %v8927_v51  ;;  %v1275_v45 = vpop.permute.xlu1 %1274  ;;  %v8474_v51 = vld [vmem:[%s15001_s3 + $0x310] sm:$0xff] }
 0x494   : > { %v1284_v58 = vsel %vm1276_vm14, %v1259_v19, %v1275_v45  ;;  %v1292_v38 = vsel %vm1276_vm14, %v1275_v45, %v1259_v19  ;;  %v1273_v43 = vpop.permute.xlu0 %1272  ;;  %v8473_v19 = vld [vmem:[%s15001_s3 + $0x308] sm:$0xff] }
 0x495   : > { %v1320_v27 = vmul.f32 %v13172_v49, %v1292_v38  ;;  %v1321_v30 = vmul.f32 %v13175_v18, %v1284_v58  ;;  %v1283_v9 = vsel %vm1276_vm14, %v1257_v31, %v1273_v43  ;;  %v1291_v48 = vsel %vm1276_vm14, %v1273_v43, %v1257_v31  ;;  %v8475_v31 = vld [vmem:[%s15001_s3 + $0x318] sm:$0xff] }
 0x496   : > { %v1318_v7 = vmul.f32 %v13172_v49, %v1291_v48  ;;  %v1319_v52 = vmul.f32 %v13175_v18, %v1283_v9 }
 0x497   : > { %v5213_v42 = vpop.permute.xlu1 %5212 }
 0x498   : > { %v8595_v34 = vpack.c.bf16 %v1320_v27, %v1318_v7  ;;  %v5211_v21 = vpop.permute.xlu0 %5210  ;;  %v8593_v5 = vpack.c.bf16 %v1321_v30, %v1319_v52 }
 0x49a   : > { %8594 = vmatprep.subr.bf16.mxu0 %v8593_v5 }
 0x49b   : > { %8596 = vmatpush1.bf16.msra.mxu0 %v8595_v34  ;;  %v5229_v36 = vpop.permute.xlu1 %5228 }
 0x49c   : > { %v5238_v41 = vsel %vm5230_vm13, %v5213_v42, %v5229_v36  ;;  %v5246_v17 = vsel %vm5230_vm13, %v5229_v36, %v5213_v42  ;;  %v5227_v13 = vpop.permute.xlu0 %5226 }
 0x49d   : > { %v5274_v54 = vmul.f32 %v13212_v55, %v5238_v41  ;;  %v5275_v60 = vmul.f32 %v13215_v1, %v5246_v17  ;;  %v5237_v35 = vsel %vm5230_vm13, %v5211_v21, %v5227_v13  ;;  %v5245_v6 = vsel %vm5230_vm13, %v5227_v13, %v5211_v21 }
 0x49e   : > { %v5272_v23 = vmul.f32 %v13212_v55, %v5237_v35  ;;  %v5273_v0 = vmul.f32 %v13215_v1, %v5245_v6  ;;  %8288 = vmatmul.mubr.msk.f32.vlgmr.msra.gmra.mrb[16].mxu0 %vm849_vm6, %v8284_v62 }
 0x49f   : > { %1409 = vmatprep.mubr.f32.mxu0 %v15405_v44 }
 0x4a0   : > { %v8931_v61 = vpack.c.bf16 %v5274_v54, %v5272_v23  ;;  %v8929_v20 = vpack.c.bf16 %v5275_v60, %v5273_v0 }
 0x4a2   : > { %8289 = vmatmul.mubr.msk.f32.gmra.mrb[18].mxu0 %vm849_vm6, %v8285_v24  ;;  %8930 = vmatprep.subr.bf16.mxu1 %v8929_v20 }
 0x4a3   : > { %8932 = vmatpush1.bf16.msra.mxu1 %v8931_v61  ;;  %1415 = vmatprep.mubr.f32.mxu0 %v15405_v44 }
 0x4a6   : > { %8290 = vmatmul.mubr.msk.f32.gmra.mrb[20].mxu0 %vm849_vm6, %v8286_v32  ;;  %8476 = vmatmul.mubr.msk.f32.vlgmr.msra.gmra.mrb[0].mxu1 %vm849_vm6, %v8472_v10 }
 0x4a7   : > { %1421 = vmatprep.mubr.f32.mxu0 %v15405_v44  ;;  %5363 = vmatprep.mubr.f32.mxu1 %v15405_v44 }
 0x4aa   : > { %8291 = vmatmul.mubr.msk.f32.gmra.mrb[22].mxu0 %vm849_vm6, %v8287_v4  ;;  %8477 = vmatmul.mubr.msk.f32.gmra.mrb[2].mxu1 %vm849_vm6, %v8473_v19 }
 0x4ab   : > { %5369 = vmatprep.mubr.f32.mxu1 %v15405_v44  ;;  %5565 = vmatprep.mubr.f32.mxu0 %v15405_v44 }
 0x4ac   : > { %v5402_v17 = vpop.permute.xlu1 %5401 }
 0x4ad   : > { %v5397_v7 = vpop.permute.xlu0 %5396 }
 0x4ae   : > { %8478 = vmatmul.mubr.msk.f32.gmra.mrb[4].mxu1 %vm849_vm6, %v8474_v51 }
 0x4af   : > { %5375 = vmatprep.mubr.f32.mxu1 %v15405_v44 }
 0x4b2   : > { %8479 = vmatmul.mubr.msk.f32.gmra.mrb[6].mxu1 %vm849_vm6, %v8475_v31  ;;  %v5407_v31 = vpop.permute.xlu0 %5406 }
 0x571   : > { %v1405_v14 = vpop.f32.mrb[16].mxu0 }
 0x572   : > { %v1407_v45 = vpop.f32.mrb[17].mxu0 }
 0x575   : > { %v1411_v58 = vpop.f32.mrb[18].mxu0 }
 0x576   : > { %v1413_v38 = vpop.f32.mrb[19].mxu0 }
 0x579   : > { %v1417_v43 = vpop.f32.mrb[20].mxu0  ;;  %v5359_v27 = vpop.f32.mrb[0].mxu1 }
 0x57a   : > { %v9133_v30 = vadd.f32 %v5359_v27, %v1405_v14  ;;  %v1419_v9 = vpop.f32.mrb[21].mxu0  ;;  %v5361_v48 = vpop.f32.mrb[1].mxu1 }
 0x57b   : > { %v9134_v52 = vadd.f32 %v5361_v48, %v1407_v45 }
 0x57c   : > { %v5414_v42 = vadd.f32 %v9133_v30, %v5397_v7 }
 0x57d   : > { %v1423_v34 = vpop.f32.mrb[22].mxu0  ;;  %v5365_v21 = vpop.f32.mrb[2].mxu1  ;;  %v5415_v10 = vadd.f32 %v9134_v52, %v5397_v7 }
 0x57e   : > { %v13354_v5 = vmax.f32 %v5414_v42, 0.0  ;;  %v9135_v36 = vadd.f32 %v5365_v21, %v1411_v58  ;;  %v1425_v62 = vpop.f32.mrb[23].mxu0  ;;  %v5367_v41 = vpop.f32.mrb[3].mxu1 }
 0x57f   : > { %v9136_v13 = vadd.f32 %v5367_v41, %v1413_v38  ;;  %v13412_v4 = vmax.f32 %v5415_v10, 0.0  ;;  %v5412_v58 = vpop.permute.xlu1 %5411 }
 0x580   : > { %v5416_v54 = vadd.f32 %v9135_v36, %v5402_v17  ;;  %5463 = vrot.lane.b32.xlu0 %v13354_v5, %s9481_s26 }
 0x581   : > { %v5371_v60 = vpop.f32.mrb[4].mxu1  ;;  %v5417_v19 = vadd.f32 %v9136_v13, %v5402_v17 }
 0x582   : > { %v13358_v35 = vmax.f32 %v5416_v54, 0.0  ;;  %v9137_v6 = vadd.f32 %v5371_v60, %v1417_v43  ;;  %v5373_v23 = vpop.f32.mrb[5].mxu1 }
 0x583   : > { %v13360_v0 = vadd.f32 %v5373_v23, %v1419_v9  ;;  %v13418_v51 = vmax.f32 %v5417_v19, 0.0 }
 0x584   : > { %5430 = vrot.lane.b32.xlu0 %v13354_v5, %s9479_s24  ;;  %5465 = vrot.lane.b32.xlu1 %v13358_v35, %s9481_s26  ;;  %v5418_v14 = vadd.f32 %v9137_v6, %v5407_v31 }
 0x585   : > { %v5377_v24 = vpop.f32.mrb[6].mxu1  ;;  %v5419_v13 = vadd.f32 %v13360_v0, %v5407_v31 }
 0x586   : > { %v9139_v61 = vadd.f32 %v5377_v24, %v1423_v34  ;;  %v5379_v20 = vpop.f32.mrb[7].mxu1  ;;  %v13464_v45 = vmax.f32 %v5418_v14, 0.0 }
 0x587   : > { %v13366_v32 = vadd.f32 %v5379_v20, %v1425_v62  ;;  %v13543_v6 = vmax.f32 %v5419_v13, 0.0 }
 0x588   : > { %5646 = vrot.lane.b32.xlu0 %v13354_v5, %s9483_s30  ;;  %5432 = vrot.lane.b32.xlu1 %v13358_v35, %s9479_s24  ;;  %v5420_v38 = vadd.f32 %v9139_v61, %v5412_v58 }
 0x589   : > { %v5421_v0 = vadd.f32 %v13366_v32, %v5412_v58 }
 0x58a   : > { %v13474_v43 = vmax.f32 %v5420_v38, 0.0 }
 0x58b   : > { %v13562_v10 = vmax.f32 %v5421_v0, 0.0 }
 0x58c   : > { %5756 = vrot.lane.b32.xlu0 %v13354_v5, %s9501_s16  ;;  %5648 = vrot.lane.b32.xlu1 %v13358_v35, %s9483_s30 }
 0x590   : > { %5866 = vrot.lane.b32.xlu0 %v13354_v5, %s9478_s23  ;;  %5758 = vrot.lane.b32.xlu1 %v13358_v35, %s9501_s16 }
 0x594   : > { %5976 = vrot.lane.b32.xlu0 %v13354_v5, %s9480_s25  ;;  %5868 = vrot.lane.b32.xlu1 %v13358_v35, %s9478_s23 }
 0x598   : > { %6086 = vrot.lane.b32.xlu0 %v13354_v5, %s9482_s29  ;;  %5978 = vrot.lane.b32.xlu1 %v13358_v35, %s9480_s25 }
 0x59c   : > { %6196 = vrot.lane.b32.xlu0 %v13354_v5, %s9484_s9  ;;  %6088 = vrot.lane.b32.xlu1 %v13358_v35, %s9482_s29 }
 0x5a0   : > { %6306 = vrot.lane.b32.xlu0 %v13354_v5, %s9485_s10  ;;  %6198 = vrot.lane.b32.xlu1 %v13358_v35, %s9484_s9 }
 0x5a4   : > { %6416 = vrot.lane.b32.xlu0 %v13354_v5, %s9486_s11  ;;  %6308 = vrot.lane.b32.xlu1 %v13358_v35, %s9485_s10 }
 0x5a8   : > { %6526 = vrot.lane.b32.xlu0 %v13354_v5, %s9487_s13  ;;  %6418 = vrot.lane.b32.xlu1 %v13358_v35, %s9486_s11 }
 0x5ac   : > { %6636 = vrot.lane.b32.xlu0 %v13354_v5, %s9488_s14  ;;  %6528 = vrot.lane.b32.xlu1 %v13358_v35, %s9487_s13 }
 0x5b0   : > { %6824 = vrot.lane.b32.xlu0 %v13354_v5, %s15587_s18  ;;  %6638 = vrot.lane.b32.xlu1 %v13358_v35, %s9488_s14 }
 0x5b4   : > { %5471 = vrot.lane.b32.xlu0 %v13412_v4, %s9481_s26  ;;  %6826 = vrot.lane.b32.xlu1 %v13358_v35, %s15587_s18 }
 0x5b8   : > { %5438 = vrot.lane.b32.xlu0 %v13412_v4, %s9479_s24  ;;  %5473 = vrot.lane.b32.xlu1 %v13418_v51, %s9481_s26 }
 0x5bc   : > { %5654 = vrot.lane.b32.xlu0 %v13412_v4, %s9483_s30  ;;  %5440 = vrot.lane.b32.xlu1 %v13418_v51, %s9479_s24 }
 0x5c0   : > { %5764 = vrot.lane.b32.xlu0 %v13412_v4, %s9501_s16  ;;  %5656 = vrot.lane.b32.xlu1 %v13418_v51, %s9483_s30 }
 0x5c4   : > { %5874 = vrot.lane.b32.xlu0 %v13412_v4, %s9478_s23  ;;  %5766 = vrot.lane.b32.xlu1 %v13418_v51, %s9501_s16 }
 0x5c8   : > { %5984 = vrot.lane.b32.xlu0 %v13412_v4, %s9480_s25  ;;  %5876 = vrot.lane.b32.xlu1 %v13418_v51, %s9478_s23 }
 0x5cc   : > { %6094 = vrot.lane.b32.xlu0 %v13412_v4, %s9482_s29  ;;  %5986 = vrot.lane.b32.xlu1 %v13418_v51, %s9480_s25 }
 0x5d0   : > { %6204 = vrot.lane.b32.xlu0 %v13412_v4, %s9484_s9  ;;  %6096 = vrot.lane.b32.xlu1 %v13418_v51, %s9482_s29 }
 0x5d4   : > { %6314 = vrot.lane.b32.xlu0 %v13412_v4, %s9485_s10  ;;  %6206 = vrot.lane.b32.xlu1 %v13418_v51, %s9484_s9 }
 0x5d8   : > { %6424 = vrot.lane.b32.xlu0 %v13412_v4, %s9486_s11  ;;  %6316 = vrot.lane.b32.xlu1 %v13418_v51, %s9485_s10 }
 0x5dc   : > { %6534 = vrot.lane.b32.xlu0 %v13412_v4, %s9487_s13  ;;  %6426 = vrot.lane.b32.xlu1 %v13418_v51, %s9486_s11 }
 0x5e0   : > { %6644 = vrot.lane.b32.xlu0 %v13412_v4, %s9488_s14  ;;  %6536 = vrot.lane.b32.xlu1 %v13418_v51, %s9487_s13 }
 0x5e4   : > { %6646 = vrot.lane.b32.xlu1 %v13418_v51, %s9488_s14  ;;  %5467 = vrot.lane.b32.xlu0 %v13464_v45, %s9481_s26 }
 0x5e8   : > { %6834 = vrot.lane.b32.xlu1 %v13418_v51, %s15587_s18  ;;  %5434 = vrot.lane.b32.xlu0 %v13464_v45, %s9479_s24 }
 0x5ec   : > { %5650 = vrot.lane.b32.xlu0 %v13464_v45, %s9483_s30  ;;  %5469 = vrot.lane.b32.xlu1 %v13474_v43, %s9481_s26 }
 0x5f0   : > { %5760 = vrot.lane.b32.xlu0 %v13464_v45, %s9501_s16  ;;  %5436 = vrot.lane.b32.xlu1 %v13474_v43, %s9479_s24 }
 0x5f2   : > { %v5464_v27 = vpop.permute.xlu0 %5463 }
 0x5f4   : > { %5870 = vrot.lane.b32.xlu0 %v13464_v45, %s9478_s23  ;;  %5652 = vrot.lane.b32.xlu1 %v13474_v43, %s9483_s30 }
 0x5f6   : > { %v13488_v30 = vpop.permute.xlu0 %5430  ;;  %v5466_v9 = vpop.permute.xlu1 %5465 }
 0x5f8   : > { %5980 = vrot.lane.b32.xlu0 %v13464_v45, %s9480_s25  ;;  %5762 = vrot.lane.b32.xlu1 %v13474_v43, %s9501_s16 }
 0x5fa   : > { %v13494_v48 = vpop.permute.xlu0 %5646  ;;  %v13496_v7 = vpop.permute.xlu1 %5432 }
 0x5fc   : > { %6090 = vrot.lane.b32.xlu0 %v13464_v45, %s9482_s29  ;;  %5872 = vrot.lane.b32.xlu1 %v13474_v43, %s9478_s23 }
 0x5fe   : > { %v13502_v52 = vpop.permute.xlu0 %5756  ;;  %v13504_v42 = vpop.permute.xlu1 %5648 }
 0x600   : > { %6200 = vrot.lane.b32.xlu0 %v13464_v45, %s9484_s9  ;;  %5982 = vrot.lane.b32.xlu1 %v13474_v43, %s9480_s25 }
 0x602   : > { %v13510_v34 = vpop.permute.xlu0 %5866  ;;  %v13512_v21 = vpop.permute.xlu1 %5758 }
 0x604   : > { %6310 = vrot.lane.b32.xlu0 %v13464_v45, %s9485_s10  ;;  %6092 = vrot.lane.b32.xlu1 %v13474_v43, %s9482_s29 }
 0x606   : > { %v13518_v36 = vpop.permute.xlu0 %5976  ;;  %v13520_v62 = vpop.permute.xlu1 %5868 }
 0x608   : > { %6420 = vrot.lane.b32.xlu0 %v13464_v45, %s9486_s11  ;;  %6202 = vrot.lane.b32.xlu1 %v13474_v43, %s9484_s9 }
 0x60a   : > { %v13526_v41 = vpop.permute.xlu0 %6086  ;;  %v13528_v17 = vpop.permute.xlu1 %5978 }
 0x60b   : > { %15588 = vst [vmem:[#allocation106_spill] sm:$0xff] %v13526_v41  ;;  %v15632_v41 = vld [vmem:[#allocation96_spill] sm:$0xff] }
 0x60c   : > { %6530 = vrot.lane.b32.xlu0 %v13464_v45, %s9487_s13  ;;  %6312 = vrot.lane.b32.xlu1 %v13474_v43, %s9485_s10 }
 0x60e   : > { %v13535_v54 = vpop.permute.xlu0 %6196  ;;  %v13537_v60 = vpop.permute.xlu1 %6088 }
 0x60f   : > { %15589 = vst [vmem:[#allocation87_spill] sm:$0xff] %v13535_v54  ;;  %15590 = vst [vmem:[#allocation24_spill] sm:$0xff] %v13537_v60 }
 0x610   : > { %6640 = vrot.lane.b32.xlu0 %v13464_v45, %s9488_s14  ;;  %6422 = vrot.lane.b32.xlu1 %v13474_v43, %s9486_s11 }
 0x612   : > { %v13545_v23 = vpop.permute.xlu0 %6306  ;;  %v13547_v24 = vpop.permute.xlu1 %6198 }
 0x613   : > { %15591 = vst [vmem:[#allocation11_spill] sm:$0xff] %v13545_v23  ;;  %15592 = vst [vmem:[#allocation18_spill] sm:$0xff] %v13547_v24 }
 0x614   : > { %5475 = vrot.lane.b32.xlu0 %v13543_v6, %s9481_s26  ;;  %6532 = vrot.lane.b32.xlu1 %v13474_v43, %s9487_s13 }
 0x616   : > { %v13554_v61 = vpop.permute.xlu0 %6416  ;;  %v13556_v20 = vpop.permute.xlu1 %6308 }
 0x617   : > { %15593 = vst [vmem:[#allocation7_spill] sm:$0xff] %v13554_v61  ;;  %15594 = vst [vmem:[#allocation54_spill] sm:$0xff] %v13556_v20 }
 0x618   : > { %5442 = vrot.lane.b32.xlu0 %v13543_v6, %s9479_s24  ;;  %6642 = vrot.lane.b32.xlu1 %v13474_v43, %s9488_s14 }
 0x61a   : > { %v13564_v19 = vpop.permute.xlu0 %6526  ;;  %v13566_v31 = vpop.permute.xlu1 %6418 }
 0x61b   : > { %15595 = vst [vmem:[#allocation40_spill] sm:$0xff] %v13564_v19  ;;  %15596 = vst [vmem:[#allocation46_spill] sm:$0xff] %v13566_v31 }
 0x61c   : > { %5658 = vrot.lane.b32.xlu0 %v13543_v6, %s9483_s30  ;;  %5477 = vrot.lane.b32.xlu1 %v13562_v10, %s9481_s26  ;;  %s15627_s26 = smov 112  }
 0x61e   : > { %v13572_v32 = vpop.permute.xlu0 %6636  ;;  %v13574_v14 = vpop.permute.xlu1 %6528 }
 0x61f   : > { %15597 = vst [vmem:[#allocation33_spill] sm:$0xff] %v13572_v32  ;;  %15598 = vst [vmem:[#allocation79_spill] sm:$0xff] %v13574_v14 }
 0x620   : > { %5768 = vrot.lane.b32.xlu0 %v13543_v6, %s9501_s16  ;;  %5444 = vrot.lane.b32.xlu1 %v13562_v10, %s9479_s24  ;;  %s15617_s24 = smov 114  }
 0x622   : > { %v13580_v58 = vpop.permute.xlu0 %6824  ;;  %v13582_v38 = vpop.permute.xlu1 %6638 }
 0x623   : > { %15599 = vst [vmem:[#allocation68_spill] sm:$0xff] %v13580_v58  ;;  %15600 = vst [vmem:[#allocation72_spill] sm:$0xff] %v13582_v38 }
 0x624   : > { %5878 = vrot.lane.b32.xlu0 %v13543_v6, %s9478_s23  ;;  %5660 = vrot.lane.b32.xlu1 %v13562_v10, %s9483_s30 }
 0x626   : > { %v5472_v13 = vpop.permute.xlu0 %5471  ;;  %v13588_v0 = vpop.permute.xlu1 %6826 }
 0x627   : > { %15601 = vst [vmem:[#allocation62_spill] sm:$0xff] %v13588_v0  ;;  %v5479_v1 = vsel %vm798_vm1, %v5464_v27, %v5472_v13  ;;  %v5483_v55 = vsel %vm798_vm1, %v5472_v13, %v5464_v27 }
 0x628   : > { %5988 = vrot.lane.b32.xlu0 %v13543_v6, %s9480_s25  ;;  %5770 = vrot.lane.b32.xlu1 %v13562_v10, %s9501_s16  ;;  %v5487_v28 = vmul.f32 %v5483_v55, %v15602_v8  ;;  %v5488_v63 = vmul.f32 %v5479_v1, %v15603_v25 }
 0x62a   : > { %v13598_v56 = vpop.permute.xlu0 %5438  ;;  %v5474_v59 = vpop.permute.xlu1 %5473 }
 0x62b   : > { %v5480_v12 = vsel %vm798_vm1, %v5466_v9, %v5474_v59  ;;  %v5484_v46 = vsel %vm798_vm1, %v5474_v59, %v5466_v9 }
 0x62c   : > { %v5489_v26 = vmul.f32 %v5484_v46, %v15602_v8  ;;  %v5490_v37 = vmul.f32 %v5480_v12, %v15603_v25  ;;  %6098 = vrot.lane.b32.xlu0 %v13543_v6, %s9482_s29  ;;  %5880 = vrot.lane.b32.xlu1 %v13562_v10, %s9478_s23  ;;  %s15612_s23 = smov 126  }
 0x62e   : > { %v8935_v27 = vpack.c.bf16 %v5489_v26, %v5487_v28  ;;  %v13612_v13 = vpop.permute.xlu0 %5654  ;;  %v13614_v11 = vpop.permute.xlu1 %5440  ;;  %v8933_v59 = vpack.c.bf16 %v5490_v37, %v5488_v63 }
 0x630   : > { %8934 = vmatprep.subr.bf16.mxu0 %v8933_v59  ;;  %6208 = vrot.lane.b32.xlu0 %v13543_v6, %s9484_s9 }
 0x631   : > { %5990 = vrot.lane.b32.xlu1 %v13562_v10, %s9480_s25  ;;  %8936 = vmatpush1.bf16.msra.mxu0 %v8935_v27  ;;  %s15619_s25 = smov 113  }
 0x632   : > { %v13620_v46 = vpop.permute.xlu0 %5764  ;;  %v13622_v12 = vpop.permute.xlu1 %5656 }
 0x634   : > { %6318 = vrot.lane.b32.xlu0 %v13543_v6, %s9485_s10 }
 0x635   : > { %6100 = vrot.lane.b32.xlu1 %v13562_v10, %s9482_s29  ;;  %s15633_s29 = smov 111  }
 0x636   : > { %v13628_v26 = vpop.permute.xlu0 %5874  ;;  %v13630_v37 = vpop.permute.xlu1 %5766 }
 0x638   : > { %6428 = vrot.lane.b32.xlu0 %v13543_v6, %s9486_s11 }
 0x639   : > { %6210 = vrot.lane.b32.xlu1 %v13562_v10, %s9484_s9 }
 0x63a   : > { %v13636_v63 = vpop.permute.xlu0 %5984  ;;  %v13638_v28 = vpop.permute.xlu1 %5876 }
 0x63c   : > { %6538 = vrot.lane.b32.xlu0 %v13543_v6, %s9487_s13 }
 0x63d   : > { %6320 = vrot.lane.b32.xlu1 %v13562_v10, %s9485_s10 }
 0x63e   : > { %v13644_v55 = vpop.permute.xlu0 %6094  ;;  %v13646_v1 = vpop.permute.xlu1 %5986 }
 0x63f   : > { %15604 = vst [vmem:[#allocation39_spill] sm:$0xff] %v13644_v55 }
 0x640   : > { %6648 = vrot.lane.b32.xlu0 %v13543_v6, %s9488_s14 }
 0x641   : > { %6430 = vrot.lane.b32.xlu1 %v13562_v10, %s9486_s11 }
 0x642   : > { %v13652_v9 = vpop.permute.xlu0 %6204  ;;  %v13654_v27 = vpop.permute.xlu1 %6096 }
 0x643   : > { %15605 = vst [vmem:[#allocation94_spill] sm:$0xff] %v13652_v9  ;;  %v5446_v9 = vsel %vm717_vm2, %v13488_v30, %v13598_v56 }
 0x644   : > { %6832 = vrot.lane.b32.xlu0 %v13412_v4, %s15587_s18 }
 0x645   : > { %6540 = vrot.lane.b32.xlu1 %v13562_v10, %s9487_s13  ;;  %s15635_s13 = smov 110  }
 0x646   : > { %v13660_v59 = vpop.permute.xlu0 %6314  ;;  %v13662_v3 = vpop.permute.xlu1 %6206 }
 0x647   : > { %15606 = vst [vmem:[#allocation107_spill] sm:$0xff] %v13660_v59  ;;  %15607 = vst [vmem:[#allocation88_spill] sm:$0xff] %v13662_v3 }
 0x648   : > { %6828 = vrot.lane.b32.xlu0 %v13464_v45, %s15587_s18 }
 0x649   : > { %6650 = vrot.lane.b32.xlu1 %v13562_v10, %s9488_s14 }
 0x64a   : > { %v13668_v16 = vpop.permute.xlu0 %6424  ;;  %v13670_v33 = vpop.permute.xlu1 %6316 }
 0x64b   : > { %15608 = vst [vmem:[#allocation27_spill] sm:$0xff] %v13668_v16  ;;  %15609 = vst [vmem:[#allocation12_spill] sm:$0xff] %v13670_v33 }
 0x64c   : > { %6836 = vrot.lane.b32.xlu0 %v13543_v6, %s15587_s18 }
 0x64d   : > { %6830 = vrot.lane.b32.xlu1 %v13474_v43, %s15587_s18 }
 0x64e   : > { %v13676_v57 = vpop.permute.xlu0 %6534  ;;  %v13678_v22 = vpop.permute.xlu1 %6426 }
 0x64f   : > { %15610 = vst [vmem:[#allocation20_spill] sm:$0xff] %v13676_v57  ;;  %15611 = vst [vmem:[#allocation8_spill] sm:$0xff] %v13678_v22 }
 0x650   : > { %6934 = vrot.lane.b32.xlu0 %v13354_v5, %s15612_s23 }
 0x651   : > { %6838 = vrot.lane.b32.xlu1 %v13562_v10, %s15587_s18  ;;  %s15652_s18 = smov 97  }
 0x652   : > { %v13684_v29 = vpop.permute.xlu0 %6644  ;;  %v13686_v40 = vpop.permute.xlu1 %6536 }
 0x653   : > { %15613 = vst [vmem:[#allocation55_spill] sm:$0xff] %v13684_v29  ;;  %15614 = vst [vmem:[#allocation42_spill] sm:$0xff] %v13686_v40 }
 0x654   : > { %6942 = vrot.lane.b32.xlu0 %v13412_v4, %s15612_s23 }
 0x655   : > { %6936 = vrot.lane.b32.xlu1 %v13358_v35, %s15612_s23 }
 0x656   : > { %v13692_v50 = vpop.permute.xlu1 %6646  ;;  %v5468_v39 = vpop.permute.xlu0 %5467 }
 0x657   : > { %15615 = vst [vmem:[#allocation48_spill] sm:$0xff] %v13692_v50 }
 0x658   : > { %6938 = vrot.lane.b32.xlu0 %v13464_v45, %s15612_s23 }
 0x659   : > { %6944 = vrot.lane.b32.xlu1 %v13418_v51, %s15612_s23 }
 0x65a   : > { %v13698_v2 = vpop.permute.xlu1 %6834  ;;  %v13700_v0 = vpop.permute.xlu0 %5434 }
 0x65b   : > { %15616 = vst [vmem:[#allocation34_spill] sm:$0xff] %v13698_v2 }
 0x65c   : > { %6946 = vrot.lane.b32.xlu0 %v13543_v6, %s15612_s23 }
 0x65d   : > { %6940 = vrot.lane.b32.xlu1 %v13474_v43, %s15612_s23 }
 0x65e   : > { %v13706_v58 = vpop.permute.xlu0 %5650  ;;  %v5470_v32 = vpop.permute.xlu1 %5469 }
 0x660   : > { %7044 = vrot.lane.b32.xlu0 %v13354_v5, %s15617_s24 }
 0x661   : > { %6948 = vrot.lane.b32.xlu1 %v13562_v10, %s15612_s23 }
 0x662   : > { %v13712_v29 = vpop.permute.xlu0 %5760  ;;  %v13714_v2 = vpop.permute.xlu1 %5436 }
 0x664   : > { %7052 = vrot.lane.b32.xlu0 %v13412_v4, %s15617_s24 }
 0x665   : > { %7046 = vrot.lane.b32.xlu1 %v13358_v35, %s15617_s24 }
 0x666   : > { %v13720_v38 = vpop.permute.xlu0 %5870  ;;  %v13722_v50 = vpop.permute.xlu1 %5652 }
 0x668   : > { %7048 = vrot.lane.b32.xlu0 %v13464_v45, %s15617_s24 }
 0x669   : > { %7054 = vrot.lane.b32.xlu1 %v13418_v51, %s15617_s24 }
 0x66a   : > { %v13728_v19 = vpop.permute.xlu0 %5980  ;;  %v13730_v57 = vpop.permute.xlu1 %5762 }
 0x66c   : > { %7056 = vrot.lane.b32.xlu0 %v13543_v6, %s15617_s24 }
 0x66d   : > { %7050 = vrot.lane.b32.xlu1 %v13474_v43, %s15617_s24 }
 0x66e   : > { %v13736_v14 = vpop.permute.xlu0 %6090  ;;  %v13738_v40 = vpop.permute.xlu1 %5872 }
 0x66f   : > { %15618 = vst [vmem:[#allocation80_spill] sm:$0xff] %v13736_v14 }
 0x670   : > { %7154 = vrot.lane.b32.xlu0 %v13354_v5, %s15619_s25 }
 0x671   : > { %7058 = vrot.lane.b32.xlu1 %v13562_v10, %s15617_s24 }
 0x672   : > { %v13744_v61 = vpop.permute.xlu0 %6200  ;;  %v13746_v16 = vpop.permute.xlu1 %5982 }
 0x673   : > { %15620 = vst [vmem:[#allocation70_spill] sm:$0xff] %v13744_v61 }
 0x674   : > { %7162 = vrot.lane.b32.xlu0 %v13412_v4, %s15619_s25 }
 0x675   : > { %7156 = vrot.lane.b32.xlu1 %v13358_v35, %s15619_s25 }
 0x676   : > { %v13752_v31 = vpop.permute.xlu0 %6310  ;;  %v13754_v22 = vpop.permute.xlu1 %6092 }
 0x677   : > { %15621 = vst [vmem:[#allocation73_spill] sm:$0xff] %v13752_v31  ;;  %15622 = vst [vmem:[#allocation63_spill] sm:$0xff] %v13754_v22 }
 0x678   : > { %7158 = vrot.lane.b32.xlu0 %v13464_v45, %s15619_s25 }
 0x679   : > { %7164 = vrot.lane.b32.xlu1 %v13418_v51, %s15619_s25 }
 0x67a   : > { %v13760_v23 = vpop.permute.xlu0 %6420  ;;  %v13762_v59 = vpop.permute.xlu1 %6202 }
 0x67b   : > { %15623 = vst [vmem:[#allocation29_spill] sm:$0xff] %v13760_v23  ;;  %15624 = vst [vmem:[#allocation101_spill] sm:$0xff] %v13762_v59 }
 0x67c   : > { %7166 = vrot.lane.b32.xlu0 %v13543_v6, %s15619_s25 }
 0x67d   : > { %7160 = vrot.lane.b32.xlu1 %v13474_v43, %s15619_s25 }
 0x67e   : > { %v13768_v20 = vpop.permute.xlu0 %6530  ;;  %v13770_v31 = vpop.permute.xlu1 %6312 }
 0x67f   : > { %15625 = vst [vmem:[#allocation108_spill] sm:$0xff] %v13768_v20  ;;  %15626 = vst [vmem:[#allocation89_spill] sm:$0xff] %v13770_v31 }
 0x680   : > { %7264 = vrot.lane.b32.xlu0 %v13354_v5, %s15627_s26 }
 0x681   : > { %7168 = vrot.lane.b32.xlu1 %v13562_v10, %s15619_s25 }
 0x682   : > { %v13776_v33 = vpop.permute.xlu0 %6640  ;;  %v13778_v23 = vpop.permute.xlu1 %6422 }
 0x683   : > { %15628 = vst [vmem:[#allocation28_spill] sm:$0xff] %v13776_v33  ;;  %15629 = vst [vmem:[#allocation15_spill] sm:$0xff] %v13778_v23 }
 0x684   : > { %7272 = vrot.lane.b32.xlu0 %v13412_v4, %s15627_s26 }
 0x685   : > { %7266 = vrot.lane.b32.xlu1 %v13358_v35, %s15627_s26 }
 0x686   : > { %v5476_v61 = vpop.permute.xlu0 %5475  ;;  %v13784_v20 = vpop.permute.xlu1 %6532 }
 0x687   : > { %15630 = vst [vmem:[#allocation21_spill] sm:$0xff] %v13784_v20  ;;  %v5481_v33 = vsel %vm798_vm1, %v5468_v39, %v5476_v61  ;;  %v5485_v23 = vsel %vm798_vm1, %v5476_v61, %v5468_v39  ;;  %v5447_v20 = vsel %vm717_vm2, %v13496_v7, %v13614_v11 }
 0x688   : > { %7268 = vrot.lane.b32.xlu0 %v13464_v45, %s15627_s26  ;;  %v5491_v24 = vmul.f32 %v5485_v23, %v15602_v8  ;;  %v5492_v3 = vmul.f32 %v5481_v33, %v15603_v25  ;;  %v5457_v55 = vmul.f32 %v5447_v20, %v15632_v41 }
 0x689   : > { %7274 = vrot.lane.b32.xlu1 %v13418_v51, %s15627_s26 }
 0x68a   : > { %v5443_v31 = vpop.permute.xlu0 %5442  ;;  %v13790_v59 = vpop.permute.xlu1 %6642 }
 0x68b   : > { %15631 = vst [vmem:[#allocation9_spill] sm:$0xff] %v13790_v59 }
 0x68c   : > { %7276 = vrot.lane.b32.xlu0 %v13543_v6, %s15627_s26 }
 0x68d   : > { %7270 = vrot.lane.b32.xlu1 %v13474_v43, %s15627_s26 }
 0x68e   : > { %v13804_v54 = vpop.permute.xlu0 %5658  ;;  %v5478_v59 = vpop.permute.xlu1 %5477 }
 0x68f   : > { %v5482_v39 = vsel %vm798_vm1, %v5470_v32, %v5478_v59  ;;  %v5486_v61 = vsel %vm798_vm1, %v5478_v59, %v5470_v32  ;;  %v5451_v32 = vsel %vm717_vm2, %v13614_v11, %v13496_v7  ;;  %v5448_v11 = vsel %vm717_vm2, %v13700_v0, %v5443_v31 }
 0x690   : > { %v5493_v14 = vmul.f32 %v5486_v61, %v15602_v8  ;;  %v5494_v22 = vmul.f32 %v5482_v39, %v15603_v25  ;;  %7374 = vrot.lane.b32.xlu0 %v13354_v5, %s15633_s29  ;;  %v5455_v25 = vmul.f32 %v5446_v9, %v15632_v41  ;;  %v5450_v39 = vsel %vm717_vm2, %v13598_v56, %v13488_v30  ;;  %v15634_v61 = vld [vmem:[#allocation95_spill] sm:$0xff] }
 0x691   : > { %7278 = vrot.lane.b32.xlu1 %v13562_v10, %s15627_s26  ;;  %v5456_v60 = vmul.f32 %v5451_v32, %v15634_v61  ;;  %vm5497_vm1 = vcmask 261120   ;;  %v5459_v9 = vmul.f32 %v5448_v11, %v15632_v41  ;;  %v5662_v32 = vsel %vm1084_vm15, %v13494_v48, %v13612_v13  ;;  %s8532_s26 = sshll.u32 %s15792_s28, 3 }
 0x692   : > { %v8939_v23 = vpack.c.bf16 %v5493_v14, %v5491_v24  ;;  %v13827_v59 = vpop.permute.xlu0 %5768  ;;  %v5445_v33 = vpop.permute.xlu1 %5444  ;;  %v8937_v8 = vpack.c.bf16 %v5494_v22, %v5492_v3  ;;  %v8941_v22 = vpack.c.bf16 %v5457_v55, %v5455_v25  ;;  %v5454_v24 = vmul.f32 %v5450_v39, %v15634_v61  ;;  %v8480_v55 = vld [vmem:[%s15003_s5 + $0x4] sm:$0x7]  ;;  %s305_s9 = scalar_lea.vmem %s15006_s8, %s8532_s26 }
 0x693   : > { %v5449_v20 = vsel %vm717_vm2, %v13714_v2, %v5445_v33  ;;  %v5453_v3 = vsel %vm717_vm2, %v5445_v33, %v13714_v2  ;;  %v5663_v14 = vsel %vm1084_vm15, %v13504_v42, %v13622_v12  ;;  %v5452_v2 = vsel %vm717_vm2, %v5443_v31, %v13700_v0 }
 0x694   : > { %8938 = vmatprep.subr.bf16.mxu0 %v8937_v8  ;;  %7382 = vrot.lane.b32.xlu0 %v13412_v4, %s15633_s29  ;;  %v5461_v56 = vmul.f32 %v5449_v20, %v15632_v41  ;;  %v5460_v33 = vmul.f32 %v5453_v3, %v15634_v61  ;;  %v5667_v31 = vsel %vm1084_vm15, %v13622_v12, %v13504_v42 }
 0x695   : > { %7376 = vrot.lane.b32.xlu1 %v13358_v35, %s15633_s29  ;;  %8940 = vmatpush1.bf16.msra.mxu0 %v8939_v23  ;;  %v8943_v23 = vpack.c.bf16 %v5456_v60, %v5454_v24  ;;  %v5673_v41 = vmul.f32 %v5663_v14, %v13003_v47  ;;  %v5458_v25 = vmul.f32 %v5452_v2, %v15634_v61 }
 0x696   : > { %v13849_v30 = vpop.permute.xlu0 %5878  ;;  %v5661_v7 = vpop.permute.xlu1 %5660  ;;  %8942 = vmatprep.subr.bf16.mxu0 %v8941_v22  ;;  %v8945_v60 = vpack.c.bf16 %v5461_v56, %v5459_v9  ;;  %v5666_v42 = vsel %vm1084_vm15, %v13612_v13, %v13494_v48  ;;  %v5671_v12 = vmul.f32 %v5662_v32, %v13003_v47  ;;  %v5672_v39 = vmul.f32 %v5667_v31, %v13000_v15 }
 0x697   : > { %v5665_v20 = vsel %vm1084_vm15, %v13722_v50, %v5661_v7  ;;  %v5664_v61 = vsel %vm1084_vm15, %v13706_v58, %v13804_v54  ;;  %v8947_v11 = vpack.c.bf16 %v5460_v33, %v5458_v25  ;;  %v5669_v48 = vsel %vm1084_vm15, %v5661_v7, %v13722_v50  ;;  %v5462_v50 = vld [vmem:[%s15003_s5] sm:$0x7] }
 0x698   : > { %7378 = vrot.lane.b32.xlu0 %v13464_v45, %s15633_s29  ;;  %8481 = vmatmul.mubr.msk.f32.vlgmr.msra.gmra.mrb[24].mxu0 %vm5497_vm1, %v8480_v55  ;;  %v5677_v13 = vmul.f32 %v5665_v20, %v13003_v47  ;;  %v8949_v3 = vpack.c.bf16 %v5673_v41, %v5671_v12  ;;  %v5670_v56 = vmul.f32 %v5666_v42, %v13000_v15 }
 0x699   : > { %7384 = vrot.lane.b32.xlu1 %v13418_v51, %s15633_s29  ;;  %8944 = vmatpush1.bf16.msra.mxu0 %v8943_v23  ;;  %v5773_v24 = vsel %vm1276_vm14, %v13512_v21, %v13630_v37  ;;  %v5668_v7 = vsel %vm1084_vm15, %v13804_v54, %v13706_v58  ;;  %v5675_v55 = vmul.f32 %v5664_v61, %v13003_v47 }
 0x69a   : > { %v13878_v0 = vpop.permute.xlu0 %5988  ;;  %v5771_v8 = vpop.permute.xlu1 %5770  ;;  %8946 = vmatprep.subr.bf16.mxu0 %v8945_v60  ;;  %5639 = vmatprep.mubr.f32.mxu0 %v15405_v44  ;;  %v5772_v2 = vsel %vm1276_vm14, %v13502_v52, %v13620_v46  ;;  %v8951_v9 = vpack.c.bf16 %v5672_v39, %v5670_v56  ;;  %v5676_v32 = vmul.f32 %v5669_v48, %v13000_v15 }
 0x69b   : > { %v5777_v47 = vsel %vm1276_vm14, %v13630_v37, %v13512_v21  ;;  %v5783_v54 = vmul.f32 %v5773_v24, %v13175_v18  ;;  %v8953_v58 = vpack.c.bf16 %v5677_v13, %v5675_v55  ;;  %v5674_v23 = vmul.f32 %v5668_v7, %v13000_v15 }
 0x69c   : > { %7386 = vrot.lane.b32.xlu0 %v13543_v6, %s15633_s29  ;;  %v5775_v33 = vsel %vm1276_vm14, %v13730_v57, %v5771_v8  ;;  %v5776_v21 = vsel %vm1276_vm14, %v13620_v46, %v13502_v52  ;;  %v5781_v37 = vmul.f32 %v5772_v2, %v13175_v18  ;;  %v5782_v15 = vmul.f32 %v5777_v47, %v13172_v49 }
 0x69d   : > { %7380 = vrot.lane.b32.xlu1 %v13474_v43, %s15633_s29  ;;  %8948 = vmatpush1.bf16.msra.mxu0 %v8947_v11  ;;  %v5774_v60 = vsel %vm1276_vm14, %v13712_v29, %v13827_v59  ;;  %v8955_v25 = vpack.c.bf16 %v5676_v32, %v5674_v23  ;;  %v5779_v20 = vsel %vm1276_vm14, %v5771_v8, %v13730_v57  ;;  %v8483_v57 = vld [vmem:[%s15003_s5 + $0x8] sm:$0x7] }
 0x69e   : > { %v13902_v22 = vpop.permute.xlu0 %6098  ;;  %v13910_v14 = vpop.permute.xlu1 %5880  ;;  %8950 = vmatprep.subr.bf16.mxu0 %v8949_v3  ;;  %v5787_v52 = vmul.f32 %v5775_v33, %v13175_v18  ;;  %v8957_v46 = vpack.c.bf16 %v5783_v54, %v5781_v37  ;;  %v5780_v42 = vmul.f32 %v5776_v21, %v13172_v49  ;;  %v5883_v12 = vsel %vm1468_vm0, %v13520_v62, %v13638_v28 }
 0x69f   : > { %v5778_v8 = vsel %vm1276_vm14, %v13827_v59, %v13712_v29  ;;  %v5785_v11 = vmul.f32 %v5774_v60, %v13175_v18  ;;  %v5882_v48 = vsel %vm1468_vm0, %v13510_v34, %v13628_v26  ;;  %v5786_v3 = vmul.f32 %v5779_v20, %v13172_v49  ;;  %v15636_v29 = vld [vmem:[#allocation16_spill] sm:$0xff] }
 0x6a0   : > { %7484 = vrot.lane.b32.xlu0 %v13354_v5, %s15635_s13  ;;  %8482 = vmatmul.mubr.msk.f32.vlgmr.msra.gmra.mrb[24].mxu0 %vm5497_vm1, %v5462_v50  ;;  %v8959_v13 = vpack.c.bf16 %v5782_v15, %v5780_v42  ;;  %v5887_v56 = vsel %vm1468_vm0, %v13638_v28, %v13520_v62  ;;  %v5893_v59 = vmul.f32 %v5883_v12, %v15636_v29 }
 0x6a1   : > { %7388 = vrot.lane.b32.xlu1 %v13562_v10, %s15633_s29  ;;  %8952 = vmatpush1.bf16.msra.mxu0 %v8951_v9  ;;  %v8961_v18 = vpack.c.bf16 %v5787_v52, %v5785_v11  ;;  %v5784_v24 = vmul.f32 %v5778_v8, %v13172_v49  ;;  %v5885_v50 = vsel %vm1468_vm0, %v13738_v40, %v13910_v14  ;;  %v15637_v49 = vld [vmem:[#allocation19_spill] sm:$0xff]  ;;  %s15669_s29 = smov 96  }
 0x6a2   : > { %v13939_v31 = vpop.permute.xlu0 %6208  ;;  %5747 = vmatprep.mubr.f32.mxu0 %v15405_v44  ;;  %8954 = vmatprep.subr.bf16.mxu0 %v8953_v58  ;;  %v5886_v62 = vsel %vm1468_vm0, %v13628_v26, %v13510_v34  ;;  %v5891_v28 = vmul.f32 %v5882_v48, %v15636_v29  ;;  %v5892_v2 = vmul.f32 %v5887_v56, %v15637_v49  ;;  %v15641_v56 = vld [vmem:[#allocation24_spill] sm:$0xff] }
 0x6a3   : > { %v13941_v41 = vpop.permute.xlu1 %5990  ;;  %v5884_v9 = vsel %vm1468_vm0, %v13720_v38, %v13849_v30  ;;  %v8963_v32 = vpack.c.bf16 %v5786_v3, %v5784_v24  ;;  %v5889_v47 = vsel %vm1468_vm0, %v13910_v14, %v13738_v40  ;;  %v5897_v34 = vmul.f32 %v5885_v50, %v15636_v29  ;;  %v8485_v40 = vld [vmem:[%s15003_s5 + $0xc] sm:$0x7] }
 0x6a4   : > { %7492 = vrot.lane.b32.xlu0 %v13412_v4, %s15635_s13  ;;  %v8965_v26 = vpack.c.bf16 %v5893_v59, %v5891_v28  ;;  %v5890_v54 = vmul.f32 %v5886_v62, %v15637_v49  ;;  %v5993_v58 = vsel %vm1660_vm3, %v13528_v17, %v13646_v1  ;;  %v5888_v14 = vsel %vm1468_vm0, %v13849_v30, %v13720_v38  ;;  %v15639_v38 = vld [vmem:[#allocation98_spill] sm:$0xff]  ;;  %v15642_v50 = vld [vmem:[#allocation39_spill] sm:$0xff] }
 0x6a5   : > { %7486 = vrot.lane.b32.xlu1 %v13358_v35, %s15635_s13  ;;  %8956 = vmatpush1.bf16.msra.mxu0 %v8955_v25  ;;  %v5895_v21 = vmul.f32 %v5884_v9, %v15636_v29  ;;  %v5992_v37 = vsel %vm1660_vm3, %v13518_v36, %v13636_v63  ;;  %v5896_v60 = vmul.f32 %v5889_v47, %v15637_v49  ;;  %v15643_v62 = vld [vmem:[#allocation106_spill] sm:$0xff]  ;;  %vm15699_vm0 = vcmp.lt.s32.totalorder %v9904_v53, 114 }
 0x6a6   : > { %v13967_v39 = vpop.permute.xlu0 %6318  ;;  %8958 = vmatprep.subr.bf16.mxu0 %v8957_v46  ;;  %v8967_v15 = vpack.c.bf16 %v5892_v2, %v5890_v54  ;;  %v5997_v25 = vsel %vm1660_vm3, %v13646_v1, %v13528_v17  ;;  %v6003_v30 = vmul.f32 %v5993_v58, %v15639_v38  ;;  %v5894_v52 = vmul.f32 %v5888_v14, %v15637_v49  ;;  %v15646_v14 = vld [vmem:[#allocation100_spill] sm:$0xff]  ;;  %vm15700_vm2 = vmmov %vm15699_vm0 }
 0x6a7   : > { %v13969_v61 = vpop.permute.xlu1 %6100  ;;  %v8969_v20 = vpack.c.bf16 %v5897_v34, %v5895_v21  ;;  %v5995_v46 = vsel %vm1660_vm3, %v13746_v16, %v13941_v41  ;;  %v5996_v17 = vsel %vm1660_vm3, %v13636_v63, %v13518_v36  ;;  %v6001_v1 = vmul.f32 %v5992_v37, %v15639_v38  ;;  %v15645_v34 = vld [vmem:[#allocation63_spill] sm:$0xff]  ;;  %v15647_v37 = vld [vmem:[#allocation80_spill] sm:$0xff]  ;;  %vm15706_vm6 = vmmov %vm15699_vm0 }
 0x6a8   : > { %7488 = vrot.lane.b32.xlu0 %v13464_v45, %s15635_s13  ;;  %8484 = vmatmul.mubr.msk.f32.vlgmr.msra.gmra.mrb[24].mxu0 %vm5497_vm1, %v8483_v57  ;;  %v15640_v57 = vld [vmem:[#allocation97_spill] sm:$0xff]  ;;  %v5994_v11 = vsel %vm1660_vm3, %v13728_v19, %v13878_v0  ;;  %v8971_v48 = vpack.c.bf16 %v5896_v60, %v5894_v52  ;;  %v6007_v36 = vmul.f32 %v5995_v46, %v15639_v38  ;;  %v15648_v52 = vld [vmem:[#allocation88_spill] sm:$0xff]  ;;  %v15649_v46 = vld [vmem:[#allocation18_spill] sm:$0xff] }
 0x6a9   : > { %7494 = vrot.lane.b32.xlu1 %v13418_v51, %s15635_s13  ;;  %8960 = vmatpush1.bf16.msra.mxu0 %v8959_v13  ;;  %v6002_v8 = vmul.f32 %v5997_v25, %v15640_v57  ;;  %v5999_v13 = vsel %vm1660_vm3, %v13941_v41, %v13746_v16  ;;  %v8973_v63 = vpack.c.bf16 %v6003_v30, %v6001_v1  ;;  %v8487_v16 = vld [vmem:[%s15003_s5 + $0x10] sm:$0x7] }
 0x6aa   : > { %v13999_v7 = vpop.permute.xlu0 %6428  ;;  %5857 = vmatprep.mubr.f32.mxu0 %v15405_v44  ;;  %8962 = vmatprep.subr.bf16.mxu0 %v8961_v18  ;;  %v6000_v3 = vmul.f32 %v5996_v17, %v15640_v57  ;;  %v6103_v29 = vsel %vm1852_vm4, %v15641_v56, %v13654_v27  ;;  %v5998_v41 = vsel %vm1660_vm3, %v13878_v0, %v13728_v19  ;;  %v15644_v19 = vld [vmem:[#allocation102_spill] sm:$0xff]  ;;  %vm15701_vm3 = vmmov %vm15699_vm0 }
 0x6ab   : > { %v14001_v55 = vpop.permute.xlu1 %6210  ;;  %v6005_v24 = vmul.f32 %v5994_v11, %v15639_v38  ;;  %v6102_v28 = vsel %vm1852_vm4, %v15643_v62, %v15642_v50  ;;  %v6006_v2 = vmul.f32 %v5999_v13, %v15640_v57  ;;  %v6107_v9 = vsel %vm1852_vm4, %v13654_v27, %v15641_v56  ;;  %v15651_v13 = vld [vmem:[#allocation87_spill] sm:$0xff] }
 0x6ac   : > { %7496 = vrot.lane.b32.xlu0 %v13543_v6, %s15635_s13  ;;  %v8975_v49 = vpack.c.bf16 %v6002_v8, %v6000_v3  ;;  %v6113_v0 = vmul.f32 %v6103_v29, %v15644_v19  ;;  %v6004_v47 = vmul.f32 %v5998_v41, %v15640_v57  ;;  %v6106_v27 = vsel %vm1852_vm4, %v15642_v50, %v15643_v62 }
 0x6ad   : > { %7490 = vrot.lane.b32.xlu1 %v13474_v43, %s15635_s13  ;;  %8964 = vmatpush1.bf16.msra.mxu0 %v8963_v32  ;;  %v8977_v32 = vpack.c.bf16 %v6007_v36, %v6005_v24  ;;  %v6112_v21 = vmul.f32 %v6107_v9, %v15646_v14  ;;  %v6109_v25 = vsel %vm1852_vm4, %v13969_v61, %v15645_v34  ;;  %v15654_v24 = vld [vmem:[#allocation101_spill] sm:$0xff]  ;;  %v15655_v9 = vld [vmem:[#allocation103_spill] sm:$0xff] }
 0x6ae   : > { %v14028_v23 = vpop.permute.xlu0 %6538  ;;  %8966 = vmatprep.subr.bf16.mxu0 %v8965_v26  ;;  %v6105_v26 = vsel %vm1852_vm4, %v15645_v34, %v13969_v61  ;;  %v8979_v60 = vpack.c.bf16 %v6006_v2, %v6004_v47  ;;  %v6213_v17 = vsel %vm2044_vm5, %v15649_v46, %v15648_v52  ;;  %v8489_v61 = vld [vmem:[%s15003_s5 + $0x14] sm:$0x7]  ;;  %v6108_v8 = vsel %vm1852_vm4, %v13902_v22, %v15647_v37 }
 0x6af   : > { %v14030_v33 = vpop.permute.xlu1 %6320  ;;  %v6117_v38 = vmul.f32 %v6105_v26, %v15644_v19  ;;  %v6116_v3 = vmul.f32 %v6109_v25, %v15646_v14  ;;  %v6217_v56 = vsel %vm2044_vm5, %v15648_v52, %v15649_v46  ;;  %v6114_v41 = vmul.f32 %v6108_v8, %v15646_v14 }
 0x6b0   : > { %7594 = vrot.lane.b32.xlu0 %v13354_v5, %s15638_s21  ;;  %8486 = vmatmul.mubr.msk.f32.vlgmr.msra.gmra.mrb[24].mxu0 %vm5497_vm1, %v8485_v40  ;;  %v6111_v40 = vmul.f32 %v6102_v28, %v15644_v19  ;;  %v6215_v50 = vsel %vm2044_vm5, %v15654_v24, %v14001_v55  ;;  %v6219_v34 = vsel %vm2044_vm5, %v14001_v55, %v15654_v24  ;;  %v8491_v55 = vld [vmem:[%s15003_s5 + $0x18] sm:$0x7] }
 0x6b1   : > { %7498 = vrot.lane.b32.xlu1 %v13562_v10, %s15635_s13  ;;  %8968 = vmatpush1.bf16.msra.mxu0 %v8967_v15  ;;  %v6104_v15 = vsel %vm1852_vm4, %v15647_v37, %v13902_v22  ;;  %v15653_v22 = vld [vmem:[#allocation105_spill] sm:$0xff]  ;;  %v8987_v47 = vpack.c.bf16 %v6116_v3, %v6114_v41  ;;  %s15686_s13 = smov 95   ;;  %vm15703_vm4 = vmmov %vm15699_vm0 }
 0x6b2   : > { %v14060_v42 = vpop.permute.xlu0 %6648  ;;  %5967 = vmatprep.mubr.f32.mxu0 %v15405_v44  ;;  %8970 = vmatprep.subr.bf16.mxu0 %v8969_v20  ;;  %v8981_v30 = vpack.c.bf16 %v6113_v0, %v6111_v40  ;;  %v6110_v20 = vmul.f32 %v6106_v27, %v15646_v14  ;;  %v6115_v11 = vmul.f32 %v6104_v15, %v15644_v19  ;;  %v15656_v0 = vld [vmem:[#allocation70_spill] sm:$0xff]  ;;  %v15657_v14 = vld [vmem:[#allocation12_spill] sm:$0xff]  ;;  %v15664_v41 = vld [vmem:[#allocation73_spill] sm:$0xff] }
 0x6b3   : > { %v14062_v12 = vpop.permute.xlu1 %6430  ;;  %v6223_v29 = vmul.f32 %v6213_v17, %v15653_v22  ;;  %v6222_v19 = vmul.f32 %v6217_v56, %v15655_v9  ;;  %v6227_v26 = vmul.f32 %v6215_v50, %v15653_v22  ;;  %v6218_v25 = vsel %vm2044_vm5, %v13939_v31, %v15656_v0 }
 0x6b4   : > { %7602 = vrot.lane.b32.xlu0 %v13412_v4, %s15638_s21  ;;  %v6226_v17 = vmul.f32 %v6219_v34, %v15655_v9  ;;  %v6324_v24 = vsel %vm2236_vm7, %v15664_v41, %v13967_v39 }
 0x6b5   : > { %7596 = vrot.lane.b32.xlu1 %v13358_v35, %s15638_s21  ;;  %8972 = vmatpush1.bf16.msra.mxu0 %v8971_v48  ;;  %v15650_v48 = vld [vmem:[#allocation94_spill] sm:$0xff] }
 0x6b6   : > { %v14089_v59 = vpop.permute.xlu0 %6832  ;;  %8974 = vmatprep.subr.bf16.mxu0 %v8973_v63  ;;  %v6212_v36 = vsel %vm2044_vm5, %v15651_v13, %v15650_v48  ;;  %v8983_v63 = vpack.c.bf16 %v6112_v21, %v6110_v20  ;;  %v15658_v21 = vld [vmem:[#allocation54_spill] sm:$0xff]  ;;  %v15660_v20 = vld [vmem:[#allocation11_spill] sm:$0xff] }
 0x6b7   : > { %v14091_v18 = vpop.permute.xlu1 %6540  ;;  %v6221_v2 = vmul.f32 %v6212_v36, %v15653_v22  ;;  %v6323_v37 = vsel %vm2236_vm7, %v15658_v21, %v15657_v14 }
 0x6b8   : > { %7598 = vrot.lane.b32.xlu0 %v13464_v45, %s15638_s21  ;;  %8488 = vmatmul.mubr.msk.f32.vlgmr.msra.gmra.mrb[24].mxu0 %vm5497_vm1, %v8487_v16  ;;  %v8985_v16 = vpack.c.bf16 %v6117_v38, %v6115_v11 }
 0x6b9   : > { %7604 = vrot.lane.b32.xlu1 %v13418_v51, %s15638_s21  ;;  %8976 = vmatpush1.bf16.msra.mxu0 %v8975_v49  ;;  %v6216_v49 = vsel %vm2044_vm5, %v15650_v48, %v15651_v13  ;;  %v8989_v27 = vpack.c.bf16 %v6223_v29, %v6221_v2  ;;  %v6224_v48 = vmul.f32 %v6218_v25, %v15655_v9  ;;  %v15662_v13 = vld [vmem:[#allocation89_spill] sm:$0xff]  ;;  %v15663_v29 = vld [vmem:[#allocation86_spill] sm:$0xff] }
 0x6ba   : > { %v14121_v54 = vpop.permute.xlu0 %6828  ;;  %6077 = vmatprep.mubr.f32.mxu0 %v15405_v44  ;;  %8978 = vmatprep.subr.bf16.mxu0 %v8977_v32  ;;  %v6214_v32 = vsel %vm2044_vm5, %v15656_v0, %v13939_v31  ;;  %v6220_v40 = vmul.f32 %v6216_v49, %v15655_v9  ;;  %v15661_v31 = vld [vmem:[#allocation31_spill] sm:$0xff]  ;;  %v6325_v36 = vsel %vm2236_vm7, %v15662_v13, %v14030_v33  ;;  %v15665_v0 = vld [vmem:[#allocation8_spill] sm:$0xff]  ;;  %vm15704_vm5 = vmmov %vm15699_vm0 }
 0x6bb   : > { %v14123_v58 = vpop.permute.xlu1 %6650  ;;  %v6225_v38 = vmul.f32 %v6214_v32, %v15653_v22  ;;  %v6333_v8 = vmul.f32 %v6323_v37, %v15661_v31  ;;  %v8995_v50 = vpack.c.bf16 %v6226_v17, %v6224_v48  ;;  %v6329_v49 = vsel %vm2236_vm7, %v14030_v33, %v15662_v13  ;;  %v15666_v32 = vld [vmem:[#allocation46_spill] sm:$0xff]  ;;  %v8493_v33 = vld [vmem:[%s15003_s5 + $0x1c] sm:$0x7]  ;;  %v15672_v48 = vld [vmem:[#allocation36_spill] sm:$0xff] }
 0x6bc   : > { %7606 = vrot.lane.b32.xlu0 %v13543_v6, %s15638_s21  ;;  %v8991_v46 = vpack.c.bf16 %v6222_v19, %v6220_v40  ;;  %v6337_v2 = vmul.f32 %v6325_v36, %v15661_v31  ;;  %v6335_v40 = vmul.f32 %v6324_v24, %v15661_v31  ;;  %v6336_v25 = vmul.f32 %v6329_v49, %v15663_v29  ;;  %v15673_v36 = vld [vmem:[#allocation29_spill] sm:$0xff]  ;;  %v15675_v49 = vld [vmem:[#allocation79_spill] sm:$0xff] }
 0x6bd   : > { %7600 = vrot.lane.b32.xlu1 %v13474_v43, %s15638_s21  ;;  %8980 = vmatpush1.bf16.msra.mxu0 %v8979_v60  ;;  %v8993_v11 = vpack.c.bf16 %v6227_v26, %v6225_v38  ;;  %v6437_v38 = vsel %vm2428_vm8, %v15665_v0, %v15666_v32 }
 0x6be   : > { %v14150_v1 = vpop.permute.xlu0 %6836  ;;  %8982 = vmatprep.subr.bf16.mxu0 %v8981_v30  ;;  %v15659_v30 = vld [vmem:[#allocation107_spill] sm:$0xff]  ;;  %v6442_v13 = vmul.f32 %v6437_v38, %v15672_v48  ;;  %v15679_v38 = vld [vmem:[#allocation21_spill] sm:$0xff] }
 0x6bf   : > { %v14152_v57 = vpop.permute.xlu1 %6830  ;;  %v6322_v52 = vsel %vm2236_vm7, %v15660_v20, %v15659_v30  ;;  %v6326_v56 = vsel %vm2236_vm7, %v15659_v30, %v15660_v20  ;;  %v9001_v20 = vpack.c.bf16 %v6337_v2, %v6335_v40 }
 0x6c0   : > { %7704 = vrot.lane.b32.xlu0 %v13354_v5, %s15652_s18  ;;  %8490 = vmatmul.mubr.msk.f32.vlgmr.msra.gmra.mrb[24].mxu0 %vm5497_vm1, %v8489_v61  ;;  %v6327_v61 = vsel %vm2236_vm7, %v15657_v14, %v15658_v21  ;;  %v6331_v22 = vmul.f32 %v6322_v52, %v15661_v31  ;;  %v6330_v19 = vmul.f32 %v6326_v56, %v15663_v29  ;;  %v15667_v14 = vld [vmem:[#allocation27_spill] sm:$0xff] }
 0x6c1   : > { %7608 = vrot.lane.b32.xlu1 %v13562_v10, %s15638_s21  ;;  %8984 = vmatpush1.bf16.msra.mxu0 %v8983_v63  ;;  %v15668_v21 = vld [vmem:[#allocation7_spill] sm:$0xff]  ;;  %v6434_v56 = vsel %vm2428_vm8, %v15673_v36, %v13999_v7  ;;  %s15694_s21 = smov 94  }
 0x6c2   : > { %v14182_v62 = vpop.permute.xlu0 %6934  ;;  %6187 = vmatprep.mubr.f32.mxu0 %v15405_v44  ;;  %8986 = vmatprep.subr.bf16.mxu0 %v8985_v16  ;;  %v6332_v16 = vmul.f32 %v6327_v61, %v15663_v29  ;;  %v8997_v9 = vpack.c.bf16 %v6333_v8, %v6331_v22  ;;  %v6432_v37 = vsel %vm2428_vm8, %v15668_v21, %v15667_v14 }
 0x6c3   : > { %v14184_v28 = vpop.permute.xlu1 %6838  ;;  %v6436_v8 = vsel %vm2428_vm8, %v15667_v14, %v15668_v21 }
 0x6c4   : > { %7712 = vrot.lane.b32.xlu0 %v13412_v4, %s15652_s18  ;;  %v6440_v24 = vmul.f32 %v6436_v8, %v15672_v48 }
 0x6c5   : > { %7706 = vrot.lane.b32.xlu1 %v13358_v35, %s15652_s18  ;;  %8988 = vmatpush1.bf16.msra.mxu0 %v8987_v47  ;;  %v6433_v47 = vsel %vm2428_vm8, %v15666_v32, %v15665_v0  ;;  %v6438_v0 = vsel %vm2428_vm8, %v13999_v7, %v15673_v36  ;;  %v15678_v7 = vld [vmem:[#allocation58_spill] sm:$0xff]  ;;  %v6549_v36 = vsel %vm2620_vm9, %v14091_v18, %v15679_v38 }
 0x6c6   : > { %v14211_v15 = vpop.permute.xlu0 %6942  ;;  %8990 = vmatprep.subr.bf16.mxu0 %v8989_v27  ;;  %v6328_v27 = vsel %vm2236_vm7, %v13967_v39, %v15664_v41  ;;  %v15670_v39 = vld [vmem:[#allocation82_spill] sm:$0xff]  ;;  %v9007_v40 = vpack.c.bf16 %v6442_v13, %v6440_v24  ;;  %vm15707_vm7 = vmmov %vm15699_vm0 }
 0x6c7   : > { %v14213_v60 = vpop.permute.xlu1 %6936  ;;  %v6443_v30 = vmul.f32 %v6433_v47, %v15670_v39  ;;  %v6334_v52 = vmul.f32 %v6328_v27, %v15663_v29  ;;  %v6445_v32 = vmul.f32 %v6434_v56, %v15670_v39  ;;  %v15676_v47 = vld [vmem:[#allocation20_spill] sm:$0xff] }
 0x6c8   : > { %7708 = vrot.lane.b32.xlu0 %v13464_v45, %s15652_s18  ;;  %8492 = vmatmul.mubr.msk.f32.vlgmr.msra.gmra.mrb[24].mxu0 %vm5497_vm1, %v8491_v55  ;;  %v8999_v55 = vpack.c.bf16 %v6332_v16, %v6330_v19 }
 0x6c9   : > { %7714 = vrot.lane.b32.xlu1 %v13418_v51, %s15652_s18  ;;  %8992 = vmatpush1.bf16.msra.mxu0 %v8991_v46  ;;  %v15671_v46 = vld [vmem:[#allocation15_spill] sm:$0xff]  ;;  %v9003_v22 = vpack.c.bf16 %v6336_v25, %v6334_v52  ;;  %v6444_v25 = vmul.f32 %v6438_v0, %v15672_v48 }
 0x6ca   : > { %v14243_v63 = vpop.permute.xlu0 %6938  ;;  %6297 = vmatprep.mubr.f32.mxu0 %v15405_v44  ;;  %8994 = vmatprep.subr.bf16.mxu0 %v8993_v11  ;;  %v6435_v17 = vsel %vm2428_vm8, %v15671_v46, %v14062_v12  ;;  %v6441_v11 = vmul.f32 %v6432_v37, %v15670_v39  ;;  %v6439_v29 = vsel %vm2428_vm8, %v14062_v12, %v15671_v46  ;;  %v8495_v12 = vld [vmem:[%s15003_s5 + $0x20] sm:$0x7]  ;;  %v15684_v0 = vld [vmem:[#allocation55_spill] sm:$0xff]  ;;  %vm15708_vm8 = vcmp.lt.s32.totalorder %v9904_v53, 113 }
 0x6cb   : > { %v14245_v3 = vpop.permute.xlu1 %6944  ;;  %v6447_v16 = vmul.f32 %v6435_v17, %v15670_v39  ;;  %v6446_v14 = vmul.f32 %v6439_v29, %v15672_v48  ;;  %v6545_v39 = vsel %vm2620_vm9, %v15679_v38, %v14091_v18  ;;  %v15680_v17 = vld [vmem:[#allocation90_spill] sm:$0xff]  ;;  %vm15714_vm14 = vmmov %vm15708_vm8 }
 0x6cc   : > { %7716 = vrot.lane.b32.xlu0 %v13543_v6, %s15652_s18  ;;  %v9005_v41 = vpack.c.bf16 %v6443_v30, %v6441_v11  ;;  %v15681_v11 = vld [vmem:[#allocation108_spill] sm:$0xff]  ;;  %v6557_v56 = vmul.f32 %v6545_v39, %v15678_v7  ;;  %v8497_v18 = vld [vmem:[%s15003_s5 + $0x24] sm:$0x7]  ;;  %vm15716_vm15 = vmmov %vm15708_vm8 }
 0x6cd   : > { %7710 = vrot.lane.b32.xlu1 %v13474_v43, %s15652_s18  ;;  %8996 = vmatpush1.bf16.msra.mxu0 %v8995_v50  ;;  %v15674_v50 = vld [vmem:[#allocation42_spill] sm:$0xff]  ;;  %v6544_v48 = vsel %vm2620_vm9, %v15681_v11, %v14028_v23  ;;  %v9011_v13 = vpack.c.bf16 %v6446_v14, %v6444_v25 }
 0x6ce   : > { %v14272_v34 = vpop.permute.xlu0 %6946  ;;  %8998 = vmatprep.subr.bf16.mxu0 %v8997_v9  ;;  %v6543_v2 = vsel %vm2620_vm9, %v15675_v49, %v15674_v50  ;;  %v6547_v21 = vsel %vm2620_vm9, %v15674_v50, %v15675_v49 }
 0x6cf   : > { %v14274_v26 = vpop.permute.xlu1 %6940  ;;  %v6553_v37 = vmul.f32 %v6543_v2, %v15678_v7  ;;  %v6552_v8 = vmul.f32 %v6547_v21, %v15680_v17  ;;  %v6548_v2 = vsel %vm2620_vm9, %v14028_v23, %v15681_v11  ;;  %v15687_v23 = vld [vmem:[#allocation56_spill] sm:$0xff] }
 0x6d0   : > { %7814 = vrot.lane.b32.xlu0 %v13354_v5, %s15669_s29  ;;  %8494 = vmatmul.mubr.msk.f32.vlgmr.msra.gmra.mrb[24].mxu0 %vm5497_vm1, %v8493_v33  ;;  %v15677_v33 = vld [vmem:[#allocation40_spill] sm:$0xff] }
 0x6d1   : > { %7718 = vrot.lane.b32.xlu1 %v13562_v10, %s15652_s18  ;;  %9000 = vmatpush1.bf16.msra.mxu0 %v8999_v55  ;;  %v6542_v27 = vsel %vm2620_vm9, %v15677_v33, %v15676_v47  ;;  %v9009_v55 = vpack.c.bf16 %v6447_v16, %v6445_v32  ;;  %v6546_v52 = vsel %vm2620_vm9, %v15676_v47, %v15677_v33  ;;  %v15682_v16 = vld [vmem:[#allocation48_spill] sm:$0xff]  ;;  %v15685_v32 = vld [vmem:[#allocation33_spill] sm:$0xff]  ;;  %vm15709_vm9 = vmmov %vm15699_vm0 }
 0x6d2   : > { %v14304_v61 = vpop.permute.xlu0 %7044  ;;  %6407 = vmatprep.mubr.f32.mxu0 %v15405_v44  ;;  %9002 = vmatprep.subr.bf16.mxu0 %v9001_v20  ;;  %v6551_v46 = vmul.f32 %v6542_v27, %v15678_v7  ;;  %v6550_v29 = vmul.f32 %v6546_v52, %v15680_v17  ;;  %v6652_v47 = vsel %vm2812_vm10, %v15685_v32, %v15684_v0 }
 0x6d3   : > { %v14306_v31 = vpop.permute.xlu1 %6948  ;;  %v6556_v27 = vmul.f32 %v6549_v36, %v15680_v17  ;;  %v6656_v39 = vsel %vm2812_vm10, %v15684_v0, %v15685_v32  ;;  %v6661_v52 = vmul.f32 %v6652_v47, %v15687_v23 }
 0x6d4   : > { %7822 = vrot.lane.b32.xlu0 %v13412_v4, %s15669_s29  ;;  %v9015_v33 = vpack.c.bf16 %v6552_v8, %v6550_v29  ;;  %v15690_v8 = vld [vmem:[#allocation28_spill] sm:$0xff] }
 0x6d5   : > { %7816 = vrot.lane.b32.xlu1 %v13358_v35, %s15669_s29  ;;  %9004 = vmatpush1.bf16.msra.mxu0 %v9003_v22  ;;  %v9013_v22 = vpack.c.bf16 %v6553_v37, %v6551_v46  ;;  %v15688_v37 = vld [vmem:[#allocation9_spill] sm:$0xff]  ;;  %v15689_v46 = vld [vmem:[#allocation84_spill] sm:$0xff]  ;;  %v6654_v11 = vsel %vm2812_vm10, %v15690_v8, %v14060_v42 }
 0x6d6   : > { %v14333_v9 = vpop.permute.xlu0 %7052  ;;  %9006 = vmatprep.subr.bf16.mxu0 %v9005_v41  ;;  %v15683_v41 = vld [vmem:[#allocation72_spill] sm:$0xff] }
 0x6d7   : > { %v14335_v19 = vpop.permute.xlu1 %7046  ;;  %v6653_v24 = vsel %vm2812_vm10, %v15683_v41, %v15682_v16 }
 0x6d8   : > { %7818 = vrot.lane.b32.xlu0 %v13464_v45, %s15669_s29  ;;  %8496 = vmatmul.mubr.msk.f32.vlgmr.msra.gmra.mrb[24].mxu0 %vm5497_vm1, %v8495_v12  ;;  %v6555_v12 = vmul.f32 %v6544_v48, %v15678_v7  ;;  %v6663_v14 = vmul.f32 %v6653_v24, %v15687_v23  ;;  %v6554_v7 = vmul.f32 %v6548_v2, %v15680_v17 }
 0x6d9   : > { %7824 = vrot.lane.b32.xlu1 %v13418_v51, %s15669_s29  ;;  %9008 = vmatpush1.bf16.msra.mxu0 %v9007_v40  ;;  %v6657_v40 = vsel %vm2812_vm10, %v15682_v16, %v15683_v41  ;;  %v8499_v41 = vld [vmem:[%s15003_s5 + $0x28] sm:$0x7]  ;;  %v6665_v24 = vmul.f32 %v6654_v11, %v15687_v23 }
 0x6da   : > { %v14365_v30 = vpop.permute.xlu0 %7048  ;;  %6517 = vmatprep.mubr.f32.mxu0 %v15405_v44  ;;  %9010 = vmatprep.subr.bf16.mxu0 %v9009_v55  ;;  %v9017_v21 = vpack.c.bf16 %v6557_v56, %v6555_v12  ;;  %v6655_v55 = vsel %vm2812_vm10, %v15688_v37, %v14123_v58  ;;  %v6662_v17 = vmul.f32 %v6657_v40, %v15689_v46 }
 0x6db   : > { %v14367_v20 = vpop.permute.xlu1 %7054  ;;  %v9019_v48 = vpack.c.bf16 %v6556_v27, %v6554_v7  ;;  %v6667_v36 = vmul.f32 %v6655_v55, %v15687_v23  ;;  %v9021_v56 = vpack.c.bf16 %v6663_v14, %v6661_v52  ;;  %v15691_v27 = vld [vmem:[#allocation68_spill] sm:$0xff]  ;;  %v15692_v7 = vld [vmem:[#allocation62_spill] sm:$0xff] }
 0x6dc   : > { %7826 = vrot.lane.b32.xlu0 %v13543_v6, %s15669_s29  ;;  %v6844_v40 = vsel %vm3118_vm11, %v14089_v59, %v15691_v27  ;;  %v6840_v52 = vsel %vm3118_vm11, %v15691_v27, %v14089_v59  ;;  %v6954_v27 = vsel %vm3310_vm12, %v14211_v15, %v14182_v62 }
 0x6dd   : > { %7820 = vrot.lane.b32.xlu1 %v13474_v43, %s15669_s29  ;;  %9012 = vmatpush1.bf16.msra.mxu0 %v9011_v13  ;;  %v6659_v13 = vsel %vm2812_vm10, %v14123_v58, %v15688_v37  ;;  %v6658_v58 = vsel %vm2812_vm10, %v14060_v42, %v15690_v8  ;;  %v9025_v12 = vpack.c.bf16 %v6667_v36, %v6665_v24  ;;  %v15693_v37 = vld [vmem:[#allocation34_spill] sm:$0xff]  ;;  %v15696_v36 = vld [vmem:[#allocation76_spill] sm:$0xff]  ;;  %vm15710_vm10 = vmmov %vm15708_vm8 }
 0x6de   : > { %v14394_v50 = vpop.permute.xlu0 %7056  ;;  %9014 = vmatprep.subr.bf16.mxu0 %v9013_v22  ;;  %v6660_v22 = vmul.f32 %v6656_v39, %v15689_v46  ;;  %v6666_v2 = vmul.f32 %v6659_v13, %v15689_v46  ;;  %v6664_v0 = vmul.f32 %v6658_v58, %v15689_v46  ;;  %v6845_v55 = vsel %vm3118_vm11, %v15693_v37, %v15692_v7  ;;  %v15695_v46 = vld [vmem:[#allocation81_spill] sm:$0xff] }
 0x6df   : > { %v14396_v49 = vpop.permute.xlu1 %7050  ;;  %v9031_v39 = vpack.c.bf16 %v13358_v35, %v13354_v5  ;;  %v9033_v8 = vpack.c.bf16 %v13562_v10, %v13543_v6  ;;  %v6841_v59 = vsel %vm3118_vm11, %v15692_v7, %v15693_v37  ;;  %v6851_v13 = vmul.f32 %v6845_v55, %v15695_v46 }
 0x6e0   : > { %7924 = vrot.lane.b32.xlu0 %v13354_v5, %s15686_s13  ;;  %8498 = vmatmul.mubr.msk.f32.vlgmr.msra.gmra.mrb[24].mxu0 %vm5497_vm1, %v8497_v18  ;;  %v9023_v18 = vpack.c.bf16 %v6662_v17, %v6660_v22  ;;  %v9027_v47 = vpack.c.bf16 %v6666_v2, %v6664_v0  ;;  %v6849_v17 = vmul.f32 %v6844_v40, %v15695_v46 }
 0x6e1   : > { %7828 = vrot.lane.b32.xlu1 %v13562_v10, %s15669_s29  ;;  %9016 = vmatpush1.bf16.msra.mxu0 %v9015_v33  ;;  %v9029_v33 = vpack.c.bf16 %v13418_v51, %v13412_v4  ;;  %v6846_v22 = vsel %vm3118_vm11, %v14150_v1, %v14121_v54  ;;  %v6843_v58 = vsel %vm3118_vm11, %v14152_v57, %v14184_v28 }
 0x6e2   : > { %v14426_v25 = vpop.permute.xlu0 %7154  ;;  %6627 = vmatprep.mubr.f32.mxu0 %v15405_v44  ;;  %9018 = vmatprep.subr.bf16.mxu0 %v9017_v21  ;;  %v8501_v21 = vld [vmem:[%s15003_s5 + $0x2c] sm:$0x7]  ;;  %v6850_v2 = vmul.f32 %v6841_v59, %v15696_v36  ;;  %v6951_v40 = vsel %vm3310_vm12, %v14213_v60, %v14245_v3 }
 0x6e3   : > { %v14428_v38 = vpop.permute.xlu1 %7058 }
 0x6e4   : > { %7932 = vrot.lane.b32.xlu0 %v13412_v4, %s15686_s13 }
 0x6e5   : > { %7926 = vrot.lane.b32.xlu1 %v13358_v35, %s15686_s13  ;;  %9020 = vmatpush1.bf16.msra.mxu0 %v9019_v48 }
 0x6e6   : > { %v14451_v29 = vpop.permute.xlu0 %7162  ;;  %9022 = vmatprep.subr.bf16.mxu0 %v9021_v56  ;;  %v6848_v56 = vmul.f32 %v6840_v52, %v15696_v36 }
 0x6e7   : > { %v14453_v16 = vpop.permute.xlu1 %7156 }
 0x6e8   : > { %7928 = vrot.lane.b32.xlu0 %v13464_v45, %s15686_s13  ;;  %8500 = vmatmul.mubr.msk.f32.vlgmr.msra.gmra.mrb[24].mxu0 %vm5497_vm1, %v8499_v41  ;;  %v9035_v41 = vpack.c.bf16 %v13474_v43, %v13464_v45 }
 0x6e9   : > { %7934 = vrot.lane.b32.xlu1 %v13418_v51, %s15686_s13  ;;  %9024 = vmatpush1.bf16.msra.mxu0 %v9023_v18  ;;  %v9037_v18 = vpack.c.bf16 %v6851_v13, %v6849_v17  ;;  %v6953_v17 = vsel %vm3310_vm12, %v14274_v26, %v14306_v31 }
 0x6ea   : > { %v14470_v32 = vpop.permute.xlu0 %7158  ;;  %6737 = vmatprep.mubr.f32.mxu0 %v15405_v44  ;;  %9026 = vmatprep.subr.bf16.mxu0 %v9025_v12 }
 0x6eb   : > { %v14472_v42 = vpop.permute.xlu1 %7164 }
 0x6ec   : > { %7936 = vrot.lane.b32.xlu0 %v13543_v6, %s15686_s13 }
 0x6ed   : > { %7930 = vrot.lane.b32.xlu1 %v13474_v43, %s15686_s13  ;;  %9028 = vmatpush1.bf16.msra.mxu0 %v9027_v47  ;;  %v9039_v47 = vpack.c.bf16 %v6850_v2, %v6848_v56 }
 0x6ee   : > { %v14485_v23 = vpop.permute.xlu0 %7166  ;;  %9030 = vmatprep.subr.bf16.mxu0 %v9029_v33  ;;  %v6854_v33 = vmul.f32 %v6843_v58, %v15696_v36  ;;  %v15702_v58 = vld [vmem:[#allocation99_spill] sm:$0xff] }
 0x6ef   : > { %v14487_v14 = vpop.permute.xlu1 %7160 }
 0x6f0   : > { %8034 = vrot.lane.b32.xlu0 %v13354_v5, %s15694_s21  ;;  %8502 = vmatmul.mubr.msk.f32.vlgmr.msra.gmra.mrb[24].mxu0 %vm5497_vm1, %v8501_v21  ;;  %v6847_v5 = vsel %vm3118_vm11, %v14184_v28, %v14152_v57  ;;  %v8503_v57 = vld [vmem:[%s15003_s5 + $0x30] sm:$0x7]  ;;  %v6853_v28 = vmul.f32 %v6846_v22, %v15695_v46  ;;  %v7064_v22 = vsel %vm15700_vm2, %v14333_v9, %v14304_v61  ;;  %vm15718_vm2 = vcmp.lt.s32.totalorder %v9904_v53, 112 }
 0x6f1   : > { %7938 = vrot.lane.b32.xlu1 %v13562_v10, %s15686_s13  ;;  %9032 = vmatpush1.bf16.msra.mxu0 %v9031_v39  ;;  %v6855_v24 = vmul.f32 %v6847_v5, %v15695_v46  ;;  %v15698_v39 = vld [vmem:[#allocation91_spill] sm:$0xff]  ;;  %v6956_v46 = vsel %vm3310_vm12, %v14272_v34, %v14243_v63 }
 0x6f2   : > { %v14514_v11 = vpop.permute.xlu0 %7264  ;;  %6815 = vmatprep.mubr.f32.mxu0 %v15405_v44  ;;  %9034 = vmatprep.subr.bf16.mxu0 %v9033_v8  ;;  %v6960_v52 = vmul.f32 %v6951_v40, %v15698_v39  ;;  %v8144_v8 = vld [vmem:[%s15004_s6] sm:$0x7]  ;;  %v6964_v56 = vmul.f32 %v6953_v17, %v15698_v39 }
 0x6f3   : > { %v14516_v48 = vpop.permute.xlu1 %7168  ;;  %v9041_v21 = vpack.c.bf16 %v6855_v24, %v6853_v28  ;;  %v7066_v28 = vsel %vm15706_vm6, %v14394_v50, %v14365_v30  ;;  %vm15723_vm6 = vmmov %vm15718_vm2 }
 0x6f4   : > { %8042 = vrot.lane.b32.xlu0 %v13412_v4, %s15694_s21  ;;  %v6955_v4 = vsel %vm3310_vm12, %v14245_v3, %v14213_v60 }
 0x6f5   : > { %8036 = vrot.lane.b32.xlu1 %v13358_v35, %s15694_s21  ;;  %9036 = vmatpush1.bf16.msra.mxu0 %v9035_v41  ;;  %v6842_v35 = vsel %vm3118_vm11, %v14121_v54, %v14150_v1  ;;  %v15697_v54 = vld [vmem:[#allocation60_spill] sm:$0xff]  ;;  %v7061_v41 = vsel %vm15701_vm3, %v14335_v19, %v14367_v20  ;;  %vm15711_vm11 = vmmov %vm15708_vm8 }
 0x6f6   : > { %v14545_v12 = vpop.permute.xlu0 %7272  ;;  %9038 = vmatprep.subr.bf16.mxu0 %v9037_v18  ;;  %v6961_v1 = vmul.f32 %v6955_v4, %v15697_v54  ;;  %v6852_v7 = vmul.f32 %v6842_v35, %v15696_v36  ;;  %v6959_v60 = vmul.f32 %v6954_v27, %v15697_v54  ;;  %v6963_v13 = vmul.f32 %v6956_v46, %v15697_v54 }
 0x6f7   : > { %v14547_v0 = vpop.permute.xlu1 %7266  ;;  %v7067_v18 = vsel %vm15703_vm4, %v14428_v38, %v14396_v49  ;;  %vm15720_vm4 = vmmov %vm15718_vm2 }
 0x6f8   : > { %8038 = vrot.lane.b32.xlu0 %v13464_v45, %s15694_s21  ;;  %8504 = vmatmul.mubr.msk.f32.vlgmr.msra.gmra.mrb[24].mxu0 %vm5497_vm1, %v8503_v57  ;;  %v6957_v45 = vsel %vm3310_vm12, %v14306_v31, %v14274_v26  ;;  %v9043_v3 = vpack.c.bf16 %v6854_v33, %v6852_v7  ;;  %v6952_v31 = vsel %vm3310_vm12, %v14243_v63, %v14272_v34  ;;  %v15705_v57 = vld [vmem:[#allocation85_spill] sm:$0xff] }
 0x6f9   : > { %8044 = vrot.lane.b32.xlu1 %v13418_v51, %s15694_s21  ;;  %9040 = vmatpush1.bf16.msra.mxu0 %v9039_v47  ;;  %v6950_v51 = vsel %vm3310_vm12, %v14182_v62, %v14211_v15  ;;  %v6965_v62 = vmul.f32 %v6957_v45, %v15697_v54  ;;  %v9045_v15 = vpack.c.bf16 %v6961_v1, %v6959_v60  ;;  %v8507_v1 = vld [vmem:[%s15003_s5 + $0x38] sm:$0x7]  ;;  %v15712_v60 = vld [vmem:[#allocation23_spill] sm:$0xff]  ;;  %vm15713_vm12 = vmmov %vm15708_vm8 }
 0x6fa   : > { %v14577_v37 = vpop.permute.xlu0 %7268  ;;  %6925 = vmatprep.mubr.f32.mxu0 %v15405_v44  ;;  %9042 = vmatprep.subr.bf16.mxu0 %v9041_v21  ;;  %v6958_v5 = vmul.f32 %v6950_v51, %v15698_v39  ;;  %v6962_v34 = vmul.f32 %v6952_v31, %v15698_v39  ;;  %v7070_v35 = vmul.f32 %v7061_v41, %v15705_v57 }
 0x6fb   : > { %v14579_v55 = vpop.permute.xlu1 %7274  ;;  %v9049_v63 = vpack.c.bf16 %v6965_v62, %v6963_v13  ;;  %v7063_v47 = vsel %vm15707_vm7, %v14396_v49, %v14428_v38  ;;  %v7075_v33 = vmul.f32 %v7067_v18, %v15702_v58  ;;  %v7062_v49 = vsel %vm15709_vm9, %v14365_v30, %v14394_v50  ;;  %v15715_v62 = vld [vmem:[#allocation10_spill] sm:$0xff]  ;;  %vm15724_vm7 = vmmov %vm15718_vm2 }
 0x6fc   : > { %8046 = vrot.lane.b32.xlu0 %v13543_v6, %s15694_s21  ;;  %v7065_v6 = vsel %vm15699_vm0, %v14367_v20, %v14335_v19  ;;  %v9047_v36 = vpack.c.bf16 %v6960_v52, %v6958_v5  ;;  %v7069_v19 = vmul.f32 %v7064_v22, %v15702_v58  ;;  %v9051_v20 = vpack.c.bf16 %v6964_v56, %v6962_v34  ;;  %vm15717_vm0 = vmmov %vm15708_vm8 }
 0x6fd   : > { %8040 = vrot.lane.b32.xlu1 %v13474_v43, %s15694_s21  ;;  %9044 = vmatpush1.bf16.msra.mxu0 %v9043_v3  ;;  %v8505_v43 = vld [vmem:[%s15003_s5 + $0x34] sm:$0x7]  ;;  %v7071_v24 = vmul.f32 %v7065_v6, %v15702_v58  ;;  %v7073_v38 = vmul.f32 %v7066_v28, %v15702_v58  ;;  %v7074_v7 = vmul.f32 %v7063_v47, %v15705_v57  ;;  %vm15719_vm3 = vmmov %vm15717_vm0 }
 0x6fe   : > { %v14609_v59 = vpop.permute.xlu0 %7276  ;;  %9046 = vmatprep.subr.bf16.mxu0 %v9045_v15  ;;  %v7174_v45 = vsel %vm15710_vm10, %v14451_v29, %v14426_v25  ;;  %v7171_v51 = vsel %vm15711_vm11, %v14453_v16, %v14472_v42  ;;  %v7072_v50 = vmul.f32 %v7062_v49, %v15705_v57  ;;  %v7177_v39 = vsel %vm15713_vm12, %v14516_v48, %v14487_v14  ;;  %vm15727_vm9 = vmmov %vm15718_vm2 }
 0x6ff   : > { %v14611_v26 = vpop.permute.xlu1 %7270  ;;  %v9053_v27 = vpack.c.bf16 %v7071_v24, %v7069_v19  ;;  %v9057_v30 = vpack.c.bf16 %v7075_v33, %v7073_v38  ;;  %v7180_v15 = vmul.f32 %v7171_v51, %v15715_v62  ;;  %v7173_v5 = vsel %vm15717_vm0, %v14487_v14, %v14516_v48  ;;  %v15722_v24 = vld [vmem:[#allocation13_spill] sm:$0xff]  ;;  %vm15729_vm11 = vmmov %vm15718_vm2 }
 0x700   : > { %8147 = vperm.xlu0 %9407, %v8144_v8   ;;  %8506 = vmatmul.mubr.msk.f32.vlgmr.msra.gmra.mrb[24].mxu0 %vm5497_vm1, %v8505_v43  ;;  %v9059_v17 = vpack.c.bf16 %v7074_v7, %v7072_v50  ;;  %v7176_v8 = vsel %vm15716_vm15, %v14485_v23, %v14470_v32  ;;  %v7185_v6 = vmul.f32 %v7177_v39, %v15712_v60  ;;  %vm15728_vm10 = vcmp.lt.s32.totalorder %v9904_v53, 111  ;;  %v15732_v7 = vld [vmem:[#allocation17_spill] sm:$0xff]  ;;  %v15735_v39 = vld [vmem:[#allocation6_spill] sm:$0xff] }
 0x701   : > { %8048 = vrot.lane.b32.xlu1 %v13562_v10, %s15694_s21  ;;  %9048 = vmatpush1.bf16.msra.mxu0 %v9047_v36  ;;  %v7060_v10 = vsel %vm15704_vm5, %v14304_v61, %v14333_v9  ;;  %v7175_v9 = vsel %vm15708_vm8, %v14472_v42, %v14453_v16  ;;  %v7170_v16 = vsel %vm15714_vm14, %v14426_v25, %v14451_v29  ;;  %v8509_v36 = vld [vmem:[%s15003_s5 + $0x3c] sm:$0x7]  ;;  %vm15721_vm5 = vmmov %vm15718_vm2 }
 0x702   : > { %v14639_v2 = vpop.permute.xlu0 %7374  ;;  %7035 = vmatprep.mubr.f32.mxu0 %v15405_v44  ;;  %9050 = vmatprep.subr.bf16.mxu0 %v9049_v63  ;;  %v7068_v61 = vmul.f32 %v7060_v10, %v15705_v57  ;;  %v7181_v3 = vmul.f32 %v7175_v9, %v15712_v60  ;;  %v7179_v42 = vmul.f32 %v7174_v45, %v15712_v60  ;;  %vm15726_vm8 = vmmov %vm15718_vm2 }
 0x703   : > { %v14641_v4 = vpop.permute.xlu1 %7278  ;;  %v7178_v25 = vmul.f32 %v7170_v16, %v15715_v62  ;;  %v7285_v29 = vsel %vm15718_vm2, %v14579_v55, %v14547_v0  ;;  %v7172_v14 = vsel %vm15719_vm3, %v14470_v32, %v14485_v23  ;;  %v7183_v48 = vmul.f32 %v7176_v8, %v15712_v60  ;;  %vm15730_vm12 = vmmov %vm15728_vm10  ;;  %v8513_v8 = vld [vmem:[%s15003_s5 + $0x44] sm:$0x7] }
 0x704   : > { %v9055_v21 = vpack.c.bf16 %v7070_v35, %v7068_v61  ;;  %v9061_v43 = vpack.c.bf16 %v7181_v3, %v7179_v42  ;;  %v7184_v22 = vmul.f32 %v7173_v5, %v15715_v62  ;;  %v7284_v41 = vsel %vm15720_vm4, %v14545_v12, %v14514_v11  ;;  %v8511_v61 = vld [vmem:[%s15003_s5 + $0x40] sm:$0x7]  ;;  %vm15731_vm14 = vmmov %vm15728_vm10 }
 0x705   : > { %9052 = vmatpush1.bf16.msra.mxu0 %v9051_v20  ;;  %v9063_v56 = vpack.c.bf16 %v7180_v15, %v7178_v25  ;;  %v7281_v58 = vsel %vm15721_vm5, %v14547_v0, %v14579_v55  ;;  %v7291_v63 = vmul.f32 %v7285_v29, %v15722_v24  ;;  %v9065_v32 = vpack.c.bf16 %v7185_v6, %v7183_v48  ;;  %v15725_v20 = vld [vmem:[#allocation14_spill] sm:$0xff]  ;;  %vm15733_vm15 = vmmov %vm15728_vm10 }
 0x706   : > { %v14664_v40 = vpop.permute.xlu0 %7382  ;;  %9054 = vmatprep.subr.bf16.mxu0 %v9053_v27  ;;  %v7182_v23 = vmul.f32 %v7172_v14, %v15715_v62  ;;  %v7287_v34 = vsel %vm15723_vm6, %v14641_v4, %v14611_v26  ;;  %v7280_v0 = vsel %vm15724_vm7, %v14514_v11, %v14545_v12  ;;  %v7289_v55 = vmul.f32 %v7284_v41, %v15722_v24  ;;  %vm15734_vm0 = vmmov %vm15728_vm10  ;;  %v15742_v14 = vld [vmem:[#allocation38_spill] sm:$0xff] }
 0x707   : > { %v14666_v54 = vpop.permute.xlu1 %7376  ;;  %v7290_v57 = vmul.f32 %v7281_v58, %v15725_v20  ;;  %v7286_v35 = vsel %vm15726_vm8, %v14609_v59, %v14577_v37  ;;  %v7283_v28 = vsel %vm15727_vm9, %v14611_v26, %v14641_v4  ;;  %v7295_v47 = vmul.f32 %v7287_v34, %v15722_v24  ;;  %vm15736_vm2 = vmmov %vm15734_vm0 }
 0x708   : > { %8508 = vmatmul.mubr.msk.f32.vlgmr.msra.gmra.mrb[24].mxu0 %vm5497_vm1, %v8507_v1  ;;  %v9067_v19 = vpack.c.bf16 %v7184_v22, %v7182_v23  ;;  %v9069_v33 = vpack.c.bf16 %v7291_v63, %v7289_v55  ;;  %v7288_v11 = vmul.f32 %v7280_v0, %v15725_v20  ;;  %v7282_v26 = vsel %vm15729_vm11, %v14577_v37, %v14609_v59  ;;  %vm15737_vm3 = vmmov %vm15734_vm0  ;;  %v15744_v63 = vld [vmem:[#allocation52_spill] sm:$0xff] }
 0x709   : > { %9056 = vmatpush1.bf16.msra.mxu0 %v9055_v21  ;;  %7145 = vmatprep.mubr.f32.mxu0 %v15405_v44  ;;  %v7293_v4 = vmul.f32 %v7286_v35, %v15722_v24  ;;  %v7294_v49 = vmul.f32 %v7283_v28, %v15725_v20  ;;  %v7394_v38 = vsel %vm15730_vm12, %v14664_v40, %v14639_v2  ;;  %vm15738_vm4 = vcmp.lt.s32.totalorder %v9904_v53, 110  ;;  %vm15739_vm5 = vmmov %vm15734_vm0 }
 0x70a   : > { %v14692_v52 = vpop.permute.xlu0 %7378  ;;  %9058 = vmatprep.subr.bf16.mxu0 %v9057_v30  ;;  %v9071_v1 = vpack.c.bf16 %v7290_v57, %v7288_v11  ;;  %v7292_v59 = vmul.f32 %v7282_v26, %v15725_v20  ;;  %v7390_v3 = vsel %vm15734_vm0, %v14639_v2, %v14664_v40  ;;  %vm15740_vm6 = vmmov %vm15738_vm4  ;;  %v8515_v20 = vld [vmem:[%s15003_s5 + $0x48] sm:$0x7] }
 0x70b   : > { %v7385_v46 = vpop.permute.xlu1 %7384  ;;  %v9073_v37 = vpack.c.bf16 %v7295_v47, %v7293_v4  ;;  %v7398_v2 = vmul.f32 %v7390_v3, %v15735_v39  ;;  %vm15741_vm7 = vmmov %vm15738_vm4 }
 0x70c   : > { %v7395_v12 = vsel %vm15728_vm10, %v7385_v46, %v14666_v54  ;;  %v7391_v21 = vsel %vm15731_vm14, %v14666_v54, %v7385_v46  ;;  %v7399_v54 = vmul.f32 %v7394_v38, %v15732_v7  ;;  %v9075_v50 = vpack.c.bf16 %v7294_v49, %v7292_v59  ;;  %vm15743_vm8 = vmmov %vm15738_vm4  ;;  %v15753_v38 = vld [vmem:[#allocation43_spill] sm:$0xff] }
 0x70d   : > { %9060 = vmatpush1.bf16.msra.mxu0 %v9059_v17  ;;  %v7401_v45 = vmul.f32 %v7395_v12, %v15732_v7  ;;  %v7400_v46 = vmul.f32 %v7391_v21, %v15735_v39  ;;  %vm15745_vm9 = vmmov %vm15738_vm4  ;;  %vm15749_vm14 = vcmp.lt.s32.totalorder %v9904_v53, 98 }
 0x70e   : > { %v14715_v31 = vpop.permute.xlu0 %7386  ;;  %9062 = vmatprep.subr.bf16.mxu0 %v9061_v43  ;;  %vm15746_vm10 = vmmov %vm15738_vm4 }
 0x70f   : > { %v7381_v13 = vpop.permute.xlu1 %7380  ;;  %v7396_v16 = vsel %vm15736_vm2, %v14715_v31, %v14692_v52  ;;  %v9077_v62 = vpack.c.bf16 %v7401_v45, %v7399_v54  ;;  %v7392_v5 = vsel %vm15739_vm5, %v14692_v52, %v14715_v31  ;;  %v9079_v25 = vpack.c.bf16 %v7400_v46, %v7398_v2  ;;  %vm15747_vm11 = vmmov %vm15738_vm4 }
 0x710   : > { %8510 = vmatmul.mubr.msk.f32.vlgmr.msra.gmra.mrb[24].mxu0 %vm5497_vm1, %v8509_v36  ;;  %v7403_v6 = vmul.f32 %v7396_v16, %v15732_v7  ;;  %v7402_v52 = vmul.f32 %v7392_v5, %v15735_v39  ;;  %vm15748_vm12 = vmmov %vm15738_vm4 }
 0x711   : > { %9064 = vmatpush1.bf16.msra.mxu0 %v9063_v56  ;;  %7255 = vmatprep.mubr.f32.mxu0 %v15405_v44  ;;  %vm15751_vm0 = vmmov %vm15749_vm14 }
 0x712   : > { %v14741_v18 = vpop.permute.xlu0 %7484  ;;  %9066 = vmatprep.subr.bf16.mxu0 %v9065_v32  ;;  %vm15752_vm2 = vmmov %vm15751_vm0 }
 0x713   : > { %v7389_v10 = vpop.permute.xlu1 %7388  ;;  %vm15757_vm5 = vmmov %vm15751_vm0 }
 0x714   : > { %v7397_v51 = vsel %vm15733_vm15, %v7389_v10, %v7381_v13  ;;  %v7393_v42 = vsel %vm15737_vm3, %v7381_v13, %v7389_v10  ;;  %vm15750_vm15 = vmmov %vm15749_vm14 }
 0x715   : > { %9068 = vmatpush1.bf16.msra.mxu0 %v9067_v19  ;;  %v7405_v17 = vmul.f32 %v7397_v51, %v15732_v7  ;;  %v7404_v29 = vmul.f32 %v7393_v42, %v15735_v39  ;;  %v15754_v7 = vld [vmem:[#allocation44_spill] sm:$0xff]  ;;  %vm15755_vm3 = vmmov %vm15751_vm0 }
 0x716   : > { %v7493_v27 = vpop.permute.xlu0 %7492  ;;  %9070 = vmatprep.subr.bf16.mxu0 %v9069_v33 }
 0x717   : > { %v7487_v9 = vpop.permute.xlu1 %7486  ;;  %v7504_v13 = vsel %vm15740_vm6, %v7493_v27, %v14741_v18  ;;  %v9081_v56 = vpack.c.bf16 %v7405_v17, %v7403_v6  ;;  %v7500_v22 = vsel %vm15743_vm8, %v14741_v18, %v7493_v27  ;;  %v9083_v24 = vpack.c.bf16 %v7404_v29, %v7402_v52  ;;  %vm15758_vm6 = vmmov %vm15751_vm0  ;;  %v15763_v52 = vld [vmem:[#allocation32_spill] sm:$0xff] }
 0x718   : > { %8512 = vmatmul.mubr.msk.f32.vlgmr.msra.gmra.mrb[24].mxu0 %vm5497_vm1, %v8511_v61  ;;  %v7509_v41 = vmul.f32 %v7504_v13, %v15742_v14  ;;  %v7508_v18 = vmul.f32 %v7500_v22, %v15744_v63  ;;  %v15764_v22 = vld [vmem:[#allocation47_spill] sm:$0xff] }
 0x719   : > { %9072 = vmatpush1.bf16.msra.mxu0 %v9071_v1  ;;  %7365 = vmatprep.mubr.f32.mxu0 %v15405_v44 }
 0x71a   : > { %v7489_v60 = vpop.permute.xlu0 %7488  ;;  %9074 = vmatprep.subr.bf16.mxu0 %v9073_v37 }
 0x71b   : > { %v7495_v30 = vpop.permute.xlu1 %7494 }
 0x71c   : > { %v7505_v40 = vsel %vm15738_vm4, %v7495_v30, %v7487_v9  ;;  %v7501_v36 = vsel %vm15741_vm7, %v7487_v9, %v7495_v30  ;;  %vm15756_vm4 = vmmov %vm15751_vm0  ;;  %vm15759_vm7 = vcmp.lt.s32.totalorder %v9904_v53, 97 }
 0x71d   : > { %9076 = vmatpush1.bf16.msra.mxu0 %v9075_v50  ;;  %v7511_v48 = vmul.f32 %v7505_v40, %v15742_v14  ;;  %v7510_v32 = vmul.f32 %v7501_v36, %v15744_v63  ;;  %vm15760_vm8 = vmmov %vm15759_vm7  ;;  %v8519_v36 = vld [vmem:[%s15003_s5 + $0x50] sm:$0x7] }
 0x71e   : > { %v7497_v15 = vpop.permute.xlu0 %7496  ;;  %9078 = vmatprep.subr.bf16.mxu0 %v9077_v62 }
 0x71f   : > { %v7491_v43 = vpop.permute.xlu1 %7490  ;;  %v7506_v23 = vsel %vm15745_vm9, %v7497_v15, %v7489_v60  ;;  %v9085_v55 = vpack.c.bf16 %v7511_v48, %v7509_v41  ;;  %v7502_v57 = vsel %vm15748_vm12, %v7489_v60, %v7497_v15  ;;  %v9087_v47 = vpack.c.bf16 %v7510_v32, %v7508_v18  ;;  %v8517_v60 = vld [vmem:[%s15003_s5 + $0x4c] sm:$0x7]  ;;  %vm15761_vm9 = vmmov %vm15759_vm7 }
 0x720   : > { %8514 = vmatmul.mubr.msk.f32.vlgmr.msra.gmra.mrb[24].mxu0 %vm5497_vm1, %v8513_v8  ;;  %v7513_v35 = vmul.f32 %v7506_v23, %v15742_v14  ;;  %v7512_v12 = vmul.f32 %v7502_v57, %v15744_v63  ;;  %vm15766_vm12 = vmmov %vm15759_vm7 }
 0x721   : > { %9080 = vmatpush1.bf16.msra.mxu0 %v9079_v25  ;;  %7475 = vmatprep.mubr.f32.mxu0 %v15405_v44 }
 0x722   : > { %v7595_v31 = vpop.permute.xlu0 %7594  ;;  %9082 = vmatprep.subr.bf16.mxu0 %v9081_v56 }
 0x723   : > { %v7499_v58 = vpop.permute.xlu1 %7498 }
 0x724   : > { %v7507_v34 = vsel %vm15746_vm10, %v7499_v58, %v7491_v43  ;;  %v7503_v10 = vsel %vm15747_vm11, %v7491_v43, %v7499_v58  ;;  %vm15762_vm10 = vmmov %vm15759_vm7 }
 0x725   : > { %v7515_v0 = vmul.f32 %v7507_v34, %v15742_v14  ;;  %9084 = vmatpush1.bf16.msra.mxu0 %v9083_v24  ;;  %v7514_v33 = vmul.f32 %v7503_v10, %v15744_v63  ;;  %vm15765_vm11 = vmmov %vm15759_vm7 }
 0x726   : > { %v7603_v19 = vpop.permute.xlu0 %7602  ;;  %9086 = vmatprep.subr.bf16.mxu0 %v9085_v55 }
 0x727   : > { %v7597_v28 = vpop.permute.xlu1 %7596  ;;  %v9089_v11 = vpack.c.bf16 %v7515_v0, %v7513_v35  ;;  %v7610_v27 = vsel %vm15749_vm14, %v7595_v31, %v7603_v19  ;;  %v7614_v61 = vsel %vm15750_vm15, %v7603_v19, %v7595_v31  ;;  %v9091_v9 = vpack.c.bf16 %v7514_v33, %v7512_v12  ;;  %vm15767_vm14 = vmmov %vm15759_vm7 }
 0x728   : > { %8516 = vmatmul.mubr.msk.f32.vlgmr.msra.gmra.mrb[24].mxu0 %vm5497_vm1, %v8515_v20  ;;  %v7618_v21 = vmul.f32 %v7610_v27, %v15753_v38  ;;  %v7619_v45 = vmul.f32 %v7614_v61, %v15754_v7  ;;  %vm15768_vm15 = vmmov %vm15759_vm7 }
 0x729   : > { %9088 = vmatpush1.bf16.msra.mxu0 %v9087_v47  ;;  %7585 = vmatprep.mubr.f32.mxu0 %v15405_v44 }
 0x72a   : > { %v7599_v26 = vpop.permute.xlu0 %7598  ;;  %9090 = vmatprep.subr.bf16.mxu0 %v9089_v11 }
 0x72b   : > { %v7605_v4 = vpop.permute.xlu1 %7604 }
 0x72c   : > { %v7611_v1 = vsel %vm15751_vm0, %v7597_v28, %v7605_v4  ;;  %v7615_v49 = vsel %vm15752_vm2, %v7605_v4, %v7597_v28  ;;  %vm15769_vm0 = vcmp.lt.s32.totalorder %v9904_v53, 96 }
 0x72d   : > { %v7620_v37 = vmul.f32 %v7611_v1, %v15753_v38  ;;  %v7621_v59 = vmul.f32 %v7615_v49, %v15754_v7  ;;  %9092 = vmatpush1.bf16.msra.mxu0 %v9091_v9  ;;  %vm15770_vm2 = vmmov %vm15769_vm0  ;;  %v8521_v9 = vld [vmem:[%s15003_s5 + $0x54] sm:$0x7] }
 0x72e   : > { %v7607_v51 = vpop.permute.xlu0 %7606 }
 0x72f   : > { %v9095_v3 = vpack.c.bf16 %v7620_v37, %v7618_v21  ;;  %v7601_v54 = vpop.permute.xlu1 %7600  ;;  %v9093_v30 = vpack.c.bf16 %v7621_v59, %v7619_v45  ;;  %v7612_v50 = vsel %vm15755_vm3, %v7599_v26, %v7607_v51  ;;  %v7616_v39 = vsel %vm15756_vm4, %v7607_v51, %v7599_v26  ;;  %vm15771_vm3 = vmmov %vm15769_vm0  ;;  %v15773_v21 = vld [vmem:[#allocation77_spill] sm:$0xff]  ;;  %v15774_v45 = vld [vmem:[#allocation66_spill] sm:$0xff] }
 0x730   : > { %8518 = vmatmul.mubr.msk.f32.vlgmr.msra.gmra.mrb[24].mxu0 %vm5497_vm1, %v8517_v60  ;;  %v7622_v62 = vmul.f32 %v7612_v50, %v15753_v38  ;;  %v7623_v2 = vmul.f32 %v7616_v39, %v15754_v7  ;;  %vm15772_vm4 = vmmov %vm15769_vm0 }
 0x731   : > { %9094 = vmatprep.subr.bf16.mxu0 %v9093_v30  ;;  %7695 = vmatprep.mubr.f32.mxu0 %v15405_v44 }
 0x732   : > { %9096 = vmatpush1.bf16.msra.mxu0 %v9095_v3  ;;  %v7705_v46 = vpop.permute.xlu0 %7704 }
 0x733   : > { %v7609_v16 = vpop.permute.xlu1 %7608 }
 0x734   : > { %v7613_v42 = vsel %vm15757_vm5, %v7601_v54, %v7609_v16  ;;  %v7617_v17 = vsel %vm15758_vm6, %v7609_v16, %v7601_v54  ;;  %vm15775_vm5 = vmmov %vm15769_vm0 }
 0x735   : > { %v7624_v40 = vmul.f32 %v7613_v42, %v15753_v38  ;;  %v7625_v15 = vmul.f32 %v7617_v17, %v15754_v7  ;;  %vm15776_vm6 = vmmov %vm15769_vm0 }
 0x736   : > { %v7713_v8 = vpop.permute.xlu0 %7712 }
 0x737   : > { %v9099_v5 = vpack.c.bf16 %v7624_v40, %v7622_v62  ;;  %v7707_v6 = vpop.permute.xlu1 %7706  ;;  %v9097_v43 = vpack.c.bf16 %v7625_v15, %v7623_v2  ;;  %v7720_v25 = vsel %vm15759_vm7, %v7705_v46, %v7713_v8  ;;  %v7724_v29 = vsel %vm15760_vm8, %v7713_v8, %v7705_v46  ;;  %vm15777_vm7 = vmmov %vm15769_vm0 }
 0x738   : > { %v7728_v31 = vmul.f32 %v7720_v25, %v15763_v52  ;;  %v7729_v41 = vmul.f32 %v7724_v29, %v15764_v22  ;;  %vm15778_vm8 = vmmov %vm15769_vm0 }
 0x739   : > { %9098 = vmatprep.subr.bf16.mxu0 %v9097_v43 }
 0x73a   : > { %9100 = vmatpush1.bf16.msra.mxu0 %v9099_v5  ;;  %v7709_v13 = vpop.permute.xlu0 %7708 }
 0x73b   : > { %v7715_v14 = vpop.permute.xlu1 %7714 }
 0x73c   : > { %v7721_v48 = vsel %vm15761_vm9, %v7707_v6, %v7715_v14  ;;  %v7725_v56 = vsel %vm15762_vm10, %v7715_v14, %v7707_v6  ;;  %vm15779_vm9 = vcmp.lt.s32.totalorder %v9904_v53, 95 }
 0x73d   : > { %v7730_v58 = vmul.f32 %v7721_v48, %v15763_v52  ;;  %v7731_v24 = vmul.f32 %v7725_v56, %v15764_v22  ;;  %8520 = vmatmul.mubr.msk.f32.vlgmr.msra.gmra.mrb[24].mxu0 %vm5497_vm1, %v8519_v36  ;;  %vm15780_vm10 = vmmov %vm15779_vm9  ;;  %v8523_v36 = vld [vmem:[%s15003_s5 + $0x58] sm:$0x7] }
 0x73e   : > { %v7717_v63 = vpop.permute.xlu0 %7716  ;;  %7805 = vmatprep.mubr.f32.mxu0 %v15405_v44 }
 0x73f   : > { %v9103_v32 = vpack.c.bf16 %v7730_v58, %v7728_v31  ;;  %v7711_v23 = vpop.permute.xlu1 %7710  ;;  %v9101_v34 = vpack.c.bf16 %v7731_v24, %v7729_v41  ;;  %v7722_v10 = vsel %vm15765_vm11, %v7709_v13, %v7717_v63  ;;  %v7726_v0 = vsel %vm15766_vm12, %v7717_v63, %v7709_v13  ;;  %vm15781_vm11 = vmmov %vm15779_vm9 }
 0x740   : > { %v7732_v57 = vmul.f32 %v7722_v10, %v15763_v52  ;;  %v7733_v35 = vmul.f32 %v7726_v0, %v15764_v22  ;;  %vm15782_vm12 = vmmov %vm15779_vm9 }
 0x741   : > { %9102 = vmatprep.subr.bf16.mxu0 %v9101_v34 }
 0x742   : > { %9104 = vmatpush1.bf16.msra.mxu0 %v9103_v32  ;;  %v7815_v55 = vpop.permute.xlu0 %7814 }
 0x743   : > { %v7719_v18 = vpop.permute.xlu1 %7718 }
 0x744   : > { %v7723_v19 = vsel %vm15767_vm14, %v7711_v23, %v7719_v18  ;;  %v7727_v20 = vsel %vm15768_vm15, %v7719_v18, %v7711_v23  ;;  %vm15785_vm14 = vmmov %vm15779_vm9 }
 0x745   : > { %v7734_v28 = vmul.f32 %v7723_v19, %v15763_v52  ;;  %v7735_v47 = vmul.f32 %v7727_v20, %v15764_v22  ;;  %v15783_v52 = vld [vmem:[#allocation71_spill] sm:$0xff]  ;;  %v15784_v22 = vld [vmem:[#allocation61_spill] sm:$0xff]  ;;  %vm15786_vm15 = vmmov %vm15779_vm9 }
 0x746   : > { %v7823_v33 = vpop.permute.xlu0 %7822 }
 0x747   : > { %v9107_v11 = vpack.c.bf16 %v7734_v28, %v7732_v57  ;;  %v7817_v12 = vpop.permute.xlu1 %7816  ;;  %v9105_v27 = vpack.c.bf16 %v7735_v47, %v7733_v35  ;;  %v7830_v61 = vsel %vm15769_vm0, %v7815_v55, %v7823_v33  ;;  %v7834_v26 = vsel %vm15770_vm2, %v7823_v33, %v7815_v55  ;;  %vm15787_vm0 = vmmov %vm15779_vm9 }
 0x748   : > { %v7838_v7 = vmul.f32 %v7830_v61, %v15773_v21  ;;  %v7839_v37 = vmul.f32 %v7834_v26, %v15774_v45  ;;  %vm15788_vm2 = vmmov %vm15787_vm0 }
 0x749   : > { %9106 = vmatprep.subr.bf16.mxu0 %v9105_v27 }
 0x74a   : > { %9108 = vmatpush1.bf16.msra.mxu0 %v9107_v11  ;;  %v7819_v4 = vpop.permute.xlu0 %7818 }
 0x74b   : > { %v7825_v1 = vpop.permute.xlu1 %7824 }
 0x74c   : > { %v7831_v49 = vsel %vm15771_vm3, %v7817_v12, %v7825_v1  ;;  %v7835_v38 = vsel %vm15772_vm4, %v7825_v1, %v7817_v12 }
 0x74d   : > { %v7840_v59 = vmul.f32 %v7831_v49, %v15773_v21  ;;  %v7841_v51 = vmul.f32 %v7835_v38, %v15774_v45  ;;  %8522 = vmatmul.mubr.msk.f32.vlgmr.msra.gmra.mrb[24].mxu0 %vm5497_vm1, %v8521_v9  ;;  %v8525_v9 = vld [vmem:[%s15003_s5 + $0x5c] sm:$0x7] }
 0x74e   : > { %v7827_v60 = vpop.permute.xlu0 %7826  ;;  %7915 = vmatprep.mubr.f32.mxu0 %v15405_v44 }
 0x74f   : > { %v9111_v3 = vpack.c.bf16 %v7840_v59, %v7838_v7  ;;  %v7821_v54 = vpop.permute.xlu1 %7820  ;;  %v9109_v30 = vpack.c.bf16 %v7841_v51, %v7839_v37  ;;  %v7832_v50 = vsel %vm15775_vm5, %v7819_v4, %v7827_v60  ;;  %v7836_v39 = vsel %vm15776_vm6, %v7827_v60, %v7819_v4 }
 0x750   : > { %v7842_v62 = vmul.f32 %v7832_v50, %v15773_v21  ;;  %v7843_v2 = vmul.f32 %v7836_v39, %v15774_v45 }
 0x751   : > { %9110 = vmatprep.subr.bf16.mxu0 %v9109_v30 }
 0x752   : > { %9112 = vmatpush1.bf16.msra.mxu0 %v9111_v3  ;;  %v7925_v46 = vpop.permute.xlu0 %7924 }
 0x753   : > { %v7829_v16 = vpop.permute.xlu1 %7828 }
 0x754   : > { %v7833_v42 = vsel %vm15777_vm7, %v7821_v54, %v7829_v16  ;;  %v7837_v17 = vsel %vm15778_vm8, %v7829_v16, %v7821_v54 }
 0x755   : > { %v7844_v40 = vmul.f32 %v7833_v42, %v15773_v21  ;;  %v7845_v15 = vmul.f32 %v7837_v17, %v15774_v45  ;;  %v15789_v21 = vld [vmem:[#allocation109_spill] sm:$0xff]  ;;  %v15790_v45 = vld [vmem:[#allocation92_spill] sm:$0xff] }
 0x756   : > { %v7933_v8 = vpop.permute.xlu0 %7932 }
 0x757   : > { %v9115_v5 = vpack.c.bf16 %v7844_v40, %v7842_v62  ;;  %v7927_v6 = vpop.permute.xlu1 %7926  ;;  %v9113_v43 = vpack.c.bf16 %v7845_v15, %v7843_v2  ;;  %v7940_v25 = vsel %vm15779_vm9, %v7925_v46, %v7933_v8  ;;  %v7944_v29 = vsel %vm15780_vm10, %v7933_v8, %v7925_v46  ;;  %v8527_v8 = vld [vmem:[%s15003_s5 + $0x60] sm:$0x7] }
 0x758   : > { %v7948_v31 = vmul.f32 %v7940_v25, %v15783_v52  ;;  %v7949_v41 = vmul.f32 %v7944_v29, %v15784_v22 }
 0x759   : > { %9114 = vmatprep.subr.bf16.mxu0 %v9113_v43 }
 0x75a   : > { %9116 = vmatpush1.bf16.msra.mxu0 %v9115_v5  ;;  %v7929_v13 = vpop.permute.xlu0 %7928 }
 0x75b   : > { %v7935_v14 = vpop.permute.xlu1 %7934 }
 0x75c   : > { %v7941_v48 = vsel %vm15781_vm11, %v7927_v6, %v7935_v14  ;;  %v7945_v56 = vsel %vm15782_vm12, %v7935_v14, %v7927_v6 }
 0x75d   : > { %v7950_v58 = vmul.f32 %v7941_v48, %v15783_v52  ;;  %v7951_v24 = vmul.f32 %v7945_v56, %v15784_v22  ;;  %8524 = vmatmul.mubr.msk.f32.vlgmr.msra.gmra.mrb[24].mxu0 %vm5497_vm1, %v8523_v36 }
 0x75e   : > { %v7937_v63 = vpop.permute.xlu0 %7936  ;;  %8025 = vmatprep.mubr.f32.mxu0 %v15405_v44 }
 0x75f   : > { %v9119_v32 = vpack.c.bf16 %v7950_v58, %v7948_v31  ;;  %v7931_v23 = vpop.permute.xlu1 %7930  ;;  %v9117_v34 = vpack.c.bf16 %v7951_v24, %v7949_v41  ;;  %v7942_v10 = vsel %vm15785_vm14, %v7929_v13, %v7937_v63  ;;  %v7946_v0 = vsel %vm15786_vm15, %v7937_v63, %v7929_v13 }
 0x760   : > { %v7952_v57 = vmul.f32 %v7942_v10, %v15783_v52  ;;  %v7953_v35 = vmul.f32 %v7946_v0, %v15784_v22 }
 0x761   : > { %9118 = vmatprep.subr.bf16.mxu0 %v9117_v34 }
 0x762   : > { %9120 = vmatpush1.bf16.msra.mxu0 %v9119_v32  ;;  %v8035_v55 = vpop.permute.xlu0 %8034 }
 0x763   : > { %v7939_v18 = vpop.permute.xlu1 %7938 }
 0x764   : > { %v7943_v19 = vsel %vm15787_vm0, %v7931_v23, %v7939_v18  ;;  %v7947_v20 = vsel %vm15788_vm2, %v7939_v18, %v7931_v23 }
 0x765   : > { %v7954_v28 = vmul.f32 %v7943_v19, %v15783_v52  ;;  %v7955_v47 = vmul.f32 %v7947_v20, %v15784_v22 }
 0x766   : > { %v8043_v33 = vpop.permute.xlu0 %8042 }
 0x767   : > { %v9123_v11 = vpack.c.bf16 %v7954_v28, %v7952_v57  ;;  %v8037_v12 = vpop.permute.xlu1 %8036  ;;  %v9121_v27 = vpack.c.bf16 %v7955_v47, %v7953_v35  ;;  %v8050_v61 = vsel %vm5230_vm13, %v8035_v55, %v8043_v33  ;;  %v8054_v26 = vsel %vm5230_vm13, %v8043_v33, %v8035_v55 }
 0x768   : > { %v8058_v7 = vmul.f32 %v8050_v61, %v15789_v21  ;;  %v8059_v37 = vmul.f32 %v8054_v26, %v15790_v45 }
 0x769   : > { %9122 = vmatprep.subr.bf16.mxu0 %v9121_v27 }
 0x76a   : > { %9124 = vmatpush1.bf16.msra.mxu0 %v9123_v11  ;;  %v8039_v4 = vpop.permute.xlu0 %8038 }
 0x76b   : > { %v8045_v1 = vpop.permute.xlu1 %8044 }
 0x76c   : > { %v8051_v49 = vsel %vm5230_vm13, %v8037_v12, %v8045_v1  ;;  %v8055_v38 = vsel %vm5230_vm13, %v8045_v1, %v8037_v12 }
 0x76d   : > { %v8060_v59 = vmul.f32 %v8051_v49, %v15789_v21  ;;  %v8061_v51 = vmul.f32 %v8055_v38, %v15790_v45  ;;  %8526 = vmatmul.mubr.msk.f32.vlgmr.msra.gmra.mrb[24].mxu0 %vm5497_vm1, %v8525_v9 }
 0x76e   : > { %8135 = vmatprep.mubr.f32.mxu0 %v15405_v44  ;;  %v8047_v3 = vpop.permute.xlu0 %8046 }
 0x76f   : > { %v9127_v60 = vpack.c.bf16 %v8060_v59, %v8058_v7  ;;  %v8041_v54 = vpop.permute.xlu1 %8040  ;;  %v9125_v30 = vpack.c.bf16 %v8061_v51, %v8059_v37  ;;  %v8052_v50 = vsel %vm5230_vm13, %v8039_v4, %v8047_v3  ;;  %v8056_v39 = vsel %vm5230_vm13, %v8047_v3, %v8039_v4 }
 0x770   : > { %v8062_v42 = vmul.f32 %v8052_v50, %v15789_v21  ;;  %v8063_v17 = vmul.f32 %v8056_v39, %v15790_v45 }
 0x771   : > { %9126 = vmatprep.subr.bf16.mxu0 %v9125_v30 }
 0x772   : > { %9128 = vmatpush1.bf16.msra.mxu0 %v9127_v60 }
 0x773   : > { %v8049_v46 = vpop.permute.xlu1 %8048 }
 0x774   : > { %v8053_v16 = vsel %vm5230_vm13, %v8041_v54, %v8049_v46  ;;  %v8057_v44 = vsel %vm5230_vm13, %v8049_v46, %v8041_v54 }
 0x775   : > { %v8064_v62 = vmul.f32 %v8053_v16, %v15789_v21  ;;  %v8065_v2 = vmul.f32 %v8057_v44, %v15790_v45 }
 0x777   : > { %v9131_v40 = vpack.c.bf16 %v8064_v62, %v8062_v42  ;;  %v9129_v15 = vpack.c.bf16 %v8065_v2, %v8063_v17 }
 0x779   : > { %9130 = vmatprep.subr.bf16.mxu0 %v9129_v15 }
 0x77a   : > { %9132 = vmatpush1.bf16.msra.mxu0 %v9131_v40 }
 0x77d   : > { %8528 = vmatmul.mubr.msk.f32.vlgmr.msra.gmra.mrb[24].mxu0 %vm5497_vm1, %v8527_v8 }
 0x77f   : > { %v8148_v53 = vpop.permute.xlu0 %8147 }
 0x850   : > { %v8137_v5 = vpop.f32.mrb[24].mxu0 }
 0x851   : > { %v8150_v6 = vadd.f32 %v8148_v53, %v8137_v5  ;;  %v8139_v43 = vpop.f32.mrb[25].mxu0 }
 0x852   : > { %v8151_v25 = vadd.f32 %v8148_v53, %v8139_v43 }
 0x854   : > { %v8154_v29 = vcombine.low %v8150_v6, %v8151_v25 }
 0x856   : > { %8156 = vst [vmem:[%s305_s9] sm:$0x77] %v8154_v29 }
 0x857 PF: > { %s18_s27 = sadd.s32 1, %s9475_s27  }
 0x858   : > { %p15_p4 = scmp.ge.s32.totalorder %s18_s27, 4  }
 0x85a   :  { %17 = sbr.rel (!%p15_p4) target bundleno = 1 (0x1), region = 153 }

</bundles_post_ra>
